<compile_context>
chip_gen: v6e
topology: v6e:2x2x1
jax: 0.10.0
libtpu: 0.0.40
codegen_flags: <defaults>
</compile_context>

<pallas_src>
import functools

import jax
import jax.numpy as jnp
import numpy as np
from jax.experimental import pallas as pl
from jax.experimental.pallas import tpu as pltpu


# ----------------------------------------------------------------------------
# Pallas kernel
# ----------------------------------------------------------------------------
def _window_attn_kv_kernel(skip_ref, q_ref, wk_ref, wv_ref, kb_ref, vb_ref,
                           bias_ref, pw_ref, pb_ref, o_ref, *,
                           num_heads, head_dim, scale):
    """One grid step == Bb windows."""
    Bb, N, C = skip_ref.shape
    M = Bb * N

    # (Bb, N, C) -> (Bb*N, C): merging the window dim into the sublane dim is
    # tile-aligned (N == 8), so this reshape is free.
    skip = skip_ref[...].reshape(M, C).astype(jnp.float32)

    # Scale the whole query tensor once (head-major: (H, Bb, N, hd)).
    q_all = q_ref[...].astype(jnp.float32) * scale

    acc = jnp.zeros((M, C), dtype=jnp.float32)

    # Short static head loop; all per-head operands come from leading-axis
    # indexing (no lane-sparse column slices, no concatenate), and every
    # matmul is either a big (M, C) slab dot or batched over the Bb windows.
    for h in range(num_heads):
        k = jnp.dot(skip, wk_ref[h], preferred_element_type=jnp.float32)
        k = (k + kb_ref[h]).reshape(Bb, N, head_dim)            # (Bb, N, hd)
        v = jnp.dot(skip, wv_ref[h], preferred_element_type=jnp.float32)
        v = (v + vb_ref[h]).reshape(Bb, N, head_dim)            # (Bb, N, hd)

        qh = q_all[h]                                           # (Bb, N, hd)

        s = jnp.einsum('bnd,bmd->bnm', qh, k,
                       preferred_element_type=jnp.float32)      # (Bb, N, N)
        s = s + bias_ref[h][None]                               # rel-pos bias

        m = jnp.max(s, axis=-1, keepdims=True)
        e = jnp.exp(s - m)
        z = jnp.sum(e, axis=-1, keepdims=True)
        p = e * pl.reciprocal(z, approx=True)                   # EUP divide

        oh = jnp.einsum('bnm,bmd->bnd', p, v,
                        preferred_element_type=jnp.float32)     # (Bb, N, hd)

        # Per-head block of the output projection; accumulating these equals
        # concat(heads) @ Wproj without any cross-lane concat.
        acc = acc + jnp.dot(oh.reshape(M, head_dim), pw_ref[h],
                            preferred_element_type=jnp.float32)

    x = acc + pb_ref[0]
    # Output stays (Bb, N, C); with C >= 128 (real Swin stages) the store is
    # lane-dense automatically.
    o_ref[...] = x.reshape(Bb, N, C).astype(o_ref.dtype)


def window_attention_kv(skip, x_up, kv_w_t, kv_b, rel_bias, proj_w_t, proj_b,
                        *, num_heads, block_windows=None):
    """skip, x_up: (B, N, C); kv_w_t: (C, 2C); rel_bias: (H, N, N);
       proj_w_t: (C, C)."""
    B, N, C = skip.shape
    head_dim = C // num_heads
    scale = head_dim ** (-0.5)

    # Fold enough windows into one grid step to get >=256 rows for the slab
    # matmuls (MXU-friendly on v6e/v7x, >=128 on v5e); Bb must divide B.
    if block_windows is None:
        block_windows = min(B, max(1, 256 // N))
    Bb = int(block_windows)
    while B % Bb:
        Bb -= 1

    # Head-major parameter / query repacking (plain JAX glue, outside kernel).
    wk = kv_w_t[:, :C].reshape(C, num_heads, head_dim).transpose(1, 0, 2)
    wv = kv_w_t[:, C:].reshape(C, num_heads, head_dim).transpose(1, 0, 2)
    kb = kv_b[:C].reshape(num_heads, 1, head_dim)
    vb = kv_b[C:].reshape(num_heads, 1, head_dim)
    pw = proj_w_t.reshape(num_heads, head_dim, C)
    pb = proj_b.reshape(1, C)
    q_heads = x_up.reshape(B, N, num_heads, head_dim).transpose(2, 0, 1, 3)

    kernel = functools.partial(_window_attn_kv_kernel, num_heads=num_heads,
                               head_dim=head_dim, scale=scale)

    flops = (2 * B * N * C * 2 * C        # kv projection
             + 4 * B * N * N * C          # q@k^T and attn@v over all heads
             + 2 * B * N * C * C)         # output projection
    bytes_accessed = 4 * (3 * B * N * C + 2 * C * C + C * C + 3 * C
                          + num_heads * N * N)
    cost = pl.CostEstimate(flops=flops,
                           transcendentals=B * num_heads * N * N,
                           bytes_accessed=bytes_accessed)

    return pl.pallas_call(
        kernel,
        out_shape=jax.ShapeDtypeStruct((B, N, C), skip.dtype),
        grid_spec=pltpu.PrefetchScalarGridSpec(
            num_scalar_prefetch=0,
            grid=(B // Bb,),
            in_specs=[
                pl.BlockSpec((Bb, N, C), lambda i: (i, 0, 0)),                # skip
                pl.BlockSpec((num_heads, Bb, N, head_dim),
                             lambda i: (0, i, 0, 0)),                          # q (head-major)
                pl.BlockSpec((num_heads, C, head_dim), lambda i: (0, 0, 0)),   # Wk
                pl.BlockSpec((num_heads, C, head_dim), lambda i: (0, 0, 0)),   # Wv
                pl.BlockSpec((num_heads, 1, head_dim), lambda i: (0, 0, 0)),   # k bias
                pl.BlockSpec((num_heads, 1, head_dim), lambda i: (0, 0, 0)),   # v bias
                pl.BlockSpec((num_heads, N, N), lambda i: (0, 0, 0)),          # rel bias
                pl.BlockSpec((num_heads, head_dim, C), lambda i: (0, 0, 0)),   # proj W
                pl.BlockSpec((1, C), lambda i: (0, 0)),                        # proj bias
            ],
            out_specs=pl.BlockSpec((Bb, N, C), lambda i: (i, 0, 0)),
        ),
        compiler_params=pltpu.CompilerParams(
            dimension_semantics=("parallel",),
            vmem_limit_bytes=32 * 1024 * 1024),
        cost_estimate=cost,
    )(skip, q_heads, wk, wv, kb, vb, rel_bias, pw, pb)


# ----------------------------------------------------------------------------
# Relative position index (exactly mirrors the PyTorch __init__ math,
# including the module's 3*window_size[1]-1 multiplier on coord 0)
# ----------------------------------------------------------------------------
def make_relative_position_index(window_size):
    ws0, ws1, ws2 = window_size
    coords = np.stack(np.meshgrid(np.arange(ws0), np.arange(ws1),
                                  np.arange(ws2), indexing="ij"))   # (3,s,h,w)
    coords_flatten = coords.reshape(3, -1)                          # (3, N)
    rel = coords_flatten[:, :, None] - coords_flatten[:, None, :]   # (3, N, N)
    rel = rel.transpose(1, 2, 0).astype(np.int64)                   # (N, N, 3)
    rel[:, :, 0] += ws0 - 1
    rel[:, :, 1] += ws1 - 1
    rel[:, :, 2] += ws2 - 1
    rel[:, :, 0] *= 3 * ws1 - 1   # mirrors the module (uses window_size[1])
    rel[:, :, 1] *= 2 * ws1 - 1
    return rel.sum(-1)                                              # (N, N)


# ----------------------------------------------------------------------------
# Pure-JAX reference (for correctness check)
# ----------------------------------------------------------------------------
def reference(skip, x_up, kv_w_t, kv_b, rel_bias, proj_w_t, proj_b, num_heads):
    B, N, C = skip.shape
    hd = C // num_heads
    scale = hd ** (-0.5)
    kv = skip @ kv_w_t + kv_b                                   # (B, N, 2C)
    kv = kv.reshape(B, N, 2, num_heads, hd).transpose(2, 0, 3, 1, 4)
    k, v = kv[0], kv[1]                                         # (B, H, N, hd)
    q = x_up.reshape(B, N, num_heads, hd).transpose(0, 2, 1, 3) * scale
    attn = jnp.einsum("bhnd,bhmd->bhnm", q, k) + rel_bias[None]
    attn = jax.nn.softmax(attn, axis=-1)
    x = jnp.einsum("bhnm,bhmd->bhnd", attn, v)
    x = x.transpose(0, 2, 1, 3).reshape(B, N, C)
    return x @ proj_w_t + proj_b


# ----------------------------------------------------------------------------
# main
# ----------------------------------------------------------------------------
if __name__ == "__main__":
    dim = 32
    num_heads = 4
    window_size = (2, 2, 2)
    N = window_size[0] * window_size[1] * window_size[2]   # 8
    B = 64   # num_windows * batch

    key = jax.random.PRNGKey(0)
    ks = jax.random.split(key, 8)

    table_len = ((2 * window_size[0] - 1) * (2 * window_size[1] - 1) *
                 (2 * window_size[2] - 1))

    # deterministic synthetic parameters (trunc_normal approximated by normal)
    rel_table = jax.random.normal(ks[0], (table_len, num_heads),
                                  jnp.float32) * 0.02
    kv_w = jax.random.normal(ks[1], (2 * dim, dim), jnp.float32) * 0.05
    kv_b = jax.random.normal(ks[2], (2 * dim,), jnp.float32) * 0.05
    proj_w = jax.random.normal(ks[3], (dim, dim), jnp.float32) * 0.05
    proj_b = jax.random.normal(ks[4], (dim,), jnp.float32) * 0.05

    # inputs
    skip = jax.random.normal(ks[5], (B, N, dim), jnp.float32)
    x_up = jax.random.normal(ks[6], (B, N, dim), jnp.float32)

    # relative position bias: gather + reshape (glue, done in plain JAX)
    rpi = jnp.asarray(make_relative_position_index(window_size),
                      dtype=jnp.int32)                              # (N, N)
    rel_bias = rel_table[rpi.reshape(-1)].reshape(N, N, num_heads)
    rel_bias = jnp.transpose(rel_bias, (2, 0, 1)).astype(jnp.float32)  # (H,N,N)

    # nn.Linear computes x @ W^T + b; pre-transpose the weights.
    kv_w_t = kv_w.T          # (dim, 2*dim)
    proj_w_t = proj_w.T      # (dim, dim)

    out = window_attention_kv(skip, x_up, kv_w_t, kv_b, rel_bias, proj_w_t,
                              proj_b, num_heads=num_heads)
    out = jax.block_until_ready(out)

    ref = reference(skip, x_up, kv_w_t, kv_b, rel_bias, proj_w_t, proj_b,
                    num_heads)
    # slightly relaxed tolerance: softmax denominator uses the EUP
    # approximate reciprocal (pl.reciprocal(approx=True)).
    np.testing.assert_allclose(np.asarray(out), np.asarray(ref),
                               rtol=1e-2, atol=2e-3)

    # TODO(synk): mask / pos_embed / dropout paths are no-ops here
    # (mask=None, pos_embed=None, p=0.0 eval) and are not implemented.
    print("KERNEL_OK")
</pallas_src>

<mosaic_0001>
module attributes {stable_mosaic.version = 11 : i64} {
  func.func @_window_attn_kv_kernel(%arg0: i32, %arg1: memref<32x8x32xf32, #tpu.memory_space<vmem>>, %arg2: memref<4x32x8x8xf32, #tpu.memory_space<vmem>>, %arg3: memref<4x32x8xf32, #tpu.memory_space<vmem>>, %arg4: memref<4x32x8xf32, #tpu.memory_space<vmem>>, %arg5: memref<4x1x8xf32, #tpu.memory_space<vmem>>, %arg6: memref<4x1x8xf32, #tpu.memory_space<vmem>>, %arg7: memref<4x8x8xf32, #tpu.memory_space<vmem>>, %arg8: memref<4x8x32xf32, #tpu.memory_space<vmem>>, %arg9: memref<1x32xf32, #tpu.memory_space<vmem>>, %arg10: memref<32x8x32xf32, #tpu.memory_space<vmem>>) attributes {dimension_semantics = [#tpu.dimension_semantics<parallel>], iteration_bounds = array<i64: 2>, scalar_prefetch = 0 : i64, scratch_operands = 0 : i64, tpu.core_type = #tpu.core_type<tc>, window_params = [{transform_indices = @transform_0, window_bounds = array<i64: 32, 8, 32>}, {transform_indices = @transform_1, window_bounds = array<i64: 4, 32, 8, 8>}, {pipeline_mode = #tpu.pipeline_mode<synchronous>, transform_indices = @transform_2, window_bounds = array<i64: 4, 32, 8>}, {pipeline_mode = #tpu.pipeline_mode<synchronous>, transform_indices = @transform_3, window_bounds = array<i64: 4, 32, 8>}, {pipeline_mode = #tpu.pipeline_mode<synchronous>, transform_indices = @transform_4, window_bounds = array<i64: 4, 1, 8>}, {pipeline_mode = #tpu.pipeline_mode<synchronous>, transform_indices = @transform_5, window_bounds = array<i64: 4, 1, 8>}, {pipeline_mode = #tpu.pipeline_mode<synchronous>, transform_indices = @transform_6, window_bounds = array<i64: 4, 8, 8>}, {pipeline_mode = #tpu.pipeline_mode<synchronous>, transform_indices = @transform_7, window_bounds = array<i64: 4, 8, 32>}, {pipeline_mode = #tpu.pipeline_mode<synchronous>, transform_indices = @transform_8, window_bounds = array<i64: 1, 32>}, {transform_indices = @transform_9, window_bounds = array<i64: 32, 8, 32>}]} {
    %c0 = arith.constant 0 : index
    %c0_0 = arith.constant 0 : index
    %c0_1 = arith.constant 0 : index
    %0 = vector.load %arg1[%c0, %c0_0, %c0_1] : memref<32x8x32xf32, #tpu.memory_space<vmem>>, vector<32x8x32xf32>
    %1 = vector.shape_cast %0 : vector<32x8x32xf32> to vector<256x32xf32>
    %c0_2 = arith.constant 0 : index
    %c0_3 = arith.constant 0 : index
    %c0_4 = arith.constant 0 : index
    %c0_5 = arith.constant 0 : index
    %2 = vector.load %arg2[%c0_2, %c0_3, %c0_4, %c0_5] : memref<4x32x8x8xf32, #tpu.memory_space<vmem>>, vector<4x32x8x8xf32>
    %cst = arith.constant 0.353553385 : f32
    %3 = vector.broadcast %cst : f32 to vector<4x32x8x8xf32>
    %4 = arith.mulf %2, %3 : vector<4x32x8x8xf32>
    %cst_6 = arith.constant 0.000000e+00 : f32
    %5 = vector.broadcast %cst_6 : f32 to vector<256x32xf32>
    %c0_7 = arith.constant 0 : index
    %c0_8 = arith.constant 0 : index
    %c0_9 = arith.constant 0 : index
    %6 = vector.load %arg3[%c0_7, %c0_8, %c0_9] : memref<4x32x8xf32, #tpu.memory_space<vmem>>, vector<1x32x8xf32>
    %7 = vector.shape_cast %6 : vector<1x32x8xf32> to vector<32x8xf32>
    %cst_10 = arith.constant dense<0.000000e+00> : vector<256x8xf32>
    %8 = tpu.matmul %1, %7, %cst_10 {dimension_numbers = #tpu.dot_dimension_numbers<[1], [0], [0], [1], [0, 0, 1, 1], [], []>} : vector<256x32xf32>, vector<32x8xf32>, vector<256x8xf32> -> vector<256x8xf32>
    %c0_11 = arith.constant 0 : index
    %c0_12 = arith.constant 0 : index
    %c0_13 = arith.constant 0 : index
    %9 = vector.load %arg5[%c0_11, %c0_12, %c0_13] : memref<4x1x8xf32, #tpu.memory_space<vmem>>, vector<1x1x8xf32>
    %10 = vector.shape_cast %9 : vector<1x1x8xf32> to vector<1x8xf32>
    %11 = vector.broadcast %10 : vector<1x8xf32> to vector<256x8xf32>
    %12 = arith.addf %8, %11 : vector<256x8xf32>
    %13 = vector.shape_cast %12 : vector<256x8xf32> to vector<32x8x8xf32>
    %c0_14 = arith.constant 0 : index
    %c0_15 = arith.constant 0 : index
    %c0_16 = arith.constant 0 : index
    %14 = vector.load %arg4[%c0_14, %c0_15, %c0_16] : memref<4x32x8xf32, #tpu.memory_space<vmem>>, vector<1x32x8xf32>
    %15 = vector.shape_cast %14 : vector<1x32x8xf32> to vector<32x8xf32>
    %cst_17 = arith.constant dense<0.000000e+00> : vector<256x8xf32>
    %16 = tpu.matmul %1, %15, %cst_17 {dimension_numbers = #tpu.dot_dimension_numbers<[1], [0], [0], [1], [0, 0, 1, 1], [], []>} : vector<256x32xf32>, vector<32x8xf32>, vector<256x8xf32> -> vector<256x8xf32>
    %c0_18 = arith.constant 0 : index
    %c0_19 = arith.constant 0 : index
    %c0_20 = arith.constant 0 : index
    %17 = vector.load %arg6[%c0_18, %c0_19, %c0_20] : memref<4x1x8xf32, #tpu.memory_space<vmem>>, vector<1x1x8xf32>
    %18 = vector.shape_cast %17 : vector<1x1x8xf32> to vector<1x8xf32>
    %19 = vector.broadcast %18 : vector<1x8xf32> to vector<256x8xf32>
    %20 = arith.addf %16, %19 : vector<256x8xf32>
    %21 = vector.shape_cast %20 : vector<256x8xf32> to vector<32x8x8xf32>
    %22 = vector.extract_strided_slice %4 {offsets = [0, 0, 0, 0], sizes = [1, 32, 8, 8], strides = [1, 1, 1, 1]} : vector<4x32x8x8xf32> to vector<1x32x8x8xf32>
    %23 = vector.shape_cast %22 : vector<1x32x8x8xf32> to vector<32x8x8xf32>
    "tpu.trace_start"() <{level = 10 : i32, message = "bnd,bmd->bnm"}> : () -> ()
    %cst_21 = arith.constant dense<0.000000e+00> : vector<32x8x8xf32>
    %24 = tpu.matmul %23, %13, %cst_21 {dimension_numbers = #tpu.dot_dimension_numbers<[2], [2], [1], [1], [0, 0, 0, 1, 1, 1], [0], [0]>} : vector<32x8x8xf32>, vector<32x8x8xf32>, vector<32x8x8xf32> -> vector<32x8x8xf32>
    "tpu.trace_stop"() : () -> ()
    %c0_22 = arith.constant 0 : index
    %c0_23 = arith.constant 0 : index
    %c0_24 = arith.constant 0 : index
    %25 = vector.load %arg7[%c0_22, %c0_23, %c0_24] : memref<4x8x8xf32, #tpu.memory_space<vmem>>, vector<1x8x8xf32>
    %26 = vector.shape_cast %25 : vector<1x8x8xf32> to vector<8x8xf32>
    %27 = vector.shape_cast %26 : vector<8x8xf32> to vector<1x8x8xf32>
    %28 = vector.broadcast %27 : vector<1x8x8xf32> to vector<32x8x8xf32>
    %29 = arith.addf %24, %28 : vector<32x8x8xf32>
    %cst_25 = arith.constant dense<0xFF800000> : vector<32x8xf32>
    %30 = vector.multi_reduction <maximumf>, %29, %cst_25 [2] : vector<32x8x8xf32> to vector<32x8xf32>
    %31 = vector.shape_cast %30 : vector<32x8xf32> to vector<32x8x1xf32>
    %32 = vector.broadcast %31 : vector<32x8x1xf32> to vector<32x8x8xf32>
    %33 = arith.subf %29, %32 : vector<32x8x8xf32>
    %34 = math.exp %33 : vector<32x8x8xf32>
    %cst_26 = arith.constant dense<0.000000e+00> : vector<32x8xf32>
    %35 = vector.multi_reduction <add>, %34, %cst_26 [2] : vector<32x8x8xf32> to vector<32x8xf32>
    %36 = vector.shape_cast %35 : vector<32x8xf32> to vector<32x8x1xf32>
    %37 = tpu.reciprocal %36 {approx = true} : vector<32x8x1xf32> -> vector<32x8x1xf32>
    %38 = vector.broadcast %37 : vector<32x8x1xf32> to vector<32x8x8xf32>
    %39 = arith.mulf %34, %38 : vector<32x8x8xf32>
    "tpu.trace_start"() <{level = 10 : i32, message = "bnm,bmd->bnd"}> : () -> ()
    %cst_27 = arith.constant dense<0.000000e+00> : vector<32x8x8xf32>
    %40 = tpu.matmul %39, %21, %cst_27 {dimension_numbers = #tpu.dot_dimension_numbers<[2], [1], [1], [2], [0, 0, 0, 1, 1, 2], [0], [0]>} : vector<32x8x8xf32>, vector<32x8x8xf32>, vector<32x8x8xf32> -> vector<32x8x8xf32>
    "tpu.trace_stop"() : () -> ()
    %41 = vector.shape_cast %40 : vector<32x8x8xf32> to vector<256x8xf32>
    %c0_28 = arith.constant 0 : index
    %c0_29 = arith.constant 0 : index
    %c0_30 = arith.constant 0 : index
    %42 = vector.load %arg8[%c0_28, %c0_29, %c0_30] : memref<4x8x32xf32, #tpu.memory_space<vmem>>, vector<1x8x32xf32>
    %43 = vector.shape_cast %42 : vector<1x8x32xf32> to vector<8x32xf32>
    %cst_31 = arith.constant dense<0.000000e+00> : vector<256x32xf32>
    %44 = tpu.matmul %41, %43, %cst_31 {dimension_numbers = #tpu.dot_dimension_numbers<[1], [0], [0], [1], [0, 0, 1, 1], [], []>} : vector<256x8xf32>, vector<8x32xf32>, vector<256x32xf32> -> vector<256x32xf32>
    %45 = arith.addf %5, %44 : vector<256x32xf32>
    %c1 = arith.constant 1 : index
    %c0_32 = arith.constant 0 : index
    %c0_33 = arith.constant 0 : index
    %46 = vector.load %arg3[%c1, %c0_32, %c0_33] : memref<4x32x8xf32, #tpu.memory_space<vmem>>, vector<1x32x8xf32>
    %47 = vector.shape_cast %46 : vector<1x32x8xf32> to vector<32x8xf32>
    %cst_34 = arith.constant dense<0.000000e+00> : vector<256x8xf32>
    %48 = tpu.matmul %1, %47, %cst_34 {dimension_numbers = #tpu.dot_dimension_numbers<[1], [0], [0], [1], [0, 0, 1, 1], [], []>} : vector<256x32xf32>, vector<32x8xf32>, vector<256x8xf32> -> vector<256x8xf32>
    %c1_35 = arith.constant 1 : index
    %c0_36 = arith.constant 0 : index
    %c0_37 = arith.constant 0 : index
    %49 = vector.load %arg5[%c1_35, %c0_36, %c0_37] : memref<4x1x8xf32, #tpu.memory_space<vmem>>, vector<1x1x8xf32>
    %50 = vector.shape_cast %49 : vector<1x1x8xf32> to vector<1x8xf32>
    %51 = vector.broadcast %50 : vector<1x8xf32> to vector<256x8xf32>
    %52 = arith.addf %48, %51 : vector<256x8xf32>
    %53 = vector.shape_cast %52 : vector<256x8xf32> to vector<32x8x8xf32>
    %c1_38 = arith.constant 1 : index
    %c0_39 = arith.constant 0 : index
    %c0_40 = arith.constant 0 : index
    %54 = vector.load %arg4[%c1_38, %c0_39, %c0_40] : memref<4x32x8xf32, #tpu.memory_space<vmem>>, vector<1x32x8xf32>
    %55 = vector.shape_cast %54 : vector<1x32x8xf32> to vector<32x8xf32>
    %cst_41 = arith.constant dense<0.000000e+00> : vector<256x8xf32>
    %56 = tpu.matmul %1, %55, %cst_41 {dimension_numbers = #tpu.dot_dimension_numbers<[1], [0], [0], [1], [0, 0, 1, 1], [], []>} : vector<256x32xf32>, vector<32x8xf32>, vector<256x8xf32> -> vector<256x8xf32>
    %c1_42 = arith.constant 1 : index
    %c0_43 = arith.constant 0 : index
    %c0_44 = arith.constant 0 : index
    %57 = vector.load %arg6[%c1_42, %c0_43, %c0_44] : memref<4x1x8xf32, #tpu.memory_space<vmem>>, vector<1x1x8xf32>
    %58 = vector.shape_cast %57 : vector<1x1x8xf32> to vector<1x8xf32>
    %59 = vector.broadcast %58 : vector<1x8xf32> to vector<256x8xf32>
    %60 = arith.addf %56, %59 : vector<256x8xf32>
    %61 = vector.shape_cast %60 : vector<256x8xf32> to vector<32x8x8xf32>
    %62 = vector.extract_strided_slice %4 {offsets = [1, 0, 0, 0], sizes = [1, 32, 8, 8], strides = [1, 1, 1, 1]} : vector<4x32x8x8xf32> to vector<1x32x8x8xf32>
    %63 = vector.shape_cast %62 : vector<1x32x8x8xf32> to vector<32x8x8xf32>
    "tpu.trace_start"() <{level = 10 : i32, message = "bnd,bmd->bnm"}> : () -> ()
    %cst_45 = arith.constant dense<0.000000e+00> : vector<32x8x8xf32>
    %64 = tpu.matmul %63, %53, %cst_45 {dimension_numbers = #tpu.dot_dimension_numbers<[2], [2], [1], [1], [0, 0, 0, 1, 1, 1], [0], [0]>} : vector<32x8x8xf32>, vector<32x8x8xf32>, vector<32x8x8xf32> -> vector<32x8x8xf32>
    "tpu.trace_stop"() : () -> ()
    %c1_46 = arith.constant 1 : index
    %c0_47 = arith.constant 0 : index
    %c0_48 = arith.constant 0 : index
    %65 = vector.load %arg7[%c1_46, %c0_47, %c0_48] : memref<4x8x8xf32, #tpu.memory_space<vmem>>, vector<1x8x8xf32>
    %66 = vector.shape_cast %65 : vector<1x8x8xf32> to vector<8x8xf32>
    %67 = vector.shape_cast %66 : vector<8x8xf32> to vector<1x8x8xf32>
    %68 = vector.broadcast %67 : vector<1x8x8xf32> to vector<32x8x8xf32>
    %69 = arith.addf %64, %68 : vector<32x8x8xf32>
    %cst_49 = arith.constant dense<0xFF800000> : vector<32x8xf32>
    %70 = vector.multi_reduction <maximumf>, %69, %cst_49 [2] : vector<32x8x8xf32> to vector<32x8xf32>
    %71 = vector.shape_cast %70 : vector<32x8xf32> to vector<32x8x1xf32>
    %72 = vector.broadcast %71 : vector<32x8x1xf32> to vector<32x8x8xf32>
    %73 = arith.subf %69, %72 : vector<32x8x8xf32>
    %74 = math.exp %73 : vector<32x8x8xf32>
    %cst_50 = arith.constant dense<0.000000e+00> : vector<32x8xf32>
    %75 = vector.multi_reduction <add>, %74, %cst_50 [2] : vector<32x8x8xf32> to vector<32x8xf32>
    %76 = vector.shape_cast %75 : vector<32x8xf32> to vector<32x8x1xf32>
    %77 = tpu.reciprocal %76 {approx = true} : vector<32x8x1xf32> -> vector<32x8x1xf32>
    %78 = vector.broadcast %77 : vector<32x8x1xf32> to vector<32x8x8xf32>
    %79 = arith.mulf %74, %78 : vector<32x8x8xf32>
    "tpu.trace_start"() <{level = 10 : i32, message = "bnm,bmd->bnd"}> : () -> ()
    %cst_51 = arith.constant dense<0.000000e+00> : vector<32x8x8xf32>
    %80 = tpu.matmul %79, %61, %cst_51 {dimension_numbers = #tpu.dot_dimension_numbers<[2], [1], [1], [2], [0, 0, 0, 1, 1, 2], [0], [0]>} : vector<32x8x8xf32>, vector<32x8x8xf32>, vector<32x8x8xf32> -> vector<32x8x8xf32>
    "tpu.trace_stop"() : () -> ()
    %81 = vector.shape_cast %80 : vector<32x8x8xf32> to vector<256x8xf32>
    %c1_52 = arith.constant 1 : index
    %c0_53 = arith.constant 0 : index
    %c0_54 = arith.constant 0 : index
    %82 = vector.load %arg8[%c1_52, %c0_53, %c0_54] : memref<4x8x32xf32, #tpu.memory_space<vmem>>, vector<1x8x32xf32>
    %83 = vector.shape_cast %82 : vector<1x8x32xf32> to vector<8x32xf32>
    %cst_55 = arith.constant dense<0.000000e+00> : vector<256x32xf32>
    %84 = tpu.matmul %81, %83, %cst_55 {dimension_numbers = #tpu.dot_dimension_numbers<[1], [0], [0], [1], [0, 0, 1, 1], [], []>} : vector<256x8xf32>, vector<8x32xf32>, vector<256x32xf32> -> vector<256x32xf32>
    %85 = arith.addf %45, %84 : vector<256x32xf32>
    %c2 = arith.constant 2 : index
    %c0_56 = arith.constant 0 : index
    %c0_57 = arith.constant 0 : index
    %86 = vector.load %arg3[%c2, %c0_56, %c0_57] : memref<4x32x8xf32, #tpu.memory_space<vmem>>, vector<1x32x8xf32>
    %87 = vector.shape_cast %86 : vector<1x32x8xf32> to vector<32x8xf32>
    %cst_58 = arith.constant dense<0.000000e+00> : vector<256x8xf32>
    %88 = tpu.matmul %1, %87, %cst_58 {dimension_numbers = #tpu.dot_dimension_numbers<[1], [0], [0], [1], [0, 0, 1, 1], [], []>} : vector<256x32xf32>, vector<32x8xf32>, vector<256x8xf32> -> vector<256x8xf32>
    %c2_59 = arith.constant 2 : index
    %c0_60 = arith.constant 0 : index
    %c0_61 = arith.constant 0 : index
    %89 = vector.load %arg5[%c2_59, %c0_60, %c0_61] : memref<4x1x8xf32, #tpu.memory_space<vmem>>, vector<1x1x8xf32>
    %90 = vector.shape_cast %89 : vector<1x1x8xf32> to vector<1x8xf32>
    %91 = vector.broadcast %90 : vector<1x8xf32> to vector<256x8xf32>
    %92 = arith.addf %88, %91 : vector<256x8xf32>
    %93 = vector.shape_cast %92 : vector<256x8xf32> to vector<32x8x8xf32>
    %c2_62 = arith.constant 2 : index
    %c0_63 = arith.constant 0 : index
    %c0_64 = arith.constant 0 : index
    %94 = vector.load %arg4[%c2_62, %c0_63, %c0_64] : memref<4x32x8xf32, #tpu.memory_space<vmem>>, vector<1x32x8xf32>
    %95 = vector.shape_cast %94 : vector<1x32x8xf32> to vector<32x8xf32>
    %cst_65 = arith.constant dense<0.000000e+00> : vector<256x8xf32>
    %96 = tpu.matmul %1, %95, %cst_65 {dimension_numbers = #tpu.dot_dimension_numbers<[1], [0], [0], [1], [0, 0, 1, 1], [], []>} : vector<256x32xf32>, vector<32x8xf32>, vector<256x8xf32> -> vector<256x8xf32>
    %c2_66 = arith.constant 2 : index
    %c0_67 = arith.constant 0 : index
    %c0_68 = arith.constant 0 : index
    %97 = vector.load %arg6[%c2_66, %c0_67, %c0_68] : memref<4x1x8xf32, #tpu.memory_space<vmem>>, vector<1x1x8xf32>
    %98 = vector.shape_cast %97 : vector<1x1x8xf32> to vector<1x8xf32>
    %99 = vector.broadcast %98 : vector<1x8xf32> to vector<256x8xf32>
    %100 = arith.addf %96, %99 : vector<256x8xf32>
    %101 = vector.shape_cast %100 : vector<256x8xf32> to vector<32x8x8xf32>
    %102 = vector.extract_strided_slice %4 {offsets = [2, 0, 0, 0], sizes = [1, 32, 8, 8], strides = [1, 1, 1, 1]} : vector<4x32x8x8xf32> to vector<1x32x8x8xf32>
    %103 = vector.shape_cast %102 : vector<1x32x8x8xf32> to vector<32x8x8xf32>
    "tpu.trace_start"() <{level = 10 : i32, message = "bnd,bmd->bnm"}> : () -> ()
    %cst_69 = arith.constant dense<0.000000e+00> : vector<32x8x8xf32>
    %104 = tpu.matmul %103, %93, %cst_69 {dimension_numbers = #tpu.dot_dimension_numbers<[2], [2], [1], [1], [0, 0, 0, 1, 1, 1], [0], [0]>} : vector<32x8x8xf32>, vector<32x8x8xf32>, vector<32x8x8xf32> -> vector<32x8x8xf32>
    "tpu.trace_stop"() : () -> ()
    %c2_70 = arith.constant 2 : index
    %c0_71 = arith.constant 0 : index
    %c0_72 = arith.constant 0 : index
    %105 = vector.load %arg7[%c2_70, %c0_71, %c0_72] : memref<4x8x8xf32, #tpu.memory_space<vmem>>, vector<1x8x8xf32>
    %106 = vector.shape_cast %105 : vector<1x8x8xf32> to vector<8x8xf32>
    %107 = vector.shape_cast %106 : vector<8x8xf32> to vector<1x8x8xf32>
    %108 = vector.broadcast %107 : vector<1x8x8xf32> to vector<32x8x8xf32>
    %109 = arith.addf %104, %108 : vector<32x8x8xf32>
    %cst_73 = arith.constant dense<0xFF800000> : vector<32x8xf32>
    %110 = vector.multi_reduction <maximumf>, %109, %cst_73 [2] : vector<32x8x8xf32> to vector<32x8xf32>
    %111 = vector.shape_cast %110 : vector<32x8xf32> to vector<32x8x1xf32>
    %112 = vector.broadcast %111 : vector<32x8x1xf32> to vector<32x8x8xf32>
    %113 = arith.subf %109, %112 : vector<32x8x8xf32>
    %114 = math.exp %113 : vector<32x8x8xf32>
    %cst_74 = arith.constant dense<0.000000e+00> : vector<32x8xf32>
    %115 = vector.multi_reduction <add>, %114, %cst_74 [2] : vector<32x8x8xf32> to vector<32x8xf32>
    %116 = vector.shape_cast %115 : vector<32x8xf32> to vector<32x8x1xf32>
    %117 = tpu.reciprocal %116 {approx = true} : vector<32x8x1xf32> -> vector<32x8x1xf32>
    %118 = vector.broadcast %117 : vector<32x8x1xf32> to vector<32x8x8xf32>
    %119 = arith.mulf %114, %118 : vector<32x8x8xf32>
    "tpu.trace_start"() <{level = 10 : i32, message = "bnm,bmd->bnd"}> : () -> ()
    %cst_75 = arith.constant dense<0.000000e+00> : vector<32x8x8xf32>
    %120 = tpu.matmul %119, %101, %cst_75 {dimension_numbers = #tpu.dot_dimension_numbers<[2], [1], [1], [2], [0, 0, 0, 1, 1, 2], [0], [0]>} : vector<32x8x8xf32>, vector<32x8x8xf32>, vector<32x8x8xf32> -> vector<32x8x8xf32>
    "tpu.trace_stop"() : () -> ()
    %121 = vector.shape_cast %120 : vector<32x8x8xf32> to vector<256x8xf32>
    %c2_76 = arith.constant 2 : index
    %c0_77 = arith.constant 0 : index
    %c0_78 = arith.constant 0 : index
    %122 = vector.load %arg8[%c2_76, %c0_77, %c0_78] : memref<4x8x32xf32, #tpu.memory_space<vmem>>, vector<1x8x32xf32>
    %123 = vector.shape_cast %122 : vector<1x8x32xf32> to vector<8x32xf32>
    %cst_79 = arith.constant dense<0.000000e+00> : vector<256x32xf32>
    %124 = tpu.matmul %121, %123, %cst_79 {dimension_numbers = #tpu.dot_dimension_numbers<[1], [0], [0], [1], [0, 0, 1, 1], [], []>} : vector<256x8xf32>, vector<8x32xf32>, vector<256x32xf32> -> vector<256x32xf32>
    %125 = arith.addf %85, %124 : vector<256x32xf32>
    %c3 = arith.constant 3 : index
    %c0_80 = arith.constant 0 : index
    %c0_81 = arith.constant 0 : index
    %126 = vector.load %arg3[%c3, %c0_80, %c0_81] : memref<4x32x8xf32, #tpu.memory_space<vmem>>, vector<1x32x8xf32>
    %127 = vector.shape_cast %126 : vector<1x32x8xf32> to vector<32x8xf32>
    %cst_82 = arith.constant dense<0.000000e+00> : vector<256x8xf32>
    %128 = tpu.matmul %1, %127, %cst_82 {dimension_numbers = #tpu.dot_dimension_numbers<[1], [0], [0], [1], [0, 0, 1, 1], [], []>} : vector<256x32xf32>, vector<32x8xf32>, vector<256x8xf32> -> vector<256x8xf32>
    %c3_83 = arith.constant 3 : index
    %c0_84 = arith.constant 0 : index
    %c0_85 = arith.constant 0 : index
    %129 = vector.load %arg5[%c3_83, %c0_84, %c0_85] : memref<4x1x8xf32, #tpu.memory_space<vmem>>, vector<1x1x8xf32>
    %130 = vector.shape_cast %129 : vector<1x1x8xf32> to vector<1x8xf32>
    %131 = vector.broadcast %130 : vector<1x8xf32> to vector<256x8xf32>
    %132 = arith.addf %128, %131 : vector<256x8xf32>
    %133 = vector.shape_cast %132 : vector<256x8xf32> to vector<32x8x8xf32>
    %c3_86 = arith.constant 3 : index
    %c0_87 = arith.constant 0 : index
    %c0_88 = arith.constant 0 : index
    %134 = vector.load %arg4[%c3_86, %c0_87, %c0_88] : memref<4x32x8xf32, #tpu.memory_space<vmem>>, vector<1x32x8xf32>
    %135 = vector.shape_cast %134 : vector<1x32x8xf32> to vector<32x8xf32>
    %cst_89 = arith.constant dense<0.000000e+00> : vector<256x8xf32>
    %136 = tpu.matmul %1, %135, %cst_89 {dimension_numbers = #tpu.dot_dimension_numbers<[1], [0], [0], [1], [0, 0, 1, 1], [], []>} : vector<256x32xf32>, vector<32x8xf32>, vector<256x8xf32> -> vector<256x8xf32>
    %c3_90 = arith.constant 3 : index
    %c0_91 = arith.constant 0 : index
    %c0_92 = arith.constant 0 : index
    %137 = vector.load %arg6[%c3_90, %c0_91, %c0_92] : memref<4x1x8xf32, #tpu.memory_space<vmem>>, vector<1x1x8xf32>
    %138 = vector.shape_cast %137 : vector<1x1x8xf32> to vector<1x8xf32>
    %139 = vector.broadcast %138 : vector<1x8xf32> to vector<256x8xf32>
    %140 = arith.addf %136, %139 : vector<256x8xf32>
    %141 = vector.shape_cast %140 : vector<256x8xf32> to vector<32x8x8xf32>
    %142 = vector.extract_strided_slice %4 {offsets = [3, 0, 0, 0], sizes = [1, 32, 8, 8], strides = [1, 1, 1, 1]} : vector<4x32x8x8xf32> to vector<1x32x8x8xf32>
    %143 = vector.shape_cast %142 : vector<1x32x8x8xf32> to vector<32x8x8xf32>
    "tpu.trace_start"() <{level = 10 : i32, message = "bnd,bmd->bnm"}> : () -> ()
    %cst_93 = arith.constant dense<0.000000e+00> : vector<32x8x8xf32>
    %144 = tpu.matmul %143, %133, %cst_93 {dimension_numbers = #tpu.dot_dimension_numbers<[2], [2], [1], [1], [0, 0, 0, 1, 1, 1], [0], [0]>} : vector<32x8x8xf32>, vector<32x8x8xf32>, vector<32x8x8xf32> -> vector<32x8x8xf32>
    "tpu.trace_stop"() : () -> ()
    %c3_94 = arith.constant 3 : index
    %c0_95 = arith.constant 0 : index
    %c0_96 = arith.constant 0 : index
    %145 = vector.load %arg7[%c3_94, %c0_95, %c0_96] : memref<4x8x8xf32, #tpu.memory_space<vmem>>, vector<1x8x8xf32>
    %146 = vector.shape_cast %145 : vector<1x8x8xf32> to vector<8x8xf32>
    %147 = vector.shape_cast %146 : vector<8x8xf32> to vector<1x8x8xf32>
    %148 = vector.broadcast %147 : vector<1x8x8xf32> to vector<32x8x8xf32>
    %149 = arith.addf %144, %148 : vector<32x8x8xf32>
    %cst_97 = arith.constant dense<0xFF800000> : vector<32x8xf32>
    %150 = vector.multi_reduction <maximumf>, %149, %cst_97 [2] : vector<32x8x8xf32> to vector<32x8xf32>
    %151 = vector.shape_cast %150 : vector<32x8xf32> to vector<32x8x1xf32>
    %152 = vector.broadcast %151 : vector<32x8x1xf32> to vector<32x8x8xf32>
    %153 = arith.subf %149, %152 : vector<32x8x8xf32>
    %154 = math.exp %153 : vector<32x8x8xf32>
    %cst_98 = arith.constant dense<0.000000e+00> : vector<32x8xf32>
    %155 = vector.multi_reduction <add>, %154, %cst_98 [2] : vector<32x8x8xf32> to vector<32x8xf32>
    %156 = vector.shape_cast %155 : vector<32x8xf32> to vector<32x8x1xf32>
    %157 = tpu.reciprocal %156 {approx = true} : vector<32x8x1xf32> -> vector<32x8x1xf32>
    %158 = vector.broadcast %157 : vector<32x8x1xf32> to vector<32x8x8xf32>
    %159 = arith.mulf %154, %158 : vector<32x8x8xf32>
    "tpu.trace_start"() <{level = 10 : i32, message = "bnm,bmd->bnd"}> : () -> ()
    %cst_99 = arith.constant dense<0.000000e+00> : vector<32x8x8xf32>
    %160 = tpu.matmul %159, %141, %cst_99 {dimension_numbers = #tpu.dot_dimension_numbers<[2], [1], [1], [2], [0, 0, 0, 1, 1, 2], [0], [0]>} : vector<32x8x8xf32>, vector<32x8x8xf32>, vector<32x8x8xf32> -> vector<32x8x8xf32>
    "tpu.trace_stop"() : () -> ()
    %161 = vector.shape_cast %160 : vector<32x8x8xf32> to vector<256x8xf32>
    %c3_100 = arith.constant 3 : index
    %c0_101 = arith.constant 0 : index
    %c0_102 = arith.constant 0 : index
    %162 = vector.load %arg8[%c3_100, %c0_101, %c0_102] : memref<4x8x32xf32, #tpu.memory_space<vmem>>, vector<1x8x32xf32>
    %163 = vector.shape_cast %162 : vector<1x8x32xf32> to vector<8x32xf32>
    %cst_103 = arith.constant dense<0.000000e+00> : vector<256x32xf32>
    %164 = tpu.matmul %161, %163, %cst_103 {dimension_numbers = #tpu.dot_dimension_numbers<[1], [0], [0], [1], [0, 0, 1, 1], [], []>} : vector<256x8xf32>, vector<8x32xf32>, vector<256x32xf32> -> vector<256x32xf32>
    %165 = arith.addf %125, %164 : vector<256x32xf32>
    %c0_104 = arith.constant 0 : index
    %c0_105 = arith.constant 0 : index
    %166 = vector.load %arg9[%c0_104, %c0_105] : memref<1x32xf32, #tpu.memory_space<vmem>>, vector<1x32xf32>
    %167 = vector.shape_cast %166 : vector<1x32xf32> to vector<32xf32>
    %168 = vector.shape_cast %167 : vector<32xf32> to vector<1x32xf32>
    %169 = vector.broadcast %168 : vector<1x32xf32> to vector<256x32xf32>
    %170 = arith.addf %165, %169 : vector<256x32xf32>
    %171 = vector.shape_cast %170 : vector<256x32xf32> to vector<32x8x32xf32>
    %c0_106 = arith.constant 0 : index
    %c0_107 = arith.constant 0 : index
    %c0_108 = arith.constant 0 : index
    %172 = vector.load %arg10[%c0_106, %c0_107, %c0_108] : memref<32x8x32xf32, #tpu.memory_space<vmem>>, vector<32x8x32xf32>
    tpu.vector_store %arg10[%c0_106, %c0_107, %c0_108], %171 {strides = array<i32>} : memref<32x8x32xf32, #tpu.memory_space<vmem>>, vector<32x8x32xf32>,
    return
  }
  func.func @transform_0(%arg0: i32) -> (i32, i32, i32) {
    %c0_i32 = arith.constant 0 : i32
    %c0_i32_0 = arith.constant 0 : i32
    %c0_i32_1 = arith.constant 0 : i32
    return %arg0, %c0_i32, %c0_i32_0 : i32, i32, i32
  }
  func.func @transform_1(%arg0: i32) -> (i32, i32, i32, i32) {
    %c0_i32 = arith.constant 0 : i32
    %c0_i32_0 = arith.constant 0 : i32
    %c0_i32_1 = arith.constant 0 : i32
    %c0_i32_2 = arith.constant 0 : i32
    return %c0_i32, %arg0, %c0_i32_0, %c0_i32_1 : i32, i32, i32, i32
  }
  func.func @transform_2(%arg0: i32) -> (i32, i32, i32) {
    %c0_i32 = arith.constant 0 : i32
    %c0_i32_0 = arith.constant 0 : i32
    %c0_i32_1 = arith.constant 0 : i32
    %c0_i32_2 = arith.constant 0 : i32
    return %c0_i32, %c0_i32_0, %c0_i32_1 : i32, i32, i32
  }
  func.func @transform_3(%arg0: i32) -> (i32, i32, i32) {
    %c0_i32 = arith.constant 0 : i32
    %c0_i32_0 = arith.constant 0 : i32
    %c0_i32_1 = arith.constant 0 : i32
    %c0_i32_2 = arith.constant 0 : i32
    return %c0_i32, %c0_i32_0, %c0_i32_1 : i32, i32, i32
  }
  func.func @transform_4(%arg0: i32) -> (i32, i32, i32) {
    %c0_i32 = arith.constant 0 : i32
    %c0_i32_0 = arith.constant 0 : i32
    %c0_i32_1 = arith.constant 0 : i32
    %c0_i32_2 = arith.constant 0 : i32
    return %c0_i32, %c0_i32_0, %c0_i32_1 : i32, i32, i32
  }
  func.func @transform_5(%arg0: i32) -> (i32, i32, i32) {
    %c0_i32 = arith.constant 0 : i32
    %c0_i32_0 = arith.constant 0 : i32
    %c0_i32_1 = arith.constant 0 : i32
    %c0_i32_2 = arith.constant 0 : i32
    return %c0_i32, %c0_i32_0, %c0_i32_1 : i32, i32, i32
  }
  func.func @transform_6(%arg0: i32) -> (i32, i32, i32) {
    %c0_i32 = arith.constant 0 : i32
    %c0_i32_0 = arith.constant 0 : i32
    %c0_i32_1 = arith.constant 0 : i32
    %c0_i32_2 = arith.constant 0 : i32
    return %c0_i32, %c0_i32_0, %c0_i32_1 : i32, i32, i32
  }
  func.func @transform_7(%arg0: i32) -> (i32, i32, i32) {
    %c0_i32 = arith.constant 0 : i32
    %c0_i32_0 = arith.constant 0 : i32
    %c0_i32_1 = arith.constant 0 : i32
    %c0_i32_2 = arith.constant 0 : i32
    return %c0_i32, %c0_i32_0, %c0_i32_1 : i32, i32, i32
  }
  func.func @transform_8(%arg0: i32) -> (i32, i32) {
    %c0_i32 = arith.constant 0 : i32
    %c0_i32_0 = arith.constant 0 : i32
    %c0_i32_1 = arith.constant 0 : i32
    return %c0_i32, %c0_i32_0 : i32, i32
  }
  func.func @transform_9(%arg0: i32) -> (i32, i32, i32) {
    %c0_i32 = arith.constant 0 : i32
    %c0_i32_0 = arith.constant 0 : i32
    %c0_i32_1 = arith.constant 0 : i32
    return %arg0, %c0_i32, %c0_i32_0 : i32, i32, i32
  }
}

</mosaic_0001>

<bundles_post_ra>
// kernel: tpu_custom_call.1
= control target key start
LH: loop header
LB: loop body
LE: loop exit
PB: predicated region body
PF: predicated region fallthrough
CT: control target
= control target key end

     0   :  { %s29584_s30 = smov 0   ;;  %s29586_s10 = smov 0   ;;  %s34856_s0 = inlined_call_operand.vmem [shape: f32[64,8,32], index: 0, kind: input, shape index: {}]   ;;  %s34857_s1 = inlined_call_operand.vmem [shape: f32[4,64,8,8], index: 1, kind: input, shape index: {}]   ;;  %s34858_s2 = inlined_call_operand.vmem [shape: f32[4,32,8], index: 2, kind: input, shape index: {}]   ;;  %s34859_s3 = inlined_call_operand.vmem [shape: f32[4,32,8], index: 3, kind: input, shape index: {}]   ;;  %s34860_s4 = inlined_call_operand.vmem [shape: f32[4,1,8], index: 4, kind: input, shape index: {}]   ;;  %s34861_s5 = inlined_call_operand.vmem [shape: f32[4,1,8], index: 5, kind: input, shape index: {}]   ;;  %s34862_s6 = inlined_call_operand.vmem [shape: f32[4,8,8], index: 6, kind: input, shape index: {}]   ;;  %s34863_s7 = inlined_call_operand.vmem [shape: f32[4,8,32], index: 7, kind: input, shape index: {}]   ;;  %s34864_s8 = inlined_call_operand.vmem [shape: f32[1,32], index: 8, kind: input, shape index: {}]   ;;  %s34865_s9 = inlined_call_operand.vmem [shape: f32[64,8,32], index: 9, kind: output, shape index: {}]  }
   0x1   :  { %s29588_s11 = smov 0  }
   0x2 LB: > { %s25174_s12 = sadd.s32 4294967295, %s29530_s11   ;;  %s29601_s13 = sadd.s32 1, %s29530_s11   ;;  %s29530_s11 = sphi %s29588_s11, %s35229_s11   ;;  %s29526_s10 = sphi %s29586_s10, %s35228_s10   ;;  %s29522_s30 = sphi %s29584_s30, %s35227_s30  }
   0x3   : > { %s49_s14 = ssub.s32 %s29530_s11, %s29601_s13  ;;  %s52_s15 = sadd.s32 1, %s29526_s10 }
   0x4   : > { %p50_p0 = scmp.eq.s32.totalorder %s49_s14, 0  ;;  %p59_p1 = scmp.ne.s32.totalorder %s29526_s10, %s29522_s30 }
   0x5   : > { %p60_p2 = scmp.eq.s32.totalorder %s29530_s11, 0  ;;  %p25177_p4 = scmp.ge.s32.totalorder %s29530_s11, 2 }
   0x6   : > { %s29610_s16 = scalar_select %p50_p0, %s29526_s10, %s52_s15  }
   0x7   : > { %p61_p3 = por %p60_p2, %p59_p1  ;;  %279 = sbr.rel (%p25177_p4) target bundleno = 80 (0x50), region = 44 }
   0xc   : > { %291 = sbr.rel (!%p61_p3) target bundleno = 80 (0x50), region = 52  ;;  %s293_s17 = sand.u32 (%p61_p3), 1, %s29526_s10  }
   0xd   : > { %s26002_s18 = sshll.u32 (%p61_p3), %s29530_s11, 8  ;;  %s25178_s19 = sshll.u32 (%p61_p3), %s293_s17, 10 }
   0xe   : > { %s29618_s22 = scalar_lea.vmem (%p61_p3), %s34857_s1, %s26002_s18  ;;  %s29623_s23 = scalar_lea.vmem (%p61_p3), [#allocation2], %s25178_s19 }
   0xf   : > { %v581_v0 = vld [vmem:[%s29618_s22] sm:$0xff] (%p61_p3)  ;;  %v583_v1 = vld [vmem:[%s29618_s22 + $0x8] sm:$0xff] (%p61_p3)  ;;  %v585_v2 = vld [vmem:[%s29618_s22 + $0x10] sm:$0xff] (%p61_p3) }
  0x10   : > { %582 = vst [vmem:[%s29623_s23] sm:$0xff] (%p61_p3), %v581_v0  ;;  %584 = vst [vmem:[%s29623_s23 + $0x8] sm:$0xff] (%p61_p3), %v583_v1  ;;  %v587_v3 = vld [vmem:[%s29618_s22 + $0x18] sm:$0xff] (%p61_p3)  ;;  %v589_v4 = vld [vmem:[%s29618_s22 + $0x20] sm:$0xff] (%p61_p3) }
  0x11   : > { %586 = vst [vmem:[%s29623_s23 + $0x10] sm:$0xff] %v585_v2  ;;  %v591_v5 = vld [vmem:[%s29618_s22 + $0x28] sm:$0xff]  ;;  %588 = vst [vmem:[%s29623_s23 + $0x18] sm:$0xff] %v587_v3  ;;  %v593_v6 = vld [vmem:[%s29618_s22 + $0x30] sm:$0xff] }
  0x12   : > { %590 = vst [vmem:[%s29623_s23 + $0x20] sm:$0xff] %v589_v4  ;;  %592 = vst [vmem:[%s29623_s23 + $0x28] sm:$0xff] %v591_v5  ;;  %v595_v7 = vld [vmem:[%s29618_s22 + $0x38] sm:$0xff]  ;;  %v597_v8 = vld [vmem:[%s29618_s22 + $0x40] sm:$0xff] }
  0x13   : > { %594 = vst [vmem:[%s29623_s23 + $0x30] sm:$0xff] %v593_v6  ;;  %596 = vst [vmem:[%s29623_s23 + $0x38] sm:$0xff] %v595_v7  ;;  %v599_v9 = vld [vmem:[%s29618_s22 + $0x48] sm:$0xff]  ;;  %v601_v10 = vld [vmem:[%s29618_s22 + $0x50] sm:$0xff] }
  0x14   : > { %598 = vst [vmem:[%s29623_s23 + $0x40] sm:$0xff] %v597_v8  ;;  %v603_v11 = vld [vmem:[%s29618_s22 + $0x58] sm:$0xff]  ;;  %600 = vst [vmem:[%s29623_s23 + $0x48] sm:$0xff] %v599_v9  ;;  %v605_v12 = vld [vmem:[%s29618_s22 + $0x60] sm:$0xff] }
  0x15   : > { %602 = vst [vmem:[%s29623_s23 + $0x50] sm:$0xff] %v601_v10  ;;  %604 = vst [vmem:[%s29623_s23 + $0x58] sm:$0xff] %v603_v11  ;;  %v607_v13 = vld [vmem:[%s29618_s22 + $0x68] sm:$0xff]  ;;  %v609_v14 = vld [vmem:[%s29618_s22 + $0x70] sm:$0xff] }
  0x16   : > { %606 = vst [vmem:[%s29623_s23 + $0x60] sm:$0xff] %v605_v12  ;;  %608 = vst [vmem:[%s29623_s23 + $0x68] sm:$0xff] %v607_v13  ;;  %v611_v15 = vld [vmem:[%s29618_s22 + $0x78] sm:$0xff]  ;;  %v613_v16 = vld [vmem:[%s29618_s22 + $0x80] sm:$0xff] }
  0x17   : > { %610 = vst [vmem:[%s29623_s23 + $0x70] sm:$0xff] %v609_v14  ;;  %v615_v17 = vld [vmem:[%s29618_s22 + $0x88] sm:$0xff]  ;;  %612 = vst [vmem:[%s29623_s23 + $0x78] sm:$0xff] %v611_v15  ;;  %v617_v18 = vld [vmem:[%s29618_s22 + $0x90] sm:$0xff] }
  0x18   : > { %614 = vst [vmem:[%s29623_s23 + $0x80] sm:$0xff] %v613_v16  ;;  %616 = vst [vmem:[%s29623_s23 + $0x88] sm:$0xff] %v615_v17  ;;  %v619_v19 = vld [vmem:[%s29618_s22 + $0x98] sm:$0xff]  ;;  %v621_v20 = vld [vmem:[%s29618_s22 + $0xa0] sm:$0xff] }
  0x19   : > { %618 = vst [vmem:[%s29623_s23 + $0x90] sm:$0xff] %v617_v18  ;;  %620 = vst [vmem:[%s29623_s23 + $0x98] sm:$0xff] %v619_v19  ;;  %v623_v21 = vld [vmem:[%s29618_s22 + $0xa8] sm:$0xff]  ;;  %v625_v22 = vld [vmem:[%s29618_s22 + $0xb0] sm:$0xff] }
  0x1a   : > { %622 = vst [vmem:[%s29623_s23 + $0xa0] sm:$0xff] %v621_v20  ;;  %v627_v23 = vld [vmem:[%s29618_s22 + $0xb8] sm:$0xff]  ;;  %624 = vst [vmem:[%s29623_s23 + $0xa8] sm:$0xff] %v623_v21  ;;  %v629_v24 = vld [vmem:[%s29618_s22 + $0xc0] sm:$0xff] }
  0x1b   : > { %626 = vst [vmem:[%s29623_s23 + $0xb0] sm:$0xff] %v625_v22  ;;  %628 = vst [vmem:[%s29623_s23 + $0xb8] sm:$0xff] %v627_v23  ;;  %v631_v25 = vld [vmem:[%s29618_s22 + $0xc8] sm:$0xff]  ;;  %v633_v26 = vld [vmem:[%s29618_s22 + $0xd0] sm:$0xff] }
  0x1c   : > { %630 = vst [vmem:[%s29623_s23 + $0xc0] sm:$0xff] %v629_v24  ;;  %632 = vst [vmem:[%s29623_s23 + $0xc8] sm:$0xff] %v631_v25  ;;  %v635_v27 = vld [vmem:[%s29618_s22 + $0xd8] sm:$0xff]  ;;  %v637_v28 = vld [vmem:[%s29618_s22 + $0xe0] sm:$0xff] }
  0x1d   : > { %634 = vst [vmem:[%s29623_s23 + $0xd0] sm:$0xff] %v633_v26  ;;  %v639_v29 = vld [vmem:[%s29618_s22 + $0xe8] sm:$0xff]  ;;  %636 = vst [vmem:[%s29623_s23 + $0xd8] sm:$0xff] %v635_v27  ;;  %v641_v30 = vld [vmem:[%s29618_s22 + $0xf0] sm:$0xff] }
  0x1e   : > { %638 = vst [vmem:[%s29623_s23 + $0xe0] sm:$0xff] %v637_v28  ;;  %640 = vst [vmem:[%s29623_s23 + $0xe8] sm:$0xff] %v639_v29  ;;  %v643_v31 = vld [vmem:[%s29618_s22 + $0xf8] sm:$0xff]  ;;  %v645_v32 = vld [vmem:[%s29618_s22 + $0x200] sm:$0xff] }
  0x1f   : > { %642 = vst [vmem:[%s29623_s23 + $0xf0] sm:$0xff] %v641_v30  ;;  %644 = vst [vmem:[%s29623_s23 + $0xf8] sm:$0xff] %v643_v31  ;;  %v647_v33 = vld [vmem:[%s29618_s22 + $0x208] sm:$0xff]  ;;  %v649_v34 = vld [vmem:[%s29618_s22 + $0x210] sm:$0xff] }
  0x20   : > { %646 = vst [vmem:[%s29623_s23 + $0x100] sm:$0xff] %v645_v32  ;;  %v651_v35 = vld [vmem:[%s29618_s22 + $0x218] sm:$0xff]  ;;  %648 = vst [vmem:[%s29623_s23 + $0x108] sm:$0xff] %v647_v33  ;;  %v653_v36 = vld [vmem:[%s29618_s22 + $0x220] sm:$0xff] }
  0x21   : > { %650 = vst [vmem:[%s29623_s23 + $0x110] sm:$0xff] %v649_v34  ;;  %652 = vst [vmem:[%s29623_s23 + $0x118] sm:$0xff] %v651_v35  ;;  %v655_v37 = vld [vmem:[%s29618_s22 + $0x228] sm:$0xff]  ;;  %v657_v38 = vld [vmem:[%s29618_s22 + $0x230] sm:$0xff] }
  0x22   : > { %654 = vst [vmem:[%s29623_s23 + $0x120] sm:$0xff] %v653_v36  ;;  %656 = vst [vmem:[%s29623_s23 + $0x128] sm:$0xff] %v655_v37  ;;  %v659_v39 = vld [vmem:[%s29618_s22 + $0x238] sm:$0xff]  ;;  %v661_v40 = vld [vmem:[%s29618_s22 + $0x240] sm:$0xff] }
  0x23   : > { %658 = vst [vmem:[%s29623_s23 + $0x130] sm:$0xff] %v657_v38  ;;  %v663_v41 = vld [vmem:[%s29618_s22 + $0x248] sm:$0xff]  ;;  %660 = vst [vmem:[%s29623_s23 + $0x138] sm:$0xff] %v659_v39  ;;  %v665_v42 = vld [vmem:[%s29618_s22 + $0x250] sm:$0xff] }
  0x24   : > { %662 = vst [vmem:[%s29623_s23 + $0x140] sm:$0xff] %v661_v40  ;;  %664 = vst [vmem:[%s29623_s23 + $0x148] sm:$0xff] %v663_v41  ;;  %v667_v43 = vld [vmem:[%s29618_s22 + $0x258] sm:$0xff]  ;;  %v669_v44 = vld [vmem:[%s29618_s22 + $0x260] sm:$0xff] }
  0x25   : > { %666 = vst [vmem:[%s29623_s23 + $0x150] sm:$0xff] %v665_v42  ;;  %668 = vst [vmem:[%s29623_s23 + $0x158] sm:$0xff] %v667_v43  ;;  %v671_v45 = vld [vmem:[%s29618_s22 + $0x268] sm:$0xff]  ;;  %v673_v46 = vld [vmem:[%s29618_s22 + $0x270] sm:$0xff] }
  0x26   : > { %670 = vst [vmem:[%s29623_s23 + $0x160] sm:$0xff] %v669_v44  ;;  %v675_v47 = vld [vmem:[%s29618_s22 + $0x278] sm:$0xff]  ;;  %672 = vst [vmem:[%s29623_s23 + $0x168] sm:$0xff] %v671_v45  ;;  %v677_v48 = vld [vmem:[%s29618_s22 + $0x280] sm:$0xff] }
  0x27   : > { %674 = vst [vmem:[%s29623_s23 + $0x170] sm:$0xff] %v673_v46  ;;  %676 = vst [vmem:[%s29623_s23 + $0x178] sm:$0xff] %v675_v47  ;;  %v679_v49 = vld [vmem:[%s29618_s22 + $0x288] sm:$0xff]  ;;  %v681_v50 = vld [vmem:[%s29618_s22 + $0x290] sm:$0xff] }
  0x28   : > { %678 = vst [vmem:[%s29623_s23 + $0x180] sm:$0xff] %v677_v48  ;;  %680 = vst [vmem:[%s29623_s23 + $0x188] sm:$0xff] %v679_v49  ;;  %v683_v51 = vld [vmem:[%s29618_s22 + $0x298] sm:$0xff]  ;;  %v685_v52 = vld [vmem:[%s29618_s22 + $0x2a0] sm:$0xff] }
  0x29   : > { %682 = vst [vmem:[%s29623_s23 + $0x190] sm:$0xff] %v681_v50  ;;  %v687_v53 = vld [vmem:[%s29618_s22 + $0x2a8] sm:$0xff]  ;;  %684 = vst [vmem:[%s29623_s23 + $0x198] sm:$0xff] %v683_v51  ;;  %v689_v54 = vld [vmem:[%s29618_s22 + $0x2b0] sm:$0xff] }
  0x2a   : > { %686 = vst [vmem:[%s29623_s23 + $0x1a0] sm:$0xff] %v685_v52  ;;  %688 = vst [vmem:[%s29623_s23 + $0x1a8] sm:$0xff] %v687_v53  ;;  %v691_v55 = vld [vmem:[%s29618_s22 + $0x2b8] sm:$0xff]  ;;  %v693_v56 = vld [vmem:[%s29618_s22 + $0x2c0] sm:$0xff] }
  0x2b   : > { %690 = vst [vmem:[%s29623_s23 + $0x1b0] sm:$0xff] %v689_v54  ;;  %692 = vst [vmem:[%s29623_s23 + $0x1b8] sm:$0xff] %v691_v55  ;;  %v695_v57 = vld [vmem:[%s29618_s22 + $0x2c8] sm:$0xff]  ;;  %v697_v58 = vld [vmem:[%s29618_s22 + $0x2d0] sm:$0xff] }
  0x2c   : > { %694 = vst [vmem:[%s29623_s23 + $0x1c0] sm:$0xff] %v693_v56  ;;  %v699_v59 = vld [vmem:[%s29618_s22 + $0x2d8] sm:$0xff]  ;;  %696 = vst [vmem:[%s29623_s23 + $0x1c8] sm:$0xff] %v695_v57  ;;  %v701_v60 = vld [vmem:[%s29618_s22 + $0x2e0] sm:$0xff] }
  0x2d   : > { %698 = vst [vmem:[%s29623_s23 + $0x1d0] sm:$0xff] %v697_v58  ;;  %700 = vst [vmem:[%s29623_s23 + $0x1d8] sm:$0xff] %v699_v59  ;;  %v703_v61 = vld [vmem:[%s29618_s22 + $0x2e8] sm:$0xff]  ;;  %v705_v62 = vld [vmem:[%s29618_s22 + $0x2f0] sm:$0xff] }
  0x2e   : > { %702 = vst [vmem:[%s29623_s23 + $0x1e0] sm:$0xff] %v701_v60  ;;  %704 = vst [vmem:[%s29623_s23 + $0x1e8] sm:$0xff] %v703_v61  ;;  %v707_v63 = vld [vmem:[%s29618_s22 + $0x2f8] sm:$0xff]  ;;  %v709_v0 = vld [vmem:[%s29618_s22 + $0x400] sm:$0xff] }
  0x2f   : > { %706 = vst [vmem:[%s29623_s23 + $0x1f0] sm:$0xff] %v705_v62  ;;  %v711_v1 = vld [vmem:[%s29618_s22 + $0x408] sm:$0xff]  ;;  %708 = vst [vmem:[%s29623_s23 + $0x1f8] sm:$0xff] %v707_v63  ;;  %v713_v2 = vld [vmem:[%s29618_s22 + $0x410] sm:$0xff] }
  0x30   : > { %710 = vst [vmem:[%s29623_s23 + $0x200] sm:$0xff] %v709_v0  ;;  %712 = vst [vmem:[%s29623_s23 + $0x208] sm:$0xff] %v711_v1  ;;  %v715_v3 = vld [vmem:[%s29618_s22 + $0x418] sm:$0xff]  ;;  %v717_v4 = vld [vmem:[%s29618_s22 + $0x420] sm:$0xff] }
  0x31   : > { %714 = vst [vmem:[%s29623_s23 + $0x210] sm:$0xff] %v713_v2  ;;  %716 = vst [vmem:[%s29623_s23 + $0x218] sm:$0xff] %v715_v3  ;;  %v719_v5 = vld [vmem:[%s29618_s22 + $0x428] sm:$0xff]  ;;  %v721_v6 = vld [vmem:[%s29618_s22 + $0x430] sm:$0xff] }
  0x32   : > { %718 = vst [vmem:[%s29623_s23 + $0x220] sm:$0xff] %v717_v4  ;;  %v723_v7 = vld [vmem:[%s29618_s22 + $0x438] sm:$0xff]  ;;  %720 = vst [vmem:[%s29623_s23 + $0x228] sm:$0xff] %v719_v5  ;;  %v725_v8 = vld [vmem:[%s29618_s22 + $0x440] sm:$0xff] }
  0x33   : > { %722 = vst [vmem:[%s29623_s23 + $0x230] sm:$0xff] %v721_v6  ;;  %724 = vst [vmem:[%s29623_s23 + $0x238] sm:$0xff] %v723_v7  ;;  %v727_v9 = vld [vmem:[%s29618_s22 + $0x448] sm:$0xff]  ;;  %v729_v10 = vld [vmem:[%s29618_s22 + $0x450] sm:$0xff] }
  0x34   : > { %726 = vst [vmem:[%s29623_s23 + $0x240] sm:$0xff] %v725_v8  ;;  %728 = vst [vmem:[%s29623_s23 + $0x248] sm:$0xff] %v727_v9  ;;  %v731_v11 = vld [vmem:[%s29618_s22 + $0x458] sm:$0xff]  ;;  %v733_v12 = vld [vmem:[%s29618_s22 + $0x460] sm:$0xff] }
  0x35   : > { %730 = vst [vmem:[%s29623_s23 + $0x250] sm:$0xff] %v729_v10  ;;  %v735_v13 = vld [vmem:[%s29618_s22 + $0x468] sm:$0xff]  ;;  %732 = vst [vmem:[%s29623_s23 + $0x258] sm:$0xff] %v731_v11  ;;  %v737_v14 = vld [vmem:[%s29618_s22 + $0x470] sm:$0xff] }
  0x36   : > { %734 = vst [vmem:[%s29623_s23 + $0x260] sm:$0xff] %v733_v12  ;;  %736 = vst [vmem:[%s29623_s23 + $0x268] sm:$0xff] %v735_v13  ;;  %v739_v15 = vld [vmem:[%s29618_s22 + $0x478] sm:$0xff]  ;;  %v741_v16 = vld [vmem:[%s29618_s22 + $0x480] sm:$0xff] }
  0x37   : > { %738 = vst [vmem:[%s29623_s23 + $0x270] sm:$0xff] %v737_v14  ;;  %740 = vst [vmem:[%s29623_s23 + $0x278] sm:$0xff] %v739_v15  ;;  %v743_v17 = vld [vmem:[%s29618_s22 + $0x488] sm:$0xff]  ;;  %v745_v18 = vld [vmem:[%s29618_s22 + $0x490] sm:$0xff] }
  0x38   : > { %742 = vst [vmem:[%s29623_s23 + $0x280] sm:$0xff] %v741_v16  ;;  %v747_v19 = vld [vmem:[%s29618_s22 + $0x498] sm:$0xff]  ;;  %744 = vst [vmem:[%s29623_s23 + $0x288] sm:$0xff] %v743_v17  ;;  %v749_v20 = vld [vmem:[%s29618_s22 + $0x4a0] sm:$0xff] }
  0x39   : > { %746 = vst [vmem:[%s29623_s23 + $0x290] sm:$0xff] %v745_v18  ;;  %748 = vst [vmem:[%s29623_s23 + $0x298] sm:$0xff] %v747_v19  ;;  %v751_v21 = vld [vmem:[%s29618_s22 + $0x4a8] sm:$0xff]  ;;  %v753_v22 = vld [vmem:[%s29618_s22 + $0x4b0] sm:$0xff] }
  0x3a   : > { %750 = vst [vmem:[%s29623_s23 + $0x2a0] sm:$0xff] %v749_v20  ;;  %752 = vst [vmem:[%s29623_s23 + $0x2a8] sm:$0xff] %v751_v21  ;;  %v755_v23 = vld [vmem:[%s29618_s22 + $0x4b8] sm:$0xff]  ;;  %v757_v24 = vld [vmem:[%s29618_s22 + $0x4c0] sm:$0xff] }
  0x3b   : > { %754 = vst [vmem:[%s29623_s23 + $0x2b0] sm:$0xff] %v753_v22  ;;  %v759_v25 = vld [vmem:[%s29618_s22 + $0x4c8] sm:$0xff]  ;;  %756 = vst [vmem:[%s29623_s23 + $0x2b8] sm:$0xff] %v755_v23  ;;  %v761_v26 = vld [vmem:[%s29618_s22 + $0x4d0] sm:$0xff] }
  0x3c   : > { %758 = vst [vmem:[%s29623_s23 + $0x2c0] sm:$0xff] %v757_v24  ;;  %760 = vst [vmem:[%s29623_s23 + $0x2c8] sm:$0xff] %v759_v25  ;;  %v763_v27 = vld [vmem:[%s29618_s22 + $0x4d8] sm:$0xff]  ;;  %v765_v28 = vld [vmem:[%s29618_s22 + $0x4e0] sm:$0xff] }
  0x3d   : > { %762 = vst [vmem:[%s29623_s23 + $0x2d0] sm:$0xff] %v761_v26  ;;  %764 = vst [vmem:[%s29623_s23 + $0x2d8] sm:$0xff] %v763_v27  ;;  %v767_v29 = vld [vmem:[%s29618_s22 + $0x4e8] sm:$0xff]  ;;  %v769_v30 = vld [vmem:[%s29618_s22 + $0x4f0] sm:$0xff] }
  0x3e   : > { %766 = vst [vmem:[%s29623_s23 + $0x2e0] sm:$0xff] %v765_v28  ;;  %v771_v31 = vld [vmem:[%s29618_s22 + $0x4f8] sm:$0xff]  ;;  %768 = vst [vmem:[%s29623_s23 + $0x2e8] sm:$0xff] %v767_v29  ;;  %v773_v32 = vld [vmem:[%s29618_s22 + $0x600] sm:$0xff] }
  0x3f   : > { %770 = vst [vmem:[%s29623_s23 + $0x2f0] sm:$0xff] %v769_v30  ;;  %772 = vst [vmem:[%s29623_s23 + $0x2f8] sm:$0xff] %v771_v31  ;;  %v775_v33 = vld [vmem:[%s29618_s22 + $0x608] sm:$0xff]  ;;  %v777_v34 = vld [vmem:[%s29618_s22 + $0x610] sm:$0xff] }
  0x40   : > { %774 = vst [vmem:[%s29623_s23 + $0x300] sm:$0xff] %v773_v32  ;;  %776 = vst [vmem:[%s29623_s23 + $0x308] sm:$0xff] %v775_v33  ;;  %v779_v35 = vld [vmem:[%s29618_s22 + $0x618] sm:$0xff]  ;;  %v781_v36 = vld [vmem:[%s29618_s22 + $0x620] sm:$0xff] }
  0x41   : > { %778 = vst [vmem:[%s29623_s23 + $0x310] sm:$0xff] %v777_v34  ;;  %v783_v37 = vld [vmem:[%s29618_s22 + $0x628] sm:$0xff]  ;;  %780 = vst [vmem:[%s29623_s23 + $0x318] sm:$0xff] %v779_v35  ;;  %v785_v38 = vld [vmem:[%s29618_s22 + $0x630] sm:$0xff] }
  0x42   : > { %782 = vst [vmem:[%s29623_s23 + $0x320] sm:$0xff] %v781_v36  ;;  %784 = vst [vmem:[%s29623_s23 + $0x328] sm:$0xff] %v783_v37  ;;  %v787_v39 = vld [vmem:[%s29618_s22 + $0x638] sm:$0xff]  ;;  %v789_v40 = vld [vmem:[%s29618_s22 + $0x640] sm:$0xff] }
  0x43   : > { %786 = vst [vmem:[%s29623_s23 + $0x330] sm:$0xff] %v785_v38  ;;  %788 = vst [vmem:[%s29623_s23 + $0x338] sm:$0xff] %v787_v39  ;;  %v791_v41 = vld [vmem:[%s29618_s22 + $0x648] sm:$0xff]  ;;  %v793_v42 = vld [vmem:[%s29618_s22 + $0x650] sm:$0xff] }
  0x44   : > { %790 = vst [vmem:[%s29623_s23 + $0x340] sm:$0xff] %v789_v40  ;;  %v795_v43 = vld [vmem:[%s29618_s22 + $0x658] sm:$0xff]  ;;  %792 = vst [vmem:[%s29623_s23 + $0x348] sm:$0xff] %v791_v41  ;;  %v797_v44 = vld [vmem:[%s29618_s22 + $0x660] sm:$0xff] }
  0x45   : > { %794 = vst [vmem:[%s29623_s23 + $0x350] sm:$0xff] %v793_v42  ;;  %796 = vst [vmem:[%s29623_s23 + $0x358] sm:$0xff] %v795_v43  ;;  %v799_v45 = vld [vmem:[%s29618_s22 + $0x668] sm:$0xff]  ;;  %v801_v46 = vld [vmem:[%s29618_s22 + $0x670] sm:$0xff] }
  0x46   : > { %798 = vst [vmem:[%s29623_s23 + $0x360] sm:$0xff] %v797_v44  ;;  %800 = vst [vmem:[%s29623_s23 + $0x368] sm:$0xff] %v799_v45  ;;  %v803_v47 = vld [vmem:[%s29618_s22 + $0x678] sm:$0xff]  ;;  %v805_v48 = vld [vmem:[%s29618_s22 + $0x680] sm:$0xff] }
  0x47   : > { %802 = vst [vmem:[%s29623_s23 + $0x370] sm:$0xff] %v801_v46  ;;  %v807_v49 = vld [vmem:[%s29618_s22 + $0x688] sm:$0xff]  ;;  %804 = vst [vmem:[%s29623_s23 + $0x378] sm:$0xff] %v803_v47  ;;  %v809_v50 = vld [vmem:[%s29618_s22 + $0x690] sm:$0xff] }
  0x48   : > { %806 = vst [vmem:[%s29623_s23 + $0x380] sm:$0xff] %v805_v48  ;;  %808 = vst [vmem:[%s29623_s23 + $0x388] sm:$0xff] %v807_v49  ;;  %v811_v51 = vld [vmem:[%s29618_s22 + $0x698] sm:$0xff]  ;;  %v813_v52 = vld [vmem:[%s29618_s22 + $0x6a0] sm:$0xff] }
  0x49   : > { %810 = vst [vmem:[%s29623_s23 + $0x390] sm:$0xff] %v809_v50  ;;  %812 = vst [vmem:[%s29623_s23 + $0x398] sm:$0xff] %v811_v51  ;;  %v815_v53 = vld [vmem:[%s29618_s22 + $0x6a8] sm:$0xff]  ;;  %v817_v54 = vld [vmem:[%s29618_s22 + $0x6b0] sm:$0xff] }
  0x4a   : > { %814 = vst [vmem:[%s29623_s23 + $0x3a0] sm:$0xff] %v813_v52  ;;  %v819_v55 = vld [vmem:[%s29618_s22 + $0x6b8] sm:$0xff]  ;;  %816 = vst [vmem:[%s29623_s23 + $0x3a8] sm:$0xff] %v815_v53  ;;  %v821_v56 = vld [vmem:[%s29618_s22 + $0x6c0] sm:$0xff] }
  0x4b   : > { %818 = vst [vmem:[%s29623_s23 + $0x3b0] sm:$0xff] %v817_v54  ;;  %820 = vst [vmem:[%s29623_s23 + $0x3b8] sm:$0xff] %v819_v55  ;;  %v823_v57 = vld [vmem:[%s29618_s22 + $0x6c8] sm:$0xff]  ;;  %v825_v58 = vld [vmem:[%s29618_s22 + $0x6d0] sm:$0xff] }
  0x4c   : > { %822 = vst [vmem:[%s29623_s23 + $0x3c0] sm:$0xff] %v821_v56  ;;  %824 = vst [vmem:[%s29623_s23 + $0x3c8] sm:$0xff] %v823_v57  ;;  %v827_v59 = vld [vmem:[%s29618_s22 + $0x6d8] sm:$0xff]  ;;  %v829_v60 = vld [vmem:[%s29618_s22 + $0x6e0] sm:$0xff] }
  0x4d   : > { %826 = vst [vmem:[%s29623_s23 + $0x3d0] sm:$0xff] %v825_v58  ;;  %v831_v61 = vld [vmem:[%s29618_s22 + $0x6e8] sm:$0xff]  ;;  %828 = vst [vmem:[%s29623_s23 + $0x3d8] sm:$0xff] %v827_v59  ;;  %v833_v62 = vld [vmem:[%s29618_s22 + $0x6f0] sm:$0xff] }
  0x4e   : > { %830 = vst [vmem:[%s29623_s23 + $0x3e0] sm:$0xff] %v829_v60  ;;  %832 = vst [vmem:[%s29623_s23 + $0x3e8] sm:$0xff] %v831_v61  ;;  %v835_v63 = vld [vmem:[%s29618_s22 + $0x6f8] sm:$0xff] }
  0x4f   : > { %834 = vst [vmem:[%s29623_s23 + $0x3f0] sm:$0xff] %v833_v62  ;;  %836 = vst [vmem:[%s29623_s23 + $0x3f8] sm:$0xff] %v835_v63 }
  0x50 PF: > { %p25181_p5 = scmp.ge.s32.totalorder %s29530_s11, 1  ;;  %p841_p6 = scmp.lt.s32.totalorder %s29530_s11, 3 }
  0x52   : > { %p842_p7 = pnand %p25181_p5, %p841_p6 }
  0x54   : > { %845 = sbr.rel (%p842_p7) target bundleno = 3865 (0xf19), region = 90 }
  0x59   : > { %v1192_v0 = vld [vmem:[%s34858_s2 + $0x18] sm:$0xff]  ;;  %v1191_v1 = vld [vmem:[%s34858_s2 + $0x10] sm:$0xff]  ;;  %s25183_s28 = sshll.u32 %s25174_s12, 5  ;;  %v1190_v4 = vld [vmem:[%s34858_s2 + $0x8] sm:$0xff]  ;;  %vm1200_vm0 = vcmask 261120   ;;  %v34866_v40 = vmov 0.0  }
  0x5a   : > { %26935 = vmatprep.subr.mxu0 %v1192_v0  ;;  %p889_p8 = scmp.lt.s32.totalorder %s25183_s28, 63  ;;  %v1525_v2 = vld [vmem:[%s34859_s3 + $0x18] sm:$0xff]  ;;  %v1524_v3 = vld [vmem:[%s34859_s3 + $0x10] sm:$0xff]  ;;  %v1523_v5 = vld [vmem:[%s34859_s3 + $0x8] sm:$0xff]  ;;  %vm29533_vm1 = vmmov 0   ;;  %s848_s29 = sand.u32 1, %s29522_s30  }
  0x5b   : > { %26936 = vmatpush3.msra.mxu0 %v1192_v0  ;;  %28863 = vmatprep.subr.mxu1 %v1525_v2  ;;  %v1189_v6 = vld [vmem:[%s34858_s2] sm:$0xff]  ;;  %s25182_s14 = sshll.u32 %s848_s29, 10  ;;  %vm1759_vm2 = vcmask 64512  }
  0x5c   : > { %26937 = vmatprep.subr.mxu0 %v1191_v1  ;;  %s35231_s28 = smov (!%p889_p8, %s25183_s28), 63  ;;  %28867 = vmatpush3.msra.mxu1 %v1525_v2  ;;  %v1522_v7 = vld [vmem:[%s34859_s3] sm:$0xff]  ;;  %s30068_s18 = scalar_lea.vmem [#allocation2], %s25182_s14 }
  0x5d   : > { %26938 = vmatpush3.msra.mxu0 %v1191_v1  ;;  %28864 = vmatprep.subr.mxu1 %v1524_v3  ;;  %s25184_s22 = sshll.u32 %s35231_s28, 3  ;;  %v30066_v41 = vld [vmem:[%s34860_s4] ss:$0 sm:$0xff]  ;;  %v934_v42 = vld [vmem:[%s30068_s18 + $0x8] sm:$0xff]  ;;  %v936_v49 = vld [vmem:[%s30068_s18 + $0x18] sm:$0xff] }
  0x5e   : > { %26939 = vmatprep.subr.mxu0 %v1190_v4  ;;  %28868 = vmatpush3.msra.mxu1 %v1524_v3  ;;  %s29911_s25 = scalar_lea.vmem %s34856_s0, %s25184_s22  ;;  %v933_v45 = vld [vmem:[%s30068_s18] sm:$0xff]  ;;  %v1062_v47 = vmul.f32 0.35355338, %v934_v42  ;;  %v935_v53 = vld [vmem:[%s30068_s18 + $0x10] sm:$0xff]  ;;  %v1064_v55 = vmul.f32 0.35355338, %v936_v49 }
  0x5f   : > { %26940 = vmatpush3.msra.mxu0 %v1190_v4  ;;  %28865 = vmatprep.subr.mxu1 %v1523_v5  ;;  %v29917_v8 = vld [vmem:[%s29911_s25] sm:$0xff]  ;;  %v29920_v9 = vld [vmem:[%s29911_s25 + $0x8] sm:$0xff]  ;;  %v29923_v10 = vld [vmem:[%s29911_s25 + $0x10] sm:$0xff]  ;;  %v1061_v51 = vmul.f32 0.35355338, %v933_v45 }
  0x60   : > { %26941 = vmatprep.subr.mxu0 %v1189_v6  ;;  %28869 = vmatpush3.msra.mxu1 %v1523_v5  ;;  %v29932_v11 = vld [vmem:[%s29911_s25 + $0x18] sm:$0xff]  ;;  %v29935_v12 = vld [vmem:[%s29911_s25 + $0x20] sm:$0xff]  ;;  %v915_v13 = vld [vmem:[%s29911_s25 + $0x70] sm:$0xff]  ;;  %v1063_v59 = vmul.f32 0.35355338, %v935_v53 }
  0x61   : > { %26942 = vmatpush3.msra.mxu0 %v1189_v6  ;;  %26943 = vmatprep.mubr.msk.f32.mxu0 %vm1200_vm0, %v29917_v8  ;;  %v916_v14 = vld [vmem:[%s29911_s25 + $0x78] sm:$0xff]  ;;  %v29946_v15 = vld [vmem:[%s29911_s25 + $0x28] sm:$0xff]  ;;  %v917_v16 = vld [vmem:[%s29911_s25 + $0x80] sm:$0xff] }
  0x62   : > { %26944 = vmatmul.mubr.msk.f32.vlgmr.msra.gmra.mxu0 %vm1200_vm0, %v29920_v9  ;;  %28866 = vmatprep.subr.mxu1 %v1522_v7  ;;  %v29950_v17 = vld [vmem:[%s29911_s25 + $0x30] sm:$0xff]  ;;  %v918_v18 = vld [vmem:[%s29911_s25 + $0x88] sm:$0xff]  ;;  %v29960_v19 = vld [vmem:[%s29911_s25 + $0x38] sm:$0xff] }
  0x63   : > { %26946 = vmatprep.mubr.msk.f32.mxu0 %vm1200_vm0, %v29923_v10  ;;  %26991 = vmatprep.subr.mxu0 %v1525_v2  ;;  %v919_v20 = vld [vmem:[%s29911_s25 + $0x90] sm:$0xff]  ;;  %v29964_v21 = vld [vmem:[%s29911_s25 + $0x40] sm:$0xff]  ;;  %v920_v22 = vld [vmem:[%s29911_s25 + $0x98] sm:$0xff] }
  0x64   : > { %28870 = vmatpush3.msra.mxu1 %v1522_v7  ;;  %26992 = vmatpush3.msra.mxu0 %v1525_v2  ;;  %v921_v23 = vld [vmem:[%s29911_s25 + $0xa0] sm:$0xff]  ;;  %v29975_v24 = vld [vmem:[%s29911_s25 + $0x48] sm:$0xff]  ;;  %v29979_v25 = vld [vmem:[%s29911_s25 + $0x50] sm:$0xff] }
  0x65   : > { %27020 = vmatprep.mubr.msk.f32.mxu1 %vm1200_vm0, %v915_v13  ;;  %26993 = vmatprep.subr.mxu0 %v1524_v3  ;;  %v922_v26 = vld [vmem:[%s29911_s25 + $0xa8] sm:$0xff]  ;;  %v923_v27 = vld [vmem:[%s29911_s25 + $0xb0] sm:$0xff]  ;;  %v912_v28 = vld [vmem:[%s29911_s25 + $0x58] sm:$0xff] }
  0x66   : > { %26947 = vmatmul.mubr.msk.f32.gmra.mxu0 %vm1200_vm0, %v29932_v11  ;;  %27021 = vmatmul.mubr.msk.f32.vlgmr.msra.gmra.mxu1 %vm1200_vm0, %v916_v14  ;;  %v913_v29 = vld [vmem:[%s29911_s25 + $0x60] sm:$0xff]  ;;  %v924_v30 = vld [vmem:[%s29911_s25 + $0xb8] sm:$0xff]  ;;  %v914_v32 = vld [vmem:[%s29911_s25 + $0x68] sm:$0xff] }
  0x67   : > { %26949 = vmatprep.mubr.msk.f32.mxu0 %vm1200_vm0, %v29935_v12  ;;  %26994 = vmatpush3.msra.mxu0 %v1524_v3  ;;  %v925_v31 = vld [vmem:[%s29911_s25 + $0xc0] sm:$0xff]  ;;  %v926_v33 = vld [vmem:[%s29911_s25 + $0xc8] sm:$0xff]  ;;  %v927_v34 = vld [vmem:[%s29911_s25 + $0xd0] sm:$0xff] }
  0x68   : > { %26995 = vmatprep.subr.mxu0 %v1523_v5  ;;  %27023 = vmatprep.mubr.msk.f32.mxu1 %vm1200_vm0, %v917_v16  ;;  %v928_v35 = vld [vmem:[%s29911_s25 + $0xd8] sm:$0xff]  ;;  %v929_v36 = vld [vmem:[%s29911_s25 + $0xe0] sm:$0xff]  ;;  %v930_v37 = vld [vmem:[%s29911_s25 + $0xe8] sm:$0xff] }
  0x69   : > { %26996 = vmatpush3.msra.mxu0 %v1523_v5  ;;  %v931_v38 = vld [vmem:[%s29911_s25 + $0xf0] sm:$0xff]  ;;  %v932_v39 = vld [vmem:[%s29911_s25 + $0xf8] sm:$0xff]  ;;  %27052 = vmatprep.subr.mxu1 %v34866_v40  ;;  %v938_v57 = vld [vmem:[%s30068_s18 + $0x28] sm:$0xff] }
  0x6a   : > { %26950 = vmatmul.mubr.msk.f32.gmra.mxu0 %vm1200_vm0, %v29946_v15  ;;  %27024 = vmatmul.mubr.msk.f32.gmra.mxu1 %vm1200_vm0, %v918_v18  ;;  %v937_v61 = vld [vmem:[%s30068_s18 + $0x20] sm:$0xff]  ;;  %v1066_v63 = vmul.f32 0.35355338, %v938_v57  ;;  %v940_v1 = vld [vmem:[%s30068_s18 + $0x38] sm:$0xff]  ;;  %v939_v5 = vld [vmem:[%s30068_s18 + $0x30] sm:$0xff] }
  0x6b   : > { %26952 = vmatprep.mubr.msk.f32.mxu0 %vm1200_vm0, %v29950_v17  ;;  %26997 = vmatprep.subr.mxu0 %v1522_v7  ;;  %v1065_v3 = vmul.f32 0.35355338, %v937_v61 }
  0x6c   : > { %26998 = vmatpush3.msra.mxu0 %v1522_v7  ;;  %27026 = vmatprep.mubr.msk.f32.mxu1 %vm1200_vm0, %v919_v20  ;;  %v1068_v7 = vmul.f32 0.35355338, %v940_v1 }
  0x6d   : > { %27047 = vmatprep.subr.mxu0 %v34866_v40 }
  0x6e   : > { %26953 = vmatmul.mubr.msk.f32.gmra.mxu0 %vm1200_vm0, %v29960_v19  ;;  %27027 = vmatmul.mubr.msk.f32.gmra.mxu1 %vm1200_vm0, %v920_v22 }
  0x6f   : > { %26955 = vmatprep.mubr.msk.f32.mxu0 %vm1200_vm0, %v29964_v21  ;;  %27029 = vmatprep.mubr.msk.f32.mxu1 %vm1200_vm0, %v921_v23 }
  0x72   : > { %26956 = vmatmul.mubr.msk.f32.gmra.mxu0 %vm1200_vm0, %v29975_v24  ;;  %27030 = vmatmul.mubr.msk.f32.gmra.mxu1 %vm1200_vm0, %v922_v26 }
  0x73   : > { %26958 = vmatprep.mubr.msk.f32.mxu0 %vm1200_vm0, %v29979_v25  ;;  %27032 = vmatprep.mubr.msk.f32.mxu1 %vm1200_vm0, %v923_v27 }
  0x76   : > { %26959 = vmatmul.mubr.msk.f32.gmra.mxu0 %vm1200_vm0, %v912_v28  ;;  %27033 = vmatmul.mubr.msk.f32.gmra.mxu1 %vm1200_vm0, %v924_v30 }
  0x77   : > { %26961 = vmatprep.mubr.msk.f32.mxu0 %vm1200_vm0, %v913_v29  ;;  %27035 = vmatprep.mubr.msk.f32.mxu1 %vm1200_vm0, %v925_v31 }
  0x7a   : > { %26962 = vmatmul.mubr.msk.f32.gmra.mxu0 %vm1200_vm0, %v914_v32  ;;  %27036 = vmatmul.mubr.msk.f32.gmra.mxu1 %vm1200_vm0, %v926_v33 }
  0x7b   : > { %26964 = vmatprep.mubr.msk.f32.mxu0 %vm1200_vm0, %v915_v13  ;;  %27038 = vmatprep.mubr.msk.f32.mxu1 %vm1200_vm0, %v927_v34  ;;  %v941_v13 = vld [vmem:[%s30068_s18 + $0x40] sm:$0xff] }
  0x7e   : > { %26965 = vmatmul.mubr.msk.f32.gmra.mxu0 %vm1200_vm0, %v916_v14  ;;  %27039 = vmatmul.mubr.msk.f32.gmra.mxu1 %vm1200_vm0, %v928_v35 }
  0x7f   : > { %26967 = vmatprep.mubr.msk.f32.mxu0 %vm1200_vm0, %v917_v16  ;;  %27041 = vmatprep.mubr.msk.f32.mxu1 %vm1200_vm0, %v929_v36 }
  0x82   : > { %26968 = vmatmul.mubr.msk.f32.gmra.mxu0 %vm1200_vm0, %v918_v18  ;;  %27042 = vmatmul.mubr.msk.f32.gmra.mxu1 %vm1200_vm0, %v930_v37 }
  0x83   : > { %26970 = vmatprep.mubr.msk.f32.mxu0 %vm1200_vm0, %v919_v20  ;;  %27044 = vmatprep.mubr.msk.f32.mxu1 %vm1200_vm0, %v931_v38 }
  0x86   : > { %26971 = vmatmul.mubr.msk.f32.gmra.mxu0 %vm1200_vm0, %v920_v22  ;;  %27045 = vmatmul.mubr.msk.f32.gmra.mxu1 %vm1200_vm0, %v932_v39 }
  0x87   : > { %26973 = vmatprep.mubr.msk.f32.mxu0 %vm1200_vm0, %v921_v23  ;;  %27054 = vmatprep.mubr.msk.f32.mxu1 %vm29533_vm1, %v34866_v40 }
  0x8a   : > { %26974 = vmatmul.mubr.msk.f32.gmra.mxu0 %vm1200_vm0, %v922_v26 }
  0x8b   : > { %26976 = vmatprep.mubr.msk.f32.mxu0 %vm1200_vm0, %v923_v27 }
  0x8e   : > { %26977 = vmatmul.mubr.msk.f32.gmra.mxu0 %vm1200_vm0, %v924_v30 }
  0x8f   : > { %26979 = vmatprep.mubr.msk.f32.mxu0 %vm1200_vm0, %v925_v31 }
  0x92   : > { %26980 = vmatmul.mubr.msk.f32.gmra.mxu0 %vm1200_vm0, %v926_v33  ;;  %v948_v33 = vld [vmem:[%s30068_s18 + $0x78] sm:$0xff] }
  0x93   : > { %26982 = vmatprep.mubr.msk.f32.mxu0 %vm1200_vm0, %v927_v34 }
  0x96   : > { %26983 = vmatmul.mubr.msk.f32.gmra.mxu0 %vm1200_vm0, %v928_v35 }
  0x97   : > { %26985 = vmatprep.mubr.msk.f32.mxu0 %vm1200_vm0, %v929_v36 }
  0x9a   : > { %26986 = vmatmul.mubr.msk.f32.gmra.mxu0 %vm1200_vm0, %v930_v37  ;;  %v947_v37 = vld [vmem:[%s30068_s18 + $0x70] sm:$0xff] }
  0x9b   : > { %26988 = vmatprep.mubr.msk.f32.mxu0 %vm1200_vm0, %v931_v38  ;;  %v1075_v45 = vmul.f32 0.35355338, %v947_v37 }
  0x9e   : > { %26989 = vmatmul.mubr.msk.f32.gmra.mxu0 %vm1200_vm0, %v932_v39  ;;  %v1076_v39 = vmul.f32 0.35355338, %v948_v33 }
  0x9f   : > { %26999 = vmatprep.mubr.msk.f32.mxu0 %vm1200_vm0, %v29917_v8 }
  0xa2   : > { %27000 = vmatmul.mubr.msk.f32.vlgmr.msra.gmra.mxu0 %vm1200_vm0, %v29920_v9  ;;  %v942_v9 = vld [vmem:[%s30068_s18 + $0x48] sm:$0xff] }
  0xa3   : > { %27002 = vmatprep.mubr.msk.f32.mxu0 %vm1200_vm0, %v29923_v10 }
  0xa6   : > { %27003 = vmatmul.mubr.msk.f32.gmra.mxu0 %vm1200_vm0, %v29932_v11  ;;  %v1067_v11 = vmul.f32 0.35355338, %v939_v5 }
  0xa7   : > { %27005 = vmatprep.mubr.msk.f32.mxu0 %vm1200_vm0, %v29935_v12 }
  0xaa   : > { %27006 = vmatmul.mubr.msk.f32.gmra.mxu0 %vm1200_vm0, %v29946_v15  ;;  %v1070_v15 = vmul.f32 0.35355338, %v942_v9 }
  0xab   : > { %27008 = vmatprep.mubr.msk.f32.mxu0 %vm1200_vm0, %v29950_v17  ;;  %v944_v17 = vld [vmem:[%s30068_s18 + $0x58] sm:$0xff] }
  0xac   : > { %v1072_v23 = vmul.f32 0.35355338, %v944_v17 }
  0xae   : > { %27009 = vmatmul.mubr.msk.f32.gmra.mxu0 %vm1200_vm0, %v29960_v19  ;;  %v1069_v19 = vmul.f32 0.35355338, %v941_v13 }
  0xaf   : > { %27011 = vmatprep.mubr.msk.f32.mxu0 %vm1200_vm0, %v29964_v21  ;;  %v943_v21 = vld [vmem:[%s30068_s18 + $0x50] sm:$0xff] }
  0xb0   : > { %v1071_v27 = vmul.f32 0.35355338, %v943_v21 }
  0xb2   : > { %27012 = vmatmul.mubr.msk.f32.gmra.mxu0 %vm1200_vm0, %v29975_v24 }
  0xb3   : > { %27014 = vmatprep.mubr.msk.f32.mxu0 %vm1200_vm0, %v29979_v25  ;;  %v946_v25 = vld [vmem:[%s30068_s18 + $0x68] sm:$0xff] }
  0xb4   : > { %v1074_v31 = vmul.f32 0.35355338, %v946_v25 }
  0xb6   : > { %27015 = vmatmul.mubr.msk.f32.gmra.mxu0 %vm1200_vm0, %v912_v28 }
  0xb7   : > { %27017 = vmatprep.mubr.msk.f32.mxu0 %vm1200_vm0, %v913_v29  ;;  %v945_v29 = vld [vmem:[%s30068_s18 + $0x60] sm:$0xff] }
  0xb8   : > { %v1073_v35 = vmul.f32 0.35355338, %v945_v29 }
  0xba   : > { %27018 = vmatmul.mubr.msk.f32.gmra.mxu0 %vm1200_vm0, %v914_v32 }
  0xbb   : > { %27049 = vmatprep.mubr.msk.f32.mxu0 %vm29533_vm1, %v34866_v40 }
 0x122   : > { %v26945_v43 = vpop.f32.mrf.mxu0 }
 0x123   : > { %v1369_v44 = vadd.f32 %v26945_v43, %v30066_v41  ;;  %v950_v43 = vld [vmem:[%s30068_s18 + $0x88] sm:$0xff] }
 0x124   : > { %v1363_v46 = vpop.f32.mrf.mxu0  ;;  %v1078_v49 = vmul.f32 0.35355338, %v950_v43  ;;  %v30281_v43 = vld [vmem:[%s34861_s5] ss:$0 sm:$0xff] }
 0x125   : > { %v1364_v48 = vadd.f32 %v30066_v41, %v1363_v46  ;;  %27053 = vmatpush3.xpose.msk.msra.mxu1 %vm1759_vm2, %v1369_v44 }
 0x126   : > { %v26948_v50 = vpop.f32.mrf.mxu0  ;;  %27062 = vmatprep.subr.mxu1 %v34866_v40 }
 0x127   : > { %v1379_v52 = vadd.f32 %v26948_v50, %v30066_v41  ;;  %27048 = vmatpush3.xpose.msk.msra.mxu0 %vm1759_vm2, %v1364_v48 }
 0x128   : > { %v1373_v54 = vpop.f32.mrf.mxu0  ;;  %27055 = vmatmul.mubr.msk.f32.vlgmr.msra.gmra.mxu1 %vm1759_vm2, %v1062_v47  ;;  %27057 = vmatprep.subr.mxu0 %v34866_v40  ;;  %v949_v47 = vld [vmem:[%s30068_s18 + $0x80] sm:$0xff] }
 0x129   : > { %v1374_v56 = vadd.f32 %v30066_v41, %v1373_v54  ;;  %27063 = vmatpush3.xpose.msk.msra.mxu1 %vm1759_vm2, %v1379_v52  ;;  %27064 = vmatprep.mubr.msk.f32.mxu1 %vm29533_vm1, %v34866_v40  ;;  %v1077_v53 = vmul.f32 0.35355338, %v949_v47 }
 0x12a   : > { %v26951_v58 = vpop.f32.mrf.mxu0  ;;  %27050 = vmatmul.mubr.msk.f32.vlgmr.msra.gmra.mxu0 %vm1759_vm2, %v1061_v51  ;;  %27072 = vmatprep.subr.mxu1 %v34866_v40  ;;  %v952_v51 = vld [vmem:[%s30068_s18 + $0x98] sm:$0xff] }
 0x12b   : > { %v1389_v60 = vadd.f32 %v26951_v58, %v30066_v41  ;;  %27058 = vmatpush3.xpose.msk.msra.mxu0 %vm1759_vm2, %v1374_v56  ;;  %27059 = vmatprep.mubr.msk.f32.mxu0 %vm29533_vm1, %v34866_v40  ;;  %v1080_v57 = vmul.f32 0.35355338, %v952_v51 }
 0x12c   : > { %v1383_v62 = vpop.f32.mrf.mxu0  ;;  %27065 = vmatmul.mubr.msk.f32.vlgmr.msra.gmra.mxu1 %vm1759_vm2, %v1064_v55  ;;  %27067 = vmatprep.subr.mxu0 %v34866_v40  ;;  %v951_v55 = vld [vmem:[%s30068_s18 + $0x90] sm:$0xff] }
 0x12d   : > { %v1384_v0 = vadd.f32 %v30066_v41, %v1383_v62  ;;  %27073 = vmatpush3.xpose.msk.msra.mxu1 %vm1759_vm2, %v1389_v60  ;;  %27074 = vmatprep.mubr.msk.f32.mxu1 %vm29533_vm1, %v34866_v40  ;;  %v1079_v61 = vmul.f32 0.35355338, %v951_v55 }
 0x12e   : > { %v26954_v2 = vpop.f32.mrf.mxu0  ;;  %27060 = vmatmul.mubr.msk.f32.vlgmr.msra.gmra.mxu0 %vm1759_vm2, %v1063_v59  ;;  %27082 = vmatprep.subr.mxu1 %v34866_v40  ;;  %v954_v59 = vld [vmem:[%s30068_s18 + $0xa8] sm:$0xff] }
 0x12f   : > { %v1399_v4 = vadd.f32 %v26954_v2, %v30066_v41  ;;  %27068 = vmatpush3.xpose.msk.msra.mxu0 %vm1759_vm2, %v1384_v0  ;;  %27069 = vmatprep.mubr.msk.f32.mxu0 %vm29533_vm1, %v34866_v40  ;;  %v1082_v1 = vmul.f32 0.35355338, %v954_v59 }
 0x130   : > { %v1393_v6 = vpop.f32.mrf.mxu0  ;;  %27075 = vmatmul.mubr.msk.f32.vlgmr.msra.gmra.mxu1 %vm1759_vm2, %v1066_v63  ;;  %27077 = vmatprep.subr.mxu0 %v34866_v40  ;;  %v953_v63 = vld [vmem:[%s30068_s18 + $0xa0] sm:$0xff] }
 0x131   : > { %v1394_v8 = vadd.f32 %v30066_v41, %v1393_v6  ;;  %27083 = vmatpush3.xpose.msk.msra.mxu1 %vm1759_vm2, %v1399_v4  ;;  %27084 = vmatprep.mubr.msk.f32.mxu1 %vm29533_vm1, %v34866_v40  ;;  %v1081_v5 = vmul.f32 0.35355338, %v953_v63 }
 0x132   : > { %v26957_v10 = vpop.f32.mrf.mxu0  ;;  %27070 = vmatmul.mubr.msk.f32.vlgmr.msra.gmra.mxu0 %vm1759_vm2, %v1065_v3  ;;  %27092 = vmatprep.subr.mxu1 %v34866_v40  ;;  %v956_v3 = vld [vmem:[%s30068_s18 + $0xb8] sm:$0xff] }
 0x133   : > { %v1409_v12 = vadd.f32 %v26957_v10, %v30066_v41  ;;  %27078 = vmatpush3.xpose.msk.msra.mxu0 %vm1759_vm2, %v1394_v8  ;;  %27079 = vmatprep.mubr.msk.f32.mxu0 %vm29533_vm1, %v34866_v40  ;;  %v1084_v9 = vmul.f32 0.35355338, %v956_v3 }
 0x134   : > { %v1403_v14 = vpop.f32.mrf.mxu0  ;;  %27085 = vmatmul.mubr.msk.f32.vlgmr.msra.gmra.mxu1 %vm1759_vm2, %v1068_v7  ;;  %27087 = vmatprep.subr.mxu0 %v34866_v40  ;;  %v955_v7 = vld [vmem:[%s30068_s18 + $0xb0] sm:$0xff] }
 0x135   : > { %v1404_v16 = vadd.f32 %v30066_v41, %v1403_v14  ;;  %27093 = vmatpush3.xpose.msk.msra.mxu1 %vm1759_vm2, %v1409_v12  ;;  %27094 = vmatprep.mubr.msk.f32.mxu1 %vm29533_vm1, %v34866_v40  ;;  %v1083_v13 = vmul.f32 0.35355338, %v955_v7 }
 0x136   : > { %v26960_v18 = vpop.f32.mrf.mxu0  ;;  %27080 = vmatmul.mubr.msk.f32.vlgmr.msra.gmra.mxu0 %vm1759_vm2, %v1067_v11  ;;  %27102 = vmatprep.subr.mxu1 %v34866_v40  ;;  %v958_v11 = vld [vmem:[%s30068_s18 + $0xc8] sm:$0xff] }
 0x137   : > { %v1419_v20 = vadd.f32 %v26960_v18, %v30066_v41  ;;  %27088 = vmatpush3.xpose.msk.msra.mxu0 %vm1759_vm2, %v1404_v16  ;;  %27089 = vmatprep.mubr.msk.f32.mxu0 %vm29533_vm1, %v34866_v40  ;;  %v1086_v17 = vmul.f32 0.35355338, %v958_v11 }
 0x138   : > { %v1413_v22 = vpop.f32.mrf.mxu0  ;;  %27095 = vmatmul.mubr.msk.f32.vlgmr.msra.gmra.mxu1 %vm1759_vm2, %v1070_v15  ;;  %27097 = vmatprep.subr.mxu0 %v34866_v40  ;;  %v957_v15 = vld [vmem:[%s30068_s18 + $0xc0] sm:$0xff] }
 0x139   : > { %v1414_v24 = vadd.f32 %v30066_v41, %v1413_v22  ;;  %27103 = vmatpush3.xpose.msk.msra.mxu1 %vm1759_vm2, %v1419_v20  ;;  %27104 = vmatprep.mubr.msk.f32.mxu1 %vm29533_vm1, %v34866_v40  ;;  %v1085_v21 = vmul.f32 0.35355338, %v957_v15 }
 0x13a   : > { %v26963_v26 = vpop.f32.mrf.mxu0  ;;  %27090 = vmatmul.mubr.msk.f32.vlgmr.msra.gmra.mxu0 %vm1759_vm2, %v1069_v19  ;;  %27112 = vmatprep.subr.mxu1 %v34866_v40  ;;  %v960_v19 = vld [vmem:[%s30068_s18 + $0xd8] sm:$0xff] }
 0x13b   : > { %v1429_v28 = vadd.f32 %v26963_v26, %v30066_v41  ;;  %27098 = vmatpush3.xpose.msk.msra.mxu0 %vm1759_vm2, %v1414_v24  ;;  %27099 = vmatprep.mubr.msk.f32.mxu0 %vm29533_vm1, %v34866_v40  ;;  %v1088_v25 = vmul.f32 0.35355338, %v960_v19 }
 0x13c   : > { %v1423_v30 = vpop.f32.mrf.mxu0  ;;  %27105 = vmatmul.mubr.msk.f32.vlgmr.msra.gmra.mxu1 %vm1759_vm2, %v1072_v23  ;;  %27107 = vmatprep.subr.mxu0 %v34866_v40  ;;  %v959_v23 = vld [vmem:[%s30068_s18 + $0xd0] sm:$0xff] }
 0x13d   : > { %v1424_v32 = vadd.f32 %v30066_v41, %v1423_v30  ;;  %27113 = vmatpush3.xpose.msk.msra.mxu1 %vm1759_vm2, %v1429_v28  ;;  %27114 = vmatprep.mubr.msk.f32.mxu1 %vm29533_vm1, %v34866_v40  ;;  %v1087_v29 = vmul.f32 0.35355338, %v959_v23 }
 0x13e   : > { %v26966_v34 = vpop.f32.mrf.mxu0  ;;  %27100 = vmatmul.mubr.msk.f32.vlgmr.msra.gmra.mxu0 %vm1759_vm2, %v1071_v27  ;;  %27122 = vmatprep.subr.mxu1 %v34866_v40  ;;  %v962_v27 = vld [vmem:[%s30068_s18 + $0xe8] sm:$0xff] }
 0x13f   : > { %v1439_v36 = vadd.f32 %v26966_v34, %v30066_v41  ;;  %27108 = vmatpush3.xpose.msk.msra.mxu0 %vm1759_vm2, %v1424_v32  ;;  %27109 = vmatprep.mubr.msk.f32.mxu0 %vm29533_vm1, %v34866_v40  ;;  %v1090_v33 = vmul.f32 0.35355338, %v962_v27 }
 0x140   : > { %v1433_v38 = vpop.f32.mrf.mxu0  ;;  %27115 = vmatmul.mubr.msk.f32.vlgmr.msra.gmra.mxu1 %vm1759_vm2, %v1074_v31  ;;  %27117 = vmatprep.subr.mxu0 %v34866_v40  ;;  %v961_v31 = vld [vmem:[%s30068_s18 + $0xe0] sm:$0xff] }
 0x141   : > { %v1434_v42 = vadd.f32 %v30066_v41, %v1433_v38  ;;  %27123 = vmatpush3.xpose.msk.msra.mxu1 %vm1759_vm2, %v1439_v36  ;;  %27124 = vmatprep.mubr.msk.f32.mxu1 %vm29533_vm1, %v34866_v40  ;;  %v1089_v37 = vmul.f32 0.35355338, %v961_v31 }
 0x142   : > { %v26969_v44 = vpop.f32.mrf.mxu0  ;;  %27110 = vmatmul.mubr.msk.f32.vlgmr.msra.gmra.mxu0 %vm1759_vm2, %v1073_v35  ;;  %27132 = vmatprep.subr.mxu1 %v34866_v40  ;;  %v964_v35 = vld [vmem:[%s30068_s18 + $0xf8] sm:$0xff] }
 0x143   : > { %v1449_v46 = vadd.f32 %v26969_v44, %v30066_v41  ;;  %27118 = vmatpush3.xpose.msk.msra.mxu0 %vm1759_vm2, %v1434_v42  ;;  %27119 = vmatprep.mubr.msk.f32.mxu0 %vm29533_vm1, %v34866_v40  ;;  %v1092_v44 = vmul.f32 0.35355338, %v964_v35 }
 0x144   : > { %v1443_v48 = vpop.f32.mrf.mxu0  ;;  %27125 = vmatmul.mubr.msk.f32.vlgmr.msra.gmra.mxu1 %vm1759_vm2, %v1076_v39  ;;  %27127 = vmatprep.subr.mxu0 %v34866_v40  ;;  %v963_v39 = vld [vmem:[%s30068_s18 + $0xf0] sm:$0xff] }
 0x145   : > { %v1444_v50 = vadd.f32 %v30066_v41, %v1443_v48  ;;  %27133 = vmatpush3.xpose.msk.msra.mxu1 %vm1759_vm2, %v1449_v46  ;;  %27134 = vmatprep.mubr.msk.f32.mxu1 %vm29533_vm1, %v34866_v40  ;;  %v1091_v46 = vmul.f32 0.35355338, %v963_v39 }
 0x146   : > { %v26972_v52 = vpop.f32.mrf.mxu0  ;;  %27120 = vmatmul.mubr.msk.f32.vlgmr.msra.gmra.mxu0 %vm1759_vm2, %v1075_v45  ;;  %27142 = vmatprep.subr.mxu1 %v34866_v40 }
 0x147   : > { %v1459_v54 = vadd.f32 %v26972_v52, %v30066_v41  ;;  %27128 = vmatpush3.xpose.msk.msra.mxu0 %vm1759_vm2, %v1444_v50  ;;  %27129 = vmatprep.mubr.msk.f32.mxu0 %vm29533_vm1, %v34866_v40 }
 0x148   : > { %v1453_v56 = vpop.f32.mrf.mxu0  ;;  %27135 = vmatmul.mubr.msk.f32.vlgmr.msra.gmra.mxu1 %vm1759_vm2, %v1078_v49  ;;  %27137 = vmatprep.subr.mxu0 %v34866_v40 }
 0x149   : > { %v1454_v58 = vadd.f32 %v30066_v41, %v1453_v56  ;;  %27143 = vmatpush3.xpose.msk.msra.mxu1 %vm1759_vm2, %v1459_v54  ;;  %27144 = vmatprep.mubr.msk.f32.mxu1 %vm29533_vm1, %v34866_v40 }
 0x14a   : > { %v26975_v60 = vpop.f32.mrf.mxu0  ;;  %27130 = vmatmul.mubr.msk.f32.vlgmr.msra.gmra.mxu0 %vm1759_vm2, %v1077_v53  ;;  %27152 = vmatprep.subr.mxu1 %v34866_v40 }
 0x14b   : > { %v1469_v62 = vadd.f32 %v26975_v60, %v30066_v41  ;;  %27138 = vmatpush3.xpose.msk.msra.mxu0 %vm1759_vm2, %v1454_v58  ;;  %27139 = vmatprep.mubr.msk.f32.mxu0 %vm29533_vm1, %v34866_v40 }
 0x14c   : > { %v1463_v0 = vpop.f32.mrf.mxu0  ;;  %27145 = vmatmul.mubr.msk.f32.vlgmr.msra.gmra.mxu1 %vm1759_vm2, %v1080_v57  ;;  %27147 = vmatprep.subr.mxu0 %v34866_v40 }
 0x14d   : > { %v1464_v2 = vadd.f32 %v30066_v41, %v1463_v0  ;;  %27153 = vmatpush3.xpose.msk.msra.mxu1 %vm1759_vm2, %v1469_v62  ;;  %27154 = vmatprep.mubr.msk.f32.mxu1 %vm29533_vm1, %v34866_v40  ;;  %v30330_v62 = vld [vmem:[%s34862_s6] sm:$0xff] }
 0x14e   : > { %v26978_v4 = vpop.f32.mrf.mxu0  ;;  %27140 = vmatmul.mubr.msk.f32.vlgmr.msra.gmra.mxu0 %vm1759_vm2, %v1079_v61  ;;  %27162 = vmatprep.subr.mxu1 %v34866_v40 }
 0x14f   : > { %v1479_v6 = vadd.f32 %v26978_v4, %v30066_v41  ;;  %27148 = vmatpush3.xpose.msk.msra.mxu0 %vm1759_vm2, %v1464_v2  ;;  %27149 = vmatprep.mubr.msk.f32.mxu0 %vm29533_vm1, %v34866_v40 }
 0x150   : > { %v1473_v8 = vpop.f32.mrf.mxu0  ;;  %27155 = vmatmul.mubr.msk.f32.vlgmr.msra.gmra.mxu1 %vm1759_vm2, %v1082_v1  ;;  %27157 = vmatprep.subr.mxu0 %v34866_v40 }
 0x151   : > { %v1474_v10 = vadd.f32 %v30066_v41, %v1473_v8  ;;  %27163 = vmatpush3.xpose.msk.msra.mxu1 %vm1759_vm2, %v1479_v6  ;;  %27164 = vmatprep.mubr.msk.f32.mxu1 %vm29533_vm1, %v34866_v40 }
 0x152   : > { %v26981_v12 = vpop.f32.mrf.mxu0  ;;  %27150 = vmatmul.mubr.msk.f32.vlgmr.msra.gmra.mxu0 %vm1759_vm2, %v1081_v5  ;;  %27172 = vmatprep.subr.mxu1 %v34866_v40 }
 0x153   : > { %v1489_v14 = vadd.f32 %v26981_v12, %v30066_v41  ;;  %27158 = vmatpush3.xpose.msk.msra.mxu0 %vm1759_vm2, %v1474_v10  ;;  %27159 = vmatprep.mubr.msk.f32.mxu0 %vm29533_vm1, %v34866_v40 }
 0x154   : > { %v1483_v16 = vpop.f32.mrf.mxu0  ;;  %27165 = vmatmul.mubr.msk.f32.vlgmr.msra.gmra.mxu1 %vm1759_vm2, %v1084_v9  ;;  %27167 = vmatprep.subr.mxu0 %v34866_v40 }
 0x155   : > { %v1484_v18 = vadd.f32 %v30066_v41, %v1483_v16  ;;  %27173 = vmatpush3.xpose.msk.msra.mxu1 %vm1759_vm2, %v1489_v14  ;;  %27174 = vmatprep.mubr.msk.f32.mxu1 %vm29533_vm1, %v34866_v40 }
 0x156   : > { %v26984_v20 = vpop.f32.mrf.mxu0  ;;  %27160 = vmatmul.mubr.msk.f32.vlgmr.msra.gmra.mxu0 %vm1759_vm2, %v1083_v13  ;;  %27182 = vmatprep.subr.mxu1 %v34866_v40 }
 0x157   : > { %v1499_v22 = vadd.f32 %v26984_v20, %v30066_v41  ;;  %27168 = vmatpush3.xpose.msk.msra.mxu0 %vm1759_vm2, %v1484_v18  ;;  %27169 = vmatprep.mubr.msk.f32.mxu0 %vm29533_vm1, %v34866_v40 }
 0x158   : > { %v1493_v24 = vpop.f32.mrf.mxu0  ;;  %27175 = vmatmul.mubr.msk.f32.vlgmr.msra.gmra.mxu1 %vm1759_vm2, %v1086_v17  ;;  %27177 = vmatprep.subr.mxu0 %v34866_v40  ;;  %v30355_v17 = vpop.f32.mrf.mxu1 }
 0x159   : > { %v1494_v26 = vadd.f32 %v30066_v41, %v1493_v24  ;;  %27183 = vmatpush3.xpose.msk.msra.mxu1 %vm1759_vm2, %v1499_v22  ;;  %27184 = vmatprep.mubr.msk.f32.mxu1 %vm29533_vm1, %v34866_v40  ;;  %34872 = vst [vmem:[#allocation7_spill] sm:$0xff] %v30355_v17 }
 0x15a   : > { %v26987_v28 = vpop.f32.mrf.mxu0  ;;  %27170 = vmatmul.mubr.msk.f32.vlgmr.msra.gmra.mxu0 %vm1759_vm2, %v1085_v21  ;;  %27192 = vmatprep.subr.mxu1 %v34866_v40  ;;  %v30359_v20 = vpop.f32.mrf.mxu1 }
 0x15b   : > { %v1509_v30 = vadd.f32 %v26987_v28, %v30066_v41  ;;  %27178 = vmatpush3.xpose.msk.msra.mxu0 %vm1759_vm2, %v1494_v26  ;;  %27179 = vmatprep.mubr.msk.f32.mxu0 %vm29533_vm1, %v34866_v40 }
 0x15c   : > { %v1503_v32 = vpop.f32.mrf.mxu0  ;;  %27185 = vmatmul.mubr.msk.f32.vlgmr.msra.gmra.mxu1 %vm1759_vm2, %v1088_v25  ;;  %27187 = vmatprep.subr.mxu0 %v34866_v40  ;;  %v30364_v23 = vpop.f32.mrf.mxu1 }
 0x15d   : > { %v1504_v34 = vadd.f32 %v30066_v41, %v1503_v32  ;;  %27193 = vmatpush3.xpose.msk.msra.mxu1 %vm1759_vm2, %v1509_v30  ;;  %27194 = vmatprep.mubr.msk.f32.mxu1 %vm29533_vm1, %v34866_v40  ;;  %34873 = vst [vmem:[#allocation8_spill] sm:$0xff] %v30364_v23 }
 0x15e   : > { %v26990_v36 = vpop.f32.mrf.mxu0  ;;  %27180 = vmatmul.mubr.msk.f32.vlgmr.msra.gmra.mxu0 %vm1759_vm2, %v1087_v29  ;;  %27202 = vmatprep.subr.mxu1 %v34866_v40  ;;  %v30368_v26 = vpop.f32.mrf.mxu1 }
 0x15f   : > { %v1519_v38 = vadd.f32 %v26990_v36, %v30066_v41  ;;  %27188 = vmatpush3.xpose.msk.msra.mxu0 %vm1759_vm2, %v1504_v34  ;;  %27189 = vmatprep.mubr.msk.f32.mxu0 %vm29533_vm1, %v34866_v40 }
 0x160   : > { %v1513_v42 = vpop.f32.mrf.mxu0  ;;  %27195 = vmatmul.mubr.msk.f32.vlgmr.msra.gmra.mxu1 %vm1759_vm2, %v1090_v33  ;;  %27197 = vmatprep.subr.mxu0 %v34866_v40  ;;  %v30373_v29 = vpop.f32.mrf.mxu1 }
 0x161   : > { %v1514_v45 = vadd.f32 %v30066_v41, %v1513_v42  ;;  %27203 = vmatpush3.xpose.msk.msra.mxu1 %vm1759_vm2, %v1519_v38  ;;  %27204 = vmatprep.mubr.msk.f32.mxu1 %vm29533_vm1, %v34866_v40  ;;  %34874 = vst [vmem:[#allocation9_spill] sm:$0xff] %v30373_v29 }
 0x162   : > { %27190 = vmatmul.mubr.msk.f32.vlgmr.msra.gmra.mxu0 %vm1759_vm2, %v1089_v37  ;;  %v27001_v47 = vpop.f32.mrf.mxu0  ;;  %27212 = vmatprep.subr.mxu1 %v34866_v40  ;;  %v30377_v32 = vpop.f32.mrf.mxu1 }
 0x163   : > { %27198 = vmatpush3.xpose.msk.msra.mxu0 %vm1759_vm2, %v1514_v45  ;;  %27199 = vmatprep.mubr.msk.f32.mxu0 %vm29533_vm1, %v34866_v40  ;;  %v1605_v48 = vadd.f32 %v27001_v47, %v30281_v43 }
 0x164   : > { %v1599_v49 = vpop.f32.mrf.mxu0  ;;  %27207 = vmatprep.subr.mxu0 %v34866_v40  ;;  %27205 = vmatmul.mubr.msk.f32.vlgmr.msra.gmra.mxu1 %vm1759_vm2, %v1092_v44  ;;  %v30382_v35 = vpop.f32.mrf.mxu1 }
 0x165   : > { %v1600_v41 = vadd.f32 %v30281_v43, %v1599_v49  ;;  %27213 = vmatpush3.msra.mxu1 %v1605_v48  ;;  %27214 = vmatprep.mubr.msk.f32.mxu1 %vm29533_vm1, %v34866_v40  ;;  %34875 = vst [vmem:[#allocation10_spill] sm:$0xff] %v30382_v35 }
 0x166   : > { %27200 = vmatmul.mubr.msk.f32.vlgmr.msra.gmra.mxu0 %vm1759_vm2, %v1091_v46  ;;  %27222 = vmatprep.subr.mxu1 %v34866_v40  ;;  %v30303_v50 = vpop.f32.mrf.mxu0  ;;  %v30386_v38 = vpop.f32.mrf.mxu1 }
 0x167   : > { %27208 = vmatpush3.msra.mxu0 %v1600_v41  ;;  %27209 = vmatprep.mubr.msk.f32.mxu0 %vm29533_vm1, %v34866_v40 }
 0x168   : > { %27217 = vmatprep.subr.mxu0 %v34866_v40  ;;  %v30305_v51 = vpop.f32.mrf.mxu0  ;;  %v30391_v44 = vpop.f32.mrf.mxu1 }
 0x169   : > { %34876 = vst [vmem:[#allocation11_spill] sm:$0xff] %v30391_v44 }
 0x16a   : > { %v30307_v52 = vpop.f32.mrf.mxu0  ;;  %v30395_v47 = vpop.f32.mrf.mxu1 }
 0x16c   : > { %v30309_v53 = vpop.f32.mrf.mxu0  ;;  %v30400_v41 = vpop.f32.mrf.mxu1 }
 0x16d   : > { %34877 = vst [vmem:[#allocation12_spill] sm:$0xff] %v30400_v41 }
 0x16e   : > { %v30311_v54 = vpop.f32.mrf.mxu0 }
 0x16f   : > { %34868 = vst [vmem:[#allocation3_spill] sm:$0xff] %v30311_v54 }
 0x170   : > { %v30313_v55 = vpop.f32.mrf.mxu0 }
 0x172   : > { %v30315_v56 = vpop.f32.mrf.mxu0 }
 0x173   : > { %34869 = vst [vmem:[#allocation4_spill] sm:$0xff] %v30315_v56 }
 0x174   : > { %v30317_v57 = vpop.f32.mrf.mxu0 }
 0x176   : > { %v30319_v58 = vpop.f32.mrf.mxu0 }
 0x177   : > { %34870 = vst [vmem:[#allocation5_spill] sm:$0xff] %v30319_v58 }
 0x178   : > { %v30321_v59 = vpop.f32.mrf.mxu0 }
 0x17a   : > { %v30323_v60 = vpop.f32.mrf.mxu0 }
 0x17b   : > { %34871 = vst [vmem:[#allocation6_spill] sm:$0xff] %v30323_v60 }
 0x17c   : > { %v30325_v61 = vpop.f32.mrf.mxu0 }
 0x1ea   : > { %v1832_v63 = vpop.f32.mrf.mxu0 }
 0x1eb   : > { %v30333_v0 = vadd.f32 %v1832_v63, %v30330_v62 }
 0x1ec   : > { %v27051_v1 = vpop.f32.mrf.mxu0 }
 0x1ed   : > { %v4192_v2 = vsel %vm1759_vm2, %v30333_v0, -inf }
 0x1ee   : > { %4193 = vmax.xlane.f32.xlu0 %v4192_v2  ;;  %v1984_v3 = vpop.f32.mrf.mxu0  ;;  %v30404_v2 = vpop.f32.mrf.mxu1 }
 0x1ef   : > { %v30338_v4 = vadd.f32 %v1984_v3, %v30330_v62 }
 0x1f0   : > { %v27061_v5 = vpop.f32.mrf.mxu0 }
 0x1f1   : > { %v4198_v6 = vsel %vm1759_vm2, %v30338_v4, -inf }
 0x1f2   : > { %4199 = vmax.xlane.f32.xlu0 %v4198_v6  ;;  %v2136_v7 = vpop.f32.mrf.mxu0  ;;  %v30409_v6 = vpop.f32.mrf.mxu1 }
 0x1f3   : > { %v30343_v8 = vadd.f32 %v2136_v7, %v30330_v62  ;;  %34878 = vst [vmem:[#allocation13_spill] sm:$0xff] %v30409_v6 }
 0x1f4   : > { %v27071_v9 = vpop.f32.mrf.mxu0 }
 0x1f5   : > { %v4204_v10 = vsel %vm1759_vm2, %v30343_v8, -inf }
 0x1f6   : > { %4205 = vmax.xlane.f32.xlu1 %v4204_v10  ;;  %v2288_v11 = vpop.f32.mrf.mxu0  ;;  %v30413_v10 = vpop.f32.mrf.mxu1 }
 0x1f7   : > { %v30348_v12 = vadd.f32 %v2288_v11, %v30330_v62 }
 0x1f8   : > { %v27081_v13 = vpop.f32.mrf.mxu0 }
 0x1f9   : > { %v4210_v14 = vsel %vm1759_vm2, %v30348_v12, -inf }
 0x1fa   : > { %4211 = vmax.xlane.f32.xlu1 %v4210_v14  ;;  %v2440_v15 = vpop.f32.mrf.mxu0  ;;  %v30418_v14 = vpop.f32.mrf.mxu1 }
 0x1fb   : > { %v30353_v16 = vadd.f32 %v2440_v15, %v30330_v62  ;;  %34879 = vst [vmem:[#allocation14_spill] sm:$0xff] %v30418_v14 }
 0x1fc   : > { %v27091_v18 = vpop.f32.mrf.mxu0 }
 0x1fd   : > { %v4216_v19 = vsel %vm1759_vm2, %v30353_v16, -inf }
 0x1fe   : > { %4217 = vmax.xlane.f32.xlu0 %v4216_v19  ;;  %v2592_v21 = vpop.f32.mrf.mxu0  ;;  %v30422_v19 = vpop.f32.mrf.mxu1 }
 0x1ff   : > { %v30362_v22 = vadd.f32 %v2592_v21, %v30330_v62 }
 0x200   : > { %v27101_v24 = vpop.f32.mrf.mxu0 }
 0x201   : > { %v4222_v25 = vsel %vm1759_vm2, %v30362_v22, -inf }
 0x202   : > { %4223 = vmax.xlane.f32.xlu1 %v4222_v25  ;;  %v2744_v27 = vpop.f32.mrf.mxu0  ;;  %v30427_v25 = vpop.f32.mrf.mxu1 }
 0x203   : > { %v30371_v28 = vadd.f32 %v2744_v27, %v30330_v62  ;;  %34880 = vst [vmem:[#allocation15_spill] sm:$0xff] %v30427_v25 }
 0x204   : > { %v27111_v30 = vpop.f32.mrf.mxu0 }
 0x205   : > { %v4228_v31 = vsel %vm1759_vm2, %v30371_v28, -inf }
 0x206   : > { %4229 = vmax.xlane.f32.xlu0 %v4228_v31  ;;  %v2896_v33 = vpop.f32.mrf.mxu0  ;;  %v30431_v31 = vpop.f32.mrf.mxu1 }
 0x207   : > { %v30380_v34 = vadd.f32 %v2896_v33, %v30330_v62 }
 0x208   : > { %v27121_v36 = vpop.f32.mrf.mxu0 }
 0x209   : > { %v4234_v37 = vsel %vm1759_vm2, %v30380_v34, -inf }
 0x20a   : > { %4235 = vmax.xlane.f32.xlu1 %v4234_v37  ;;  %v3048_v39 = vpop.f32.mrf.mxu0  ;;  %v30436_v37 = vpop.f32.mrf.mxu1 }
 0x20b   : > { %v30389_v42 = vadd.f32 %v3048_v39, %v30330_v62 }
 0x20c   : > { %v27131_v45 = vpop.f32.mrf.mxu0 }
 0x20d   : > { %v4240_v46 = vsel %vm1759_vm2, %v30389_v42, -inf }
 0x20e   : > { %4241 = vmax.xlane.f32.xlu0 %v4240_v46  ;;  %v3200_v48 = vpop.f32.mrf.mxu0  ;;  %v27056_v46 = vpop.f32.mrf.mxu1 }
 0x20f   : > { %v30398_v49 = vadd.f32 %v3200_v48, %v30330_v62 }
 0x210   : > { %v27141_v63 = vpop.f32.mrf.mxu0 }
 0x211   : > { %v4246_v1 = vsel %vm1759_vm2, %v30398_v49, -inf }
 0x212   : > { %4247 = vmax.xlane.f32.xlu1 %v4246_v1  ;;  %v3352_v3 = vpop.f32.mrf.mxu0  ;;  %v30443_v1 = vpop.f32.mrf.mxu1 }
 0x213   : > { %v30407_v5 = vadd.f32 %v3352_v3, %v30330_v62 }
 0x214   : > { %v27151_v7 = vpop.f32.mrf.mxu0 }
 0x215   : > { %v4252_v9 = vsel %vm1759_vm2, %v30407_v5, -inf }
 0x216   : > { %4253 = vmax.xlane.f32.xlu0 %v4252_v9  ;;  %v3504_v11 = vpop.f32.mrf.mxu0  ;;  %v27066_v9 = vpop.f32.mrf.mxu1 }
 0x217   : > { %v30416_v13 = vadd.f32 %v3504_v11, %v30330_v62 }
 0x218   : > { %v27161_v15 = vpop.f32.mrf.mxu0 }
 0x219   : > { %v4258_v18 = vsel %vm1759_vm2, %v30416_v13, -inf }
 0x21a   : > { %4259 = vmax.xlane.f32.xlu1 %v4258_v18  ;;  %v3656_v21 = vpop.f32.mrf.mxu0  ;;  %v30450_v18 = vpop.f32.mrf.mxu1 }
 0x21b   : > { %v30425_v24 = vadd.f32 %v3656_v21, %v30330_v62 }
 0x21c   : > { %v27171_v27 = vpop.f32.mrf.mxu0 }
 0x21d   : > { %v4264_v30 = vsel %vm1759_vm2, %v30425_v24, -inf }
 0x21e   : > { %4265 = vmax.xlane.f32.xlu0 %v4264_v30  ;;  %v3808_v33 = vpop.f32.mrf.mxu0  ;;  %v27076_v30 = vpop.f32.mrf.mxu1 }
 0x21f   : > { %v30434_v36 = vadd.f32 %v3808_v33, %v30330_v62 }
 0x220   : > { %v27181_v39 = vpop.f32.mrf.mxu0  ;;  %v30454_v33 = vpop.f32.mrf.mxu1 }
 0x221   : > { %v4270_v45 = vsel %vm1759_vm2, %v30434_v36, -inf }
 0x222   : > { %4271 = vmax.xlane.f32.xlu1 %v4270_v45  ;;  %v3960_v48 = vpop.f32.mrf.mxu0  ;;  %v27086_v39 = vpop.f32.mrf.mxu1 }
 0x223   : > { %v30441_v63 = vadd.f32 %v3960_v48, %v30330_v62 }
 0x224   : > { %v27191_v3 = vpop.f32.mrf.mxu0  ;;  %v30456_v45 = vpop.f32.mrf.mxu1 }
 0x225   : > { %v4276_v7 = vsel %vm1759_vm2, %v30441_v63, -inf }
 0x226   : > { %4277 = vmax.xlane.f32.xlu0 %v4276_v7  ;;  %v4112_v11 = vpop.f32.mrf.mxu0  ;;  %v27096_v46 = vpop.f32.mrf.mxu1 }
 0x227   : > { %v30448_v15 = vadd.f32 %v4112_v11, %v30330_v62 }
 0x228   : > { %v27201_v21 = vpop.f32.mrf.mxu0  ;;  %v30458_v48 = vpop.f32.mrf.mxu1 }
 0x229   : > { %v4282_v27 = vsel %vm1759_vm2, %v30448_v15, -inf }
 0x22a   : > { %4283 = vmax.xlane.f32.xlu1 %v4282_v27  ;;  %v27106_v3 = vpop.f32.mrf.mxu1 }
 0x22c   : > { %v30460_v7 = vpop.f32.mrf.mxu1 }
 0x22e   : > { %v27116_v9 = vpop.f32.mrf.mxu1 }
 0x230   : > { %v30462_v11 = vpop.f32.mrf.mxu1 }
 0x232   : > { %v27126_v21 = vpop.f32.mrf.mxu1 }
 0x234   : > { %v30464_v40 = vpop.f32.mrf.mxu1 }
 0x236   : > { %v27136_v25 = vpop.f32.mrf.mxu1 }
 0x238   : > { %v30466_v30 = vpop.f32.mrf.mxu1 }
 0x23a   : > { %v27146_v27 = vpop.f32.mrf.mxu1 }
 0x23c   : > { %v30468_v14 = vpop.f32.mrf.mxu1 }
 0x23e   : > { %v27156_v39 = vpop.f32.mrf.mxu1 }
 0x240   : > { %v30470_v6 = vpop.f32.mrf.mxu1 }
 0x242   : > { %v27166_v46 = vpop.f32.mrf.mxu1 }
 0x244   : > { %v30472_v41 = vpop.f32.mrf.mxu1 }
 0x246   : > { %v27176_v3 = vpop.f32.mrf.mxu1 }
 0x248   : > { %v30474_v44 = vpop.f32.mrf.mxu1 }
 0x24a   : > { %v27186_v9 = vpop.f32.mrf.mxu1 }
 0x24c   : > { %v30476_v35 = vpop.f32.mrf.mxu1 }
 0x24e   : > { %v27196_v21 = vpop.f32.mrf.mxu1 }
 0x250   : > { %v30478_v29 = vpop.f32.mrf.mxu1 }
 0x252   : > { %v27206_v25 = vpop.f32.mrf.mxu1 }
 0x277   : > { %v4194_v23 = vpop.xlane.xlu0 %4193 }
 0x278   : > { %v4288_v27 = vsub.f32 %v30333_v0, %v4194_v23 }
 0x27a   : > { %v4320_v17 = vmul.f32 1.442695, %v4288_v27 }
 0x27b   : > { %v4200_v39 = vpop.xlane.xlu0 %4199 }
 0x27c   : > { %28897 = vpow2.f32 %v4320_v17  ;;  %v4290_v46 = vsub.f32 %v30338_v4, %v4200_v39 }
 0x27e   : > { %v4324_v60 = vmul.f32 1.442695, %v4290_v46 }
 0x27f   : > { %v4206_v58 = vpop.xlane.xlu1 %4205 }
 0x280   : > { %28899 = vpow2.f32 %v4324_v60  ;;  %v4292_v3 = vsub.f32 %v30343_v8, %v4206_v58 }
 0x282   : > { %v4328_v9 = vmul.f32 1.442695, %v4292_v3 }
 0x283   : > { %v4212_v56 = vpop.xlane.xlu1 %4211 }
 0x284   : > { %28901 = vpow2.f32 %v4328_v9  ;;  %v4294_v21 = vsub.f32 %v30348_v12, %v4212_v56 }
 0x286   : > { %v4332_v54 = vmul.f32 1.442695, %v4294_v21 }
 0x287   : > { %v4218_v25 = vpop.xlane.xlu0 %4217 }
 0x288   : > { %28903 = vpow2.f32 %v4332_v54  ;;  %v4296_v0 = vsub.f32 %v30353_v16, %v4218_v25 }
 0x289   : > { %v30485_v23 = vpop.eup %28897 }
 0x28a   : > { %v4336_v17 = vmul.f32 1.442695, %v4296_v0  ;;  %v4384_v4 = vsel %vm1759_vm2, %v30485_v23, 0.0 }
 0x28b   : > { %v4224_v27 = vpop.xlane.xlu1 %4223  ;;  %4385 = vadd.xlane.f32.xlu0 %v4384_v4 }
 0x28c   : > { %28905 = vpow2.f32 %v4336_v17  ;;  %v4298_v58 = vsub.f32 %v30362_v22, %v4224_v27 }
 0x28d   : > { %v30490_v60 = vpop.eup %28899 }
 0x28e   : > { %v4340_v8 = vmul.f32 1.442695, %v4298_v58  ;;  %v4390_v56 = vsel %vm1759_vm2, %v30490_v60, 0.0 }
 0x28f   : > { %v4230_v54 = vpop.xlane.xlu0 %4229  ;;  %4391 = vadd.xlane.f32.xlu1 %v4390_v56 }
 0x290   : > { %28907 = vpow2.f32 %v4340_v8  ;;  %v4300_v12 = vsub.f32 %v30371_v28, %v4230_v54 }
 0x291   : > { %v30495_v16 = vpop.eup %28901 }
 0x292   : > { %v4344_v39 = vmul.f32 1.442695, %v4300_v12  ;;  %v4396_v46 = vsel %vm1759_vm2, %v30495_v16, 0.0 }
 0x293   : > { %v4236_v3 = vpop.xlane.xlu1 %4235  ;;  %4397 = vadd.xlane.f32.xlu0 %v4396_v46 }
 0x294   : > { %28909 = vpow2.f32 %v4344_v39  ;;  %v4302_v22 = vsub.f32 %v30380_v34, %v4236_v3 }
 0x295   : > { %v30500_v9 = vpop.eup %28903 }
 0x296   : > { %v4348_v21 = vmul.f32 1.442695, %v4302_v22  ;;  %v4402_v25 = vsel %vm1759_vm2, %v30500_v9, 0.0 }
 0x297   : > { %v4242_v0 = vpop.xlane.xlu0 %4241  ;;  %4403 = vadd.xlane.f32.xlu1 %v4402_v25 }
 0x298   : > { %28911 = vpow2.f32 %v4348_v21  ;;  %v4304_v28 = vsub.f32 %v30389_v42, %v4242_v0 }
 0x299   : > { %v30505_v17 = vpop.eup %28905 }
 0x29a   : > { %v4352_v4 = vmul.f32 1.442695, %v4304_v28  ;;  %v4408_v27 = vsel %vm1759_vm2, %v30505_v17, 0.0 }
 0x29b   : > { %v4248_v58 = vpop.xlane.xlu1 %4247  ;;  %4409 = vadd.xlane.f32.xlu0 %v4408_v27 }
 0x29c   : > { %28913 = vpow2.f32 %v4352_v4  ;;  %v4306_v34 = vsub.f32 %v30398_v49, %v4248_v58 }
 0x29d   : > { %v30510_v8 = vpop.eup %28907 }
 0x29e   : > { %v4356_v56 = vmul.f32 1.442695, %v4306_v34  ;;  %v4414_v54 = vsel %vm1759_vm2, %v30510_v8, 0.0 }
 0x29f   : > { %v4254_v12 = vpop.xlane.xlu0 %4253  ;;  %4415 = vadd.xlane.f32.xlu1 %v4414_v54 }
 0x2a0   : > { %28915 = vpow2.f32 %v4356_v56  ;;  %v4308_v42 = vsub.f32 %v30407_v5, %v4254_v12 }
 0x2a1   : > { %v30515_v39 = vpop.eup %28909 }
 0x2a2   : > { %v4360_v46 = vmul.f32 1.442695, %v4308_v42  ;;  %v4420_v3 = vsel %vm1759_vm2, %v30515_v39, 0.0 }
 0x2a3   : > { %v4260_v22 = vpop.xlane.xlu1 %4259  ;;  %4421 = vadd.xlane.f32.xlu0 %v4420_v3 }
 0x2a4   : > { %28917 = vpow2.f32 %v4360_v46  ;;  %v4310_v49 = vsub.f32 %v30416_v13, %v4260_v22 }
 0x2a5   : > { %v30520_v21 = vpop.eup %28911 }
 0x2a6   : > { %v4364_v25 = vmul.f32 1.442695, %v4310_v49  ;;  %v4426_v0 = vsel %vm1759_vm2, %v30520_v21, 0.0 }
 0x2a7   : > { %v4266_v28 = vpop.xlane.xlu0 %4265  ;;  %4427 = vadd.xlane.f32.xlu1 %v4426_v0 }
 0x2a8   : > { %28919 = vpow2.f32 %v4364_v25  ;;  %v4312_v5 = vsub.f32 %v30425_v24, %v4266_v28  ;;  %v30536_v24 = vadd.f32 %v30436_v37, %v30330_v62  ;;  %v30545_v25 = vadd.f32 %v30443_v1, %v30330_v62 }
 0x2a9   : > { %v30525_v4 = vpop.eup %28913 }
 0x2aa   : > { %v4368_v27 = vmul.f32 1.442695, %v4312_v5  ;;  %v4432_v58 = vsel %vm1759_vm2, %v30525_v4, 0.0  ;;  %v4195_v37 = vsel %vm1759_vm2, %v30536_v24, -inf  ;;  %v4201_v1 = vsel %vm1759_vm2, %v30545_v25, -inf }
 0x2ab   : > { %v4272_v34 = vpop.xlane.xlu1 %4271  ;;  %4433 = vadd.xlane.f32.xlu0 %v4432_v58 }
 0x2ac   : > { %28921 = vpow2.f32 %v4368_v27  ;;  %v4314_v13 = vsub.f32 %v30434_v36, %v4272_v34  ;;  %v30556_v27 = vadd.f32 %v30450_v18, %v30330_v62  ;;  %v30566_v34 = vadd.f32 %v30454_v33, %v30330_v62 }
 0x2ad   : > { %v30530_v56 = vpop.eup %28915 }
 0x2ae   : > { %v4372_v54 = vmul.f32 1.442695, %v4314_v13  ;;  %v4438_v12 = vsel %vm1759_vm2, %v30530_v56, 0.0  ;;  %v4207_v13 = vsel %vm1759_vm2, %v30556_v27, -inf }
 0x2af   : > { %v4278_v42 = vpop.xlane.xlu0 %4277  ;;  %4439 = vadd.xlane.f32.xlu1 %v4438_v12  ;;  %v30576_v12 = vadd.f32 %v30456_v45, %v30330_v62 }
 0x2b0   : > { %28923 = vpow2.f32 %v4372_v54  ;;  %v4316_v46 = vsub.f32 %v30441_v63, %v4278_v42  ;;  %v4213_v42 = vsel %vm1759_vm2, %v30566_v34, -inf }
 0x2b1   : > { %v30539_v3 = vpop.eup %28917  ;;  %v4219_v45 = vsel %vm1759_vm2, %v30576_v12, -inf }
 0x2b2   : > { %v4376_v22 = vmul.f32 1.442695, %v4316_v46  ;;  %v4444_v36 = vsel %vm1759_vm2, %v30539_v3, 0.0 }
 0x2b3   : > { %4445 = vadd.xlane.f32.xlu0 %v4444_v36  ;;  %v4284_v49 = vpop.xlane.xlu1 %4283  ;;  %v30590_v36 = vadd.f32 %v30460_v7, %v30330_v62 }
 0x2b4   : > { %28925 = vpow2.f32 %v4376_v22  ;;  %v4318_v0 = vsub.f32 %v30448_v15, %v4284_v49  ;;  %v30586_v22 = vadd.f32 %v30458_v48, %v30330_v62  ;;  %v30604_v48 = vadd.f32 %v30464_v40, %v30330_v62 }
 0x2b5   : > { %v30550_v28 = vpop.eup %28919  ;;  %v4231_v7 = vsel %vm1759_vm2, %v30590_v36, -inf }
 0x2b6   : > { %v4380_v63 = vmul.f32 1.442695, %v4318_v0  ;;  %v4450_v5 = vsel %vm1759_vm2, %v30550_v28, 0.0  ;;  %v4243_v40 = vsel %vm1759_vm2, %v30604_v48, -inf }
 0x2b7   : > { %4196 = vmax.xlane.f32.xlu0 %v4195_v37  ;;  %4451 = vadd.xlane.f32.xlu1 %v4450_v5  ;;  %v30600_v37 = vadd.f32 %v30462_v11, %v30330_v62  ;;  %v30612_v5 = vadd.f32 %v30466_v30, %v30330_v62  ;;  %v30616_v11 = vadd.f32 %v30468_v14, %v30330_v62 }
 0x2b8   : > { %28927 = vpow2.f32 %v4380_v63  ;;  %v4225_v63 = vsel %vm1759_vm2, %v30586_v22, -inf  ;;  %v30628_v30 = vadd.f32 %v30472_v41, %v30330_v62 }
 0x2b9   : > { %v30560_v15 = vpop.eup %28921  ;;  %v4255_v14 = vsel %vm1759_vm2, %v30616_v11, -inf }
 0x2ba   : > { %v4456_v58 = vsel %vm1759_vm2, %v30560_v15, 0.0  ;;  %v4267_v41 = vsel %vm1759_vm2, %v30628_v30, -inf }
 0x2bb   : > { %4202 = vmax.xlane.f32.xlu0 %v4201_v1  ;;  %4457 = vadd.xlane.f32.xlu1 %v4456_v58  ;;  %v4237_v1 = vsel %vm1759_vm2, %v30600_v37, -inf  ;;  %v30624_v58 = vadd.f32 %v30470_v6, %v30330_v62  ;;  %v30640_v6 = vadd.f32 %v30476_v35, %v30330_v62 }
 0x2bd   : > { %v30570_v18 = vpop.eup %28923 }
 0x2be   : > { %v4462_v54 = vsel %vm1759_vm2, %v30570_v18, 0.0 }
 0x2bf   : > { %4208 = vmax.xlane.f32.xlu0 %v4207_v13  ;;  %4463 = vadd.xlane.f32.xlu1 %v4462_v54  ;;  %v4249_v13 = vsel %vm1759_vm2, %v30612_v5, -inf  ;;  %v30636_v54 = vadd.f32 %v30474_v44, %v30330_v62  ;;  %v4279_v44 = vsel %vm1759_vm2, %v30640_v6, -inf }
 0x2c1   : > { %v30580_v46 = vpop.eup %28925 }
 0x2c2   : > { %v4468_v33 = vsel %vm1759_vm2, %v30580_v46, 0.0 }
 0x2c3   : > { %4214 = vmax.xlane.f32.xlu0 %v4213_v42  ;;  %4469 = vadd.xlane.f32.xlu1 %v4468_v33  ;;  %v4261_v42 = vsel %vm1759_vm2, %v30624_v58, -inf  ;;  %v30648_v33 = vadd.f32 %v30478_v29, %v30330_v62 }
 0x2c5   : > { %v30594_v49 = vpop.eup %28927  ;;  %v4285_v35 = vsel %vm1759_vm2, %v30648_v33, -inf }
 0x2c6   : > { %v4474_v0 = vsel %vm1759_vm2, %v30594_v49, 0.0 }
 0x2c7   : > { %4220 = vmax.xlane.f32.xlu0 %v4219_v45  ;;  %4475 = vadd.xlane.f32.xlu1 %v4474_v0  ;;  %v4273_v45 = vsel %vm1759_vm2, %v30636_v54, -inf }
 0x2cb   : > { %4232 = vmax.xlane.f32.xlu0 %v4231_v7  ;;  %4226 = vmax.xlane.f32.xlu1 %v4225_v63 }
 0x2cf   : > { %4244 = vmax.xlane.f32.xlu0 %v4243_v40  ;;  %4238 = vmax.xlane.f32.xlu1 %v4237_v1  ;;  %v1610_v1 = vadd.f32 %v30281_v43, %v30305_v51 }
 0x2d3   : > { %4256 = vmax.xlane.f32.xlu0 %v4255_v14  ;;  %4250 = vmax.xlane.f32.xlu1 %v4249_v13 }
 0x2d7   : > { %4268 = vmax.xlane.f32.xlu0 %v4267_v41  ;;  %4262 = vmax.xlane.f32.xlu1 %v4261_v42  ;;  %v34881_v41 = vmov 0.0  }
 0x2db   : > { %4280 = vmax.xlane.f32.xlu0 %v4279_v44  ;;  %4274 = vmax.xlane.f32.xlu1 %v4273_v45  ;;  %v1620_v44 = vadd.f32 %v30281_v43, %v30309_v53 }
 0x2df   : > { %4286 = vmax.xlane.f32.xlu1 %v4285_v35  ;;  %v1630_v35 = vadd.f32 %v30281_v43, %v30313_v55 }
 0x314   : > { %v4386_v0 = vpop.xlane.xlu0 %4385 }
 0x315   : > { %28929 = vrcp.f32 %v4386_v0 }
 0x318   : > { %v4392_v7 = vpop.xlane.xlu1 %4391 }
 0x319   : > { %28931 = vrcp.f32 %v4392_v7  ;;  %v1640_v7 = vadd.f32 %v30281_v43, %v30317_v57 }
 0x31c   : > { %v4398_v63 = vpop.xlane.xlu0 %4397 }
 0x31d   : > { %28933 = vrcp.f32 %v4398_v63 }
 0x320   : > { %v4404_v62 = vpop.xlane.xlu1 %4403 }
 0x321   : > { %28935 = vrcp.f32 %v4404_v62  ;;  %v1650_v62 = vadd.f32 %v30281_v43, %v30321_v59 }
 0x322   : > { %v28930_v29 = vpop.eup %28929 }
 0x323   : > { %v4512_v40 = vmul.f32 %v28930_v29, %v30485_v23 }
 0x324   : > { %v4410_v14 = vpop.xlane.xlu0 %4409 }
 0x325   : > { %28937 = vrcp.f32 %v4410_v14  ;;  %27210 = vmatmul.mubr.msk.f32.vlgmr.msra.gmra.mxu0 %vm1759_vm2, %v4512_v40  ;;  %v1660_v40 = vadd.f32 %v30281_v43, %v30325_v61  ;;  %v1670_v14 = vadd.f32 %v30281_v43, %v30359_v20 }
 0x326   : > { %v28932_v13 = vpop.eup %28931  ;;  %27218 = vmatpush3.msra.mxu0 %v1610_v1  ;;  %27219 = vmatprep.mubr.msk.f32.mxu0 %vm29533_vm1, %v34881_v41 }
 0x327   : > { %27227 = vmatprep.subr.mxu0 %v34881_v41  ;;  %v4514_v42 = vmul.f32 %v28932_v13, %v30490_v60 }
 0x328   : > { %v4416_v23 = vpop.xlane.xlu1 %4415 }
 0x329   : > { %28939 = vrcp.f32 %v4416_v23  ;;  %27220 = vmatmul.mubr.msk.f32.vlgmr.msra.gmra.mxu0 %vm1759_vm2, %v4514_v42  ;;  %v1680_v42 = vadd.f32 %v30281_v43, %v30368_v26  ;;  %v1690_v26 = vadd.f32 %v30281_v43, %v30377_v32  ;;  %v1700_v32 = vadd.f32 %v30281_v43, %v30386_v38 }
 0x32a   : > { %v28934_v51 = vpop.eup %28933  ;;  %27228 = vmatpush3.msra.mxu0 %v1620_v44  ;;  %27229 = vmatprep.mubr.msk.f32.mxu0 %vm29533_vm1, %v34881_v41  ;;  %v1710_v38 = vadd.f32 %v30281_v43, %v30395_v47  ;;  %v1720_v47 = vadd.f32 %v30281_v43, %v30404_v2 }
 0x32b   : > { %27237 = vmatprep.subr.mxu0 %v34881_v41  ;;  %v4516_v45 = vmul.f32 %v28934_v51, %v30495_v16 }
 0x32c   : > { %v4422_v60 = vpop.xlane.xlu0 %4421 }
 0x32d   : > { %28941 = vrcp.f32 %v4422_v60  ;;  %27230 = vmatmul.mubr.msk.f32.vlgmr.msra.gmra.mxu0 %vm1759_vm2, %v4516_v45 }
 0x32e   : > { %v28936_v53 = vpop.eup %28935  ;;  %27238 = vmatpush3.msra.mxu0 %v1630_v35  ;;  %27239 = vmatprep.mubr.msk.f32.mxu0 %vm29533_vm1, %v34881_v41 }
 0x32f   : > { %27247 = vmatprep.subr.mxu0 %v34881_v41  ;;  %v4518_v0 = vmul.f32 %v28936_v53, %v30500_v9 }
 0x330   : > { %v4428_v16 = vpop.xlane.xlu1 %4427 }
 0x331   : > { %28943 = vrcp.f32 %v4428_v16  ;;  %27240 = vmatmul.mubr.msk.f32.vlgmr.msra.gmra.mxu0 %vm1759_vm2, %v4518_v0 }
 0x332   : > { %v28938_v55 = vpop.eup %28937  ;;  %27248 = vmatpush3.msra.mxu0 %v1640_v7  ;;  %27249 = vmatprep.mubr.msk.f32.mxu0 %vm29533_vm1, %v34881_v41 }
 0x333   : > { %27257 = vmatprep.subr.mxu0 %v34881_v41  ;;  %v4520_v63 = vmul.f32 %v28938_v55, %v30505_v17 }
 0x334   : > { %v4434_v9 = vpop.xlane.xlu0 %4433 }
 0x335   : > { %28945 = vrcp.f32 %v4434_v9  ;;  %27250 = vmatmul.mubr.msk.f32.vlgmr.msra.gmra.mxu0 %vm1759_vm2, %v4520_v63 }
 0x336   : > { %v28940_v57 = vpop.eup %28939  ;;  %27258 = vmatpush3.msra.mxu0 %v1650_v62  ;;  %27259 = vmatprep.mubr.msk.f32.mxu0 %vm29533_vm1, %v34881_v41 }
 0x337   : > { %27267 = vmatprep.subr.mxu0 %v34881_v41  ;;  %v4522_v29 = vmul.f32 %v28940_v57, %v30510_v8 }
 0x338   : > { %v4440_v17 = vpop.xlane.xlu1 %4439 }
 0x339   : > { %28947 = vrcp.f32 %v4440_v17  ;;  %27260 = vmatmul.mubr.msk.f32.vlgmr.msra.gmra.mxu0 %vm1759_vm2, %v4522_v29 }
 0x33a   : > { %v28942_v59 = vpop.eup %28941  ;;  %27268 = vmatpush3.msra.mxu0 %v1660_v40  ;;  %27269 = vmatprep.mubr.msk.f32.mxu0 %vm29533_vm1, %v34881_v41 }
 0x33b   : > { %27277 = vmatprep.subr.mxu0 %v34881_v41  ;;  %v4524_v1 = vmul.f32 %v28942_v59, %v30515_v39 }
 0x33c   : > { %v4446_v8 = vpop.xlane.xlu0 %4445 }
 0x33d   : > { %28949 = vrcp.f32 %v4446_v8  ;;  %27270 = vmatmul.mubr.msk.f32.vlgmr.msra.gmra.mxu0 %vm1759_vm2, %v4524_v1  ;;  %v1730_v8 = vadd.f32 %v30281_v43, %v30413_v10 }
 0x33e   : > { %v28944_v61 = vpop.eup %28943  ;;  %27278 = vmatpush3.msra.mxu0 %v1670_v14  ;;  %27279 = vmatprep.mubr.msk.f32.mxu0 %vm29533_vm1, %v34881_v41 }
 0x33f   : > { %27287 = vmatprep.subr.mxu0 %v34881_v41  ;;  %v4526_v13 = vmul.f32 %v28944_v61, %v30520_v21 }
 0x340   : > { %v4197_v39 = vpop.xlane.xlu0 %4196  ;;  %v4452_v44 = vpop.xlane.xlu1 %4451 }
 0x341   : > { %v4289_v20 = vsub.f32 %v30536_v24, %v4197_v39  ;;  %28951 = vrcp.f32 %v4452_v44  ;;  %27280 = vmatmul.mubr.msk.f32.vlgmr.msra.gmra.mxu0 %vm1759_vm2, %v4526_v13 }
 0x342   : > { %v28946_v23 = vpop.eup %28945  ;;  %27288 = vmatpush3.msra.mxu0 %v1680_v42  ;;  %27289 = vmatprep.mubr.msk.f32.mxu0 %vm29533_vm1, %v34881_v41 }
 0x343   : > { %v4322_v51 = vmul.f32 1.442695, %v4289_v20  ;;  %27297 = vmatprep.subr.mxu0 %v34881_v41  ;;  %v4528_v21 = vmul.f32 %v28946_v23, %v30525_v4 }
 0x344   : > { %v4203_v45 = vpop.xlane.xlu0 %4202  ;;  %v4458_v35 = vpop.xlane.xlu1 %4457 }
 0x345   : > { %28953 = vpow2.f32 %v4322_v51  ;;  %v4291_v24 = vsub.f32 %v30545_v25, %v4203_v45  ;;  %27290 = vmatmul.mubr.msk.f32.vlgmr.msra.gmra.mxu0 %vm1759_vm2, %v4528_v21 }
 0x346   : > { %v28948_v60 = vpop.eup %28947  ;;  %28955 = vrcp.f32 %v4458_v35  ;;  %27298 = vmatpush3.msra.mxu0 %v1690_v26  ;;  %27299 = vmatprep.mubr.msk.f32.mxu0 %vm29533_vm1, %v34881_v41 }
 0x347   : > { %v4326_v53 = vmul.f32 1.442695, %v4291_v24  ;;  %27307 = vmatprep.subr.mxu0 %v34881_v41  ;;  %v4530_v4 = vmul.f32 %v28948_v60, %v30530_v56  ;;  %v1750_v60 = vadd.f32 %v30281_v43, %v30431_v31 }
 0x348   : > { %v4209_v0 = vpop.xlane.xlu0 %4208  ;;  %v4464_v7 = vpop.xlane.xlu1 %4463 }
 0x349   : > { %28957 = vpow2.f32 %v4326_v53  ;;  %v4293_v25 = vsub.f32 %v30556_v27, %v4209_v0  ;;  %27300 = vmatmul.mubr.msk.f32.vlgmr.msra.gmra.mxu0 %vm1759_vm2, %v4530_v4 }
 0x34a   : > { %v28950_v16 = vpop.eup %28949  ;;  %28959 = vrcp.f32 %v4464_v7  ;;  %27308 = vmatpush3.msra.mxu0 %v1700_v32  ;;  %27309 = vmatprep.mubr.msk.f32.mxu0 %vm29533_vm1, %v34881_v41  ;;  %v25352_v32 = vld [vmem:[%s34858_s2 + $0x38] sm:$0xff] }
 0x34b   : > { %v4330_v55 = vmul.f32 1.442695, %v4293_v25  ;;  %27317 = vmatprep.subr.mxu0 %v34881_v41  ;;  %v4532_v56 = vmul.f32 %v28950_v16, %v30539_v3 }
 0x34c   : > { %v4215_v63 = vpop.xlane.xlu0 %4214  ;;  %v4470_v62 = vpop.xlane.xlu1 %4469 }
 0x34d   : > { %28961 = vpow2.f32 %v4330_v55  ;;  %v4295_v27 = vsub.f32 %v30566_v34, %v4215_v63  ;;  %27310 = vmatmul.mubr.msk.f32.vlgmr.msra.gmra.mxu0 %vm1759_vm2, %v4532_v56  ;;  %v25351_v56 = vld [vmem:[%s34858_s2 + $0x30] sm:$0xff] }
 0x34e   : > { %v28952_v9 = vpop.eup %28951  ;;  %28963 = vrcp.f32 %v4470_v62  ;;  %27318 = vmatpush3.msra.mxu0 %v1710_v38  ;;  %27319 = vmatprep.mubr.msk.f32.mxu0 %vm29533_vm1, %v34881_v41 }
 0x34f   : > { %v4334_v57 = vmul.f32 1.442695, %v4295_v27  ;;  %27327 = vmatprep.subr.mxu0 %v34881_v41  ;;  %v4534_v3 = vmul.f32 %v28952_v9, %v30550_v28 }
 0x350   : > { %v4221_v29 = vpop.xlane.xlu0 %4220  ;;  %v4476_v40 = vpop.xlane.xlu1 %4475 }
 0x351   : > { %28965 = vpow2.f32 %v4334_v57  ;;  %v4297_v34 = vsub.f32 %v30576_v12, %v4221_v29  ;;  %27320 = vmatmul.mubr.msk.f32.vlgmr.msra.gmra.mxu0 %vm1759_vm2, %v4534_v3 }
 0x352   : > { %v30742_v17 = vpop.eup %28953  ;;  %28967 = vrcp.f32 %v4476_v40  ;;  %27328 = vmatpush3.msra.mxu0 %v1720_v47  ;;  %27329 = vmatprep.mubr.msk.f32.mxu0 %vm29533_vm1, %v34881_v41  ;;  %v25349_v47 = vld [vmem:[%s34858_s2 + $0x20] sm:$0xff] }
 0x353   : > { %v28956_v59 = vpop.eup %28955  ;;  %v4338_v1 = vmul.f32 1.442695, %v4297_v34  ;;  %v4387_v28 = vsel %vm1759_vm2, %v30742_v17, 0.0  ;;  %27337 = vmatprep.subr.mxu0 %v34881_v41 }
 0x354   : > { %4388 = vadd.xlane.f32.xlu0 %v4387_v28  ;;  %v4233_v2 = vpop.xlane.xlu0 %4232  ;;  %v4227_v14 = vpop.xlane.xlu1 %4226  ;;  %v4536_v12 = vmul.f32 %v28956_v59, %v30560_v15 }
 0x355   : > { %28969 = vpow2.f32 %v4338_v1  ;;  %v4301_v61 = vsub.f32 %v30590_v36, %v4233_v2  ;;  %v4299_v13 = vsub.f32 %v30586_v22, %v4227_v14  ;;  %v1740_v36 = vadd.f32 %v30281_v43, %v30422_v19  ;;  %v30826_v14 = vld [vmem:[%s29911_s25 + $0x8] sm:$0xff] }
 0x356   : > { %v30754_v42 = vpop.eup %28957  ;;  %27330 = vmatmul.mubr.msk.f32.vlgmr.msra.gmra.mxu0 %vm1759_vm2, %v4536_v12 }
 0x357   : > { %v28960_v39 = vpop.eup %28959  ;;  %v4346_v44 = vmul.f32 1.442695, %v4301_v61  ;;  %v4342_v20 = vmul.f32 1.442695, %v4299_v13  ;;  %27338 = vmatpush3.msra.mxu0 %v1730_v8  ;;  %v4393_v23 = vsel %vm1759_vm2, %v30754_v42, 0.0  ;;  %27339 = vmatprep.mubr.msk.f32.mxu0 %vm29533_vm1, %v34881_v41  ;;  %v30834_v61 = vld [vmem:[%s29911_s25 + $0x10] sm:$0xff] }
 0x358   : > { %v4245_v10 = vpop.xlane.xlu0 %4244  ;;  %4394 = vadd.xlane.f32.xlu1 %v4393_v23  ;;  %27347 = vmatprep.subr.mxu0 %v34881_v41  ;;  %v4239_v15 = vpop.xlane.xlu1 %4238  ;;  %v4538_v22 = vmul.f32 %v28960_v39, %v30570_v18  ;;  %v30852_v23 = vld [vmem:[%s29911_s25 + $0x20] sm:$0xff] }
 0x359   : > { %28971 = vpow2.f32 %v4346_v44  ;;  %v4305_v51 = vsub.f32 %v30604_v48, %v4245_v10  ;;  %v4303_v21 = vsub.f32 %v30600_v37, %v4239_v15  ;;  %v30845_v44 = vld [vmem:[%s29911_s25 + $0x18] sm:$0xff] }
 0x35a   : > { %v30767_v26 = vpop.eup %28961  ;;  %28973 = vpow2.f32 %v4342_v20  ;;  %27340 = vmatmul.mubr.msk.f32.vlgmr.msra.gmra.mxu0 %vm1759_vm2, %v4538_v22 }
 0x35b   : > { %v28964_v45 = vpop.eup %28963  ;;  %v4354_v35 = vmul.f32 1.442695, %v4305_v51  ;;  %v4350_v24 = vmul.f32 1.442695, %v4303_v21  ;;  %27348 = vmatpush3.msra.mxu0 %v1740_v36  ;;  %v4399_v18 = vsel %vm1759_vm2, %v30767_v26, 0.0  ;;  %27349 = vmatprep.mubr.msk.f32.mxu0 %vm29533_vm1, %v34881_v41  ;;  %v30863_v36 = vld [vmem:[%s29911_s25 + $0x28] sm:$0xff] }
 0x35c   : > { %4400 = vadd.xlane.f32.xlu0 %v4399_v18  ;;  %v4257_v19 = vpop.xlane.xlu0 %4256  ;;  %27357 = vmatprep.subr.mxu0 %v34881_v41  ;;  %v4251_v37 = vpop.xlane.xlu1 %4250  ;;  %v4540_v48 = vmul.f32 %v28964_v45, %v30580_v46  ;;  %v30870_v21 = vld [vmem:[%s29911_s25 + $0x30] sm:$0xff]  ;;  %v30881_v18 = vld [vmem:[%s29911_s25 + $0x38] sm:$0xff] }
 0x35d   : > { %28975 = vpow2.f32 %v4354_v35  ;;  %v4309_v53 = vsub.f32 %v30616_v11, %v4257_v19  ;;  %v4307_v4 = vsub.f32 %v30612_v5, %v4251_v37  ;;  %v30888_v37 = vld [vmem:[%s29911_s25 + $0x40] sm:$0xff] }
 0x35e   : > { %v30783_v0 = vpop.eup %28965  ;;  %28977 = vpow2.f32 %v4350_v24  ;;  %27350 = vmatmul.mubr.msk.f32.vlgmr.msra.gmra.mxu0 %vm1759_vm2, %v4540_v48 }
 0x35f   : > { %v28968_v7 = vpop.eup %28967  ;;  %v4362_v25 = vmul.f32 1.442695, %v4309_v53  ;;  %v4358_v46 = vmul.f32 1.442695, %v4307_v4  ;;  %27358 = vmatpush3.msra.mxu0 %v1750_v60  ;;  %v4405_v43 = vsel %vm1759_vm2, %v30783_v0, 0.0  ;;  %27359 = vmatprep.mubr.msk.f32.mxu0 %vm29533_vm1, %v34881_v41  ;;  %v30899_v4 = vld [vmem:[%s29911_s25 + $0x48] sm:$0xff] }
 0x360   : > { %v4269_v31 = vpop.xlane.xlu0 %4268  ;;  %4406 = vadd.xlane.f32.xlu1 %v4405_v43  ;;  %27367 = vmatprep.subr.mxu0 %v25352_v32  ;;  %v4263_v5 = vpop.xlane.xlu1 %4262  ;;  %v4542_v11 = vmul.f32 %v28968_v7, %v30594_v49  ;;  %v30921_v43 = vld [vmem:[%s29911_s25 + $0x68] sm:$0xff] }
 0x361   : > { %28979 = vpow2.f32 %v4362_v25  ;;  %v4313_v16 = vsub.f32 %v30628_v30, %v4269_v31  ;;  %v4311_v55 = vsub.f32 %v30624_v58, %v4263_v5  ;;  %v25350_v30 = vld [vmem:[%s34858_s2 + $0x28] sm:$0xff]  ;;  %v30805_v58 = vld [vmem:[%s29911_s25] sm:$0xff]  ;;  %v30911_v25 = vld [vmem:[%s29911_s25 + $0x58] sm:$0xff] }
 0x362   : > { %v30796_v38 = vpop.eup %28969  ;;  %28981 = vpow2.f32 %v4358_v46  ;;  %27360 = vmatmul.mubr.msk.f32.vlgmr.msra.gmra.mxu0 %vm1759_vm2, %v4542_v11  ;;  %v30916_v46 = vld [vmem:[%s29911_s25 + $0x60] sm:$0xff]  ;;  %v30926_v31 = vld [vmem:[%s29911_s25 + $0x70] sm:$0xff]  ;;  %v30931_v5 = vld [vmem:[%s29911_s25 + $0x78] sm:$0xff] }
 0x363   : > { %v4370_v63 = vmul.f32 1.442695, %v4313_v16  ;;  %v4366_v62 = vmul.f32 1.442695, %v4311_v55  ;;  %27368 = vmatpush3.msra.mxu0 %v25352_v32  ;;  %v4411_v49 = vsel %vm1759_vm2, %v30796_v38, 0.0  ;;  %27375 = vmatprep.mubr.msk.f32.mxu0 %vm1200_vm0, %v30805_v58  ;;  %v30904_v32 = vld [vmem:[%s29911_s25 + $0x50] sm:$0xff] }
 0x364   : > { %27369 = vmatprep.subr.mxu0 %v25351_v56  ;;  %4412 = vadd.xlane.f32.xlu0 %v4411_v49  ;;  %v4281_v27 = vpop.xlane.xlu0 %4280  ;;  %v4275_v9 = vpop.xlane.xlu1 %4274  ;;  %v30936_v11 = vld [vmem:[%s29911_s25 + $0x80] sm:$0xff]  ;;  %v30941_v16 = vld [vmem:[%s29911_s25 + $0x88] sm:$0xff]  ;;  %v30946_v55 = vld [vmem:[%s29911_s25 + $0x90] sm:$0xff] }
 0x365   : > { %28983 = vpow2.f32 %v4370_v63  ;;  %27370 = vmatpush3.msra.mxu0 %v25351_v56  ;;  %v4317_v57 = vsub.f32 %v30640_v6, %v4281_v27  ;;  %v4315_v3 = vsub.f32 %v30636_v54, %v4275_v9  ;;  %v30951_v56 = vld [vmem:[%s29911_s25 + $0x98] sm:$0xff]  ;;  %v30956_v63 = vld [vmem:[%s29911_s25 + $0xa0] sm:$0xff]  ;;  %v30966_v49 = vld [vmem:[%s29911_s25 + $0xb0] sm:$0xff] }
 0x366   : > { %v30814_v29 = vpop.eup %28971  ;;  %28985 = vpow2.f32 %v4366_v62  ;;  %27371 = vmatprep.subr.mxu0 %v25350_v30  ;;  %v30961_v62 = vld [vmem:[%s29911_s25 + $0xa8] sm:$0xff]  ;;  %v30976_v27 = vld [vmem:[%s29911_s25 + $0xc0] sm:$0xff] }
 0x367   : > { %v30816_v40 = vpop.eup %28973  ;;  %v4378_v34 = vmul.f32 1.442695, %v4317_v57  ;;  %v4374_v59 = vmul.f32 1.442695, %v4315_v3  ;;  %27372 = vmatpush3.msra.mxu0 %v25350_v30  ;;  %v4423_v1 = vsel %vm1759_vm2, %v30814_v29, 0.0  ;;  %v30971_v30 = vld [vmem:[%s29911_s25 + $0xb8] sm:$0xff] }
 0x368   : > { %27373 = vmatprep.subr.mxu0 %v25349_v47  ;;  %4424 = vadd.xlane.f32.xlu0 %v4423_v1  ;;  %v4417_v54 = vsel %vm1759_vm2, %v30816_v40, 0.0  ;;  %v4287_v6 = vpop.xlane.xlu1 %4286  ;;  %v30981_v9 = vld [vmem:[%s29911_s25 + $0xc8] sm:$0xff]  ;;  %v30986_v57 = vld [vmem:[%s29911_s25 + $0xd0] sm:$0xff]  ;;  %v30991_v3 = vld [vmem:[%s29911_s25 + $0xd8] sm:$0xff] }
 0x369   : > { %28987 = vpow2.f32 %v4378_v34  ;;  %27374 = vmatpush3.msra.mxu0 %v25349_v47  ;;  %4418 = vadd.xlane.f32.xlu1 %v4417_v54  ;;  %v4319_v28 = vsub.f32 %v30648_v33, %v4287_v6  ;;  %v30996_v47 = vld [vmem:[%s29911_s25 + $0xe0] sm:$0xff]  ;;  %v31001_v34 = vld [vmem:[%s29911_s25 + $0xe8] sm:$0xff]  ;;  %v31011_v1 = vld [vmem:[%s29911_s25 + $0xf8] sm:$0xff] }
 0x36a   : > { %v30823_v2 = vpop.eup %28975  ;;  %28989 = vpow2.f32 %v4374_v59  ;;  %27376 = vmatmul.mubr.msk.f32.vlgmr.msra.gmra.mxu0 %vm1200_vm0, %v30826_v14  ;;  %27479 = vmatprep.subr.mxu0 %v34881_v41  ;;  %v31006_v59 = vld [vmem:[%s29911_s25 + $0xf0] sm:$0xff] }
 0x36b   : > { %v30831_v12 = vpop.eup %28977  ;;  %v4382_v8 = vmul.f32 1.442695, %v4319_v28  ;;  %27378 = vmatprep.mubr.msk.f32.mxu0 %vm1200_vm0, %v30834_v61  ;;  %v4435_v33 = vsel %vm1759_vm2, %v30823_v2, 0.0 }
 0x36c   : > { %4436 = vadd.xlane.f32.xlu0 %v4435_v33  ;;  %v4429_v13 = vsel %vm1759_vm2, %v30831_v12, 0.0 }
 0x36d   : > { %28991 = vpow2.f32 %v4382_v8  ;;  %4430 = vadd.xlane.f32.xlu1 %v4429_v13 }
 0x36e   : > { %v30842_v39 = vpop.eup %28979  ;;  %27379 = vmatmul.mubr.msk.f32.gmra.mxu0 %vm1200_vm0, %v30845_v44 }
 0x36f   : > { %v30849_v20 = vpop.eup %28981  ;;  %27381 = vmatprep.mubr.msk.f32.mxu0 %vm1200_vm0, %v30852_v23  ;;  %v4447_v10 = vsel %vm1759_vm2, %v30842_v39, 0.0 }
 0x370   : > { %4448 = vadd.xlane.f32.xlu0 %v4447_v10  ;;  %v4441_v15 = vsel %vm1759_vm2, %v30849_v20, 0.0 }
 0x371   : > { %4442 = vadd.xlane.f32.xlu1 %v4441_v15 }
 0x372   : > { %v30860_v22 = vpop.eup %28983  ;;  %27382 = vmatmul.mubr.msk.f32.gmra.mxu0 %vm1200_vm0, %v30863_v36 }
 0x373   : > { %v30867_v51 = vpop.eup %28985  ;;  %27384 = vmatprep.mubr.msk.f32.mxu0 %vm1200_vm0, %v30870_v21  ;;  %v4459_v45 = vsel %vm1759_vm2, %v30860_v22, 0.0 }
 0x374   : > { %4460 = vadd.xlane.f32.xlu0 %v4459_v45  ;;  %v4453_v35 = vsel %vm1759_vm2, %v30867_v51, 0.0 }
 0x375   : > { %4454 = vadd.xlane.f32.xlu1 %v4453_v35 }
 0x376   : > { %v30878_v24 = vpop.eup %28987  ;;  %27385 = vmatmul.mubr.msk.f32.gmra.mxu0 %vm1200_vm0, %v30881_v18 }
 0x377   : > { %v30885_v19 = vpop.eup %28989  ;;  %27387 = vmatprep.mubr.msk.f32.mxu0 %vm1200_vm0, %v30888_v37  ;;  %v4471_v48 = vsel %vm1759_vm2, %v30878_v24, 0.0 }
 0x378   : > { %4472 = vadd.xlane.f32.xlu0 %v4471_v48  ;;  %v4465_v60 = vsel %vm1759_vm2, %v30885_v19, 0.0  ;;  %v31025_v48 = vld [vmem:[%s34861_s5] ss:$0 sm:$0xff] }
 0x379   : > { %4466 = vadd.xlane.f32.xlu1 %v4465_v60  ;;  %v1615_v60 = vadd.f32 %v31025_v48, %v30303_v50 }
 0x37a   : > { %v30896_v53 = vpop.eup %28991  ;;  %27388 = vmatmul.mubr.msk.f32.gmra.mxu0 %vm1200_vm0, %v30899_v4 }
 0x37b   : > { %27390 = vmatprep.mubr.msk.f32.mxu0 %vm1200_vm0, %v30904_v32  ;;  %v4477_v7 = vsel %vm1759_vm2, %v30896_v53, 0.0 }
 0x37d   : > { %4478 = vadd.xlane.f32.xlu1 %v4477_v7 }
 0x37e   : > { %27391 = vmatmul.mubr.msk.f32.gmra.mxu0 %vm1200_vm0, %v30911_v25 }
 0x37f   : > { %27393 = vmatprep.mubr.msk.f32.mxu0 %vm1200_vm0, %v30916_v46 }
 0x382   : > { %27394 = vmatmul.mubr.msk.f32.gmra.mxu0 %vm1200_vm0, %v30921_v43 }
 0x383   : > { %27396 = vmatprep.mubr.msk.f32.mxu0 %vm1200_vm0, %v30926_v31 }
 0x386   : > { %27397 = vmatmul.mubr.msk.f32.gmra.mxu0 %vm1200_vm0, %v30931_v5 }
 0x387   : > { %27399 = vmatprep.mubr.msk.f32.mxu0 %vm1200_vm0, %v30936_v11 }
 0x38a   : > { %27400 = vmatmul.mubr.msk.f32.gmra.mxu0 %vm1200_vm0, %v30941_v16 }
 0x38b   : > { %27402 = vmatprep.mubr.msk.f32.mxu0 %vm1200_vm0, %v30946_v55 }
 0x38e   : > { %27403 = vmatmul.mubr.msk.f32.gmra.mxu0 %vm1200_vm0, %v30951_v56 }
 0x38f   : > { %27405 = vmatprep.mubr.msk.f32.mxu0 %vm1200_vm0, %v30956_v63 }
 0x392   : > { %27406 = vmatmul.mubr.msk.f32.gmra.mxu0 %vm1200_vm0, %v30961_v62 }
 0x393   : > { %27408 = vmatprep.mubr.msk.f32.mxu0 %vm1200_vm0, %v30966_v49 }
 0x396   : > { %27409 = vmatmul.mubr.msk.f32.gmra.mxu0 %vm1200_vm0, %v30971_v30 }
 0x397   : > { %27411 = vmatprep.mubr.msk.f32.mxu0 %vm1200_vm0, %v30976_v27 }
 0x39a   : > { %27412 = vmatmul.mubr.msk.f32.gmra.mxu0 %vm1200_vm0, %v30981_v9 }
 0x39b   : > { %27414 = vmatprep.mubr.msk.f32.mxu0 %vm1200_vm0, %v30986_v57 }
 0x39e   : > { %27415 = vmatmul.mubr.msk.f32.gmra.mxu0 %vm1200_vm0, %v30991_v3 }
 0x39f   : > { %27417 = vmatprep.mubr.msk.f32.mxu0 %vm1200_vm0, %v30996_v47 }
 0x3a2   : > { %27418 = vmatmul.mubr.msk.f32.gmra.mxu0 %vm1200_vm0, %v31001_v34 }
 0x3a3   : > { %27420 = vmatprep.mubr.msk.f32.mxu0 %vm1200_vm0, %v31006_v59 }
 0x3a6   : > { %27421 = vmatmul.mubr.msk.f32.gmra.mxu0 %vm1200_vm0, %v31011_v1 }
 0x3a7   : > { %27481 = vmatprep.mubr.msk.f32.mxu0 %vm29533_vm1, %v34881_v41 }
 0x3dd   : > { %v4389_v54 = vpop.xlane.xlu0 %4388 }
 0x3de   : > { %28993 = vrcp.f32 %v4389_v54 }
 0x3e1   : > { %v4395_v6 = vpop.xlane.xlu1 %4394 }
 0x3e2   : > { %28995 = vrcp.f32 %v4395_v6 }
 0x3e5   : > { %v4401_v28 = vpop.xlane.xlu0 %4400  ;;  %v31017_v8 = vpop.f32.mrf.mxu0 }
 0x3e6   : > { %34882 = vst [vmem:[#allocation16_spill] sm:$0xff] %v31017_v8  ;;  %28997 = vrcp.f32 %v4401_v28 }
 0x3e7   : > { %v27211_v33 = vpop.f32.mrf.mxu0 }
 0x3e8   : > { %v1625_v33 = vadd.f32 %v31025_v48, %v30307_v52 }
 0x3e9   : > { %v4407_v13 = vpop.xlane.xlu1 %4406  ;;  %v31019_v10 = vpop.f32.mrf.mxu0 }
 0x3ea   : > { %34883 = vst [vmem:[#allocation17_spill] sm:$0xff] %v31019_v10  ;;  %28999 = vrcp.f32 %v4407_v13 }
 0x3eb   : > { %v28994_v15 = vpop.eup %28993  ;;  %v27221_v45 = vpop.f32.mrf.mxu0 }
 0x3ec   : > { %v4513_v35 = vmul.f32 %v28994_v15, %v30742_v17 }
 0x3ed   : > { %v4413_v7 = vpop.xlane.xlu0 %4412  ;;  %v31029_v54 = vpop.f32.mrf.mxu0 }
 0x3ee   : > { %34884 = vst [vmem:[#allocation18_spill] sm:$0xff] %v31029_v54  ;;  %29001 = vrcp.f32 %v4413_v7  ;;  %27215 = vmatmul.mubr.msk.f32.vlgmr.msra.gmra.mxu1 %vm1759_vm2, %v4513_v35 }
 0x3ef   : > { %v28996_v6 = vpop.eup %28995  ;;  %27223 = vmatpush3.msra.mxu1 %v1615_v60  ;;  %v27231_v28 = vpop.f32.mrf.mxu0  ;;  %27224 = vmatprep.mubr.msk.f32.mxu1 %vm29533_vm1, %v34881_v41  ;;  %v34886_v60 = vld [vmem:[#allocation3_spill] sm:$0xff] }
 0x3f0   : > { %27232 = vmatprep.subr.mxu1 %v34881_v41  ;;  %v4515_v17 = vmul.f32 %v28996_v6, %v30754_v42  ;;  %v1635_v52 = vadd.f32 %v31025_v48, %v34886_v60 }
 0x3f1   : > { %v31038_v50 = vpop.f32.mrf.mxu0  ;;  %v4425_v13 = vpop.xlane.xlu0 %4424 }
 0x3f2   : > { %34885 = vst [vmem:[#allocation19_spill] sm:$0xff] %v31038_v50  ;;  %v4419_v15 = vpop.xlane.xlu1 %4418  ;;  %27225 = vmatmul.mubr.msk.f32.vlgmr.msra.gmra.mxu1 %vm1759_vm2, %v4515_v17 }
 0x3f3   : > { %v28998_v45 = vpop.eup %28997  ;;  %29003 = vrcp.f32 %v4419_v15  ;;  %27233 = vmatpush3.msra.mxu1 %v1625_v33  ;;  %v27241_v35 = vpop.f32.mrf.mxu0  ;;  %27234 = vmatprep.mubr.msk.f32.mxu1 %vm29533_vm1, %v34881_v41 }
 0x3f4   : > { %27242 = vmatprep.subr.mxu1 %v34881_v41  ;;  %v4517_v42 = vmul.f32 %v28998_v45, %v30767_v26  ;;  %29005 = vrcp.f32 %v4425_v13  ;;  %v34888_v26 = vld [vmem:[#allocation4_spill] sm:$0xff] }
 0x3f5   : > { %v31047_v7 = vpop.f32.mrf.mxu0  ;;  %v1645_v15 = vadd.f32 %v31025_v48, %v34888_v26  ;;  %v4437_v45 = vpop.xlane.xlu0 %4436 }
 0x3f6   : > { %34887 = vst [vmem:[#allocation3_spill] sm:$0xff] %v31047_v7  ;;  %v4431_v6 = vpop.xlane.xlu1 %4430  ;;  %27235 = vmatmul.mubr.msk.f32.vlgmr.msra.gmra.mxu1 %vm1759_vm2, %v4517_v42 }
 0x3f7   : > { %v29000_v28 = vpop.eup %28999  ;;  %27243 = vmatpush3.msra.mxu1 %v1635_v52  ;;  %v27251_v17 = vpop.f32.mrf.mxu0  ;;  %27244 = vmatprep.mubr.msk.f32.mxu1 %vm29533_vm1, %v34881_v41  ;;  %29007 = vrcp.f32 %v4431_v6 }
 0x3f8   : > { %27252 = vmatprep.subr.mxu1 %v34881_v41  ;;  %v4519_v33 = vmul.f32 %v29000_v28, %v30783_v0  ;;  %v34890_v0 = vld [vmem:[#allocation5_spill] sm:$0xff]  ;;  %29009 = vrcp.f32 %v4437_v45  ;;  %v34893_v45 = vld [vmem:[#allocation6_spill] sm:$0xff] }
 0x3f9   : > { %v31056_v13 = vpop.f32.mrf.mxu0  ;;  %v1655_v52 = vadd.f32 %v31025_v48, %v34890_v0 }
 0x3fa   : > { %34889 = vst [vmem:[#allocation4_spill] sm:$0xff] %v31056_v13  ;;  %27245 = vmatmul.mubr.msk.f32.vlgmr.msra.gmra.mxu1 %vm1759_vm2, %v4519_v33  ;;  %v4443_v28 = vpop.xlane.xlu1 %4442 }
 0x3fb   : > { %v29002_v35 = vpop.eup %29001  ;;  %27253 = vmatpush3.msra.mxu1 %v1645_v15  ;;  %v27261_v42 = vpop.f32.mrf.mxu0  ;;  %27254 = vmatprep.mubr.msk.f32.mxu1 %vm29533_vm1, %v34881_v41  ;;  %29011 = vrcp.f32 %v4443_v28  ;;  %v34895_v28 = vld [vmem:[#allocation7_spill] sm:$0xff] }
 0x3fc   : > { %27262 = vmatprep.subr.mxu1 %v34881_v41  ;;  %v4521_v60 = vmul.f32 %v29002_v35, %v30796_v38  ;;  %v1665_v35 = vadd.f32 %v31025_v48, %v34893_v45  ;;  %v4449_v42 = vpop.xlane.xlu0 %4448 }
 0x3fd   : > { %v31065_v6 = vpop.f32.mrf.mxu0  ;;  %29013 = vrcp.f32 %v4449_v42 }
 0x3fe   : > { %34891 = vst [vmem:[#allocation5_spill] sm:$0xff] %v31065_v6  ;;  %27255 = vmatmul.mubr.msk.f32.vlgmr.msra.gmra.mxu1 %vm1759_vm2, %v4521_v60 }
 0x3ff   : > { %27263 = vmatpush3.msra.mxu1 %v1655_v52  ;;  %v27271_v17 = vpop.f32.mrf.mxu0  ;;  %27264 = vmatprep.mubr.msk.f32.mxu1 %vm29533_vm1, %v34881_v41 }
 0x400   : > { %v29004_v33 = vpop.eup %29003  ;;  %27272 = vmatprep.subr.mxu1 %v34881_v41  ;;  %v1675_v17 = vadd.f32 %v31025_v48, %v34895_v28 }
 0x401   : > { %v31071_v26 = vpop.f32.mrf.mxu0  ;;  %v4523_v38 = vmul.f32 %v29004_v33, %v30816_v40  ;;  %v29006_v15 = vpop.eup %29005 }
 0x402   : > { %34892 = vst [vmem:[#allocation20_spill] sm:$0xff] %v31071_v26  ;;  %v4525_v52 = vmul.f32 %v29006_v15, %v30814_v29  ;;  %v4455_v33 = vpop.xlane.xlu1 %4454  ;;  %v34897_v15 = vld [vmem:[#allocation8_spill] sm:$0xff] }
 0x403   : > { %27265 = vmatmul.mubr.msk.f32.vlgmr.msra.gmra.mxu1 %vm1759_vm2, %v4523_v38  ;;  %v27281_v60 = vpop.f32.mrf.mxu0  ;;  %29015 = vrcp.f32 %v4455_v33  ;;  %v1685_v42 = vadd.f32 %v31025_v48, %v34897_v15 }
 0x404   : > { %27273 = vmatpush3.msra.mxu1 %v1665_v35  ;;  %27274 = vmatprep.mubr.msk.f32.mxu1 %vm29533_vm1, %v34881_v41  ;;  %v29008_v40 = vpop.eup %29007  ;;  %v4461_v60 = vpop.xlane.xlu0 %4460 }
 0x405   : > { %27282 = vmatprep.subr.mxu1 %v34881_v41  ;;  %v31080_v0 = vpop.f32.mrf.mxu0  ;;  %v4527_v35 = vmul.f32 %v29008_v40, %v30831_v12  ;;  %v29010_v29 = vpop.eup %29009  ;;  %29017 = vrcp.f32 %v4461_v60  ;;  %v34899_v40 = vld [vmem:[#allocation9_spill] sm:$0xff] }
 0x406   : > { %34894 = vst [vmem:[#allocation6_spill] sm:$0xff] %v31080_v0  ;;  %v1695_v33 = vadd.f32 %v31025_v48, %v34899_v40 }
 0x407   : > { %27275 = vmatmul.mubr.msk.f32.vlgmr.msra.gmra.mxu1 %vm1759_vm2, %v4525_v52  ;;  %v27291_v38 = vpop.f32.mrf.mxu0 }
 0x408   : > { %27283 = vmatpush3.msra.mxu1 %v1675_v17  ;;  %27284 = vmatprep.mubr.msk.f32.mxu1 %vm29533_vm1, %v34881_v41  ;;  %v4529_v17 = vmul.f32 %v29010_v29, %v30823_v2  ;;  %v29012_v12 = vpop.eup %29011  ;;  %v4467_v38 = vpop.xlane.xlu1 %4466  ;;  %v34901_v29 = vld [vmem:[#allocation10_spill] sm:$0xff] }
 0x409   : > { %27292 = vmatprep.subr.mxu1 %v34881_v41  ;;  %v31089_v45 = vpop.f32.mrf.mxu0  ;;  %29019 = vrcp.f32 %v4467_v38  ;;  %v1705_v60 = vadd.f32 %v31025_v48, %v34901_v29  ;;  %v34902_v38 = vld [vmem:[#allocation11_spill] sm:$0xff] }
 0x40a   : > { %34896 = vst [vmem:[#allocation7_spill] sm:$0xff] %v31089_v45  ;;  %v29014_v2 = vpop.eup %29013 }
 0x40b   : > { %27285 = vmatmul.mubr.msk.f32.vlgmr.msra.gmra.mxu1 %vm1759_vm2, %v4527_v35  ;;  %v27301_v52 = vpop.f32.mrf.mxu0  ;;  %v4533_v40 = vmul.f32 %v29014_v2, %v30842_v39  ;;  %v34904_v2 = vld [vmem:[#allocation12_spill] sm:$0xff] }
 0x40c   : > { %27293 = vmatpush3.msra.mxu1 %v1685_v42  ;;  %27294 = vmatprep.mubr.msk.f32.mxu1 %vm29533_vm1, %v34881_v41  ;;  %v4531_v42 = vmul.f32 %v29012_v12, %v30849_v20  ;;  %v4473_v52 = vpop.xlane.xlu0 %4472  ;;  %v1715_v20 = vadd.f32 %v31025_v48, %v34902_v38  ;;  %v4479_v12 = vpop.xlane.xlu1 %4478 }
 0x40d   : > { %27302 = vmatprep.subr.mxu1 %v34881_v41  ;;  %v31098_v28 = vpop.f32.mrf.mxu0  ;;  %29021 = vrcp.f32 %v4473_v52 }
 0x40e   : > { %34898 = vst [vmem:[#allocation8_spill] sm:$0xff] %v31098_v28  ;;  %29023 = vrcp.f32 %v4479_v12 }
 0x40f   : > { %27295 = vmatmul.mubr.msk.f32.vlgmr.msra.gmra.mxu1 %vm1759_vm2, %v4529_v17  ;;  %v27311_v35 = vpop.f32.mrf.mxu0 }
 0x410   : > { %27303 = vmatpush3.msra.mxu1 %v1695_v33  ;;  %27304 = vmatprep.mubr.msk.f32.mxu1 %vm29533_vm1, %v34881_v41  ;;  %v29016_v33 = vpop.eup %29015 }
 0x411   : > { %27312 = vmatprep.subr.mxu1 %v34881_v41  ;;  %v31107_v15 = vpop.f32.mrf.mxu0  ;;  %v4535_v29 = vmul.f32 %v29016_v33, %v30867_v51 }
 0x412   : > { %34900 = vst [vmem:[#allocation9_spill] sm:$0xff] %v31107_v15  ;;  %v29018_v39 = vpop.eup %29017 }
 0x413   : > { %27305 = vmatmul.mubr.msk.f32.vlgmr.msra.gmra.mxu1 %vm1759_vm2, %v4531_v42  ;;  %v27321_v17 = vpop.f32.mrf.mxu0 }
 0x414   : > { %27313 = vmatpush3.msra.mxu1 %v1705_v60  ;;  %27314 = vmatprep.mubr.msk.f32.mxu1 %vm29533_vm1, %v34881_v41  ;;  %v1725_v60 = vadd.f32 %v31025_v48, %v34904_v2  ;;  %v34908_v2 = vld [vmem:[#allocation14_spill] sm:$0xff] }
 0x415   : > { %27322 = vmatprep.subr.mxu1 %v34881_v41 }
 0x416   : > { %v31119_v35 = vpop.f32.mrf.mxu0  ;;  %v29020_v38 = vpop.eup %29019 }
 0x417   : > { %34903 = vst [vmem:[#allocation10_spill] sm:$0xff] %v31119_v35  ;;  %27315 = vmatmul.mubr.msk.f32.vlgmr.msra.gmra.mxu1 %vm1759_vm2, %v4533_v40  ;;  %v4537_v40 = vmul.f32 %v29018_v39, %v30860_v22  ;;  %v1745_v22 = vadd.f32 %v31025_v48, %v34908_v2 }
 0x418   : > { %27323 = vmatpush3.msra.mxu1 %v1715_v20  ;;  %v27331_v42 = vpop.f32.mrf.mxu0  ;;  %27324 = vmatprep.mubr.msk.f32.mxu1 %vm29533_vm1, %v34881_v41  ;;  %v34906_v20 = vld [vmem:[#allocation13_spill] sm:$0xff] }
 0x419   : > { %27332 = vmatprep.subr.mxu1 %v34881_v41  ;;  %v1735_v51 = vadd.f32 %v31025_v48, %v34906_v20  ;;  %v4539_v42 = vmul.f32 %v29020_v38, %v30885_v19  ;;  %v34910_v19 = vld [vmem:[#allocation15_spill] sm:$0xff]  ;;  %v25390_v20 = vld [vmem:[%s34859_s3 + $0x38] sm:$0xff] }
 0x41a   : > { %v31128_v52 = vpop.f32.mrf.mxu0  ;;  %v1755_v38 = vadd.f32 %v31025_v48, %v34910_v19  ;;  %v25389_v48 = vld [vmem:[%s34859_s3 + $0x30] sm:$0xff] }
 0x41b   : > { %34905 = vst [vmem:[#allocation11_spill] sm:$0xff] %v31128_v52  ;;  %27325 = vmatmul.mubr.msk.f32.vlgmr.msra.gmra.mxu1 %vm1759_vm2, %v4535_v29  ;;  %v29022_v29 = vpop.eup %29021  ;;  %v967_v19 = vld [vmem:[%s30068_s18 + $0x110] sm:$0xff] }
 0x41c   : > { %27333 = vmatpush3.msra.mxu1 %v1725_v60  ;;  %v27341_v17 = vpop.f32.mrf.mxu0  ;;  %27334 = vmatprep.mubr.msk.f32.mxu1 %vm29533_vm1, %v34881_v41 }
 0x41d   : > { %27342 = vmatprep.subr.mxu1 %v34881_v41  ;;  %v4541_v17 = vmul.f32 %v29022_v29, %v30878_v24  ;;  %v31165_v24 = vld [vmem:[%s34860_s4 + $0x1] ss:$0 sm:$0xff] }
 0x41e   : > { %v31137_v33 = vpop.f32.mrf.mxu0 }
 0x41f   : > { %34907 = vst [vmem:[#allocation12_spill] sm:$0xff] %v31137_v33  ;;  %27335 = vmatmul.mubr.msk.f32.vlgmr.msra.gmra.mxu1 %vm1759_vm2, %v4537_v40  ;;  %v29024_v40 = vpop.eup %29023 }
 0x420   : > { %27343 = vmatpush3.msra.mxu1 %v1735_v51  ;;  %v27351_v12 = vpop.f32.mrf.mxu0  ;;  %27344 = vmatprep.mubr.msk.f32.mxu1 %vm29533_vm1, %v34881_v41  ;;  %v4543_v51 = vmul.f32 %v29024_v40, %v30896_v53  ;;  %v25388_v53 = vld [vmem:[%s34859_s3 + $0x28] sm:$0xff] }
 0x421   : > { %27352 = vmatprep.subr.mxu1 %v34881_v41 }
 0x422   : > { %v31146_v39 = vpop.f32.mrf.mxu0 }
 0x423   : > { %34909 = vst [vmem:[#allocation13_spill] sm:$0xff] %v31146_v39  ;;  %27345 = vmatmul.mubr.msk.f32.vlgmr.msra.gmra.mxu1 %vm1759_vm2, %v4539_v42  ;;  %v965_v42 = vld [vmem:[%s30068_s18 + $0x100] sm:$0xff] }
 0x424   : > { %27353 = vmatpush3.msra.mxu1 %v1745_v22  ;;  %v27361_v60 = vpop.f32.mrf.mxu0  ;;  %27354 = vmatprep.mubr.msk.f32.mxu1 %vm29533_vm1, %v34881_v41 }
 0x425   : > { %27362 = vmatprep.subr.mxu1 %v34881_v41  ;;  %v25387_v60 = vld [vmem:[%s34859_s3 + $0x20] sm:$0xff] }
 0x427   : > { %27355 = vmatmul.mubr.msk.f32.vlgmr.msra.gmra.mxu1 %vm1759_vm2, %v4541_v17  ;;  %v1093_v17 = vmul.f32 0.35355338, %v965_v42 }
 0x428   : > { %27363 = vmatpush3.msra.mxu1 %v1755_v38  ;;  %27364 = vmatprep.mubr.msk.f32.mxu1 %vm29533_vm1, %v34881_v41 }
 0x429   : > { %27423 = vmatprep.subr.mxu1 %v25390_v20 }
 0x42a   : > { %v27377_v12 = vpop.f32.mrf.mxu0 }
 0x42b   : > { %27365 = vmatmul.mubr.msk.f32.vlgmr.msra.gmra.mxu1 %vm1759_vm2, %v4543_v51 }
 0x42c   : > { %v6960_v29 = vpop.f32.mrf.mxu0  ;;  %27424 = vmatpush3.msra.mxu1 %v25390_v20  ;;  %27431 = vmatprep.mubr.msk.f32.mxu1 %vm1200_vm0, %v30805_v58  ;;  %v6966_v20 = vadd.f32 %v27377_v12, %v31165_v24 }
 0x42d   : > { %v6961_v2 = vadd.f32 %v31165_v24, %v6960_v29  ;;  %27425 = vmatprep.subr.mxu1 %v25389_v48  ;;  %v969_v29 = vld [vmem:[%s30068_s18 + $0x120] sm:$0xff] }
 0x42e   : > { %v27380_v22 = vpop.f32.mrf.mxu0  ;;  %27426 = vmatpush3.msra.mxu1 %v25389_v48  ;;  %v1095_v48 = vmul.f32 0.35355338, %v967_v19 }
 0x42f   : > { %v31182_v40 = vadd.f32 %v27380_v22, %v31165_v24  ;;  %27427 = vmatprep.subr.mxu1 %v25388_v53  ;;  %27480 = vmatpush3.xpose.msk.msra.mxu0 %vm1759_vm2, %v6961_v2 }
 0x430   : > { %v6970_v38 = vpop.f32.mrf.mxu0  ;;  %27428 = vmatpush3.msra.mxu1 %v25388_v53  ;;  %27489 = vmatprep.subr.mxu0 %v34881_v41 }
 0x431   : > { %v6971_v58 = vadd.f32 %v31165_v24, %v6970_v38  ;;  %27429 = vmatprep.subr.mxu1 %v25387_v60 }
 0x432   : > { %v27383_v51 = vpop.f32.mrf.mxu0  ;;  %27430 = vmatpush3.msra.mxu1 %v25387_v60  ;;  %27482 = vmatmul.mubr.msk.f32.vlgmr.msra.gmra.mxu0 %vm1759_vm2, %v1093_v17 }
 0x433   : > { %v31191_v42 = vadd.f32 %v27383_v51, %v31165_v24  ;;  %27432 = vmatmul.mubr.msk.f32.vlgmr.msra.gmra.mxu1 %vm1200_vm0, %v30826_v14  ;;  %27490 = vmatpush3.xpose.msk.msra.mxu0 %vm1759_vm2, %v6971_v58  ;;  %v1097_v14 = vmul.f32 0.35355338, %v969_v29  ;;  %v975_v29 = vld [vmem:[%s30068_s18 + $0x150] sm:$0xff] }
 0x434   : > { %v6980_v53 = vpop.f32.mrf.mxu0  ;;  %27491 = vmatprep.mubr.msk.f32.mxu0 %vm29533_vm1, %v34881_v41  ;;  %27434 = vmatprep.mubr.msk.f32.mxu1 %vm1200_vm0, %v30834_v61  ;;  %v971_v61 = vld [vmem:[%s30068_s18 + $0x130] sm:$0xff] }
 0x435   : > { %v6981_v12 = vadd.f32 %v31165_v24, %v6980_v53  ;;  %27499 = vmatprep.subr.mxu0 %v34881_v41  ;;  %27484 = vmatprep.subr.mxu1 %v34881_v41 }
 0x436   : > { %v27386_v2 = vpop.f32.mrf.mxu0  ;;  %27492 = vmatmul.mubr.msk.f32.vlgmr.msra.gmra.mxu0 %vm1759_vm2, %v1095_v48  ;;  %27485 = vmatpush3.xpose.msk.msra.mxu1 %vm1759_vm2, %v6966_v20 }
 0x437   : > { %v31207_v22 = vadd.f32 %v27386_v2, %v31165_v24  ;;  %27435 = vmatmul.mubr.msk.f32.gmra.mxu1 %vm1200_vm0, %v30845_v44  ;;  %27500 = vmatpush3.xpose.msk.msra.mxu0 %vm1759_vm2, %v6981_v12  ;;  %v1099_v44 = vmul.f32 0.35355338, %v971_v61  ;;  %v1103_v2 = vmul.f32 0.35355338, %v975_v29 }
 0x438   : > { %v6990_v60 = vpop.f32.mrf.mxu0  ;;  %27501 = vmatprep.mubr.msk.f32.mxu0 %vm29533_vm1, %v34881_v41  ;;  %27437 = vmatprep.mubr.msk.f32.mxu1 %vm1200_vm0, %v30852_v23  ;;  %v973_v23 = vld [vmem:[%s30068_s18 + $0x140] sm:$0xff] }
 0x439   : > { %v6991_v17 = vadd.f32 %v31165_v24, %v6990_v60  ;;  %27509 = vmatprep.subr.mxu0 %v34881_v41  ;;  %27494 = vmatprep.subr.mxu1 %v34881_v41  ;;  %v1101_v48 = vmul.f32 0.35355338, %v973_v23 }
 0x43a   : > { %v27389_v19 = vpop.f32.mrf.mxu0  ;;  %27502 = vmatmul.mubr.msk.f32.vlgmr.msra.gmra.mxu0 %vm1759_vm2, %v1097_v14  ;;  %v977_v14 = vld [vmem:[%s30068_s18 + $0x160] sm:$0xff] }
 0x43b   : > { %v31222_v38 = vadd.f32 %v27389_v19, %v31165_v24  ;;  %27438 = vmatmul.mubr.msk.f32.gmra.mxu1 %vm1200_vm0, %v30863_v36  ;;  %27510 = vmatpush3.xpose.msk.msra.mxu0 %vm1759_vm2, %v6991_v17  ;;  %v1105_v17 = vmul.f32 0.35355338, %v977_v14  ;;  %v979_v19 = vld [vmem:[%s30068_s18 + $0x170] sm:$0xff]  ;;  %v985_v14 = vld [vmem:[%s30068_s18 + $0x1a0] sm:$0xff] }
 0x43c   : > { %v7000_v58 = vpop.f32.mrf.mxu0  ;;  %27511 = vmatprep.mubr.msk.f32.mxu0 %vm29533_vm1, %v34881_v41  ;;  %27440 = vmatprep.mubr.msk.f32.mxu1 %vm1200_vm0, %v30870_v21 }
 0x43d   : > { %v7001_v20 = vadd.f32 %v31165_v24, %v7000_v58  ;;  %27519 = vmatprep.subr.mxu0 %v34881_v41  ;;  %v1107_v58 = vmul.f32 0.35355338, %v979_v19 }
 0x43e   : > { %v27392_v51 = vpop.f32.mrf.mxu0  ;;  %27512 = vmatmul.mubr.msk.f32.vlgmr.msra.gmra.mxu0 %vm1759_vm2, %v1099_v44 }
 0x43f   : > { %v31236_v36 = vadd.f32 %v27392_v51, %v31165_v24  ;;  %27441 = vmatmul.mubr.msk.f32.gmra.mxu1 %vm1200_vm0, %v30881_v18  ;;  %27520 = vmatpush3.xpose.msk.msra.mxu0 %vm1759_vm2, %v7001_v20  ;;  %v981_v20 = vld [vmem:[%s30068_s18 + $0x180] sm:$0xff] }
 0x440   : > { %v7010_v53 = vpop.f32.mrf.mxu0  ;;  %27521 = vmatprep.mubr.msk.f32.mxu0 %vm29533_vm1, %v34881_v41  ;;  %27443 = vmatprep.mubr.msk.f32.mxu1 %vm1200_vm0, %v30888_v37  ;;  %v1109_v29 = vmul.f32 0.35355338, %v981_v20 }
 0x441   : > { %v7011_v21 = vadd.f32 %v31165_v24, %v7010_v53  ;;  %27529 = vmatprep.subr.mxu0 %v34881_v41  ;;  %v983_v53 = vld [vmem:[%s30068_s18 + $0x190] sm:$0xff] }
 0x442   : > { %v27395_v12 = vpop.f32.mrf.mxu0  ;;  %27522 = vmatmul.mubr.msk.f32.vlgmr.msra.gmra.mxu0 %vm1759_vm2, %v1101_v48 }
 0x443   : > { %v31250_v18 = vadd.f32 %v27395_v12, %v31165_v24  ;;  %27444 = vmatmul.mubr.msk.f32.gmra.mxu1 %vm1200_vm0, %v30899_v4  ;;  %27530 = vmatpush3.xpose.msk.msra.mxu0 %vm1759_vm2, %v7011_v21 }
 0x444   : > { %v7020_v61 = vpop.f32.mrf.mxu0  ;;  %27531 = vmatprep.mubr.msk.f32.mxu0 %vm29533_vm1, %v34881_v41  ;;  %27446 = vmatprep.mubr.msk.f32.mxu1 %vm1200_vm0, %v30904_v32 }
 0x445   : > { %v7021_v37 = vadd.f32 %v31165_v24, %v7020_v61  ;;  %27539 = vmatprep.subr.mxu0 %v34881_v41 }
 0x446   : > { %v27398_v60 = vpop.f32.mrf.mxu0  ;;  %27532 = vmatmul.mubr.msk.f32.vlgmr.msra.gmra.mxu0 %vm1759_vm2, %v1103_v2  ;;  %v1111_v2 = vmul.f32 0.35355338, %v983_v53 }
 0x447   : > { %v31264_v4 = vadd.f32 %v27398_v60, %v31165_v24  ;;  %27447 = vmatmul.mubr.msk.f32.gmra.mxu1 %vm1200_vm0, %v30911_v25  ;;  %27540 = vmatpush3.xpose.msk.msra.mxu0 %vm1759_vm2, %v7021_v37  ;;  %v1113_v60 = vmul.f32 0.35355338, %v985_v14  ;;  %v995_v14 = vld [vmem:[%s30068_s18 + $0x1f0] sm:$0xff] }
 0x448   : > { %v7030_v44 = vpop.f32.mrf.mxu0  ;;  %27541 = vmatprep.mubr.msk.f32.mxu0 %vm29533_vm1, %v34881_v41  ;;  %27449 = vmatprep.mubr.msk.f32.mxu1 %vm1200_vm0, %v30916_v46 }
 0x449   : > { %v7031_v32 = vadd.f32 %v31165_v24, %v7030_v44  ;;  %27549 = vmatprep.subr.mxu0 %v34881_v41 }
 0x44a   : > { %v27401_v23 = vpop.f32.mrf.mxu0  ;;  %27542 = vmatmul.mubr.msk.f32.vlgmr.msra.gmra.mxu0 %vm1759_vm2, %v1105_v17  ;;  %v987_v17 = vld [vmem:[%s30068_s18 + $0x1b0] sm:$0xff] }
 0x44b   : > { %v31278_v25 = vadd.f32 %v27401_v23, %v31165_v24  ;;  %27450 = vmatmul.mubr.msk.f32.gmra.mxu1 %vm1200_vm0, %v30921_v43  ;;  %27550 = vmatpush3.xpose.msk.msra.mxu0 %vm1759_vm2, %v7031_v32  ;;  %v1115_v32 = vmul.f32 0.35355338, %v987_v17  ;;  %v989_v23 = vld [vmem:[%s30068_s18 + $0x1c0] sm:$0xff]  ;;  %v976_v17 = vld [vmem:[%s30068_s18 + $0x158] sm:$0xff] }
 0x44c   : > { %v7040_v51 = vpop.f32.mrf.mxu0  ;;  %27551 = vmatprep.mubr.msk.f32.mxu0 %vm29533_vm1, %v34881_v41  ;;  %27452 = vmatprep.mubr.msk.f32.mxu1 %vm1200_vm0, %v30926_v31 }
 0x44d   : > { %v7041_v46 = vadd.f32 %v31165_v24, %v7040_v51  ;;  %27559 = vmatprep.subr.mxu0 %v34881_v41  ;;  %v1117_v51 = vmul.f32 0.35355338, %v989_v23  ;;  %v986_v23 = vld [vmem:[%s30068_s18 + $0x1a8] sm:$0xff] }
 0x44e   : > { %v27404_v48 = vpop.f32.mrf.mxu0  ;;  %27552 = vmatmul.mubr.msk.f32.vlgmr.msra.gmra.mxu0 %vm1759_vm2, %v1107_v58 }
 0x44f   : > { %v31292_v43 = vadd.f32 %v27404_v48, %v31165_v24  ;;  %27453 = vmatmul.mubr.msk.f32.gmra.mxu1 %vm1200_vm0, %v30931_v5  ;;  %27560 = vmatpush3.xpose.msk.msra.mxu0 %vm1759_vm2, %v7041_v46  ;;  %v991_v46 = vld [vmem:[%s30068_s18 + $0x1d0] sm:$0xff] }
 0x450   : > { %v7050_v21 = vpop.f32.mrf.mxu0  ;;  %27561 = vmatprep.mubr.msk.f32.mxu0 %vm29533_vm1, %v34881_v41  ;;  %27455 = vmatprep.mubr.msk.f32.mxu1 %vm1200_vm0, %v30936_v11  ;;  %v1119_v53 = vmul.f32 0.35355338, %v991_v46  ;;  %v996_v46 = vld [vmem:[%s30068_s18 + $0x1f8] sm:$0xff] }
 0x451   : > { %v7051_v31 = vadd.f32 %v31165_v24, %v7050_v21  ;;  %27569 = vmatprep.subr.mxu0 %v34881_v41  ;;  %v993_v21 = vld [vmem:[%s30068_s18 + $0x1e0] sm:$0xff] }
 0x452   : > { %v27407_v12 = vpop.f32.mrf.mxu0  ;;  %27562 = vmatmul.mubr.msk.f32.vlgmr.msra.gmra.mxu0 %vm1759_vm2, %v1109_v29 }
 0x453   : > { %v31306_v5 = vadd.f32 %v27407_v12, %v31165_v24  ;;  %27456 = vmatmul.mubr.msk.f32.gmra.mxu1 %vm1200_vm0, %v30941_v16  ;;  %27570 = vmatpush3.xpose.msk.msra.mxu0 %vm1759_vm2, %v7051_v31 }
 0x454   : > { %v7060_v61 = vpop.f32.mrf.mxu0  ;;  %27571 = vmatprep.mubr.msk.f32.mxu0 %vm29533_vm1, %v34881_v41  ;;  %27458 = vmatprep.mubr.msk.f32.mxu1 %vm1200_vm0, %v30946_v55 }
 0x455   : > { %v7061_v11 = vadd.f32 %v31165_v24, %v7060_v61  ;;  %27579 = vmatprep.subr.mxu0 %v34881_v41 }
 0x456   : > { %v27410_v37 = vpop.f32.mrf.mxu0  ;;  %27572 = vmatmul.mubr.msk.f32.vlgmr.msra.gmra.mxu0 %vm1759_vm2, %v1111_v2  ;;  %v1121_v2 = vmul.f32 0.35355338, %v993_v21 }
 0x457   : > { %v31320_v16 = vadd.f32 %v27410_v37, %v31165_v24  ;;  %27459 = vmatmul.mubr.msk.f32.gmra.mxu1 %vm1200_vm0, %v30951_v56  ;;  %27580 = vmatpush3.xpose.msk.msra.mxu0 %vm1759_vm2, %v7061_v11  ;;  %v1123_v11 = vmul.f32 0.35355338, %v995_v14  ;;  %v972_v37 = vld [vmem:[%s30068_s18 + $0x138] sm:$0xff] }
 0x458   : > { %v7070_v19 = vpop.f32.mrf.mxu0  ;;  %27581 = vmatprep.mubr.msk.f32.mxu0 %vm29533_vm1, %v34881_v41  ;;  %27461 = vmatprep.mubr.msk.f32.mxu1 %vm1200_vm0, %v30956_v63 }
 0x459   : > { %v7071_v55 = vadd.f32 %v31165_v24, %v7070_v19  ;;  %27589 = vmatprep.subr.mxu0 %v34881_v41  ;;  %v978_v19 = vld [vmem:[%s30068_s18 + $0x168] sm:$0xff] }
 0x45a   : > { %v27413_v44 = vpop.f32.mrf.mxu0  ;;  %27582 = vmatmul.mubr.msk.f32.vlgmr.msra.gmra.mxu0 %vm1759_vm2, %v1113_v60  ;;  %v974_v60 = vld [vmem:[%s30068_s18 + $0x148] sm:$0xff] }
 0x45b   : > { %v31334_v56 = vadd.f32 %v27413_v44, %v31165_v24  ;;  %27462 = vmatmul.mubr.msk.f32.gmra.mxu1 %vm1200_vm0, %v30961_v62  ;;  %27590 = vmatpush3.xpose.msk.msra.mxu0 %vm1759_vm2, %v7071_v55  ;;  %v980_v55 = vld [vmem:[%s30068_s18 + $0x178] sm:$0xff]  ;;  %v982_v44 = vld [vmem:[%s30068_s18 + $0x188] sm:$0xff] }
 0x45c   : > { %v7080_v58 = vpop.f32.mrf.mxu0  ;;  %27591 = vmatprep.mubr.msk.f32.mxu0 %vm29533_vm1, %v34881_v41  ;;  %27464 = vmatprep.mubr.msk.f32.mxu1 %vm1200_vm0, %v30966_v49 }
 0x45d   : > { %v7081_v63 = vadd.f32 %v31165_v24, %v7080_v58  ;;  %27599 = vmatprep.subr.mxu0 %v34881_v41  ;;  %v988_v58 = vld [vmem:[%s30068_s18 + $0x1b8] sm:$0xff] }
 0x45e   : > { %v27416_v20 = vpop.f32.mrf.mxu0  ;;  %27592 = vmatmul.mubr.msk.f32.vlgmr.msra.gmra.mxu0 %vm1759_vm2, %v1115_v32  ;;  %v984_v32 = vld [vmem:[%s30068_s18 + $0x198] sm:$0xff] }
 0x45f   : > { %v31348_v62 = vadd.f32 %v27416_v20, %v31165_v24  ;;  %27465 = vmatmul.mubr.msk.f32.gmra.mxu1 %vm1200_vm0, %v30971_v30  ;;  %27600 = vmatpush3.xpose.msk.msra.mxu0 %vm1759_vm2, %v7081_v63  ;;  %v990_v63 = vld [vmem:[%s30068_s18 + $0x1c8] sm:$0xff]  ;;  %v992_v20 = vld [vmem:[%s30068_s18 + $0x1d8] sm:$0xff] }
 0x460   : > { %v7090_v48 = vpop.f32.mrf.mxu0  ;;  %27601 = vmatprep.mubr.msk.f32.mxu0 %vm29533_vm1, %v34881_v41  ;;  %27467 = vmatprep.mubr.msk.f32.mxu1 %vm1200_vm0, %v30976_v27 }
 0x461   : > { %v7091_v49 = vadd.f32 %v31165_v24, %v7090_v48  ;;  %27609 = vmatprep.subr.mxu0 %v34881_v41 }
 0x462   : > { %v27419_v29 = vpop.f32.mrf.mxu0  ;;  %27602 = vmatmul.mubr.msk.f32.vlgmr.msra.gmra.mxu0 %vm1759_vm2, %v1117_v51  ;;  %v994_v51 = vld [vmem:[%s30068_s18 + $0x1e8] sm:$0xff] }
 0x463   : > { %v31362_v30 = vadd.f32 %v27419_v29, %v31165_v24  ;;  %27468 = vmatmul.mubr.msk.f32.gmra.mxu1 %vm1200_vm0, %v30981_v9  ;;  %27610 = vmatpush3.xpose.msk.msra.mxu0 %vm1759_vm2, %v7091_v49 }
 0x464   : > { %v7100_v31 = vpop.f32.mrf.mxu0  ;;  %27611 = vmatprep.mubr.msk.f32.mxu0 %vm29533_vm1, %v34881_v41  ;;  %27470 = vmatprep.mubr.msk.f32.mxu1 %vm1200_vm0, %v30986_v57 }
 0x465   : > { %v7101_v27 = vadd.f32 %v31165_v24, %v7100_v31  ;;  %27619 = vmatprep.subr.mxu0 %v34881_v41 }
 0x466   : > { %v27422_v12 = vpop.f32.mrf.mxu0  ;;  %27612 = vmatmul.mubr.msk.f32.vlgmr.msra.gmra.mxu0 %vm1759_vm2, %v1119_v53 }
 0x467   : > { %v31376_v9 = vadd.f32 %v27422_v12, %v31165_v24  ;;  %27471 = vmatmul.mubr.msk.f32.gmra.mxu1 %vm1200_vm0, %v30991_v3  ;;  %27620 = vmatpush3.xpose.msk.msra.mxu0 %vm1759_vm2, %v7101_v27  ;;  %v966_v3 = vld [vmem:[%s30068_s18 + $0x108] sm:$0xff] }
 0x468   : > { %v7110_v61 = vpop.f32.mrf.mxu0  ;;  %27621 = vmatprep.mubr.msk.f32.mxu0 %vm29533_vm1, %v34881_v41  ;;  %27473 = vmatprep.mubr.msk.f32.mxu1 %vm1200_vm0, %v30996_v47  ;;  %v1094_v47 = vmul.f32 0.35355338, %v966_v3 }
 0x469   : > { %v7111_v57 = vadd.f32 %v31165_v24, %v7110_v61  ;;  %27629 = vmatprep.subr.mxu0 %v34881_v41  ;;  %v970_v24 = vld [vmem:[%s30068_s18 + $0x128] sm:$0xff] }
 0x46a   : > { %27622 = vmatmul.mubr.msk.f32.vlgmr.msra.gmra.mxu0 %vm1759_vm2, %v1121_v2 }
 0x46b   : > { %27474 = vmatmul.mubr.msk.f32.gmra.mxu1 %vm1200_vm0, %v31001_v34  ;;  %27630 = vmatpush3.xpose.msk.msra.mxu0 %vm1759_vm2, %v7111_v57  ;;  %v968_v34 = vld [vmem:[%s30068_s18 + $0x118] sm:$0xff] }
 0x46c   : > { %27631 = vmatprep.mubr.msk.f32.mxu0 %vm29533_vm1, %v34881_v41  ;;  %27476 = vmatprep.mubr.msk.f32.mxu1 %vm1200_vm0, %v31006_v59  ;;  %v1096_v59 = vmul.f32 0.35355338, %v968_v34 }
 0x46d   : > { %27639 = vmatprep.subr.mxu0 %v34881_v41 }
 0x46e   : > { %27632 = vmatmul.mubr.msk.f32.vlgmr.msra.gmra.mxu0 %vm1759_vm2, %v1123_v11 }
 0x46f   : > { %27477 = vmatmul.mubr.msk.f32.gmra.mxu1 %vm1200_vm0, %v31011_v1  ;;  %27641 = vmatprep.mubr.msk.f32.mxu0 %vm29533_vm1, %v34881_v41  ;;  %v1098_v1 = vmul.f32 0.35355338, %v970_v24 }
 0x470   : > { %27486 = vmatprep.mubr.msk.f32.mxu1 %vm29533_vm1, %v34881_v41 }
 0x473   : > { %27487 = vmatmul.mubr.msk.f32.vlgmr.msra.gmra.mxu1 %vm1759_vm2, %v1094_v47 }
 0x474   : > { %27495 = vmatpush3.xpose.msk.msra.mxu1 %vm1759_vm2, %v31182_v40  ;;  %27496 = vmatprep.mubr.msk.f32.mxu1 %vm29533_vm1, %v34881_v41  ;;  %v1100_v40 = vmul.f32 0.35355338, %v972_v37 }
 0x475   : > { %27504 = vmatprep.subr.mxu1 %v34881_v41 }
 0x477   : > { %27497 = vmatmul.mubr.msk.f32.vlgmr.msra.gmra.mxu1 %vm1759_vm2, %v1096_v59 }
 0x478   : > { %27505 = vmatpush3.xpose.msk.msra.mxu1 %vm1759_vm2, %v31191_v42  ;;  %27506 = vmatprep.mubr.msk.f32.mxu1 %vm29533_vm1, %v34881_v41  ;;  %v1102_v42 = vmul.f32 0.35355338, %v974_v60 }
 0x479   : > { %27514 = vmatprep.subr.mxu1 %v34881_v41 }
 0x47b   : > { %27507 = vmatmul.mubr.msk.f32.vlgmr.msra.gmra.mxu1 %vm1759_vm2, %v1098_v1 }
 0x47c   : > { %27515 = vmatpush3.xpose.msk.msra.mxu1 %vm1759_vm2, %v31207_v22  ;;  %27516 = vmatprep.mubr.msk.f32.mxu1 %vm29533_vm1, %v34881_v41  ;;  %v1104_v22 = vmul.f32 0.35355338, %v976_v17 }
 0x47d   : > { %27524 = vmatprep.subr.mxu1 %v34881_v41 }
 0x47f   : > { %27517 = vmatmul.mubr.msk.f32.vlgmr.msra.gmra.mxu1 %vm1759_vm2, %v1100_v40 }
 0x480   : > { %27525 = vmatpush3.xpose.msk.msra.mxu1 %vm1759_vm2, %v31222_v38  ;;  %27526 = vmatprep.mubr.msk.f32.mxu1 %vm29533_vm1, %v34881_v41  ;;  %v1106_v38 = vmul.f32 0.35355338, %v978_v19 }
 0x481   : > { %27534 = vmatprep.subr.mxu1 %v34881_v41 }
 0x483   : > { %27527 = vmatmul.mubr.msk.f32.vlgmr.msra.gmra.mxu1 %vm1759_vm2, %v1102_v42 }
 0x484   : > { %27535 = vmatpush3.xpose.msk.msra.mxu1 %vm1759_vm2, %v31236_v36  ;;  %27536 = vmatprep.mubr.msk.f32.mxu1 %vm29533_vm1, %v34881_v41  ;;  %v1108_v36 = vmul.f32 0.35355338, %v980_v55 }
 0x485   : > { %27544 = vmatprep.subr.mxu1 %v34881_v41 }
 0x487   : > { %27537 = vmatmul.mubr.msk.f32.vlgmr.msra.gmra.mxu1 %vm1759_vm2, %v1104_v22 }
 0x488   : > { %27545 = vmatpush3.xpose.msk.msra.mxu1 %vm1759_vm2, %v31250_v18  ;;  %27546 = vmatprep.mubr.msk.f32.mxu1 %vm29533_vm1, %v34881_v41  ;;  %v1110_v18 = vmul.f32 0.35355338, %v982_v44 }
 0x489   : > { %27554 = vmatprep.subr.mxu1 %v34881_v41 }
 0x48b   : > { %27547 = vmatmul.mubr.msk.f32.vlgmr.msra.gmra.mxu1 %vm1759_vm2, %v1106_v38 }
 0x48c   : > { %27555 = vmatpush3.xpose.msk.msra.mxu1 %vm1759_vm2, %v31264_v4  ;;  %27556 = vmatprep.mubr.msk.f32.mxu1 %vm29533_vm1, %v34881_v41  ;;  %v1112_v4 = vmul.f32 0.35355338, %v984_v32  ;;  %v31553_v32 = vld [vmem:[%s34861_s5 + $0x1] ss:$0 sm:$0xff] }
 0x48d   : > { %27564 = vmatprep.subr.mxu1 %v34881_v41 }
 0x48f   : > { %27557 = vmatmul.mubr.msk.f32.vlgmr.msra.gmra.mxu1 %vm1759_vm2, %v1108_v36 }
 0x490   : > { %27565 = vmatpush3.xpose.msk.msra.mxu1 %vm1759_vm2, %v31278_v25  ;;  %27566 = vmatprep.mubr.msk.f32.mxu1 %vm29533_vm1, %v34881_v41  ;;  %v1114_v25 = vmul.f32 0.35355338, %v986_v23 }
 0x491   : > { %27574 = vmatprep.subr.mxu1 %v34881_v41 }
 0x493   : > { %27567 = vmatmul.mubr.msk.f32.vlgmr.msra.gmra.mxu1 %vm1759_vm2, %v1110_v18  ;;  %v31548_v18 = vld [vmem:[%s34862_s6 + $0x8] sm:$0xff] }
 0x494   : > { %27575 = vmatpush3.xpose.msk.msra.mxu1 %vm1759_vm2, %v31292_v43  ;;  %27576 = vmatprep.mubr.msk.f32.mxu1 %vm29533_vm1, %v34881_v41  ;;  %v1116_v43 = vmul.f32 0.35355338, %v988_v58 }
 0x495   : > { %27584 = vmatprep.subr.mxu1 %v34881_v41 }
 0x497   : > { %27577 = vmatmul.mubr.msk.f32.vlgmr.msra.gmra.mxu1 %vm1759_vm2, %v1112_v4 }
 0x498   : > { %27585 = vmatpush3.xpose.msk.msra.mxu1 %vm1759_vm2, %v31306_v5  ;;  %27586 = vmatprep.mubr.msk.f32.mxu1 %vm29533_vm1, %v34881_v41  ;;  %v1118_v5 = vmul.f32 0.35355338, %v990_v63 }
 0x499   : > { %27594 = vmatprep.subr.mxu1 %v34881_v41 }
 0x49b   : > { %27587 = vmatmul.mubr.msk.f32.vlgmr.msra.gmra.mxu1 %vm1759_vm2, %v1114_v25 }
 0x49c   : > { %27595 = vmatpush3.xpose.msk.msra.mxu1 %vm1759_vm2, %v31320_v16  ;;  %27596 = vmatprep.mubr.msk.f32.mxu1 %vm29533_vm1, %v34881_v41  ;;  %v1120_v16 = vmul.f32 0.35355338, %v992_v20 }
 0x49d   : > { %27604 = vmatprep.subr.mxu1 %v34881_v41 }
 0x49f   : > { %27597 = vmatmul.mubr.msk.f32.vlgmr.msra.gmra.mxu1 %vm1759_vm2, %v1116_v43 }
 0x4a0   : > { %27605 = vmatpush3.xpose.msk.msra.mxu1 %vm1759_vm2, %v31334_v56  ;;  %27606 = vmatprep.mubr.msk.f32.mxu1 %vm29533_vm1, %v34881_v41  ;;  %v1122_v56 = vmul.f32 0.35355338, %v994_v51 }
 0x4a1   : > { %27614 = vmatprep.subr.mxu1 %v34881_v41 }
 0x4a3   : > { %27607 = vmatmul.mubr.msk.f32.vlgmr.msra.gmra.mxu1 %vm1759_vm2, %v1118_v5 }
 0x4a4   : > { %27615 = vmatpush3.xpose.msk.msra.mxu1 %vm1759_vm2, %v31348_v62  ;;  %27616 = vmatprep.mubr.msk.f32.mxu1 %vm29533_vm1, %v34881_v41  ;;  %v1124_v62 = vmul.f32 0.35355338, %v996_v46 }
 0x4a5   : > { %27624 = vmatprep.subr.mxu1 %v34881_v41 }
 0x4a7   : > { %27617 = vmatmul.mubr.msk.f32.vlgmr.msra.gmra.mxu1 %vm1759_vm2, %v1120_v16 }
 0x4a8   : > { %27625 = vmatpush3.xpose.msk.msra.mxu1 %vm1759_vm2, %v31362_v30  ;;  %27626 = vmatprep.mubr.msk.f32.mxu1 %vm29533_vm1, %v34881_v41 }
 0x4a9   : > { %27634 = vmatprep.subr.mxu1 %v34881_v41 }
 0x4ab   : > { %27627 = vmatmul.mubr.msk.f32.vlgmr.msra.gmra.mxu1 %vm1759_vm2, %v1122_v56 }
 0x4ac   : > { %27635 = vmatpush3.xpose.msk.msra.mxu1 %vm1759_vm2, %v31376_v9  ;;  %27636 = vmatprep.mubr.msk.f32.mxu1 %vm29533_vm1, %v34881_v41 }
 0x4ad   : > { %27644 = vmatprep.subr.mxu1 %v34881_v41 }
 0x4ae   : > { %v31510_v48 = vpop.f32.mrf.mxu1 }
 0x4af   : > { %34911 = vst [vmem:[#allocation14_spill] sm:$0xff] %v31510_v48  ;;  %27637 = vmatmul.mubr.msk.f32.vlgmr.msra.gmra.mxu1 %vm1759_vm2, %v1124_v62 }
 0x4b0   : > { %v27216_v49 = vpop.f32.mrf.mxu1  ;;  %27646 = vmatprep.mubr.msk.f32.mxu1 %vm29533_vm1, %v34881_v41 }
 0x4b2   : > { %v31515_v29 = vpop.f32.mrf.mxu1 }
 0x4b3   : > { %34912 = vst [vmem:[#allocation15_spill] sm:$0xff] %v31515_v29 }
 0x4b4   : > { %v27226_v53 = vpop.f32.mrf.mxu1 }
 0x4b6   : > { %v31517_v30 = vpop.f32.mrf.mxu1 }
 0x4b7   : > { %34913 = vst [vmem:[#allocation21_spill] sm:$0xff] %v31517_v30 }
 0x4b8   : > { %v27236_v21 = vpop.f32.mrf.mxu1 }
 0x4ba   : > { %v31519_v31 = vpop.f32.mrf.mxu1 }
 0x4bb   : > { %34914 = vst [vmem:[#allocation22_spill] sm:$0xff] %v31519_v31 }
 0x4bc   : > { %v27246_v27 = vpop.f32.mrf.mxu1 }
 0x4be   : > { %v31521_v12 = vpop.f32.mrf.mxu1 }
 0x4bf   : > { %34915 = vst [vmem:[#allocation23_spill] sm:$0xff] %v31521_v12 }
 0x4c0   : > { %v27256_v2 = vpop.f32.mrf.mxu1 }
 0x4c3   : > { %v31523_v9 = vpop.f32.mrf.mxu1 }
 0x4c4   : > { %34916 = vst [vmem:[#allocation24_spill] sm:$0xff] %v31523_v9 }
 0x4c5   : > { %v27266_v14 = vpop.f32.mrf.mxu1 }
 0x4c7   : > { %v31525_v61 = vpop.f32.mrf.mxu1 }
 0x4c8   : > { %34917 = vst [vmem:[#allocation25_spill] sm:$0xff] %v31525_v61 }
 0x4c9   : > { %v27276_v57 = vpop.f32.mrf.mxu1 }
 0x4cb   : > { %v31527_v11 = vpop.f32.mrf.mxu1 }
 0x4cc   : > { %34918 = vst [vmem:[#allocation26_spill] sm:$0xff] %v31527_v11 }
 0x4cd   : > { %v27286_v3 = vpop.f32.mrf.mxu1 }
 0x4cf   : > { %v31529_v47 = vpop.f32.mrf.mxu1 }
 0x4d0   : > { %34919 = vst [vmem:[#allocation27_spill] sm:$0xff] %v31529_v47 }
 0x4d1   : > { %v27296_v34 = vpop.f32.mrf.mxu1 }
 0x4d3   : > { %v31531_v59 = vpop.f32.mrf.mxu1 }
 0x4d4   : > { %34920 = vst [vmem:[#allocation28_spill] sm:$0xff] %v31531_v59 }
 0x4d5   : > { %v27306_v24 = vpop.f32.mrf.mxu1 }
 0x4d7   : > { %v31533_v1 = vpop.f32.mrf.mxu1 }
 0x4d8   : > { %34921 = vst [vmem:[#allocation29_spill] sm:$0xff] %v31533_v1 }
 0x4d9   : > { %v27316_v37 = vpop.f32.mrf.mxu1 }
 0x4db   : > { %v31535_v40 = vpop.f32.mrf.mxu1 }
 0x4dc   : > { %34922 = vst [vmem:[#allocation30_spill] sm:$0xff] %v31535_v40 }
 0x4dd   : > { %v27326_v60 = vpop.f32.mrf.mxu1 }
 0x4df   : > { %v31537_v42 = vpop.f32.mrf.mxu1 }
 0x4e0   : > { %34923 = vst [vmem:[#allocation31_spill] sm:$0xff] %v31537_v42 }
 0x4e1   : > { %v27336_v17 = vpop.f32.mrf.mxu1 }
 0x4e3   : > { %v31539_v22 = vpop.f32.mrf.mxu1 }
 0x4e4   : > { %34924 = vst [vmem:[#allocation32_spill] sm:$0xff] %v31539_v22 }
 0x4e5   : > { %v27346_v19 = vpop.f32.mrf.mxu1 }
 0x4e7   : > { %v31541_v38 = vpop.f32.mrf.mxu1 }
 0x4e8   : > { %34925 = vst [vmem:[#allocation33_spill] sm:$0xff] %v31541_v38 }
 0x4e9   : > { %v27356_v55 = vpop.f32.mrf.mxu1 }
 0x4eb   : > { %v31543_v36 = vpop.f32.mrf.mxu1 }
 0x4ec   : > { %34926 = vst [vmem:[#allocation34_spill] sm:$0xff] %v31543_v36 }
 0x4ed   : > { %v27366_v44 = vpop.f32.mrf.mxu1 }
 0x4f2   : > { %v7431_v4 = vpop.f32.mrf.mxu0 }
 0x4f3   : > { %v31556_v23 = vadd.f32 %v31548_v18, %v7431_v4  ;;  %v27433_v25 = vpop.f32.mrf.mxu1 }
 0x4f4   : > { %v7204_v58 = vadd.f32 %v27433_v25, %v31553_v32  ;;  %v27483_v43 = vpop.f32.mrf.mxu0 }
 0x4f5   : > { %v7198_v63 = vpop.f32.mrf.mxu1  ;;  %v9791_v5 = vsel %vm1759_vm2, %v31556_v23, -inf }
 0x4f6   : > { %v7199_v20 = vadd.f32 %v31553_v32, %v7198_v63  ;;  %27645 = vmatpush3.msra.mxu1 %v7204_v58  ;;  %9792 = vmax.xlane.f32.xlu0 %v9791_v5  ;;  %v7583_v16 = vpop.f32.mrf.mxu0 }
 0x4f7   : > { %v31563_v51 = vadd.f32 %v31548_v18, %v7583_v16  ;;  %v27436_v56 = vpop.f32.mrf.mxu1  ;;  %27654 = vmatprep.subr.mxu1 %v34881_v41 }
 0x4f8   : > { %v31567_v46 = vadd.f32 %v27436_v56, %v31553_v32  ;;  %v27493_v62 = vpop.f32.mrf.mxu0  ;;  %27640 = vmatpush3.msra.mxu0 %v7199_v20 }
 0x4f9   : > { %v31569_v49 = vpop.f32.mrf.mxu1  ;;  %v9797_v53 = vsel %vm1759_vm2, %v31563_v51, -inf  ;;  %27649 = vmatprep.subr.mxu0 %v34881_v41 }
 0x4fa   : > { %9798 = vmax.xlane.f32.xlu0 %v9797_v53  ;;  %v7735_v21 = vpop.f32.mrf.mxu0 }
 0x4fb   : > { %v31575_v27 = vadd.f32 %v31548_v18, %v7735_v21  ;;  %v27439_v2 = vpop.f32.mrf.mxu1 }
 0x4fc   : > { %v31578_v14 = vadd.f32 %v27439_v2, %v31553_v32  ;;  %v27503_v57 = vpop.f32.mrf.mxu0 }
 0x4fd   : > { %v31580_v3 = vpop.f32.mrf.mxu1  ;;  %v9803_v34 = vsel %vm1759_vm2, %v31575_v27, -inf }
 0x4fe   : > { %9804 = vmax.xlane.f32.xlu0 %v9803_v34  ;;  %v7887_v24 = vpop.f32.mrf.mxu0 }
 0x4ff   : > { %v31585_v37 = vadd.f32 %v31548_v18, %v7887_v24  ;;  %v27442_v60 = vpop.f32.mrf.mxu1 }
 0x500   : > { %v31588_v17 = vadd.f32 %v27442_v60, %v31553_v32  ;;  %v27513_v19 = vpop.f32.mrf.mxu0 }
 0x501   : > { %v31590_v55 = vpop.f32.mrf.mxu1  ;;  %v9809_v44 = vsel %vm1759_vm2, %v31585_v37, -inf }
 0x502   : > { %34927 = vst [vmem:[#allocation35_spill] sm:$0xff] %v31588_v17  ;;  %9810 = vmax.xlane.f32.xlu0 %v9809_v44  ;;  %v8039_v4 = vpop.f32.mrf.mxu0 }
 0x503   : > { %v31595_v25 = vadd.f32 %v31548_v18, %v8039_v4  ;;  %v27445_v58 = vpop.f32.mrf.mxu1 }
 0x504   : > { %v31598_v43 = vadd.f32 %v27445_v58, %v31553_v32  ;;  %v27523_v63 = vpop.f32.mrf.mxu0 }
 0x505   : > { %v31600_v5 = vpop.f32.mrf.mxu1  ;;  %v9815_v20 = vsel %vm1759_vm2, %v31595_v25, -inf }
 0x506   : > { %34928 = vst [vmem:[#allocation36_spill] sm:$0xff] %v31598_v43  ;;  %9816 = vmax.xlane.f32.xlu0 %v9815_v20  ;;  %v8191_v16 = vpop.f32.mrf.mxu0 }
 0x507   : > { %v31605_v56 = vadd.f32 %v31548_v18, %v8191_v16  ;;  %v27448_v62 = vpop.f32.mrf.mxu1 }
 0x508   : > { %v31608_v53 = vadd.f32 %v27448_v62, %v31553_v32  ;;  %v27533_v21 = vpop.f32.mrf.mxu0 }
 0x509   : > { %v31610_v2 = vpop.f32.mrf.mxu1  ;;  %v9821_v57 = vsel %vm1759_vm2, %v31605_v56, -inf }
 0x50a   : > { %34929 = vst [vmem:[#allocation37_spill] sm:$0xff] %v31608_v53  ;;  %9822 = vmax.xlane.f32.xlu0 %v9821_v57  ;;  %v8343_v34 = vpop.f32.mrf.mxu0 }
 0x50b   : > { %v31615_v24 = vadd.f32 %v31548_v18, %v8343_v34  ;;  %v27451_v60 = vpop.f32.mrf.mxu1 }
 0x50c   : > { %v31618_v19 = vadd.f32 %v27451_v60, %v31553_v32  ;;  %v27543_v44 = vpop.f32.mrf.mxu0 }
 0x50d   : > { %v31620_v4 = vpop.f32.mrf.mxu1  ;;  %v9827_v58 = vsel %vm1759_vm2, %v31615_v24, -inf }
 0x50e   : > { %34930 = vst [vmem:[#allocation38_spill] sm:$0xff] %v31618_v19  ;;  %9828 = vmax.xlane.f32.xlu0 %v9827_v58  ;;  %v8495_v63 = vpop.f32.mrf.mxu0 }
 0x50f   : > { %v31625_v20 = vadd.f32 %v31548_v18, %v8495_v63  ;;  %v27454_v16 = vpop.f32.mrf.mxu1 }
 0x510   : > { %v31628_v62 = vadd.f32 %v27454_v16, %v31553_v32  ;;  %v27553_v21 = vpop.f32.mrf.mxu0 }
 0x511   : > { %v31630_v57 = vpop.f32.mrf.mxu1  ;;  %v9833_v34 = vsel %vm1759_vm2, %v31625_v20, -inf }
 0x512   : > { %34931 = vst [vmem:[#allocation39_spill] sm:$0xff] %v31628_v62  ;;  %9834 = vmax.xlane.f32.xlu0 %v9833_v34  ;;  %v8647_v60 = vpop.f32.mrf.mxu0 }
 0x513   : > { %v31635_v44 = vadd.f32 %v31548_v18, %v8647_v60  ;;  %v27457_v58 = vpop.f32.mrf.mxu1 }
 0x514   : > { %v31638_v36 = vadd.f32 %v27457_v58, %v31553_v32  ;;  %v27563_v63 = vpop.f32.mrf.mxu0 }
 0x515   : > { %v31640_v39 = vpop.f32.mrf.mxu1  ;;  %v9839_v16 = vsel %vm1759_vm2, %v31635_v44, -inf }
 0x516   : > { %34932 = vst [vmem:[#allocation40_spill] sm:$0xff] %v31638_v36  ;;  %9840 = vmax.xlane.f32.xlu0 %v9839_v16  ;;  %v8799_v21 = vpop.f32.mrf.mxu0 }
 0x517   : > { %v31645_v38 = vadd.f32 %v31548_v18, %v8799_v21  ;;  %v27460_v34 = vpop.f32.mrf.mxu1 }
 0x518   : > { %v31648_v33 = vadd.f32 %v27460_v34, %v31553_v32  ;;  %v27573_v60 = vpop.f32.mrf.mxu0 }
 0x519   : > { %v31650_v22 = vpop.f32.mrf.mxu1  ;;  %v9845_v58 = vsel %vm1759_vm2, %v31645_v38, -inf }
 0x51a   : > { %34933 = vst [vmem:[#allocation41_spill] sm:$0xff] %v31648_v33  ;;  %9846 = vmax.xlane.f32.xlu0 %v9845_v58  ;;  %v8951_v63 = vpop.f32.mrf.mxu0 }
 0x51b   : > { %v31655_v52 = vadd.f32 %v31548_v18, %v8951_v63  ;;  %v27463_v16 = vpop.f32.mrf.mxu1 }
 0x51c   : > { %v31658_v42 = vadd.f32 %v27463_v16, %v31553_v32  ;;  %v27583_v21 = vpop.f32.mrf.mxu0 }
 0x51d   : > { %v31660_v35 = vpop.f32.mrf.mxu1  ;;  %v9851_v34 = vsel %vm1759_vm2, %v31655_v52, -inf }
 0x51e   : > { %34934 = vst [vmem:[#allocation42_spill] sm:$0xff] %v31658_v42  ;;  %9852 = vmax.xlane.f32.xlu0 %v9851_v34  ;;  %v9103_v60 = vpop.f32.mrf.mxu0 }
 0x51f   : > { %v31665_v40 = vadd.f32 %v31548_v18, %v9103_v60  ;;  %v27466_v58 = vpop.f32.mrf.mxu1 }
 0x520   : > { %v31668_v15 = vadd.f32 %v27466_v58, %v31553_v32  ;;  %v27593_v63 = vpop.f32.mrf.mxu0 }
 0x521   : > { %v31670_v1 = vpop.f32.mrf.mxu1  ;;  %v9857_v16 = vsel %vm1759_vm2, %v31665_v40, -inf }
 0x522   : > { %34935 = vst [vmem:[#allocation43_spill] sm:$0xff] %v31668_v15  ;;  %9858 = vmax.xlane.f32.xlu0 %v9857_v16  ;;  %v9255_v21 = vpop.f32.mrf.mxu0 }
 0x523   : > { %v31675_v28 = vadd.f32 %v31548_v18, %v9255_v21  ;;  %v27469_v34 = vpop.f32.mrf.mxu1 }
 0x524   : > { %v31678_v59 = vadd.f32 %v27469_v34, %v31553_v32  ;;  %v27603_v60 = vpop.f32.mrf.mxu0 }
 0x525   : > { %v31680_v45 = vpop.f32.mrf.mxu1  ;;  %v9863_v58 = vsel %vm1759_vm2, %v31675_v28, -inf }
 0x526   : > { %34936 = vst [vmem:[#allocation44_spill] sm:$0xff] %v31678_v59  ;;  %9864 = vmax.xlane.f32.xlu0 %v9863_v58  ;;  %v9407_v63 = vpop.f32.mrf.mxu0 }
 0x527   : > { %v31685_v47 = vadd.f32 %v31548_v18, %v9407_v63  ;;  %v27472_v16 = vpop.f32.mrf.mxu1 }
 0x528   : > { %v31688_v0 = vadd.f32 %v27472_v16, %v31553_v32  ;;  %v27613_v21 = vpop.f32.mrf.mxu0 }
 0x529   : > { %v31690_v11 = vpop.f32.mrf.mxu1  ;;  %v9869_v34 = vsel %vm1759_vm2, %v31685_v47, -inf }
 0x52a   : > { %34937 = vst [vmem:[#allocation45_spill] sm:$0xff] %v31688_v0  ;;  %9870 = vmax.xlane.f32.xlu0 %v9869_v34  ;;  %v9559_v60 = vpop.f32.mrf.mxu0 }
 0x52b   : > { %v31695_v26 = vadd.f32 %v31548_v18, %v9559_v60  ;;  %v27475_v58 = vpop.f32.mrf.mxu1 }
 0x52c   : > { %v31698_v61 = vadd.f32 %v27475_v58, %v31553_v32  ;;  %v27623_v63 = vpop.f32.mrf.mxu0 }
 0x52d   : > { %v31700_v6 = vpop.f32.mrf.mxu1  ;;  %v9875_v16 = vsel %vm1759_vm2, %v31695_v26, -inf }
 0x52e   : > { %34938 = vst [vmem:[#allocation46_spill] sm:$0xff] %v31698_v61  ;;  %9876 = vmax.xlane.f32.xlu0 %v9875_v16  ;;  %v9711_v21 = vpop.f32.mrf.mxu0 }
 0x52f   : > { %v31705_v9 = vadd.f32 %v31548_v18, %v9711_v21  ;;  %v27478_v34 = vpop.f32.mrf.mxu1 }
 0x530   : > { %v31708_v13 = vadd.f32 %v27478_v34, %v31553_v32  ;;  %v27633_v60 = vpop.f32.mrf.mxu0 }
 0x531   : > { %v31710_v12 = vpop.f32.mrf.mxu1  ;;  %v9881_v58 = vsel %vm1759_vm2, %v31705_v9, -inf }
 0x532   : > { %34939 = vst [vmem:[#allocation47_spill] sm:$0xff] %v31708_v13  ;;  %9882 = vmax.xlane.f32.xlu0 %v9881_v58 }
 0x533   : > { %v7507_v63 = vpop.f32.mrf.mxu1 }
 0x534   : > { %v31715_v7 = vadd.f32 %v31548_v18, %v7507_v63 }
 0x535   : > { %v27488_v16 = vpop.f32.mrf.mxu1 }
 0x536   : > { %v9794_v21 = vsel %vm1759_vm2, %v31715_v7, -inf }
 0x537   : > { %9795 = vmax.xlane.f32.xlu1 %v9794_v21  ;;  %v7659_v31 = vpop.f32.mrf.mxu1 }
 0x538   : > { %v31720_v34 = vadd.f32 %v31548_v18, %v7659_v31 }
 0x539   : > { %v27498_v60 = vpop.f32.mrf.mxu1 }
 0x53a   : > { %v9800_v50 = vsel %vm1759_vm2, %v31720_v34, -inf }
 0x53b   : > { %9801 = vmax.xlane.f32.xlu1 %v9800_v50  ;;  %v7811_v30 = vpop.f32.mrf.mxu1 }
 0x53c   : > { %v31725_v58 = vadd.f32 %v31548_v18, %v7811_v30 }
 0x53d   : > { %v27508_v63 = vpop.f32.mrf.mxu1 }
 0x53e   : > { %v9806_v16 = vsel %vm1759_vm2, %v31725_v58, -inf }
 0x53f   : > { %9807 = vmax.xlane.f32.xlu1 %v9806_v16  ;;  %v7963_v54 = vpop.f32.mrf.mxu1 }
 0x540   : > { %v31730_v21 = vadd.f32 %v31548_v18, %v7963_v54 }
 0x541   : > { %v27518_v31 = vpop.f32.mrf.mxu1 }
 0x542   : > { %v9812_v60 = vsel %vm1759_vm2, %v31730_v21, -inf }
 0x543   : > { %9813 = vmax.xlane.f32.xlu1 %v9812_v60  ;;  %v8115_v29 = vpop.f32.mrf.mxu1 }
 0x544   : > { %v31735_v50 = vadd.f32 %v31548_v18, %v8115_v29 }
 0x545   : > { %v27528_v30 = vpop.f32.mrf.mxu1 }
 0x546   : > { %v9818_v63 = vsel %vm1759_vm2, %v31735_v50, -inf }
 0x547   : > { %9819 = vmax.xlane.f32.xlu1 %v9818_v63  ;;  %v8267_v10 = vpop.f32.mrf.mxu1 }
 0x548   : > { %v31740_v16 = vadd.f32 %v31548_v18, %v8267_v10 }
 0x549   : > { %v27538_v54 = vpop.f32.mrf.mxu1 }
 0x54a   : > { %v9824_v31 = vsel %vm1759_vm2, %v31740_v16, -inf }
 0x54b   : > { %9825 = vmax.xlane.f32.xlu1 %v9824_v31  ;;  %v8419_v48 = vpop.f32.mrf.mxu1 }
 0x54c   : > { %v31745_v60 = vadd.f32 %v31548_v18, %v8419_v48 }
 0x54d   : > { %v27548_v29 = vpop.f32.mrf.mxu1 }
 0x54e   : > { %v9830_v30 = vsel %vm1759_vm2, %v31745_v60, -inf }
 0x54f   : > { %9831 = vmax.xlane.f32.xlu1 %v9830_v30  ;;  %v8571_v8 = vpop.f32.mrf.mxu1 }
 0x550   : > { %v31750_v63 = vadd.f32 %v31548_v18, %v8571_v8 }
 0x551   : > { %v27558_v10 = vpop.f32.mrf.mxu1 }
 0x552   : > { %v9836_v54 = vsel %vm1759_vm2, %v31750_v63, -inf }
 0x553   : > { %9837 = vmax.xlane.f32.xlu1 %v9836_v54  ;;  %v8723_v13 = vpop.f32.mrf.mxu1 }
 0x554   : > { %v31755_v31 = vadd.f32 %v31548_v18, %v8723_v13 }
 0x555   : > { %v27568_v48 = vpop.f32.mrf.mxu1 }
 0x556   : > { %v9842_v29 = vsel %vm1759_vm2, %v31755_v31, -inf }
 0x557   : > { %9843 = vmax.xlane.f32.xlu1 %v9842_v29  ;;  %v8875_v61 = vpop.f32.mrf.mxu1 }
 0x558   : > { %v31760_v30 = vadd.f32 %v31548_v18, %v8875_v61 }
 0x559   : > { %v27578_v8 = vpop.f32.mrf.mxu1 }
 0x55a   : > { %v9848_v10 = vsel %vm1759_vm2, %v31760_v30, -inf }
 0x55b   : > { %9849 = vmax.xlane.f32.xlu1 %v9848_v10  ;;  %v9027_v0 = vpop.f32.mrf.mxu1 }
 0x55c   : > { %v31765_v54 = vadd.f32 %v31548_v18, %v9027_v0 }
 0x55d   : > { %v27588_v13 = vpop.f32.mrf.mxu1 }
 0x55e   : > { %v9854_v48 = vsel %vm1759_vm2, %v31765_v54, -inf }
 0x55f   : > { %9855 = vmax.xlane.f32.xlu1 %v9854_v48  ;;  %v9179_v59 = vpop.f32.mrf.mxu1 }
 0x560   : > { %v31770_v29 = vadd.f32 %v31548_v18, %v9179_v59 }
 0x561   : > { %v27598_v61 = vpop.f32.mrf.mxu1 }
 0x562   : > { %v9860_v8 = vsel %vm1759_vm2, %v31770_v29, -inf }
 0x563   : > { %9861 = vmax.xlane.f32.xlu1 %v9860_v8  ;;  %v9331_v15 = vpop.f32.mrf.mxu1 }
 0x564   : > { %v31775_v10 = vadd.f32 %v31548_v18, %v9331_v15 }
 0x565   : > { %v27608_v0 = vpop.f32.mrf.mxu1 }
 0x566   : > { %v9866_v13 = vsel %vm1759_vm2, %v31775_v10, -inf }
 0x567   : > { %9867 = vmax.xlane.f32.xlu1 %v9866_v13  ;;  %v9483_v42 = vpop.f32.mrf.mxu1 }
 0x568   : > { %v31780_v48 = vadd.f32 %v31548_v18, %v9483_v42 }
 0x569   : > { %v27618_v59 = vpop.f32.mrf.mxu1 }
 0x56a   : > { %v9872_v61 = vsel %vm1759_vm2, %v31780_v48, -inf }
 0x56b   : > { %9873 = vmax.xlane.f32.xlu1 %v9872_v61  ;;  %v9635_v33 = vpop.f32.mrf.mxu1 }
 0x56c   : > { %v31785_v8 = vadd.f32 %v31548_v18, %v9635_v33 }
 0x56d   : > { %v27628_v15 = vpop.f32.mrf.mxu1 }
 0x56e   : > { %v9878_v0 = vsel %vm1759_vm2, %v31785_v8, -inf }
 0x56f   : > { %9879 = vmax.xlane.f32.xlu1 %v9878_v0  ;;  %v9787_v36 = vpop.f32.mrf.mxu1 }
 0x570   : > { %v31790_v13 = vadd.f32 %v31548_v18, %v9787_v36 }
 0x571   : > { %v27638_v42 = vpop.f32.mrf.mxu1 }
 0x572   : > { %v9884_v59 = vsel %vm1759_vm2, %v31790_v13, -inf }
 0x573   : > { %9885 = vmax.xlane.f32.xlu1 %v9884_v59 }
 0x57f   : > { %v9793_v62 = vpop.xlane.xlu0 %9792 }
 0x580   : > { %v9887_v61 = vsub.f32 %v31556_v23, %v9793_v62 }
 0x582   : > { %v9919_v19 = vmul.f32 1.442695, %v9887_v61 }
 0x583   : > { %v9799_v33 = vpop.xlane.xlu0 %9798 }
 0x584   : > { %29025 = vpow2.f32 %v9919_v19  ;;  %v9889_v15 = vsub.f32 %v31563_v51, %v9799_v33 }
 0x586   : > { %v9923_v53 = vmul.f32 1.442695, %v9889_v15 }
 0x587   : > { %v9805_v43 = vpop.xlane.xlu0 %9804 }
 0x588   : > { %29027 = vpow2.f32 %v9923_v53  ;;  %v9891_v0 = vsub.f32 %v31575_v27, %v9805_v43 }
 0x58a   : > { %v9927_v36 = vmul.f32 1.442695, %v9891_v0 }
 0x58b   : > { %v9811_v18 = vpop.xlane.xlu0 %9810 }
 0x58c   : > { %29029 = vpow2.f32 %v9927_v36  ;;  %v9893_v42 = vsub.f32 %v31585_v37, %v9811_v18 }
 0x58e   : > { %v9931_v17 = vmul.f32 1.442695, %v9893_v42 }
 0x58f   : > { %v9817_v59 = vpop.xlane.xlu0 %9816 }
 0x590   : > { %29031 = vpow2.f32 %v9931_v17  ;;  %v9895_v23 = vsub.f32 %v31595_v25, %v9817_v59 }
 0x591   : > { %v31799_v62 = vpop.eup %29025 }
 0x592   : > { %v9935_v19 = vmul.f32 1.442695, %v9895_v23  ;;  %v9983_v51 = vsel %vm1759_vm2, %v31799_v62, 0.0 }
 0x593   : > { %v9823_v61 = vpop.xlane.xlu0 %9822  ;;  %9984 = vadd.xlane.f32.xlu0 %v9983_v51 }
 0x594   : > { %29033 = vpow2.f32 %v9935_v19  ;;  %v9897_v27 = vsub.f32 %v31605_v56, %v9823_v61 }
 0x595   : > { %v31804_v43 = vpop.eup %29027 }
 0x596   : > { %v9939_v53 = vmul.f32 1.442695, %v9897_v27  ;;  %v9989_v37 = vsel %vm1759_vm2, %v31804_v43, 0.0 }
 0x597   : > { %v9829_v17 = vpop.xlane.xlu0 %9828  ;;  %9990 = vadd.xlane.f32.xlu0 %v9989_v37 }
 0x598   : > { %29035 = vpow2.f32 %v9939_v53  ;;  %v9899_v25 = vsub.f32 %v31615_v24, %v9829_v17 }
 0x599   : > { %v31809_v33 = vpop.eup %29029 }
 0x59a   : > { %v9943_v15 = vmul.f32 1.442695, %v9899_v25  ;;  %v9995_v0 = vsel %vm1759_vm2, %v31809_v33, 0.0 }
 0x59b   : > { %v9835_v36 = vpop.xlane.xlu0 %9834  ;;  %9996 = vadd.xlane.f32.xlu0 %v9995_v0 }
 0x59c   : > { %29037 = vpow2.f32 %v9943_v15  ;;  %v9901_v56 = vsub.f32 %v31625_v20, %v9835_v36 }
 0x59d   : > { %v31814_v18 = vpop.eup %29031 }
 0x59e   : > { %v9947_v42 = vmul.f32 1.442695, %v9901_v56  ;;  %v10001_v59 = vsel %vm1759_vm2, %v31814_v18, 0.0 }
 0x59f   : > { %v9841_v23 = vpop.xlane.xlu0 %9840  ;;  %10002 = vadd.xlane.f32.xlu0 %v10001_v59 }
 0x5a0   : > { %29039 = vpow2.f32 %v9947_v42  ;;  %v9903_v24 = vsub.f32 %v31635_v44, %v9841_v23 }
 0x5a1   : > { %v31819_v19 = vpop.eup %29033 }
 0x5a2   : > { %v9951_v51 = vmul.f32 1.442695, %v9903_v24  ;;  %v10007_v61 = vsel %vm1759_vm2, %v31819_v19, 0.0 }
 0x5a3   : > { %v9847_v27 = vpop.xlane.xlu0 %9846  ;;  %10008 = vadd.xlane.f32.xlu0 %v10007_v61 }
 0x5a4   : > { %29041 = vpow2.f32 %v9951_v51  ;;  %v9905_v20 = vsub.f32 %v31645_v38, %v9847_v27 }
 0x5a5   : > { %v31824_v53 = vpop.eup %29035 }
 0x5a6   : > { %v9955_v37 = vmul.f32 1.442695, %v9905_v20  ;;  %v10013_v17 = vsel %vm1759_vm2, %v31824_v53, 0.0 }
 0x5a7   : > { %v9853_v25 = vpop.xlane.xlu0 %9852  ;;  %10014 = vadd.xlane.f32.xlu0 %v10013_v17 }
 0x5a8   : > { %29043 = vpow2.f32 %v9955_v37  ;;  %v9907_v44 = vsub.f32 %v31655_v52, %v9853_v25 }
 0x5a9   : > { %v31829_v15 = vpop.eup %29037 }
 0x5aa   : > { %v9959_v0 = vmul.f32 1.442695, %v9907_v44  ;;  %v10019_v36 = vsel %vm1759_vm2, %v31829_v15, 0.0 }
 0x5ab   : > { %v9859_v56 = vpop.xlane.xlu0 %9858  ;;  %10020 = vadd.xlane.f32.xlu0 %v10019_v36 }
 0x5ac   : > { %29045 = vpow2.f32 %v9959_v0  ;;  %v9909_v38 = vsub.f32 %v31665_v40, %v9859_v56 }
 0x5ad   : > { %v31834_v42 = vpop.eup %29039 }
 0x5ae   : > { %v9963_v59 = vmul.f32 1.442695, %v9909_v38  ;;  %v10025_v23 = vsel %vm1759_vm2, %v31834_v42, 0.0 }
 0x5af   : > { %v9865_v24 = vpop.xlane.xlu0 %9864  ;;  %10026 = vadd.xlane.f32.xlu0 %v10025_v23 }
 0x5b0   : > { %29047 = vpow2.f32 %v9963_v59  ;;  %v9911_v52 = vsub.f32 %v31675_v28, %v9865_v24 }
 0x5b1   : > { %v31839_v51 = vpop.eup %29041 }
 0x5b2   : > { %v9967_v61 = vmul.f32 1.442695, %v9911_v52  ;;  %v10031_v27 = vsel %vm1759_vm2, %v31839_v51, 0.0 }
 0x5b3   : > { %v9871_v20 = vpop.xlane.xlu0 %9870  ;;  %10032 = vadd.xlane.f32.xlu0 %v10031_v27 }
 0x5b4   : > { %29049 = vpow2.f32 %v9967_v61  ;;  %v9913_v40 = vsub.f32 %v31685_v47, %v9871_v20 }
 0x5b5   : > { %v31844_v37 = vpop.eup %29043 }
 0x5b6   : > { %v9971_v17 = vmul.f32 1.442695, %v9913_v40  ;;  %v10037_v25 = vsel %vm1759_vm2, %v31844_v37, 0.0 }
 0x5b7   : > { %v9877_v44 = vpop.xlane.xlu0 %9876  ;;  %10038 = vadd.xlane.f32.xlu0 %v10037_v25 }
 0x5b8   : > { %29051 = vpow2.f32 %v9971_v17  ;;  %v9915_v28 = vsub.f32 %v31695_v26, %v9877_v44 }
 0x5b9   : > { %v31849_v0 = vpop.eup %29045 }
 0x5ba   : > { %v9975_v36 = vmul.f32 1.442695, %v9915_v28  ;;  %v10043_v56 = vsel %vm1759_vm2, %v31849_v0, 0.0 }
 0x5bb   : > { %10044 = vadd.xlane.f32.xlu0 %v10043_v56  ;;  %v9883_v38 = vpop.xlane.xlu0 %9882 }
 0x5bc   : > { %29053 = vpow2.f32 %v9975_v36  ;;  %v9917_v47 = vsub.f32 %v31705_v9, %v9883_v38 }
 0x5bd   : > { %v31854_v59 = vpop.eup %29047 }
 0x5be   : > { %v9979_v23 = vmul.f32 1.442695, %v9917_v47  ;;  %v10049_v24 = vsel %vm1759_vm2, %v31854_v59, 0.0 }
 0x5bf   : > { %10050 = vadd.xlane.f32.xlu0 %v10049_v24 }
 0x5c0   : > { %29055 = vpow2.f32 %v9979_v23  ;;  %v9796_v26 = vpop.xlane.xlu1 %9795 }
 0x5c1   : > { %v31858_v52 = vpop.eup %29049  ;;  %v9888_v61 = vsub.f32 %v31715_v7, %v9796_v26 }
 0x5c2   : > { %v10055_v27 = vsel %vm1759_vm2, %v31858_v52, 0.0 }
 0x5c3   : > { %v9921_v20 = vmul.f32 1.442695, %v9888_v61  ;;  %10056 = vadd.xlane.f32.xlu0 %v10055_v27 }
 0x5c4   : > { %v9802_v40 = vpop.xlane.xlu1 %9801 }
 0x5c5   : > { %v31863_v9 = vpop.eup %29051  ;;  %29057 = vpow2.f32 %v9921_v20  ;;  %v9890_v17 = vsub.f32 %v31720_v34, %v9802_v40 }
 0x5c6   : > { %v10061_v25 = vsel %vm1759_vm2, %v31863_v9, 0.0 }
 0x5c7   : > { %v9925_v44 = vmul.f32 1.442695, %v9890_v17  ;;  %10062 = vadd.xlane.f32.xlu0 %v10061_v25 }
 0x5c8   : > { %v9808_v28 = vpop.xlane.xlu1 %9807 }
 0x5c9   : > { %v31868_v36 = vpop.eup %29053  ;;  %29059 = vpow2.f32 %v9925_v44  ;;  %v9892_v7 = vsub.f32 %v31725_v58, %v9808_v28 }
 0x5ca   : > { %v10067_v56 = vsel %vm1759_vm2, %v31868_v36, 0.0 }
 0x5cb   : > { %v9929_v38 = vmul.f32 1.442695, %v9892_v7  ;;  %10068 = vadd.xlane.f32.xlu0 %v10067_v56 }
 0x5cc   : > { %v9814_v47 = vpop.xlane.xlu1 %9813 }
 0x5cd   : > { %v31873_v23 = vpop.eup %29055  ;;  %29061 = vpow2.f32 %v9929_v38  ;;  %v9894_v34 = vsub.f32 %v31730_v21, %v9814_v47 }
 0x5ce   : > { %v10073_v24 = vsel %vm1759_vm2, %v31873_v23, 0.0 }
 0x5cf   : > { %v9933_v26 = vmul.f32 1.442695, %v9894_v34  ;;  %10074 = vadd.xlane.f32.xlu0 %v10073_v24 }
 0x5d0   : > { %v9820_v61 = vpop.xlane.xlu1 %9819 }
 0x5d1   : > { %29063 = vpow2.f32 %v9933_v26  ;;  %v9896_v58 = vsub.f32 %v31735_v50, %v9820_v61 }
 0x5d2   : > { %v31879_v27 = vpop.eup %29057 }
 0x5d3   : > { %v9937_v20 = vmul.f32 1.442695, %v9896_v58  ;;  %v9986_v40 = vsel %vm1759_vm2, %v31879_v27, 0.0 }
 0x5d4   : > { %v9826_v17 = vpop.xlane.xlu1 %9825  ;;  %9987 = vadd.xlane.f32.xlu1 %v9986_v40 }
 0x5d5   : > { %29065 = vpow2.f32 %v9937_v20  ;;  %v9898_v21 = vsub.f32 %v31740_v16, %v9826_v17 }
 0x5d6   : > { %v31884_v25 = vpop.eup %29059 }
 0x5d7   : > { %v9941_v44 = vmul.f32 1.442695, %v9898_v21  ;;  %v9992_v28 = vsel %vm1759_vm2, %v31884_v25, 0.0 }
 0x5d8   : > { %v9832_v7 = vpop.xlane.xlu1 %9831  ;;  %9993 = vadd.xlane.f32.xlu1 %v9992_v28 }
 0x5d9   : > { %29067 = vpow2.f32 %v9941_v44  ;;  %v9900_v50 = vsub.f32 %v31745_v60, %v9832_v7 }
 0x5da   : > { %v31889_v56 = vpop.eup %29061 }
 0x5db   : > { %v9945_v38 = vmul.f32 1.442695, %v9900_v50  ;;  %v9998_v47 = vsel %vm1759_vm2, %v31889_v56, 0.0 }
 0x5dc   : > { %v9838_v34 = vpop.xlane.xlu1 %9837  ;;  %9999 = vadd.xlane.f32.xlu1 %v9998_v47 }
 0x5dd   : > { %29069 = vpow2.f32 %v9945_v38  ;;  %v9902_v16 = vsub.f32 %v31750_v63, %v9838_v34 }
 0x5de   : > { %v31894_v24 = vpop.eup %29063 }
 0x5df   : > { %v9949_v26 = vmul.f32 1.442695, %v9902_v16  ;;  %v10004_v61 = vsel %vm1759_vm2, %v31894_v24, 0.0 }
 0x5e0   : > { %v9844_v58 = vpop.xlane.xlu1 %9843  ;;  %10005 = vadd.xlane.f32.xlu1 %v10004_v61 }
 0x5e1   : > { %29071 = vpow2.f32 %v9949_v26  ;;  %v9904_v60 = vsub.f32 %v31755_v31, %v9844_v58 }
 0x5e2   : > { %v31899_v20 = vpop.eup %29065 }
 0x5e3   : > { %v9953_v40 = vmul.f32 1.442695, %v9904_v60  ;;  %v10010_v17 = vsel %vm1759_vm2, %v31899_v20, 0.0 }
 0x5e4   : > { %v9850_v21 = vpop.xlane.xlu1 %9849  ;;  %10011 = vadd.xlane.f32.xlu1 %v10010_v17 }
 0x5e5   : > { %29073 = vpow2.f32 %v9953_v40  ;;  %v9906_v63 = vsub.f32 %v31760_v30, %v9850_v21 }
 0x5e6   : > { %v31904_v44 = vpop.eup %29067 }
 0x5e7   : > { %v9957_v28 = vmul.f32 1.442695, %v9906_v63  ;;  %v10016_v7 = vsel %vm1759_vm2, %v31904_v44, 0.0 }
 0x5e8   : > { %v9856_v50 = vpop.xlane.xlu1 %9855  ;;  %10017 = vadd.xlane.f32.xlu1 %v10016_v7 }
 0x5e9   : > { %29075 = vpow2.f32 %v9957_v28  ;;  %v9908_v31 = vsub.f32 %v31765_v54, %v9856_v50 }
 0x5ea   : > { %v31909_v38 = vpop.eup %29069 }
 0x5eb   : > { %v9961_v47 = vmul.f32 1.442695, %v9908_v31  ;;  %v10022_v34 = vsel %vm1759_vm2, %v31909_v38, 0.0 }
 0x5ec   : > { %v9862_v16 = vpop.xlane.xlu1 %9861  ;;  %10023 = vadd.xlane.f32.xlu1 %v10022_v34 }
 0x5ed   : > { %29077 = vpow2.f32 %v9961_v47  ;;  %v9910_v30 = vsub.f32 %v31770_v29, %v9862_v16 }
 0x5ee   : > { %v31914_v26 = vpop.eup %29071 }
 0x5ef   : > { %v9965_v61 = vmul.f32 1.442695, %v9910_v30  ;;  %v10028_v58 = vsel %vm1759_vm2, %v31914_v26, 0.0 }
 0x5f0   : > { %v9868_v60 = vpop.xlane.xlu1 %9867  ;;  %10029 = vadd.xlane.f32.xlu1 %v10028_v58 }
 0x5f1   : > { %29079 = vpow2.f32 %v9965_v61  ;;  %v9912_v54 = vsub.f32 %v31775_v10, %v9868_v60 }
 0x5f2   : > { %v31919_v40 = vpop.eup %29073 }
 0x5f3   : > { %v9969_v17 = vmul.f32 1.442695, %v9912_v54  ;;  %v10034_v21 = vsel %vm1759_vm2, %v31919_v40, 0.0 }
 0x5f4   : > { %v9874_v63 = vpop.xlane.xlu1 %9873  ;;  %10035 = vadd.xlane.f32.xlu1 %v10034_v21 }
 0x5f5   : > { %29081 = vpow2.f32 %v9969_v17  ;;  %v9914_v29 = vsub.f32 %v31780_v48, %v9874_v63 }
 0x5f6   : > { %v31924_v28 = vpop.eup %29075 }
 0x5f7   : > { %v9973_v7 = vmul.f32 1.442695, %v9914_v29  ;;  %v10040_v50 = vsel %vm1759_vm2, %v31924_v28, 0.0 }
 0x5f8   : > { %v9880_v31 = vpop.xlane.xlu1 %9879  ;;  %10041 = vadd.xlane.f32.xlu1 %v10040_v50 }
 0x5f9   : > { %29083 = vpow2.f32 %v9973_v7  ;;  %v9916_v10 = vsub.f32 %v31785_v8, %v9880_v31 }
 0x5fa   : > { %v31929_v47 = vpop.eup %29077 }
 0x5fb   : > { %v9977_v34 = vmul.f32 1.442695, %v9916_v10  ;;  %v10046_v16 = vsel %vm1759_vm2, %v31929_v47, 0.0 }
 0x5fc   : > { %10047 = vadd.xlane.f32.xlu1 %v10046_v16  ;;  %v9886_v30 = vpop.xlane.xlu1 %9885 }
 0x5fd   : > { %29085 = vpow2.f32 %v9977_v34  ;;  %v9918_v48 = vsub.f32 %v31790_v13, %v9886_v30 }
 0x5fe   : > { %v31934_v61 = vpop.eup %29079 }
 0x5ff   : > { %v9981_v58 = vmul.f32 1.442695, %v9918_v48  ;;  %v10052_v60 = vsel %vm1759_vm2, %v31934_v61, 0.0  ;;  %v7209_v48 = vadd.f32 %v31553_v32, %v31569_v49 }
 0x600   : > { %10053 = vadd.xlane.f32.xlu1 %v10052_v60 }
 0x601   : > { %29087 = vpow2.f32 %v9981_v58 }
 0x602   : > { %v31938_v8 = vpop.eup %29081 }
 0x603   : > { %v10058_v54 = vsel %vm1759_vm2, %v31938_v8, 0.0 }
 0x604   : > { %10059 = vadd.xlane.f32.xlu1 %v10058_v54 }
 0x606   : > { %v31942_v17 = vpop.eup %29083 }
 0x607   : > { %v10064_v21 = vsel %vm1759_vm2, %v31942_v17, 0.0 }
 0x608   : > { %10065 = vadd.xlane.f32.xlu1 %v10064_v21  ;;  %v7219_v21 = vadd.f32 %v31553_v32, %v31580_v3 }
 0x60a   : > { %v31946_v13 = vpop.eup %29085 }
 0x60b   : > { %v10070_v63 = vsel %vm1759_vm2, %v31946_v13, 0.0 }
 0x60c   : > { %10071 = vadd.xlane.f32.xlu1 %v10070_v63 }
 0x60e   : > { %v31950_v29 = vpop.eup %29087 }
 0x60f   : > { %v10076_v7 = vsel %vm1759_vm2, %v31950_v29, 0.0 }
 0x610   : > { %10077 = vadd.xlane.f32.xlu1 %v10076_v7 }
 0x61c   : > { %v9985_v50 = vpop.xlane.xlu0 %9984 }
 0x61d   : > { %29089 = vrcp.f32 %v9985_v50 }
 0x620   : > { %v9991_v31 = vpop.xlane.xlu0 %9990 }
 0x621   : > { %29091 = vrcp.f32 %v9991_v31 }
 0x624   : > { %v9997_v10 = vpop.xlane.xlu0 %9996 }
 0x625   : > { %29093 = vrcp.f32 %v9997_v10 }
 0x628   : > { %v10003_v34 = vpop.xlane.xlu0 %10002 }
 0x629   : > { %29095 = vrcp.f32 %v10003_v34 }
 0x62a   : > { %v29090_v16 = vpop.eup %29089 }
 0x62b   : > { %v10111_v30 = vmul.f32 %v29090_v16, %v31799_v62 }
 0x62c   : > { %v10009_v58 = vpop.xlane.xlu0 %10008 }
 0x62d   : > { %29097 = vrcp.f32 %v10009_v58  ;;  %27642 = vmatmul.mubr.msk.f32.vlgmr.msra.gmra.mxu0 %vm1759_vm2, %v10111_v30 }
 0x62e   : > { %v29092_v60 = vpop.eup %29091  ;;  %27650 = vmatpush3.msra.mxu0 %v7209_v48  ;;  %27651 = vmatprep.mubr.msk.f32.mxu0 %vm29533_vm1, %v34881_v41 }
 0x62f   : > { %v10113_v54 = vmul.f32 %v29092_v60, %v31804_v43  ;;  %27659 = vmatprep.subr.mxu0 %v34881_v41  ;;  %v7229_v43 = vadd.f32 %v31553_v32, %v31590_v55 }
 0x630   : > { %v10015_v62 = vpop.xlane.xlu0 %10014 }
 0x631   : > { %29099 = vrcp.f32 %v10015_v62  ;;  %27652 = vmatmul.mubr.msk.f32.vlgmr.msra.gmra.mxu0 %vm1759_vm2, %v10113_v54 }
 0x632   : > { %v29094_v49 = vpop.eup %29093  ;;  %27660 = vmatpush3.msra.mxu0 %v7219_v21  ;;  %27661 = vmatprep.mubr.msk.f32.mxu0 %vm29533_vm1, %v34881_v41 }
 0x633   : > { %v10115_v63 = vmul.f32 %v29094_v49, %v31809_v33  ;;  %27669 = vmatprep.subr.mxu0 %v34881_v41  ;;  %v7239_v33 = vadd.f32 %v31553_v32, %v31600_v5 }
 0x634   : > { %v10021_v7 = vpop.xlane.xlu0 %10020 }
 0x635   : > { %29101 = vrcp.f32 %v10021_v7  ;;  %27662 = vmatmul.mubr.msk.f32.vlgmr.msra.gmra.mxu0 %vm1759_vm2, %v10115_v63 }
 0x636   : > { %v29096_v3 = vpop.eup %29095  ;;  %27670 = vmatpush3.msra.mxu0 %v7229_v43  ;;  %27671 = vmatprep.mubr.msk.f32.mxu0 %vm29533_vm1, %v34881_v41 }
 0x637   : > { %v10117_v50 = vmul.f32 %v29096_v3, %v31814_v18  ;;  %27679 = vmatprep.subr.mxu0 %v34881_v41  ;;  %v7249_v18 = vadd.f32 %v31553_v32, %v31610_v2 }
 0x638   : > { %v10027_v31 = vpop.xlane.xlu0 %10026 }
 0x639   : > { %29103 = vrcp.f32 %v10027_v31  ;;  %27672 = vmatmul.mubr.msk.f32.vlgmr.msra.gmra.mxu0 %vm1759_vm2, %v10117_v50 }
 0x63a   : > { %v29098_v55 = vpop.eup %29097  ;;  %27680 = vmatpush3.msra.mxu0 %v7239_v33  ;;  %27681 = vmatprep.mubr.msk.f32.mxu0 %vm29533_vm1, %v34881_v41 }
 0x63b   : > { %v10119_v10 = vmul.f32 %v29098_v55, %v31819_v19  ;;  %27689 = vmatprep.subr.mxu0 %v34881_v41  ;;  %v7259_v19 = vadd.f32 %v31553_v32, %v31620_v4 }
 0x63c   : > { %v10033_v34 = vpop.xlane.xlu0 %10032 }
 0x63d   : > { %29105 = vrcp.f32 %v10033_v34  ;;  %27682 = vmatmul.mubr.msk.f32.vlgmr.msra.gmra.mxu0 %vm1759_vm2, %v10119_v10 }
 0x63e   : > { %v29100_v5 = vpop.eup %29099  ;;  %27690 = vmatpush3.msra.mxu0 %v7249_v18  ;;  %27691 = vmatprep.mubr.msk.f32.mxu0 %vm29533_vm1, %v34881_v41 }
 0x63f   : > { %v10121_v16 = vmul.f32 %v29100_v5, %v31824_v53  ;;  %27699 = vmatprep.subr.mxu0 %v34881_v41  ;;  %v7269_v53 = vadd.f32 %v31553_v32, %v31630_v57 }
 0x640   : > { %v10039_v30 = vpop.xlane.xlu0 %10038 }
 0x641   : > { %29107 = vrcp.f32 %v10039_v30  ;;  %27692 = vmatmul.mubr.msk.f32.vlgmr.msra.gmra.mxu0 %vm1759_vm2, %v10121_v16 }
 0x642   : > { %v29102_v2 = vpop.eup %29101  ;;  %27700 = vmatpush3.msra.mxu0 %v7259_v19  ;;  %27701 = vmatprep.mubr.msk.f32.mxu0 %vm29533_vm1, %v34881_v41 }
 0x643   : > { %v10123_v48 = vmul.f32 %v29102_v2, %v31829_v15  ;;  %27709 = vmatprep.subr.mxu0 %v34881_v41  ;;  %v7279_v15 = vadd.f32 %v31553_v32, %v31640_v39 }
 0x644   : > { %v10045_v58 = vpop.xlane.xlu0 %10044 }
 0x645   : > { %29109 = vrcp.f32 %v10045_v58  ;;  %27702 = vmatmul.mubr.msk.f32.vlgmr.msra.gmra.mxu0 %vm1759_vm2, %v10123_v48 }
 0x646   : > { %v29104_v4 = vpop.eup %29103  ;;  %27710 = vmatpush3.msra.mxu0 %v7269_v53  ;;  %27711 = vmatprep.mubr.msk.f32.mxu0 %vm29533_vm1, %v34881_v41  ;;  %v34940_v53 = vld [vmem:[#allocation35_spill] sm:$0xff] }
 0x647   : > { %v10125_v60 = vmul.f32 %v29104_v4, %v31834_v42  ;;  %27719 = vmatprep.subr.mxu0 %v34881_v41  ;;  %v29442_v42 = vld [vmem:[%s34861_s5 + $0x1] ss:$0 sm:$0xff]  ;;  %v34941_v4 = vld [vmem:[#allocation36_spill] sm:$0xff] }
 0x648   : > { %v10051_v54 = vpop.xlane.xlu0 %10050  ;;  %v7289_v62 = vadd.f32 %v29442_v42, %v31650_v22  ;;  %v7309_v7 = vadd.f32 %v29442_v42, %v31670_v1  ;;  %v7319_v50 = vadd.f32 %v29442_v42, %v31680_v45  ;;  %v7329_v31 = vadd.f32 %v29442_v42, %v31690_v11 }
 0x649   : > { %29111 = vrcp.f32 %v10051_v54  ;;  %27712 = vmatmul.mubr.msk.f32.vlgmr.msra.gmra.mxu0 %vm1759_vm2, %v10125_v60  ;;  %v7339_v10 = vadd.f32 %v29442_v42, %v31700_v6  ;;  %v7349_v34 = vadd.f32 %v29442_v42, %v31710_v12  ;;  %v34942_v54 = vld [vmem:[#allocation37_spill] sm:$0xff] }
 0x64a   : > { %v29106_v57 = vpop.eup %29105  ;;  %27720 = vmatpush3.msra.mxu0 %v7279_v15  ;;  %27721 = vmatprep.mubr.msk.f32.mxu0 %vm29533_vm1, %v34881_v41 }
 0x64b   : > { %v10127_v21 = vmul.f32 %v29106_v57, %v31839_v51  ;;  %27729 = vmatprep.subr.mxu0 %v34881_v41  ;;  %v7299_v51 = vadd.f32 %v29442_v42, %v31660_v35  ;;  %v34943_v42 = vld [vmem:[#allocation38_spill] sm:$0xff] }
 0x64c   : > { %v10057_v39 = vpop.xlane.xlu0 %10056 }
 0x64d   : > { %29113 = vrcp.f32 %v10057_v39  ;;  %27722 = vmatmul.mubr.msk.f32.vlgmr.msra.gmra.mxu0 %vm1759_vm2, %v10127_v21 }
 0x64e   : > { %v29108_v32 = vpop.eup %29107  ;;  %27730 = vmatpush3.msra.mxu0 %v7289_v62  ;;  %27731 = vmatprep.mubr.msk.f32.mxu0 %vm29533_vm1, %v34881_v41 }
 0x64f   : > { %v10129_v49 = vmul.f32 %v29108_v32, %v31844_v37  ;;  %27739 = vmatprep.subr.mxu0 %v34881_v41  ;;  %v34944_v32 = vld [vmem:[#allocation39_spill] sm:$0xff] }
 0x650   : > { %v10063_v63 = vpop.xlane.xlu0 %10062 }
 0x651   : > { %29115 = vrcp.f32 %v10063_v63  ;;  %27732 = vmatmul.mubr.msk.f32.vlgmr.msra.gmra.mxu0 %vm1759_vm2, %v10129_v49  ;;  %v34945_v63 = vld [vmem:[#allocation40_spill] sm:$0xff] }
 0x652   : > { %v29110_v22 = vpop.eup %29109  ;;  %27740 = vmatpush3.msra.mxu0 %v7299_v51  ;;  %27741 = vmatprep.mubr.msk.f32.mxu0 %vm29533_vm1, %v34881_v41 }
 0x653   : > { %v10131_v43 = vmul.f32 %v29110_v22, %v31849_v0  ;;  %27749 = vmatprep.subr.mxu0 %v34881_v41 }
 0x654   : > { %v10069_v37 = vpop.xlane.xlu0 %10068 }
 0x655   : > { %29117 = vrcp.f32 %v10069_v37  ;;  %27742 = vmatmul.mubr.msk.f32.vlgmr.msra.gmra.mxu0 %vm1759_vm2, %v10131_v43 }
 0x656   : > { %v29112_v35 = vpop.eup %29111  ;;  %27750 = vmatpush3.msra.mxu0 %v7309_v7  ;;  %27751 = vmatprep.mubr.msk.f32.mxu0 %vm29533_vm1, %v34881_v41  ;;  %v34946_v7 = vld [vmem:[#allocation41_spill] sm:$0xff] }
 0x657   : > { %v10133_v3 = vmul.f32 %v29112_v35, %v31854_v59  ;;  %27759 = vmatprep.subr.mxu0 %v34881_v41 }
 0x658   : > { %v10075_v0 = vpop.xlane.xlu0 %10074 }
 0x659   : > { %29119 = vrcp.f32 %v10075_v0  ;;  %27752 = vmatmul.mubr.msk.f32.vlgmr.msra.gmra.mxu0 %vm1759_vm2, %v10133_v3  ;;  %v34947_v3 = vld [vmem:[#allocation42_spill] sm:$0xff] }
 0x65a   : > { %v29114_v1 = vpop.eup %29113  ;;  %27760 = vmatpush3.msra.mxu0 %v7319_v50  ;;  %27761 = vmatprep.mubr.msk.f32.mxu0 %vm29533_vm1, %v34881_v41 }
 0x65b   : > { %v10135_v33 = vmul.f32 %v29114_v1, %v31858_v52  ;;  %27769 = vmatprep.subr.mxu0 %v34881_v41  ;;  %v34948_v1 = vld [vmem:[#allocation43_spill] sm:$0xff] }
 0x65d   : > { %v9988_v59 = vpop.xlane.xlu1 %9987  ;;  %27762 = vmatmul.mubr.msk.f32.vlgmr.msra.gmra.mxu0 %vm1759_vm2, %v10135_v33 }
 0x65e   : > { %v29116_v55 = vpop.eup %29115  ;;  %29121 = vrcp.f32 %v9988_v59  ;;  %27770 = vmatpush3.msra.mxu0 %v7329_v31  ;;  %27771 = vmatprep.mubr.msk.f32.mxu0 %vm29533_vm1, %v34881_v41  ;;  %v34949_v59 = vld [vmem:[#allocation44_spill] sm:$0xff] }
 0x65f   : > { %v10137_v45 = vmul.f32 %v29116_v55, %v31863_v9  ;;  %27779 = vmatprep.subr.mxu0 %v34881_v41 }
 0x661   : > { %v9994_v52 = vpop.xlane.xlu1 %9993  ;;  %27772 = vmatmul.mubr.msk.f32.vlgmr.msra.gmra.mxu0 %vm1759_vm2, %v10137_v45 }
 0x662   : > { %v29118_v18 = vpop.eup %29117  ;;  %29123 = vrcp.f32 %v9994_v52  ;;  %27780 = vmatpush3.msra.mxu0 %v7339_v10  ;;  %27781 = vmatprep.mubr.msk.f32.mxu0 %vm29533_vm1, %v34881_v41 }
 0x663   : > { %v10139_v11 = vmul.f32 %v29118_v18, %v31868_v36  ;;  %27789 = vmatprep.subr.mxu0 %v34881_v41  ;;  %v34951_v18 = vld [vmem:[#allocation46_spill] sm:$0xff] }
 0x665   : > { %v10000_v9 = vpop.xlane.xlu1 %9999  ;;  %27782 = vmatmul.mubr.msk.f32.vlgmr.msra.gmra.mxu0 %vm1759_vm2, %v10139_v11  ;;  %v6880_v11 = vld [vmem:[%s34863_s7] sm:$0xff] }
 0x666   : > { %v29120_v5 = vpop.eup %29119  ;;  %29125 = vrcp.f32 %v10000_v9  ;;  %27790 = vmatpush3.msra.mxu0 %v7349_v34  ;;  %27791 = vmatprep.mubr.msk.f32.mxu0 %vm29533_vm1, %v34881_v41  ;;  %v34952_v34 = vld [vmem:[#allocation47_spill] sm:$0xff] }
 0x667   : > { %v10141_v6 = vmul.f32 %v29120_v5, %v31873_v23  ;;  %v25522_v5 = vld [vmem:[%s34863_s7 + $0x8] sm:$0xff] }
 0x668   : > { %27799 = vmatprep.subr.mxu0 %v25522_v5 }
 0x669   : > { %v10006_v16 = vpop.xlane.xlu1 %10005  ;;  %27792 = vmatmul.mubr.msk.f32.vlgmr.msra.gmra.mxu0 %vm1759_vm2, %v10141_v6  ;;  %v34954_v6 = vld [vmem:[#allocation14_spill] sm:$0xff] }
 0x66a   : > { %29127 = vrcp.f32 %v10006_v16  ;;  %27800 = vmatpush3.msra.mxu0 %v25522_v5  ;;  %v34955_v16 = vld [vmem:[#allocation17_spill] sm:$0xff] }
 0x66b   : > { %v29122_v36 = vpop.eup %29121 }
 0x66c   : > { %v10112_v19 = vmul.f32 %v29122_v36, %v31879_v27  ;;  %v34957_v36 = vld [vmem:[#allocation18_spill] sm:$0xff] }
 0x66d   : > { %v10012_v30 = vpop.xlane.xlu1 %10011 }
 0x66e   : > { %29129 = vrcp.f32 %v10012_v30  ;;  %27647 = vmatmul.mubr.msk.f32.vlgmr.msra.gmra.mxu1 %vm1759_vm2, %v10112_v19  ;;  %v34958_v19 = vld [vmem:[#allocation21_spill] sm:$0xff]  ;;  %v34959_v30 = vld [vmem:[#allocation19_spill] sm:$0xff] }
 0x66f   : > { %v29124_v12 = vpop.eup %29123  ;;  %27655 = vmatpush3.msra.mxu1 %v31567_v46  ;;  %27656 = vmatprep.mubr.msk.f32.mxu1 %vm29533_vm1, %v34881_v41 }
 0x670   : > { %v10114_v2 = vmul.f32 %v29124_v12, %v31884_v25  ;;  %27664 = vmatprep.subr.mxu1 %v34881_v41  ;;  %v34960_v12 = vld [vmem:[#allocation22_spill] sm:$0xff] }
 0x671   : > { %v10018_v23 = vpop.xlane.xlu1 %10017 }
 0x672   : > { %29131 = vrcp.f32 %v10018_v23  ;;  %27657 = vmatmul.mubr.msk.f32.vlgmr.msra.gmra.mxu1 %vm1759_vm2, %v10114_v2  ;;  %v34961_v2 = vld [vmem:[#allocation3_spill] sm:$0xff] }
 0x673   : > { %v29126_v48 = vpop.eup %29125  ;;  %27665 = vmatpush3.msra.mxu1 %v31578_v14  ;;  %27666 = vmatprep.mubr.msk.f32.mxu1 %vm29533_vm1, %v34881_v41  ;;  %v34962_v23 = vld [vmem:[#allocation23_spill] sm:$0xff] }
 0x674   : > { %v10116_v27 = vmul.f32 %v29126_v48, %v31889_v56  ;;  %27674 = vmatprep.subr.mxu1 %v34881_v41  ;;  %v34963_v48 = vld [vmem:[#allocation4_spill] sm:$0xff] }
 0x675   : > { %v10024_v46 = vpop.xlane.xlu1 %10023 }
 0x676   : > { %29133 = vrcp.f32 %v10024_v46  ;;  %27667 = vmatmul.mubr.msk.f32.vlgmr.msra.gmra.mxu1 %vm1759_vm2, %v10116_v27  ;;  %v34964_v27 = vld [vmem:[#allocation24_spill] sm:$0xff]  ;;  %v34965_v46 = vld [vmem:[#allocation5_spill] sm:$0xff] }
 0x677   : > { %v29128_v25 = vpop.eup %29127  ;;  %27675 = vmatpush3.msra.mxu1 %v34940_v53  ;;  %27676 = vmatprep.mubr.msk.f32.mxu1 %vm29533_vm1, %v34881_v41  ;;  %v34967_v53 = vld [vmem:[#allocation20_spill] sm:$0xff] }
 0x678   : > { %v10118_v58 = vmul.f32 %v29128_v25, %v31894_v24  ;;  %27684 = vmatprep.subr.mxu1 %v34881_v41  ;;  %v34966_v25 = vld [vmem:[#allocation25_spill] sm:$0xff] }
 0x679   : > { %v10030_v14 = vpop.xlane.xlu1 %10029 }
 0x67a   : > { %29135 = vrcp.f32 %v10030_v14  ;;  %27677 = vmatmul.mubr.msk.f32.vlgmr.msra.gmra.mxu1 %vm1759_vm2, %v10118_v58  ;;  %v34968_v58 = vld [vmem:[#allocation26_spill] sm:$0xff] }
 0x67b   : > { %v29130_v56 = vpop.eup %29129  ;;  %27685 = vmatpush3.msra.mxu1 %v34941_v4  ;;  %27686 = vmatprep.mubr.msk.f32.mxu1 %vm29533_vm1, %v34881_v41  ;;  %v34969_v14 = vld [vmem:[#allocation6_spill] sm:$0xff]  ;;  %v34971_v4 = vld [vmem:[#allocation7_spill] sm:$0xff] }
 0x67c   : > { %v10120_v60 = vmul.f32 %v29130_v56, %v31899_v20  ;;  %27694 = vmatprep.subr.mxu1 %v34881_v41  ;;  %v34970_v56 = vld [vmem:[#allocation27_spill] sm:$0xff] }
 0x67d   : > { %v10036_v15 = vpop.xlane.xlu1 %10035 }
 0x67e   : > { %29137 = vrcp.f32 %v10036_v15  ;;  %27687 = vmatmul.mubr.msk.f32.vlgmr.msra.gmra.mxu1 %vm1759_vm2, %v10120_v60  ;;  %v34972_v60 = vld [vmem:[#allocation28_spill] sm:$0xff] }
 0x67f   : > { %v29132_v24 = vpop.eup %29131  ;;  %27695 = vmatpush3.msra.mxu1 %v34942_v54  ;;  %27696 = vmatprep.mubr.msk.f32.mxu1 %vm29533_vm1, %v34881_v41  ;;  %v34973_v15 = vld [vmem:[#allocation8_spill] sm:$0xff]  ;;  %v34975_v54 = vld [vmem:[#allocation9_spill] sm:$0xff] }
 0x680   : > { %v10122_v57 = vmul.f32 %v29132_v24, %v31904_v44  ;;  %27704 = vmatprep.subr.mxu1 %v34881_v41  ;;  %v34974_v24 = vld [vmem:[#allocation29_spill] sm:$0xff] }
 0x681   : > { %v10042_v21 = vpop.xlane.xlu1 %10041 }
 0x682   : > { %29139 = vrcp.f32 %v10042_v21  ;;  %27697 = vmatmul.mubr.msk.f32.vlgmr.msra.gmra.mxu1 %vm1759_vm2, %v10122_v57  ;;  %v34976_v57 = vld [vmem:[#allocation30_spill] sm:$0xff] }
 0x683   : > { %v29134_v20 = vpop.eup %29133  ;;  %27705 = vmatpush3.msra.mxu1 %v34943_v42  ;;  %27706 = vmatprep.mubr.msk.f32.mxu1 %vm29533_vm1, %v34881_v41  ;;  %v34977_v21 = vld [vmem:[#allocation10_spill] sm:$0xff]  ;;  %v34979_v42 = vld [vmem:[#allocation11_spill] sm:$0xff] }
 0x684   : > { %v10124_v62 = vmul.f32 %v29134_v20, %v31909_v38  ;;  %27714 = vmatprep.subr.mxu1 %v34881_v41  ;;  %v34978_v20 = vld [vmem:[#allocation31_spill] sm:$0xff] }
 0x685   : > { %v10048_v39 = vpop.xlane.xlu1 %10047 }
 0x686   : > { %29141 = vrcp.f32 %v10048_v39  ;;  %27707 = vmatmul.mubr.msk.f32.vlgmr.msra.gmra.mxu1 %vm1759_vm2, %v10124_v62  ;;  %v34980_v62 = vld [vmem:[#allocation32_spill] sm:$0xff] }
 0x687   : > { %v29136_v44 = vpop.eup %29135  ;;  %27715 = vmatpush3.msra.mxu1 %v34944_v32  ;;  %27716 = vmatprep.mubr.msk.f32.mxu1 %vm29533_vm1, %v34881_v41  ;;  %v34981_v39 = vld [vmem:[#allocation12_spill] sm:$0xff]  ;;  %v34983_v32 = vld [vmem:[#allocation13_spill] sm:$0xff] }
 0x688   : > { %v10126_v49 = vmul.f32 %v29136_v44, %v31914_v26  ;;  %27724 = vmatprep.subr.mxu1 %v34881_v41  ;;  %v34982_v44 = vld [vmem:[#allocation33_spill] sm:$0xff] }
 0x689   : > { %v10054_v51 = vpop.xlane.xlu1 %10053 }
 0x68a   : > { %29143 = vrcp.f32 %v10054_v51  ;;  %27717 = vmatmul.mubr.msk.f32.vlgmr.msra.gmra.mxu1 %vm1759_vm2, %v10126_v49  ;;  %v25590_v49 = vld [vmem:[%s34858_s2 + $0x58] sm:$0xff] }
 0x68b   : > { %v29138_v38 = vpop.eup %29137  ;;  %27725 = vmatpush3.msra.mxu1 %v34945_v63  ;;  %27726 = vmatprep.mubr.msk.f32.mxu1 %vm29533_vm1, %v34881_v41  ;;  %v34984_v51 = vld [vmem:[#allocation34_spill] sm:$0xff] }
 0x68c   : > { %v10128_v22 = vmul.f32 %v29138_v38, %v31919_v40  ;;  %27734 = vmatprep.subr.mxu1 %v34881_v41  ;;  %27899 = vmatprep.subr.mxu0 %v25590_v49  ;;  %v32221_v38 = vld [vmem:[%s29911_s25] sm:$0xff] }
 0x68d   : > { %v10060_v43 = vpop.xlane.xlu1 %10059 }
 0x68e   : > { %29145 = vrcp.f32 %v10060_v43  ;;  %27727 = vmatmul.mubr.msk.f32.vlgmr.msra.gmra.mxu1 %vm1759_vm2, %v10128_v22 }
 0x68f   : > { %v29140_v26 = vpop.eup %29139  ;;  %27735 = vmatpush3.msra.mxu1 %v34946_v7  ;;  %27736 = vmatprep.mubr.msk.f32.mxu1 %vm29533_vm1, %v34881_v41 }
 0x690   : > { %v10130_v37 = vmul.f32 %v29140_v26, %v31924_v28  ;;  %27744 = vmatprep.subr.mxu1 %v34881_v41 }
 0x691   : > { %v10066_v35 = vpop.xlane.xlu1 %10065 }
 0x692   : > { %29147 = vrcp.f32 %v10066_v35  ;;  %27737 = vmatmul.mubr.msk.f32.vlgmr.msra.gmra.mxu1 %vm1759_vm2, %v10130_v37 }
 0x693   : > { %v29142_v40 = vpop.eup %29141  ;;  %27745 = vmatpush3.msra.mxu1 %v34947_v3  ;;  %27746 = vmatprep.mubr.msk.f32.mxu1 %vm29533_vm1, %v34881_v41 }
 0x694   : > { %v10132_v50 = vmul.f32 %v29142_v40, %v31929_v47  ;;  %27754 = vmatprep.subr.mxu1 %v34881_v41 }
 0x695   : > { %v10072_v0 = vpop.xlane.xlu1 %10071 }
 0x696   : > { %29149 = vrcp.f32 %v10072_v0  ;;  %27747 = vmatmul.mubr.msk.f32.vlgmr.msra.gmra.mxu1 %vm1759_vm2, %v10132_v50 }
 0x697   : > { %v29144_v28 = vpop.eup %29143  ;;  %27755 = vmatpush3.msra.mxu1 %v34948_v1  ;;  %27756 = vmatprep.mubr.msk.f32.mxu1 %vm29533_vm1, %v34881_v41 }
 0x698   : > { %v10134_v33 = vmul.f32 %v29144_v28, %v31934_v61  ;;  %27764 = vmatprep.subr.mxu1 %v34881_v41  ;;  %v34950_v61 = vld [vmem:[#allocation45_spill] sm:$0xff] }
 0x699   : > { %v10078_v31 = vpop.xlane.xlu1 %10077 }
 0x69a   : > { %29151 = vrcp.f32 %v10078_v31  ;;  %27757 = vmatmul.mubr.msk.f32.vlgmr.msra.gmra.mxu1 %vm1759_vm2, %v10134_v33 }
 0x69b   : > { %v29146_v47 = vpop.eup %29145  ;;  %27765 = vmatpush3.msra.mxu1 %v34949_v59  ;;  %27766 = vmatprep.mubr.msk.f32.mxu1 %vm29533_vm1, %v34881_v41 }
 0x69c   : > { %v10136_v55 = vmul.f32 %v29146_v47, %v31938_v8  ;;  %27774 = vmatprep.subr.mxu1 %v34881_v41 }
 0x69e   : > { %27767 = vmatmul.mubr.msk.f32.vlgmr.msra.gmra.mxu1 %vm1759_vm2, %v10136_v55 }
 0x69f   : > { %v29148_v45 = vpop.eup %29147  ;;  %27775 = vmatpush3.msra.mxu1 %v34950_v61  ;;  %27776 = vmatprep.mubr.msk.f32.mxu1 %vm29533_vm1, %v34881_v41 }
 0x6a0   : > { %v10138_v10 = vmul.f32 %v29148_v45, %v31942_v17  ;;  %27784 = vmatprep.subr.mxu1 %v34881_v41 }
 0x6a2   : > { %27777 = vmatmul.mubr.msk.f32.vlgmr.msra.gmra.mxu1 %vm1759_vm2, %v10138_v10 }
 0x6a3   : > { %v29150_v52 = vpop.eup %29149  ;;  %27785 = vmatpush3.msra.mxu1 %v34951_v18  ;;  %27786 = vmatprep.mubr.msk.f32.mxu1 %vm29533_vm1, %v34881_v41 }
 0x6a4   : > { %v10140_v8 = vmul.f32 %v29150_v52, %v31946_v13  ;;  %27794 = vmatprep.subr.mxu1 %v34881_v41  ;;  %v34953_v13 = vld [vmem:[#allocation16_spill] sm:$0xff] }
 0x6a6   : > { %27787 = vmatmul.mubr.msk.f32.vlgmr.msra.gmra.mxu1 %vm1759_vm2, %v10140_v8 }
 0x6a7   : > { %v29152_v17 = vpop.eup %29151  ;;  %27795 = vmatpush3.msra.mxu1 %v34952_v34  ;;  %27796 = vmatprep.mubr.msk.f32.mxu1 %vm29533_vm1, %v34881_v41 }
 0x6a8   : > { %v10142_v9 = vmul.f32 %v29152_v17, %v31950_v29  ;;  %27849 = vmatprep.subr.mxu1 %v6880_v11  ;;  %v34956_v29 = vld [vmem:[#allocation15_spill] sm:$0xff] }
 0x6aa   : > { %27797 = vmatmul.mubr.msk.f32.vlgmr.msra.gmra.mxu1 %vm1759_vm2, %v10142_v9 }
 0x6ab   : > { %27851 = vmatprep.mubr.msk.f32.mxu1 %vm1759_vm2, %v34953_v13  ;;  %27850 = vmatpush3.msra.mxu1 %v6880_v11 }
 0x6ae   : > { %27852 = vmatmul.mubr.msk.f32.vlgmr.msra.gmra.mxu1 %vm1759_vm2, %v34954_v6 }
 0x6af   : > { %27854 = vmatprep.mubr.msk.f32.mxu1 %vm1759_vm2, %v34955_v16 }
 0x6b2   : > { %27855 = vmatmul.mubr.msk.f32.gmra.mxu1 %vm1759_vm2, %v34956_v29  ;;  %v25628_v29 = vld [vmem:[%s34859_s3 + $0x58] sm:$0xff] }
 0x6b3   : > { %27857 = vmatprep.mubr.msk.f32.mxu1 %vm1759_vm2, %v34957_v36  ;;  %v25627_v36 = vld [vmem:[%s34859_s3 + $0x50] sm:$0xff]  ;;  %27955 = vmatprep.subr.mxu1 %v25628_v29 }
 0x6b4   : > { %27956 = vmatpush3.msra.mxu1 %v25628_v29  ;;  %v29468_v29 = vld [vmem:[%s29911_s25 + $0xc8] sm:$0xff] }
 0x6b5   : > { %27957 = vmatprep.subr.mxu1 %v25627_v36 }
 0x6b6   : > { %27858 = vmatmul.mubr.msk.f32.gmra.mxu1 %vm1759_vm2, %v34958_v19 }
 0x6b7   : > { %27860 = vmatprep.mubr.msk.f32.mxu1 %vm1759_vm2, %v34959_v30  ;;  %v25589_v30 = vld [vmem:[%s34858_s2 + $0x50] sm:$0xff]  ;;  %27958 = vmatpush3.msra.mxu1 %v25627_v36 }
 0x6b8   : > { %v29469_v36 = vld [vmem:[%s29911_s25 + $0xd0] sm:$0xff] }
 0x6ba   : > { %27861 = vmatmul.mubr.msk.f32.gmra.mxu1 %vm1759_vm2, %v34960_v12 }
 0x6bb   : > { %27863 = vmatprep.mubr.msk.f32.mxu1 %vm1759_vm2, %v34961_v2  ;;  %v25588_v2 = vld [vmem:[%s34858_s2 + $0x48] sm:$0xff] }
 0x6be   : > { %27864 = vmatmul.mubr.msk.f32.gmra.mxu1 %vm1759_vm2, %v34962_v23 }
 0x6bf   : > { %27866 = vmatprep.mubr.msk.f32.mxu1 %vm1759_vm2, %v34963_v48  ;;  %v25587_v48 = vld [vmem:[%s34858_s2 + $0x40] sm:$0xff] }
 0x6c2   : > { %27867 = vmatmul.mubr.msk.f32.gmra.mxu1 %vm1759_vm2, %v34964_v27 }
 0x6c3   : > { %27869 = vmatprep.mubr.msk.f32.mxu1 %vm1759_vm2, %v34965_v46 }
 0x6c6   : > { %27870 = vmatmul.mubr.msk.f32.gmra.mxu1 %vm1759_vm2, %v34966_v25 }
 0x6c7   : > { %27872 = vmatprep.mubr.msk.f32.mxu1 %vm1759_vm2, %v34967_v53 }
 0x6ca   : > { %27873 = vmatmul.mubr.msk.f32.gmra.mxu1 %vm1759_vm2, %v34968_v58 }
 0x6cb   : > { %27875 = vmatprep.mubr.msk.f32.mxu1 %vm1759_vm2, %v34969_v14 }
 0x6ce   : > { %27876 = vmatmul.mubr.msk.f32.gmra.mxu1 %vm1759_vm2, %v34970_v56 }
 0x6cf   : > { %27878 = vmatprep.mubr.msk.f32.mxu1 %vm1759_vm2, %v34971_v4 }
 0x6d2   : > { %27879 = vmatmul.mubr.msk.f32.gmra.mxu1 %vm1759_vm2, %v34972_v60 }
 0x6d3   : > { %27881 = vmatprep.mubr.msk.f32.mxu1 %vm1759_vm2, %v34973_v15 }
 0x6d6   : > { %27882 = vmatmul.mubr.msk.f32.gmra.mxu1 %vm1759_vm2, %v34974_v24 }
 0x6d7   : > { %27884 = vmatprep.mubr.msk.f32.mxu1 %vm1759_vm2, %v34975_v54 }
 0x6da   : > { %27885 = vmatmul.mubr.msk.f32.gmra.mxu1 %vm1759_vm2, %v34976_v57 }
 0x6db   : > { %27887 = vmatprep.mubr.msk.f32.mxu1 %vm1759_vm2, %v34977_v21 }
 0x6de   : > { %27888 = vmatmul.mubr.msk.f32.gmra.mxu1 %vm1759_vm2, %v34978_v20 }
 0x6df   : > { %27890 = vmatprep.mubr.msk.f32.mxu1 %vm1759_vm2, %v34979_v42 }
 0x6e2   : > { %27891 = vmatmul.mubr.msk.f32.gmra.mxu1 %vm1759_vm2, %v34980_v62 }
 0x6e3   : > { %27893 = vmatprep.mubr.msk.f32.mxu1 %vm1759_vm2, %v34981_v39 }
 0x6e6   : > { %27894 = vmatmul.mubr.msk.f32.gmra.mxu1 %vm1759_vm2, %v34982_v44 }
 0x6e7   : > { %27896 = vmatprep.mubr.msk.f32.mxu1 %vm1759_vm2, %v34983_v32 }
 0x6ea   : > { %27897 = vmatmul.mubr.msk.f32.gmra.mxu1 %vm1759_vm2, %v34984_v51 }
 0x6eb   : > { %27963 = vmatprep.mubr.msk.f32.mxu1 %vm1200_vm0, %v32221_v38 }
 0x6ed   : > { %v10212_v63 = vpop.f32.mrf.mxu0 }
 0x6ee   : > { %27801 = vmatprep.mubr.msk.f32.mxu0 %vm1759_vm2, %v10212_v63 }
 0x6ef   : > { %v27643_v22 = vpop.f32.mrf.mxu0 }
 0x6f1   : > { %v10358_v43 = vpop.f32.mrf.mxu0 }
 0x6f3   : > { %v27653_v26 = vpop.f32.mrf.mxu0 }
 0x6f5   : > { %v10504_v7 = vpop.f32.mrf.mxu0 }
 0x6f7   : > { %v27663_v37 = vpop.f32.mrf.mxu0 }
 0x6f9   : > { %v10650_v35 = vpop.f32.mrf.mxu0 }
 0x6fb   : > { %v27673_v40 = vpop.f32.mrf.mxu0 }
 0x6fc   : > { %v29444_v40 = vld [vmem:[%s29911_s25 + $0x8] sm:$0xff] }
 0x6fd   : > { %v10796_v3 = vpop.f32.mrf.mxu0 }
 0x6ff   : > { %v27683_v50 = vpop.f32.mrf.mxu0 }
 0x700   : > { %v29445_v50 = vld [vmem:[%s29911_s25 + $0x10] sm:$0xff] }
 0x701   : > { %v10942_v0 = vpop.f32.mrf.mxu0 }
 0x703   : > { %v27693_v28 = vpop.f32.mrf.mxu0 }
 0x704   : > { %v29447_v28 = vld [vmem:[%s29911_s25 + $0x20] sm:$0xff] }
 0x705   : > { %v11088_v1 = vpop.f32.mrf.mxu0 }
 0x707   : > { %v27703_v33 = vpop.f32.mrf.mxu0 }
 0x708   : > { %v29449_v33 = vld [vmem:[%s29911_s25 + $0x30] sm:$0xff] }
 0x709   : > { %v11234_v31 = vpop.f32.mrf.mxu0 }
 0x70b   : > { %v27713_v47 = vpop.f32.mrf.mxu0 }
 0x70c   : > { %v29451_v47 = vld [vmem:[%s29911_s25 + $0x40] sm:$0xff] }
 0x70d   : > { %v32226_v59 = vpop.f32.mrf.mxu0 }
 0x70f   : > { %v27723_v55 = vpop.f32.mrf.mxu0 }
 0x710   : > { %v29453_v55 = vld [vmem:[%s29911_s25 + $0x50] sm:$0xff] }
 0x711   : > { %v32228_v45 = vpop.f32.mrf.mxu0 }
 0x713   : > { %v27733_v61 = vpop.f32.mrf.mxu0 }
 0x714   : > { %v29455_v61 = vld [vmem:[%s29911_s25 + $0x60] sm:$0xff] }
 0x715   : > { %v32230_v10 = vpop.f32.mrf.mxu0 }
 0x717   : > { %v27743_v52 = vpop.f32.mrf.mxu0 }
 0x718   : > { %v29457_v52 = vld [vmem:[%s29911_s25 + $0x70] sm:$0xff] }
 0x719   : > { %v32232_v18 = vpop.f32.mrf.mxu0 }
 0x71b   : > { %v27753_v8 = vpop.f32.mrf.mxu0 }
 0x71c   : > { %v29459_v8 = vld [vmem:[%s29911_s25 + $0x80] sm:$0xff] }
 0x71d   : > { %v32234_v11 = vpop.f32.mrf.mxu0 }
 0x71f   : > { %v27763_v17 = vpop.f32.mrf.mxu0 }
 0x720   : > { %v29461_v17 = vld [vmem:[%s29911_s25 + $0x90] sm:$0xff] }
 0x721   : > { %v32236_v34 = vpop.f32.mrf.mxu0 }
 0x723   : > { %v27773_v9 = vpop.f32.mrf.mxu0 }
 0x724   : > { %v29463_v9 = vld [vmem:[%s29911_s25 + $0xa0] sm:$0xff] }
 0x725   : > { %v32238_v13 = vpop.f32.mrf.mxu0 }
 0x727   : > { %v27783_v5 = vpop.f32.mrf.mxu0 }
 0x728   : > { %v29465_v5 = vld [vmem:[%s29911_s25 + $0xb0] sm:$0xff] }
 0x729   : > { %v32240_v6 = vpop.f32.mrf.mxu0 }
 0x72b   : > { %v27793_v16 = vpop.f32.mrf.mxu0 }
 0x72c   : > { %v29467_v16 = vld [vmem:[%s29911_s25 + $0xc0] sm:$0xff] }
 0x72e   : > { %v10285_v19 = vpop.f32.mrf.mxu1 }
 0x72f   : > { %27802 = vmatmul.mubr.msk.f32.vlgmr.msra.gmra.mxu0 %vm1759_vm2, %v10285_v19  ;;  %v29470_v19 = vld [vmem:[%s29911_s25 + $0xd8] sm:$0xff] }
 0x730   : > { %v27648_v12 = vpop.f32.mrf.mxu1  ;;  %27804 = vmatprep.mubr.msk.f32.mxu0 %vm1759_vm2, %v10358_v43  ;;  %27900 = vmatpush3.msra.mxu0 %v25590_v49 }
 0x731   : > { %27901 = vmatprep.subr.mxu0 %v25589_v30  ;;  %v29472_v12 = vld [vmem:[%s29911_s25 + $0xe8] sm:$0xff] }
 0x732   : > { %v10431_v23 = vpop.f32.mrf.mxu1  ;;  %27902 = vmatpush3.msra.mxu0 %v25589_v30  ;;  %v29471_v30 = vld [vmem:[%s29911_s25 + $0xe0] sm:$0xff] }
 0x733   : > { %27805 = vmatmul.mubr.msk.f32.gmra.mxu0 %vm1759_vm2, %v10431_v23  ;;  %27903 = vmatprep.subr.mxu0 %v25588_v2  ;;  %v29474_v23 = vld [vmem:[%s29911_s25 + $0xf8] sm:$0xff] }
 0x734   : > { %v27658_v27 = vpop.f32.mrf.mxu1  ;;  %27807 = vmatprep.mubr.msk.f32.mxu0 %vm1759_vm2, %v10504_v7  ;;  %27904 = vmatpush3.msra.mxu0 %v25588_v2  ;;  %v29473_v2 = vld [vmem:[%s29911_s25 + $0xf0] sm:$0xff] }
 0x735   : > { %27905 = vmatprep.subr.mxu0 %v25587_v48 }
 0x736   : > { %v10577_v46 = vpop.f32.mrf.mxu1  ;;  %27906 = vmatpush3.msra.mxu0 %v25587_v48 }
 0x737   : > { %27808 = vmatmul.mubr.msk.f32.gmra.mxu0 %vm1759_vm2, %v10577_v46  ;;  %28011 = vmatprep.subr.mxu0 %v34881_v41 }
 0x738   : > { %v27668_v25 = vpop.f32.mrf.mxu1  ;;  %27810 = vmatprep.mubr.msk.f32.mxu0 %vm1759_vm2, %v10650_v35 }
 0x73a   : > { %v10723_v53 = vpop.f32.mrf.mxu1 }
 0x73b   : > { %27811 = vmatmul.mubr.msk.f32.gmra.mxu0 %vm1759_vm2, %v10723_v53 }
 0x73c   : > { %v27678_v58 = vpop.f32.mrf.mxu1  ;;  %27813 = vmatprep.mubr.msk.f32.mxu0 %vm1759_vm2, %v10796_v3  ;;  %v25626_v3 = vld [vmem:[%s34859_s3 + $0x48] sm:$0xff] }
 0x73d   : > { %27959 = vmatprep.subr.mxu1 %v25626_v3 }
 0x73e   : > { %v10869_v14 = vpop.f32.mrf.mxu1  ;;  %27960 = vmatpush3.msra.mxu1 %v25626_v3 }
 0x73f   : > { %27814 = vmatmul.mubr.msk.f32.gmra.mxu0 %vm1759_vm2, %v10869_v14 }
 0x740   : > { %v27688_v56 = vpop.f32.mrf.mxu1  ;;  %27816 = vmatprep.mubr.msk.f32.mxu0 %vm1759_vm2, %v10942_v0  ;;  %v25625_v0 = vld [vmem:[%s34859_s3 + $0x40] sm:$0xff] }
 0x741   : > { %27961 = vmatprep.subr.mxu1 %v25625_v0 }
 0x742   : > { %v11015_v4 = vpop.f32.mrf.mxu1  ;;  %27962 = vmatpush3.msra.mxu1 %v25625_v0 }
 0x743   : > { %27817 = vmatmul.mubr.msk.f32.gmra.mxu0 %vm1759_vm2, %v11015_v4  ;;  %27964 = vmatmul.mubr.msk.f32.vlgmr.msra.gmra.mxu1 %vm1200_vm0, %v29444_v40 }
 0x744   : > { %v27698_v60 = vpop.f32.mrf.mxu1  ;;  %27819 = vmatprep.mubr.msk.f32.mxu0 %vm1759_vm2, %v11088_v1  ;;  %27966 = vmatprep.mubr.msk.f32.mxu1 %vm1200_vm0, %v29445_v50  ;;  %v29448_v1 = vld [vmem:[%s29911_s25 + $0x28] sm:$0xff] }
 0x745   : > { %28016 = vmatprep.subr.mxu1 %v34881_v41 }
 0x746   : > { %v11161_v15 = vpop.f32.mrf.mxu1 }
 0x747   : > { %27820 = vmatmul.mubr.msk.f32.gmra.mxu0 %vm1759_vm2, %v11161_v15 }
 0x748   : > { %v27708_v24 = vpop.f32.mrf.mxu1  ;;  %27822 = vmatprep.mubr.msk.f32.mxu0 %vm1759_vm2, %v11234_v31  ;;  %v29450_v31 = vld [vmem:[%s29911_s25 + $0x38] sm:$0xff] }
 0x74a   : > { %v11307_v54 = vpop.f32.mrf.mxu1 }
 0x74b   : > { %27823 = vmatmul.mubr.msk.f32.gmra.mxu0 %vm1759_vm2, %v11307_v54 }
 0x74c   : > { %v27718_v57 = vpop.f32.mrf.mxu1  ;;  %27825 = vmatprep.mubr.msk.f32.mxu0 %vm1759_vm2, %v32226_v59  ;;  %v29452_v59 = vld [vmem:[%s29911_s25 + $0x48] sm:$0xff] }
 0x74e   : > { %v11453_v21 = vpop.f32.mrf.mxu1 }
 0x74f   : > { %27826 = vmatmul.mubr.msk.f32.gmra.mxu0 %vm1759_vm2, %v11453_v21 }
 0x750   : > { %v27728_v20 = vpop.f32.mrf.mxu1  ;;  %27828 = vmatprep.mubr.msk.f32.mxu0 %vm1759_vm2, %v32228_v45  ;;  %v29454_v45 = vld [vmem:[%s29911_s25 + $0x58] sm:$0xff] }
 0x752   : > { %v11599_v42 = vpop.f32.mrf.mxu1 }
 0x753   : > { %27829 = vmatmul.mubr.msk.f32.gmra.mxu0 %vm1759_vm2, %v11599_v42 }
 0x754   : > { %v27738_v62 = vpop.f32.mrf.mxu1  ;;  %27831 = vmatprep.mubr.msk.f32.mxu0 %vm1759_vm2, %v32230_v10  ;;  %v29456_v10 = vld [vmem:[%s29911_s25 + $0x68] sm:$0xff] }
 0x756   : > { %v11745_v39 = vpop.f32.mrf.mxu1 }
 0x757   : > { %27832 = vmatmul.mubr.msk.f32.gmra.mxu0 %vm1759_vm2, %v11745_v39 }
 0x758   : > { %v27748_v44 = vpop.f32.mrf.mxu1  ;;  %27834 = vmatprep.mubr.msk.f32.mxu0 %vm1759_vm2, %v32232_v18  ;;  %v29458_v18 = vld [vmem:[%s29911_s25 + $0x78] sm:$0xff] }
 0x75a   : > { %v11891_v32 = vpop.f32.mrf.mxu1 }
 0x75b   : > { %27835 = vmatmul.mubr.msk.f32.gmra.mxu0 %vm1759_vm2, %v11891_v32 }
 0x75c   : > { %v27758_v49 = vpop.f32.mrf.mxu1  ;;  %27837 = vmatprep.mubr.msk.f32.mxu0 %vm1759_vm2, %v32234_v11  ;;  %v29460_v11 = vld [vmem:[%s29911_s25 + $0x88] sm:$0xff] }
 0x75e   : > { %v12037_v51 = vpop.f32.mrf.mxu1 }
 0x75f   : > { %27838 = vmatmul.mubr.msk.f32.gmra.mxu0 %vm1759_vm2, %v12037_v51 }
 0x760   : > { %v27768_v63 = vpop.f32.mrf.mxu1  ;;  %27840 = vmatprep.mubr.msk.f32.mxu0 %vm1759_vm2, %v32236_v34  ;;  %v29462_v34 = vld [vmem:[%s29911_s25 + $0x98] sm:$0xff] }
 0x762   : > { %v12183_v22 = vpop.f32.mrf.mxu1 }
 0x763   : > { %27841 = vmatmul.mubr.msk.f32.gmra.mxu0 %vm1759_vm2, %v12183_v22 }
 0x764   : > { %v27778_v43 = vpop.f32.mrf.mxu1  ;;  %27843 = vmatprep.mubr.msk.f32.mxu0 %vm1759_vm2, %v32238_v13  ;;  %v29464_v13 = vld [vmem:[%s29911_s25 + $0xa8] sm:$0xff] }
 0x766   : > { %v12329_v26 = vpop.f32.mrf.mxu1 }
 0x767   : > { %27844 = vmatmul.mubr.msk.f32.gmra.mxu0 %vm1759_vm2, %v12329_v26 }
 0x768   : > { %v27788_v7 = vpop.f32.mrf.mxu1  ;;  %27846 = vmatprep.mubr.msk.f32.mxu0 %vm1759_vm2, %v32240_v6  ;;  %v29466_v6 = vld [vmem:[%s29911_s25 + $0xb8] sm:$0xff] }
 0x76a   : > { %v12475_v37 = vpop.f32.mrf.mxu1 }
 0x76b   : > { %27847 = vmatmul.mubr.msk.f32.gmra.mxu0 %vm1759_vm2, %v12475_v37 }
 0x76c   : > { %v27798_v35 = vpop.f32.mrf.mxu1  ;;  %27907 = vmatprep.mubr.msk.f32.mxu0 %vm1200_vm0, %v32221_v38  ;;  %v29446_v38 = vld [vmem:[%s29911_s25 + $0x18] sm:$0xff] }
 0x76d   : > { %27967 = vmatmul.mubr.msk.f32.gmra.mxu1 %vm1200_vm0, %v29446_v38 }
 0x76e   : > { %27969 = vmatprep.mubr.msk.f32.mxu1 %vm1200_vm0, %v29447_v28  ;;  %v32403_v48 = vpop.f32.mrf.mxu1 }
 0x76f   : > { %27908 = vmatmul.mubr.msk.f32.vlgmr.msra.gmra.mxu0 %vm1200_vm0, %v29444_v40  ;;  %34985 = vst [vmem:[#allocation35_spill] sm:$0xff] %v32403_v48 }
 0x770   : > { %27910 = vmatprep.mubr.msk.f32.mxu0 %vm1200_vm0, %v29445_v50  ;;  %v32405_v27 = vpop.f32.mrf.mxu1 }
 0x771   : > { %27970 = vmatmul.mubr.msk.f32.gmra.mxu1 %vm1200_vm0, %v29448_v1  ;;  %34986 = vst [vmem:[#allocation36_spill] sm:$0xff] %v32405_v27 }
 0x772   : > { %27972 = vmatprep.mubr.msk.f32.mxu1 %vm1200_vm0, %v29449_v33  ;;  %v32407_v46 = vpop.f32.mrf.mxu1 }
 0x773   : > { %27911 = vmatmul.mubr.msk.f32.gmra.mxu0 %vm1200_vm0, %v29446_v38  ;;  %34987 = vst [vmem:[#allocation37_spill] sm:$0xff] %v32407_v46 }
 0x774   : > { %27913 = vmatprep.mubr.msk.f32.mxu0 %vm1200_vm0, %v29447_v28  ;;  %v32409_v25 = vpop.f32.mrf.mxu1 }
 0x775   : > { %27973 = vmatmul.mubr.msk.f32.gmra.mxu1 %vm1200_vm0, %v29450_v31  ;;  %34988 = vst [vmem:[#allocation38_spill] sm:$0xff] %v32409_v25 }
 0x776   : > { %27975 = vmatprep.mubr.msk.f32.mxu1 %vm1200_vm0, %v29451_v47  ;;  %v32411_v53 = vpop.f32.mrf.mxu1 }
 0x777   : > { %27914 = vmatmul.mubr.msk.f32.gmra.mxu0 %vm1200_vm0, %v29448_v1  ;;  %34989 = vst [vmem:[#allocation39_spill] sm:$0xff] %v32411_v53 }
 0x778   : > { %27916 = vmatprep.mubr.msk.f32.mxu0 %vm1200_vm0, %v29449_v33  ;;  %v32413_v58 = vpop.f32.mrf.mxu1 }
 0x779   : > { %27976 = vmatmul.mubr.msk.f32.gmra.mxu1 %vm1200_vm0, %v29452_v59  ;;  %34990 = vst [vmem:[#allocation40_spill] sm:$0xff] %v32413_v58 }
 0x77a   : > { %27978 = vmatprep.mubr.msk.f32.mxu1 %vm1200_vm0, %v29453_v55  ;;  %v32415_v14 = vpop.f32.mrf.mxu1 }
 0x77b   : > { %27917 = vmatmul.mubr.msk.f32.gmra.mxu0 %vm1200_vm0, %v29450_v31  ;;  %34991 = vst [vmem:[#allocation41_spill] sm:$0xff] %v32415_v14 }
 0x77c   : > { %27919 = vmatprep.mubr.msk.f32.mxu0 %vm1200_vm0, %v29451_v47  ;;  %v32417_v56 = vpop.f32.mrf.mxu1 }
 0x77d   : > { %27979 = vmatmul.mubr.msk.f32.gmra.mxu1 %vm1200_vm0, %v29454_v45  ;;  %34992 = vst [vmem:[#allocation42_spill] sm:$0xff] %v32417_v56 }
 0x77e   : > { %27981 = vmatprep.mubr.msk.f32.mxu1 %vm1200_vm0, %v29455_v61  ;;  %v32419_v4 = vpop.f32.mrf.mxu1 }
 0x77f   : > { %27920 = vmatmul.mubr.msk.f32.gmra.mxu0 %vm1200_vm0, %v29452_v59  ;;  %34993 = vst [vmem:[#allocation43_spill] sm:$0xff] %v32419_v4 }
 0x780   : > { %27922 = vmatprep.mubr.msk.f32.mxu0 %vm1200_vm0, %v29453_v55  ;;  %v32421_v60 = vpop.f32.mrf.mxu1 }
 0x781   : > { %27982 = vmatmul.mubr.msk.f32.gmra.mxu1 %vm1200_vm0, %v29456_v10  ;;  %34994 = vst [vmem:[#allocation44_spill] sm:$0xff] %v32421_v60 }
 0x782   : > { %27984 = vmatprep.mubr.msk.f32.mxu1 %vm1200_vm0, %v29457_v52  ;;  %v32423_v15 = vpop.f32.mrf.mxu1 }
 0x783   : > { %27923 = vmatmul.mubr.msk.f32.gmra.mxu0 %vm1200_vm0, %v29454_v45  ;;  %34995 = vst [vmem:[#allocation45_spill] sm:$0xff] %v32423_v15 }
 0x784   : > { %27925 = vmatprep.mubr.msk.f32.mxu0 %vm1200_vm0, %v29455_v61  ;;  %v32425_v24 = vpop.f32.mrf.mxu1 }
 0x785   : > { %27985 = vmatmul.mubr.msk.f32.gmra.mxu1 %vm1200_vm0, %v29458_v18  ;;  %34996 = vst [vmem:[#allocation46_spill] sm:$0xff] %v32425_v24 }
 0x786   : > { %27987 = vmatprep.mubr.msk.f32.mxu1 %vm1200_vm0, %v29459_v8  ;;  %v32427_v54 = vpop.f32.mrf.mxu1 }
 0x787   : > { %27926 = vmatmul.mubr.msk.f32.gmra.mxu0 %vm1200_vm0, %v29456_v10  ;;  %34997 = vst [vmem:[#allocation47_spill] sm:$0xff] %v32427_v54 }
 0x788   : > { %27928 = vmatprep.mubr.msk.f32.mxu0 %vm1200_vm0, %v29457_v52  ;;  %v32429_v57 = vpop.f32.mrf.mxu1 }
 0x789   : > { %27988 = vmatmul.mubr.msk.f32.gmra.mxu1 %vm1200_vm0, %v29460_v11  ;;  %34998 = vst [vmem:[#allocation16_spill] sm:$0xff] %v32429_v57 }
 0x78a   : > { %27990 = vmatprep.mubr.msk.f32.mxu1 %vm1200_vm0, %v29461_v17  ;;  %v32431_v21 = vpop.f32.mrf.mxu1 }
 0x78b   : > { %27929 = vmatmul.mubr.msk.f32.gmra.mxu0 %vm1200_vm0, %v29458_v18  ;;  %34999 = vst [vmem:[#allocation14_spill] sm:$0xff] %v32431_v21 }
 0x78c   : > { %27931 = vmatprep.mubr.msk.f32.mxu0 %vm1200_vm0, %v29459_v8  ;;  %v32437_v62 = vpop.f32.mrf.mxu1 }
 0x78d   : > { %27991 = vmatmul.mubr.msk.f32.gmra.mxu1 %vm1200_vm0, %v29462_v34  ;;  %35002 = vst [vmem:[#allocation18_spill] sm:$0xff] %v32437_v62 }
 0x78e   : > { %27993 = vmatprep.mubr.msk.f32.mxu1 %vm1200_vm0, %v29463_v9  ;;  %v32443_v32 = vpop.f32.mrf.mxu1 }
 0x78f   : > { %27932 = vmatmul.mubr.msk.f32.gmra.mxu0 %vm1200_vm0, %v29460_v11  ;;  %35005 = vst [vmem:[#allocation22_spill] sm:$0xff] %v32443_v32 }
 0x790   : > { %27934 = vmatprep.mubr.msk.f32.mxu0 %vm1200_vm0, %v29461_v17  ;;  %v32449_v63 = vpop.f32.mrf.mxu1 }
 0x791   : > { %27994 = vmatmul.mubr.msk.f32.gmra.mxu1 %vm1200_vm0, %v29464_v13  ;;  %35008 = vst [vmem:[#allocation4_spill] sm:$0xff] %v32449_v63 }
 0x792   : > { %27996 = vmatprep.mubr.msk.f32.mxu1 %vm1200_vm0, %v29465_v5  ;;  %v32455_v26 = vpop.f32.mrf.mxu1 }
 0x793   : > { %27935 = vmatmul.mubr.msk.f32.gmra.mxu0 %vm1200_vm0, %v29462_v34  ;;  %35011 = vst [vmem:[#allocation25_spill] sm:$0xff] %v32455_v26 }
 0x794   : > { %27937 = vmatprep.mubr.msk.f32.mxu0 %vm1200_vm0, %v29463_v9  ;;  %v32461_v35 = vpop.f32.mrf.mxu1 }
 0x795   : > { %27997 = vmatmul.mubr.msk.f32.gmra.mxu1 %vm1200_vm0, %v29466_v6  ;;  %35014 = vst [vmem:[#allocation6_spill] sm:$0xff] %v32461_v35 }
 0x796   : > { %27999 = vmatprep.mubr.msk.f32.mxu1 %vm1200_vm0, %v29467_v16  ;;  %v32467_v50 = vpop.f32.mrf.mxu1 }
 0x797   : > { %27938 = vmatmul.mubr.msk.f32.gmra.mxu0 %vm1200_vm0, %v29464_v13  ;;  %35017 = vst [vmem:[#allocation28_spill] sm:$0xff] %v32467_v50 }
 0x798   : > { %27940 = vmatprep.mubr.msk.f32.mxu0 %vm1200_vm0, %v29465_v5  ;;  %v32473_v28 = vpop.f32.mrf.mxu1 }
 0x799   : > { %28000 = vmatmul.mubr.msk.f32.gmra.mxu1 %vm1200_vm0, %v29468_v29  ;;  %35020 = vst [vmem:[#allocation9_spill] sm:$0xff] %v32473_v28 }
 0x79a   : > { %28002 = vmatprep.mubr.msk.f32.mxu1 %vm1200_vm0, %v29469_v36  ;;  %v32479_v31 = vpop.f32.mrf.mxu1 }
 0x79b   : > { %27941 = vmatmul.mubr.msk.f32.gmra.mxu0 %vm1200_vm0, %v29466_v6  ;;  %35023 = vst [vmem:[#allocation31_spill] sm:$0xff] %v32479_v31 }
 0x79c   : > { %27943 = vmatprep.mubr.msk.f32.mxu0 %vm1200_vm0, %v29467_v16  ;;  %v32485_v55 = vpop.f32.mrf.mxu1 }
 0x79d   : > { %28003 = vmatmul.mubr.msk.f32.gmra.mxu1 %vm1200_vm0, %v29470_v19  ;;  %35026 = vst [vmem:[#allocation12_spill] sm:$0xff] %v32485_v55  ;;  %v997_v55 = vld [vmem:[%s30068_s18 + $0x200] sm:$0xff] }
 0x79e   : > { %28005 = vmatprep.mubr.msk.f32.mxu1 %vm1200_vm0, %v29471_v30  ;;  %v32491_v10 = vpop.f32.mrf.mxu1  ;;  %v1125_v35 = vmul.f32 0.35355338, %v997_v55  ;;  %v1002_v55 = vld [vmem:[%s30068_s18 + $0x228] sm:$0xff] }
 0x79f   : > { %27944 = vmatmul.mubr.msk.f32.gmra.mxu0 %vm1200_vm0, %v29468_v29  ;;  %35029 = vst [vmem:[#allocation34_spill] sm:$0xff] %v32491_v10 }
 0x7a0   : > { %27946 = vmatprep.mubr.msk.f32.mxu0 %vm1200_vm0, %v29469_v36  ;;  %v32497_v8 = vpop.f32.mrf.mxu1 }
 0x7a1   : > { %28006 = vmatmul.mubr.msk.f32.gmra.mxu1 %vm1200_vm0, %v29472_v12  ;;  %35032 = vst [vmem:[#allocation50_spill] sm:$0xff] %v32497_v8 }
 0x7a2   : > { %28008 = vmatprep.mubr.msk.f32.mxu1 %vm1200_vm0, %v29473_v2  ;;  %v32503_v34 = vpop.f32.mrf.mxu1 }
 0x7a3   : > { %27947 = vmatmul.mubr.msk.f32.gmra.mxu0 %vm1200_vm0, %v29470_v19  ;;  %35035 = vst [vmem:[#allocation53_spill] sm:$0xff] %v32503_v34 }
 0x7a4   : > { %27949 = vmatprep.mubr.msk.f32.mxu0 %vm1200_vm0, %v29471_v30  ;;  %v32509_v5 = vpop.f32.mrf.mxu1 }
 0x7a5   : > { %28009 = vmatmul.mubr.msk.f32.gmra.mxu1 %vm1200_vm0, %v29474_v23  ;;  %35038 = vst [vmem:[#allocation56_spill] sm:$0xff] %v32509_v5 }
 0x7a6   : > { %28018 = vmatprep.mubr.msk.f32.mxu1 %vm29533_vm1, %v34881_v41  ;;  %v32515_v29 = vpop.f32.mrf.mxu1 }
 0x7a7   : > { %27950 = vmatmul.mubr.msk.f32.gmra.mxu0 %vm1200_vm0, %v29472_v12  ;;  %35041 = vst [vmem:[#allocation59_spill] sm:$0xff] %v32515_v29 }
 0x7a8   : > { %27952 = vmatprep.mubr.msk.f32.mxu0 %vm1200_vm0, %v29473_v2  ;;  %v32521_v30 = vpop.f32.mrf.mxu1 }
 0x7a9   : > { %35044 = vst [vmem:[#allocation62_spill] sm:$0xff] %v32521_v30 }
 0x7aa   : > { %v32532_v5 = vpop.f32.mrf.mxu1 }
 0x7ab   : > { %27953 = vmatmul.mubr.msk.f32.gmra.mxu0 %vm1200_vm0, %v29474_v23  ;;  %v32530_v23 = vld [vmem:[%s34860_s4 + $0x2] ss:$0 sm:$0xff]  ;;  %35047 = vst [vmem:[#allocation65_spill] sm:$0xff] %v32532_v5 }
 0x7ac   : > { %28013 = vmatprep.mubr.msk.f32.mxu0 %vm29533_vm1, %v34881_v41  ;;  %v32537_v30 = vpop.f32.mrf.mxu1 }
 0x7ad   : > { %35048 = vst [vmem:[#allocation66_spill] sm:$0xff] %v32537_v30 }
 0x7ef   : > { %v32433_v20 = vpop.f32.mrf.mxu0 }
 0x7f0   : > { %35000 = vst [vmem:[#allocation17_spill] sm:$0xff] %v32433_v20 }
 0x7f1   : > { %v32435_v42 = vpop.f32.mrf.mxu0 }
 0x7f2   : > { %35001 = vst [vmem:[#allocation15_spill] sm:$0xff] %v32435_v42 }
 0x7f3   : > { %v32439_v39 = vpop.f32.mrf.mxu0 }
 0x7f4   : > { %35003 = vst [vmem:[#allocation21_spill] sm:$0xff] %v32439_v39 }
 0x7f5   : > { %v32441_v44 = vpop.f32.mrf.mxu0 }
 0x7f6   : > { %35004 = vst [vmem:[#allocation19_spill] sm:$0xff] %v32441_v44 }
 0x7f7   : > { %v32445_v49 = vpop.f32.mrf.mxu0 }
 0x7f8   : > { %35006 = vst [vmem:[#allocation3_spill] sm:$0xff] %v32445_v49 }
 0x7f9   : > { %v32447_v51 = vpop.f32.mrf.mxu0 }
 0x7fa   : > { %35007 = vst [vmem:[#allocation23_spill] sm:$0xff] %v32447_v51 }
 0x7fb   : > { %v32451_v22 = vpop.f32.mrf.mxu0 }
 0x7fc   : > { %35009 = vst [vmem:[#allocation24_spill] sm:$0xff] %v32451_v22 }
 0x7fd   : > { %v32453_v43 = vpop.f32.mrf.mxu0 }
 0x7fe   : > { %35010 = vst [vmem:[#allocation5_spill] sm:$0xff] %v32453_v43 }
 0x7ff   : > { %v32457_v7 = vpop.f32.mrf.mxu0 }
 0x800   : > { %35012 = vst [vmem:[#allocation20_spill] sm:$0xff] %v32457_v7 }
 0x801   : > { %v32459_v37 = vpop.f32.mrf.mxu0 }
 0x802   : > { %35013 = vst [vmem:[#allocation26_spill] sm:$0xff] %v32459_v37 }
 0x803   : > { %v32463_v40 = vpop.f32.mrf.mxu0  ;;  %v32546_v63 = vpop.f32.mrf.mxu1 }
 0x804   : > { %35015 = vst [vmem:[#allocation27_spill] sm:$0xff] %v32463_v40 }
 0x805   : > { %v32465_v3 = vpop.f32.mrf.mxu0 }
 0x806   : > { %35016 = vst [vmem:[#allocation7_spill] sm:$0xff] %v32465_v3 }
 0x807   : > { %v32469_v0 = vpop.f32.mrf.mxu0 }
 0x808   : > { %35018 = vst [vmem:[#allocation8_spill] sm:$0xff] %v32469_v0 }
 0x809   : > { %v32471_v38 = vpop.f32.mrf.mxu0 }
 0x80a   : > { %35019 = vst [vmem:[#allocation29_spill] sm:$0xff] %v32471_v38 }
 0x80b   : > { %v32475_v1 = vpop.f32.mrf.mxu0 }
 0x80c   : > { %35021 = vst [vmem:[#allocation30_spill] sm:$0xff] %v32475_v1 }
 0x80d   : > { %v32477_v33 = vpop.f32.mrf.mxu0 }
 0x80e   : > { %35022 = vst [vmem:[#allocation10_spill] sm:$0xff] %v32477_v33 }
 0x80f   : > { %v32481_v47 = vpop.f32.mrf.mxu0 }
 0x810   : > { %35024 = vst [vmem:[#allocation11_spill] sm:$0xff] %v32481_v47 }
 0x811   : > { %v32483_v59 = vpop.f32.mrf.mxu0 }
 0x812   : > { %35025 = vst [vmem:[#allocation32_spill] sm:$0xff] %v32483_v59 }
 0x813   : > { %v32487_v45 = vpop.f32.mrf.mxu0 }
 0x814   : > { %35027 = vst [vmem:[#allocation33_spill] sm:$0xff] %v32487_v45 }
 0x815   : > { %v32489_v61 = vpop.f32.mrf.mxu0 }
 0x816   : > { %35028 = vst [vmem:[#allocation13_spill] sm:$0xff] %v32489_v61 }
 0x817   : > { %v32493_v52 = vpop.f32.mrf.mxu0 }
 0x818   : > { %35030 = vst [vmem:[#allocation48_spill] sm:$0xff] %v32493_v52 }
 0x819   : > { %v32495_v18 = vpop.f32.mrf.mxu0 }
 0x81a   : > { %35031 = vst [vmem:[#allocation49_spill] sm:$0xff] %v32495_v18 }
 0x81b   : > { %v32499_v11 = vpop.f32.mrf.mxu0 }
 0x81c   : > { %35033 = vst [vmem:[#allocation51_spill] sm:$0xff] %v32499_v11 }
 0x81d   : > { %v32501_v17 = vpop.f32.mrf.mxu0 }
 0x81e   : > { %35034 = vst [vmem:[#allocation52_spill] sm:$0xff] %v32501_v17 }
 0x81f   : > { %v32505_v9 = vpop.f32.mrf.mxu0 }
 0x820   : > { %35036 = vst [vmem:[#allocation54_spill] sm:$0xff] %v32505_v9 }
 0x821   : > { %v32507_v13 = vpop.f32.mrf.mxu0 }
 0x822   : > { %35037 = vst [vmem:[#allocation55_spill] sm:$0xff] %v32507_v13 }
 0x823   : > { %v32511_v6 = vpop.f32.mrf.mxu0 }
 0x824   : > { %35039 = vst [vmem:[#allocation57_spill] sm:$0xff] %v32511_v6 }
 0x825   : > { %v32513_v16 = vpop.f32.mrf.mxu0 }
 0x826   : > { %35040 = vst [vmem:[#allocation58_spill] sm:$0xff] %v32513_v16  ;;  %v998_v16 = vld [vmem:[%s30068_s18 + $0x208] sm:$0xff] }
 0x827   : > { %v32517_v36 = vpop.f32.mrf.mxu0  ;;  %v1126_v17 = vmul.f32 0.35355338, %v998_v16 }
 0x828   : > { %35042 = vst [vmem:[#allocation60_spill] sm:$0xff] %v32517_v36 }
 0x829   : > { %v32519_v19 = vpop.f32.mrf.mxu0 }
 0x82a   : > { %35043 = vst [vmem:[#allocation61_spill] sm:$0xff] %v32519_v19 }
 0x82b   : > { %v32523_v12 = vpop.f32.mrf.mxu0 }
 0x82c   : > { %35045 = vst [vmem:[#allocation63_spill] sm:$0xff] %v32523_v12 }
 0x82d   : > { %v32525_v2 = vpop.f32.mrf.mxu0 }
 0x82e   : > { %35046 = vst [vmem:[#allocation64_spill] sm:$0xff] %v32525_v2  ;;  %v1000_v2 = vld [vmem:[%s30068_s18 + $0x218] sm:$0xff] }
 0x82f   : > { %v27909_v8 = vpop.f32.mrf.mxu0 }
 0x830   : > { %v13208_v13 = vadd.f32 %v27909_v8, %v32530_v23  ;;  %v999_v8 = vld [vmem:[%s30068_s18 + $0x210] sm:$0xff] }
 0x831   : > { %v13202_v19 = vpop.f32.mrf.mxu0 }
 0x832   : > { %v13203_v28 = vadd.f32 %v32530_v23, %v13202_v19  ;;  %28017 = vmatpush3.xpose.msk.msra.mxu1 %vm1759_vm2, %v13208_v13  ;;  %v1128_v13 = vmul.f32 0.35355338, %v1000_v2  ;;  %v32567_v2 = vld [vmem:[%s34861_s5 + $0x2] ss:$0 sm:$0xff] }
 0x833   : > { %v27912_v18 = vpop.f32.mrf.mxu0  ;;  %28026 = vmatprep.subr.mxu1 %v34881_v41 }
 0x834   : > { %v13218_v61 = vadd.f32 %v27912_v18, %v32530_v23  ;;  %28012 = vmatpush3.xpose.msk.msra.mxu0 %vm1759_vm2, %v13203_v28  ;;  %v32555_v18 = vpop.f32.mrf.mxu1 }
 0x835   : > { %v13212_v16 = vpop.f32.mrf.mxu0  ;;  %28019 = vmatmul.mubr.msk.f32.vlgmr.msra.gmra.mxu1 %vm1759_vm2, %v1126_v17  ;;  %28021 = vmatprep.subr.mxu0 %v34881_v41  ;;  %v1127_v17 = vmul.f32 0.35355338, %v999_v8 }
 0x836   : > { %v13213_v19 = vadd.f32 %v32530_v23, %v13212_v16  ;;  %28027 = vmatpush3.xpose.msk.msra.mxu1 %vm1759_vm2, %v13218_v61  ;;  %28028 = vmatprep.mubr.msk.f32.mxu1 %vm29533_vm1, %v34881_v41  ;;  %v1001_v61 = vld [vmem:[%s30068_s18 + $0x220] sm:$0xff]  ;;  %v27968_v16 = vpop.f32.mrf.mxu1 }
 0x837   : > { %v27915_v28 = vpop.f32.mrf.mxu0  ;;  %28014 = vmatmul.mubr.msk.f32.vlgmr.msra.gmra.mxu0 %vm1759_vm2, %v1125_v35  ;;  %28036 = vmatprep.subr.mxu1 %v34881_v41  ;;  %v1130_v35 = vmul.f32 0.35355338, %v1002_v55  ;;  %v32572_v8 = vadd.f32 %v27968_v16, %v32567_v2 }
 0x838   : > { %v13228_v30 = vadd.f32 %v27915_v28, %v32530_v23  ;;  %28022 = vmatpush3.xpose.msk.msra.mxu0 %vm1759_vm2, %v13213_v19  ;;  %28023 = vmatprep.mubr.msk.f32.mxu0 %vm29533_vm1, %v34881_v41  ;;  %v1004_v28 = vld [vmem:[%s30068_s18 + $0x238] sm:$0xff]  ;;  %v32579_v62 = vpop.f32.mrf.mxu1 }
 0x839   : > { %v13222_v59 = vpop.f32.mrf.mxu0  ;;  %28029 = vmatmul.mubr.msk.f32.vlgmr.msra.gmra.mxu1 %vm1759_vm2, %v1128_v13  ;;  %28031 = vmatprep.subr.mxu0 %v34881_v41  ;;  %v1129_v13 = vmul.f32 0.35355338, %v1001_v61 }
 0x83a   : > { %v13223_v19 = vadd.f32 %v32530_v23, %v13222_v59  ;;  %28037 = vmatpush3.xpose.msk.msra.mxu1 %vm1759_vm2, %v13228_v30  ;;  %28038 = vmatprep.mubr.msk.f32.mxu1 %vm29533_vm1, %v34881_v41  ;;  %v1003_v59 = vld [vmem:[%s30068_s18 + $0x230] sm:$0xff]  ;;  %v27971_v30 = vpop.f32.mrf.mxu1 }
 0x83b   : > { %v27918_v33 = vpop.f32.mrf.mxu0  ;;  %28024 = vmatmul.mubr.msk.f32.vlgmr.msra.gmra.mxu0 %vm1759_vm2, %v1127_v17  ;;  %28046 = vmatprep.subr.mxu1 %v34881_v41  ;;  %v1132_v17 = vmul.f32 0.35355338, %v1004_v28  ;;  %v32591_v57 = vadd.f32 %v27971_v30, %v32567_v2 }
 0x83c   : > { %v13238_v55 = vadd.f32 %v27918_v33, %v32530_v23  ;;  %28032 = vmatpush3.xpose.msk.msra.mxu0 %vm1759_vm2, %v13223_v19  ;;  %28033 = vmatprep.mubr.msk.f32.mxu0 %vm29533_vm1, %v34881_v41  ;;  %v1006_v33 = vld [vmem:[%s30068_s18 + $0x248] sm:$0xff]  ;;  %v32598_v19 = vpop.f32.mrf.mxu1 }
 0x83d   : > { %v13232_v16 = vpop.f32.mrf.mxu0  ;;  %28039 = vmatmul.mubr.msk.f32.vlgmr.msra.gmra.mxu1 %vm1759_vm2, %v1130_v35  ;;  %28041 = vmatprep.subr.mxu0 %v34881_v41  ;;  %v1131_v35 = vmul.f32 0.35355338, %v1003_v59 }
 0x83e   : > { %v13233_v61 = vadd.f32 %v32530_v23, %v13232_v16  ;;  %28047 = vmatpush3.xpose.msk.msra.mxu1 %vm1759_vm2, %v13238_v55  ;;  %28048 = vmatprep.mubr.msk.f32.mxu1 %vm29533_vm1, %v34881_v41  ;;  %v1005_v55 = vld [vmem:[%s30068_s18 + $0x240] sm:$0xff]  ;;  %v27974_v30 = vpop.f32.mrf.mxu1 }
 0x83f   : > { %v27921_v38 = vpop.f32.mrf.mxu0  ;;  %28034 = vmatmul.mubr.msk.f32.vlgmr.msra.gmra.mxu0 %vm1759_vm2, %v1129_v13  ;;  %28056 = vmatprep.subr.mxu1 %v34881_v41  ;;  %v1134_v13 = vmul.f32 0.35355338, %v1006_v33  ;;  %v32610_v24 = vadd.f32 %v27974_v30, %v32567_v2 }
 0x840   : > { %v13248_v28 = vadd.f32 %v27921_v38, %v32530_v23  ;;  %28042 = vmatpush3.xpose.msk.msra.mxu0 %vm1759_vm2, %v13233_v61  ;;  %28043 = vmatprep.mubr.msk.f32.mxu0 %vm29533_vm1, %v34881_v41  ;;  %v1008_v38 = vld [vmem:[%s30068_s18 + $0x258] sm:$0xff]  ;;  %v32617_v61 = vpop.f32.mrf.mxu1 }
 0x841   : > { %v13242_v16 = vpop.f32.mrf.mxu0  ;;  %28049 = vmatmul.mubr.msk.f32.vlgmr.msra.gmra.mxu1 %vm1759_vm2, %v1132_v17  ;;  %28051 = vmatprep.subr.mxu0 %v34881_v41  ;;  %v1133_v17 = vmul.f32 0.35355338, %v1005_v55 }
 0x842   : > { %v13243_v59 = vadd.f32 %v32530_v23, %v13242_v16  ;;  %28057 = vmatpush3.xpose.msk.msra.mxu1 %vm1759_vm2, %v13248_v28  ;;  %28058 = vmatprep.mubr.msk.f32.mxu1 %vm29533_vm1, %v34881_v41  ;;  %v1007_v28 = vld [vmem:[%s30068_s18 + $0x250] sm:$0xff]  ;;  %v27977_v30 = vpop.f32.mrf.mxu1 }
 0x843   : > { %v27924_v3 = vpop.f32.mrf.mxu0  ;;  %28044 = vmatmul.mubr.msk.f32.vlgmr.msra.gmra.mxu0 %vm1759_vm2, %v1131_v35  ;;  %28066 = vmatprep.subr.mxu1 %v34881_v41  ;;  %v1136_v35 = vmul.f32 0.35355338, %v1008_v38  ;;  %v32629_v60 = vadd.f32 %v27977_v30, %v32567_v2 }
 0x844   : > { %v13258_v33 = vadd.f32 %v27924_v3, %v32530_v23  ;;  %28052 = vmatpush3.xpose.msk.msra.mxu0 %vm1759_vm2, %v13243_v59  ;;  %28053 = vmatprep.mubr.msk.f32.mxu0 %vm29533_vm1, %v34881_v41  ;;  %v1010_v3 = vld [vmem:[%s30068_s18 + $0x268] sm:$0xff]  ;;  %v32636_v59 = vpop.f32.mrf.mxu1 }
 0x845   : > { %v13252_v16 = vpop.f32.mrf.mxu0  ;;  %28059 = vmatmul.mubr.msk.f32.vlgmr.msra.gmra.mxu1 %vm1759_vm2, %v1134_v13  ;;  %28061 = vmatprep.subr.mxu0 %v34881_v41  ;;  %v1135_v13 = vmul.f32 0.35355338, %v1007_v28 }
 0x846   : > { %v13253_v55 = vadd.f32 %v32530_v23, %v13252_v16  ;;  %28067 = vmatpush3.xpose.msk.msra.mxu1 %vm1759_vm2, %v13258_v33  ;;  %28068 = vmatprep.mubr.msk.f32.mxu1 %vm29533_vm1, %v34881_v41  ;;  %v1009_v33 = vld [vmem:[%s30068_s18 + $0x260] sm:$0xff]  ;;  %v27980_v30 = vpop.f32.mrf.mxu1 }
 0x847   : > { %v27927_v37 = vpop.f32.mrf.mxu0  ;;  %28054 = vmatmul.mubr.msk.f32.vlgmr.msra.gmra.mxu0 %vm1759_vm2, %v1133_v17  ;;  %28076 = vmatprep.subr.mxu1 %v34881_v41  ;;  %v1138_v17 = vmul.f32 0.35355338, %v1010_v3  ;;  %v32648_v56 = vadd.f32 %v27980_v30, %v32567_v2 }
 0x848   : > { %v13268_v38 = vadd.f32 %v27927_v37, %v32530_v23  ;;  %28062 = vmatpush3.xpose.msk.msra.mxu0 %vm1759_vm2, %v13253_v55  ;;  %28063 = vmatprep.mubr.msk.f32.mxu0 %vm29533_vm1, %v34881_v41  ;;  %v1012_v37 = vld [vmem:[%s30068_s18 + $0x278] sm:$0xff]  ;;  %v32655_v55 = vpop.f32.mrf.mxu1 }
 0x849   : > { %v13262_v16 = vpop.f32.mrf.mxu0  ;;  %28069 = vmatmul.mubr.msk.f32.vlgmr.msra.gmra.mxu1 %vm1759_vm2, %v1136_v35  ;;  %28071 = vmatprep.subr.mxu0 %v34881_v41  ;;  %v1137_v35 = vmul.f32 0.35355338, %v1009_v33 }
 0x84a   : > { %v13263_v28 = vadd.f32 %v32530_v23, %v13262_v16  ;;  %28077 = vmatpush3.xpose.msk.msra.mxu1 %vm1759_vm2, %v13268_v38  ;;  %28078 = vmatprep.mubr.msk.f32.mxu1 %vm29533_vm1, %v34881_v41  ;;  %v1011_v38 = vld [vmem:[%s30068_s18 + $0x270] sm:$0xff]  ;;  %v27983_v30 = vpop.f32.mrf.mxu1 }
 0x84b   : > { %v27930_v43 = vpop.f32.mrf.mxu0  ;;  %28064 = vmatmul.mubr.msk.f32.vlgmr.msra.gmra.mxu0 %vm1759_vm2, %v1135_v13  ;;  %28086 = vmatprep.subr.mxu1 %v34881_v41  ;;  %v1140_v13 = vmul.f32 0.35355338, %v1012_v37  ;;  %v32667_v58 = vadd.f32 %v27983_v30, %v32567_v2 }
 0x84c   : > { %v13278_v3 = vadd.f32 %v27930_v43, %v32530_v23  ;;  %28072 = vmatpush3.xpose.msk.msra.mxu0 %vm1759_vm2, %v13263_v28  ;;  %28073 = vmatprep.mubr.msk.f32.mxu0 %vm29533_vm1, %v34881_v41  ;;  %v1014_v43 = vld [vmem:[%s30068_s18 + $0x288] sm:$0xff]  ;;  %v32674_v28 = vpop.f32.mrf.mxu1 }
 0x84d   : > { %v13272_v16 = vpop.f32.mrf.mxu0  ;;  %28079 = vmatmul.mubr.msk.f32.vlgmr.msra.gmra.mxu1 %vm1759_vm2, %v1138_v17  ;;  %28081 = vmatprep.subr.mxu0 %v34881_v41  ;;  %v1139_v17 = vmul.f32 0.35355338, %v1011_v38 }
 0x84e   : > { %v13273_v33 = vadd.f32 %v32530_v23, %v13272_v16  ;;  %28087 = vmatpush3.xpose.msk.msra.mxu1 %vm1759_vm2, %v13278_v3  ;;  %28088 = vmatprep.mubr.msk.f32.mxu1 %vm29533_vm1, %v34881_v41  ;;  %v1013_v3 = vld [vmem:[%s30068_s18 + $0x280] sm:$0xff]  ;;  %v27986_v30 = vpop.f32.mrf.mxu1 }
 0x84f   : > { %v27933_v51 = vpop.f32.mrf.mxu0  ;;  %28074 = vmatmul.mubr.msk.f32.vlgmr.msra.gmra.mxu0 %vm1759_vm2, %v1137_v35  ;;  %28096 = vmatprep.subr.mxu1 %v34881_v41  ;;  %v1142_v35 = vmul.f32 0.35355338, %v1014_v43  ;;  %v32686_v25 = vadd.f32 %v27986_v30, %v32567_v2 }
 0x850   : > { %v13288_v37 = vadd.f32 %v27933_v51, %v32530_v23  ;;  %28082 = vmatpush3.xpose.msk.msra.mxu0 %vm1759_vm2, %v13273_v33  ;;  %28083 = vmatprep.mubr.msk.f32.mxu0 %vm29533_vm1, %v34881_v41  ;;  %v1016_v51 = vld [vmem:[%s30068_s18 + $0x298] sm:$0xff]  ;;  %v32693_v33 = vpop.f32.mrf.mxu1 }
 0x851   : > { %v13282_v16 = vpop.f32.mrf.mxu0  ;;  %28089 = vmatmul.mubr.msk.f32.vlgmr.msra.gmra.mxu1 %vm1759_vm2, %v1140_v13  ;;  %28091 = vmatprep.subr.mxu0 %v34881_v41  ;;  %v1141_v13 = vmul.f32 0.35355338, %v1013_v3 }
 0x852   : > { %v13283_v38 = vadd.f32 %v32530_v23, %v13282_v16  ;;  %28097 = vmatpush3.xpose.msk.msra.mxu1 %vm1759_vm2, %v13288_v37  ;;  %28098 = vmatprep.mubr.msk.f32.mxu1 %vm29533_vm1, %v34881_v41  ;;  %v1015_v37 = vld [vmem:[%s30068_s18 + $0x290] sm:$0xff]  ;;  %v27989_v30 = vpop.f32.mrf.mxu1 }
 0x853   : > { %v27936_v44 = vpop.f32.mrf.mxu0  ;;  %28084 = vmatmul.mubr.msk.f32.vlgmr.msra.gmra.mxu0 %vm1759_vm2, %v1139_v17  ;;  %28106 = vmatprep.subr.mxu1 %v34881_v41  ;;  %v1144_v17 = vmul.f32 0.35355338, %v1016_v51  ;;  %v32705_v27 = vadd.f32 %v27989_v30, %v32567_v2 }
 0x854   : > { %v13298_v43 = vadd.f32 %v27936_v44, %v32530_v23  ;;  %28092 = vmatpush3.xpose.msk.msra.mxu0 %vm1759_vm2, %v13283_v38  ;;  %28093 = vmatprep.mubr.msk.f32.mxu0 %vm29533_vm1, %v34881_v41  ;;  %v1018_v44 = vld [vmem:[%s30068_s18 + $0x2a8] sm:$0xff]  ;;  %v32712_v38 = vpop.f32.mrf.mxu1 }
 0x855   : > { %v13292_v16 = vpop.f32.mrf.mxu0  ;;  %28099 = vmatmul.mubr.msk.f32.vlgmr.msra.gmra.mxu1 %vm1759_vm2, %v1142_v35  ;;  %28101 = vmatprep.subr.mxu0 %v34881_v41  ;;  %v1143_v35 = vmul.f32 0.35355338, %v1015_v37 }
 0x856   : > { %v13293_v3 = vadd.f32 %v32530_v23, %v13292_v16  ;;  %28107 = vmatpush3.xpose.msk.msra.mxu1 %vm1759_vm2, %v13298_v43  ;;  %28108 = vmatprep.mubr.msk.f32.mxu1 %vm29533_vm1, %v34881_v41  ;;  %v1017_v43 = vld [vmem:[%s30068_s18 + $0x2a0] sm:$0xff]  ;;  %v27992_v30 = vpop.f32.mrf.mxu1 }
 0x857   : > { %v27939_v42 = vpop.f32.mrf.mxu0  ;;  %28094 = vmatmul.mubr.msk.f32.vlgmr.msra.gmra.mxu0 %vm1759_vm2, %v1141_v13  ;;  %28116 = vmatprep.subr.mxu1 %v34881_v41  ;;  %v1146_v13 = vmul.f32 0.35355338, %v1018_v44  ;;  %v32724_v5 = vadd.f32 %v27992_v30, %v32567_v2 }
 0x858   : > { %v13308_v51 = vadd.f32 %v27939_v42, %v32530_v23  ;;  %28102 = vmatpush3.xpose.msk.msra.mxu0 %vm1759_vm2, %v13293_v3  ;;  %28103 = vmatprep.mubr.msk.f32.mxu0 %vm29533_vm1, %v34881_v41  ;;  %v1020_v42 = vld [vmem:[%s30068_s18 + $0x2b8] sm:$0xff]  ;;  %v32731_v3 = vpop.f32.mrf.mxu1 }
 0x859   : > { %v13302_v16 = vpop.f32.mrf.mxu0  ;;  %28109 = vmatmul.mubr.msk.f32.vlgmr.msra.gmra.mxu1 %vm1759_vm2, %v1144_v17  ;;  %28111 = vmatprep.subr.mxu0 %v34881_v41  ;;  %35049 = vst [vmem:[#allocation67_spill] sm:$0xff] %v32724_v5  ;;  %v1145_v17 = vmul.f32 0.35355338, %v1017_v43 }
 0x85a   : > { %v13303_v37 = vadd.f32 %v32530_v23, %v13302_v16  ;;  %28117 = vmatpush3.xpose.msk.msra.mxu1 %vm1759_vm2, %v13308_v51  ;;  %28118 = vmatprep.mubr.msk.f32.mxu1 %vm29533_vm1, %v34881_v41  ;;  %v1019_v51 = vld [vmem:[%s30068_s18 + $0x2b0] sm:$0xff]  ;;  %v27995_v30 = vpop.f32.mrf.mxu1 }
 0x85b   : > { %v27942_v12 = vpop.f32.mrf.mxu0  ;;  %28104 = vmatmul.mubr.msk.f32.vlgmr.msra.gmra.mxu0 %vm1759_vm2, %v1143_v35  ;;  %28126 = vmatprep.subr.mxu1 %v34881_v41  ;;  %v1148_v35 = vmul.f32 0.35355338, %v1020_v42  ;;  %v32743_v29 = vadd.f32 %v27995_v30, %v32567_v2 }
 0x85c   : > { %v13318_v44 = vadd.f32 %v27942_v12, %v32530_v23  ;;  %28112 = vmatpush3.xpose.msk.msra.mxu0 %vm1759_vm2, %v13303_v37  ;;  %28113 = vmatprep.mubr.msk.f32.mxu0 %vm29533_vm1, %v34881_v41  ;;  %v1022_v12 = vld [vmem:[%s30068_s18 + $0x2c8] sm:$0xff]  ;;  %v32750_v37 = vpop.f32.mrf.mxu1 }
 0x85d   : > { %v13312_v16 = vpop.f32.mrf.mxu0  ;;  %28119 = vmatmul.mubr.msk.f32.vlgmr.msra.gmra.mxu1 %vm1759_vm2, %v1146_v13  ;;  %28121 = vmatprep.subr.mxu0 %v34881_v41  ;;  %35050 = vst [vmem:[#allocation68_spill] sm:$0xff] %v32743_v29  ;;  %35051 = vst [vmem:[#allocation69_spill] sm:$0xff] %v32750_v37  ;;  %v1147_v13 = vmul.f32 0.35355338, %v1019_v51 }
 0x85e   : > { %v13313_v43 = vadd.f32 %v32530_v23, %v13312_v16  ;;  %28127 = vmatpush3.xpose.msk.msra.mxu1 %vm1759_vm2, %v13318_v44  ;;  %28128 = vmatprep.mubr.msk.f32.mxu1 %vm29533_vm1, %v34881_v41  ;;  %v1021_v44 = vld [vmem:[%s30068_s18 + $0x2c0] sm:$0xff]  ;;  %v27998_v30 = vpop.f32.mrf.mxu1 }
 0x85f   : > { %v27945_v36 = vpop.f32.mrf.mxu0  ;;  %28114 = vmatmul.mubr.msk.f32.vlgmr.msra.gmra.mxu0 %vm1759_vm2, %v1145_v17  ;;  %28136 = vmatprep.subr.mxu1 %v34881_v41  ;;  %v1150_v17 = vmul.f32 0.35355338, %v1022_v12  ;;  %v32762_v34 = vadd.f32 %v27998_v30, %v32567_v2 }
 0x860   : > { %v13328_v42 = vadd.f32 %v27945_v36, %v32530_v23  ;;  %28122 = vmatpush3.xpose.msk.msra.mxu0 %vm1759_vm2, %v13313_v43  ;;  %28123 = vmatprep.mubr.msk.f32.mxu0 %vm29533_vm1, %v34881_v41  ;;  %v1024_v36 = vld [vmem:[%s30068_s18 + $0x2d8] sm:$0xff]  ;;  %v32769_v43 = vpop.f32.mrf.mxu1 }
 0x861   : > { %v13322_v16 = vpop.f32.mrf.mxu0  ;;  %28129 = vmatmul.mubr.msk.f32.vlgmr.msra.gmra.mxu1 %vm1759_vm2, %v1148_v35  ;;  %28131 = vmatprep.subr.mxu0 %v34881_v41  ;;  %35052 = vst [vmem:[#allocation70_spill] sm:$0xff] %v32762_v34  ;;  %35053 = vst [vmem:[#allocation71_spill] sm:$0xff] %v32769_v43  ;;  %v1149_v35 = vmul.f32 0.35355338, %v1021_v44 }
 0x862   : > { %v13323_v51 = vadd.f32 %v32530_v23, %v13322_v16  ;;  %28137 = vmatpush3.xpose.msk.msra.mxu1 %vm1759_vm2, %v13328_v42  ;;  %28138 = vmatprep.mubr.msk.f32.mxu1 %vm29533_vm1, %v34881_v41  ;;  %v1023_v42 = vld [vmem:[%s30068_s18 + $0x2d0] sm:$0xff]  ;;  %v28001_v30 = vpop.f32.mrf.mxu1 }
 0x863   : > { %v27948_v6 = vpop.f32.mrf.mxu0  ;;  %28124 = vmatmul.mubr.msk.f32.vlgmr.msra.gmra.mxu0 %vm1759_vm2, %v1147_v13  ;;  %28146 = vmatprep.subr.mxu1 %v34881_v41  ;;  %v1152_v13 = vmul.f32 0.35355338, %v1024_v36  ;;  %v32781_v10 = vadd.f32 %v28001_v30, %v32567_v2 }
 0x864   : > { %v13338_v12 = vadd.f32 %v27948_v6, %v32530_v23  ;;  %28132 = vmatpush3.xpose.msk.msra.mxu0 %vm1759_vm2, %v13323_v51  ;;  %28133 = vmatprep.mubr.msk.f32.mxu0 %vm29533_vm1, %v34881_v41  ;;  %v1026_v6 = vld [vmem:[%s30068_s18 + $0x2e8] sm:$0xff]  ;;  %v32788_v51 = vpop.f32.mrf.mxu1 }
 0x865   : > { %v13332_v16 = vpop.f32.mrf.mxu0  ;;  %28139 = vmatmul.mubr.msk.f32.vlgmr.msra.gmra.mxu1 %vm1759_vm2, %v1150_v17  ;;  %28141 = vmatprep.subr.mxu0 %v34881_v41  ;;  %35054 = vst [vmem:[#allocation72_spill] sm:$0xff] %v32781_v10  ;;  %35055 = vst [vmem:[#allocation73_spill] sm:$0xff] %v32788_v51  ;;  %v1151_v17 = vmul.f32 0.35355338, %v1023_v42 }
 0x866   : > { %v13333_v44 = vadd.f32 %v32530_v23, %v13332_v16  ;;  %28147 = vmatpush3.xpose.msk.msra.mxu1 %vm1759_vm2, %v13338_v12  ;;  %28148 = vmatprep.mubr.msk.f32.mxu1 %vm29533_vm1, %v34881_v41  ;;  %v1025_v12 = vld [vmem:[%s30068_s18 + $0x2e0] sm:$0xff]  ;;  %v28004_v30 = vpop.f32.mrf.mxu1 }
 0x867   : > { %v27951_v9 = vpop.f32.mrf.mxu0  ;;  %28134 = vmatmul.mubr.msk.f32.vlgmr.msra.gmra.mxu0 %vm1759_vm2, %v1149_v35  ;;  %28156 = vmatprep.subr.mxu1 %v34881_v41  ;;  %v1154_v35 = vmul.f32 0.35355338, %v1026_v6  ;;  %v32800_v31 = vadd.f32 %v28004_v30, %v32567_v2 }
 0x868   : > { %v13348_v36 = vadd.f32 %v27951_v9, %v32530_v23  ;;  %28142 = vmatpush3.xpose.msk.msra.mxu0 %vm1759_vm2, %v13333_v44  ;;  %28143 = vmatprep.mubr.msk.f32.mxu0 %vm29533_vm1, %v34881_v41  ;;  %v1028_v9 = vld [vmem:[%s30068_s18 + $0x2f8] sm:$0xff]  ;;  %v32807_v44 = vpop.f32.mrf.mxu1 }
 0x869   : > { %v13342_v16 = vpop.f32.mrf.mxu0  ;;  %28149 = vmatmul.mubr.msk.f32.vlgmr.msra.gmra.mxu1 %vm1759_vm2, %v1152_v13  ;;  %28151 = vmatprep.subr.mxu0 %v34881_v41  ;;  %35056 = vst [vmem:[#allocation74_spill] sm:$0xff] %v32800_v31  ;;  %35057 = vst [vmem:[#allocation75_spill] sm:$0xff] %v32807_v44  ;;  %v1153_v13 = vmul.f32 0.35355338, %v1025_v12  ;;  %v1156_v50 = vmul.f32 0.35355338, %v1028_v9 }
 0x86a   : > { %v13343_v42 = vadd.f32 %v32530_v23, %v13342_v16  ;;  %28157 = vmatpush3.xpose.msk.msra.mxu1 %vm1759_vm2, %v13348_v36  ;;  %28158 = vmatprep.mubr.msk.f32.mxu1 %vm29533_vm1, %v34881_v41  ;;  %v1027_v36 = vld [vmem:[%s30068_s18 + $0x2f0] sm:$0xff]  ;;  %v28007_v30 = vpop.f32.mrf.mxu1 }
 0x86b   : > { %v27954_v11 = vpop.f32.mrf.mxu0  ;;  %28144 = vmatmul.mubr.msk.f32.vlgmr.msra.gmra.mxu0 %vm1759_vm2, %v1151_v17  ;;  %28166 = vmatprep.subr.mxu1 %v34881_v41  ;;  %v32819_v17 = vadd.f32 %v28007_v30, %v32567_v2 }
 0x86c   : > { %v13358_v6 = vadd.f32 %v27954_v11, %v32530_v23  ;;  %28152 = vmatpush3.xpose.msk.msra.mxu0 %vm1759_vm2, %v13343_v42  ;;  %28153 = vmatprep.mubr.msk.f32.mxu0 %vm29533_vm1, %v34881_v41  ;;  %v13446_v11 = vadd.f32 %v32546_v63, %v32567_v2  ;;  %v32827_v42 = vpop.f32.mrf.mxu1 }
 0x86d   : > { %v13352_v16 = vpop.f32.mrf.mxu0  ;;  %28159 = vmatmul.mubr.msk.f32.vlgmr.msra.gmra.mxu1 %vm1759_vm2, %v1154_v35  ;;  %28161 = vmatprep.subr.mxu0 %v34881_v41  ;;  %35058 = vst [vmem:[#allocation76_spill] sm:$0xff] %v32819_v17  ;;  %35059 = vst [vmem:[#allocation77_spill] sm:$0xff] %v32827_v42  ;;  %v1155_v35 = vmul.f32 0.35355338, %v1027_v36 }
 0x86e   : > { %v13353_v12 = vadd.f32 %v32530_v23, %v13352_v16  ;;  %28167 = vmatpush3.xpose.msk.msra.mxu1 %vm1759_vm2, %v13358_v6  ;;  %28168 = vmatprep.mubr.msk.f32.mxu1 %vm29533_vm1, %v34881_v41  ;;  %v13441_v23 = vadd.f32 %v32567_v2, %v32555_v18  ;;  %v28010_v9 = vpop.f32.mrf.mxu1  ;;  %v32853_v18 = vld [vmem:[%s34862_s6 + $0x10] sm:$0xff] }
 0x86f   : > { %28154 = vmatmul.mubr.msk.f32.vlgmr.msra.gmra.mxu0 %vm1759_vm2, %v1153_v13  ;;  %28176 = vmatprep.subr.mxu1 %v34881_v41  ;;  %v32839_v63 = vadd.f32 %v28010_v9, %v32567_v2 }
 0x870   : > { %28162 = vmatpush3.xpose.msk.msra.mxu0 %vm1759_vm2, %v13353_v12  ;;  %28163 = vmatprep.mubr.msk.f32.mxu0 %vm29533_vm1, %v34881_v41 }
 0x871   : > { %28169 = vmatmul.mubr.msk.f32.vlgmr.msra.gmra.mxu1 %vm1759_vm2, %v1156_v50  ;;  %28171 = vmatprep.subr.mxu0 %v34881_v41  ;;  %35060 = vst [vmem:[#allocation78_spill] sm:$0xff] %v32839_v63  ;;  %v32848_v50 = vpop.f32.mrf.mxu1 }
 0x872   : > { %28177 = vmatpush3.msra.mxu1 %v13446_v11  ;;  %28178 = vmatprep.mubr.msk.f32.mxu1 %vm29533_vm1, %v34881_v41  ;;  %35061 = vst [vmem:[#allocation79_spill] sm:$0xff] %v32848_v50 }
 0x873   : > { %28164 = vmatmul.mubr.msk.f32.vlgmr.msra.gmra.mxu0 %vm1759_vm2, %v1155_v35  ;;  %28186 = vmatprep.subr.mxu1 %v34881_v41 }
 0x874   : > { %28172 = vmatpush3.msra.mxu0 %v13441_v23  ;;  %28173 = vmatprep.mubr.msk.f32.mxu0 %vm29533_vm1, %v34881_v41 }
 0x875   : > { %28181 = vmatprep.subr.mxu0 %v34881_v41 }
 0x8f5   : > { %v13749_v2 = vpop.f32.mrf.mxu1 }
 0x8f6   : > { %v32856_v13 = vadd.f32 %v32853_v18, %v13749_v2 }
 0x8f7   : > { %v13673_v6 = vpop.f32.mrf.mxu0  ;;  %v28020_v36 = vpop.f32.mrf.mxu1 }
 0x8f8   : > { %v32859_v30 = vadd.f32 %v32853_v18, %v13673_v6  ;;  %v16036_v16 = vsel %vm1759_vm2, %v32856_v13, -inf }
 0x8f9   : > { %16037 = vmax.xlane.f32.xlu0 %v16036_v16  ;;  %v28015_v12 = vpop.f32.mrf.mxu0  ;;  %v13901_v11 = vpop.f32.mrf.mxu1 }
 0x8fa   : > { %v32864_v35 = vadd.f32 %v32853_v18, %v13901_v11  ;;  %v16033_v23 = vsel %vm1759_vm2, %v32859_v30, -inf }
 0x8fb   : > { %v28030_v9 = vpop.f32.mrf.mxu1  ;;  %16034 = vmax.xlane.f32.xlu1 %v16033_v23  ;;  %v13825_v2 = vpop.f32.mrf.mxu0 }
 0x8fc   : > { %v32869_v36 = vadd.f32 %v32853_v18, %v13825_v2  ;;  %v16042_v6 = vsel %vm1759_vm2, %v32864_v35, -inf }
 0x8fd   : > { %16043 = vmax.xlane.f32.xlu0 %v16042_v6  ;;  %v28025_v52 = vpop.f32.mrf.mxu0  ;;  %v14053_v16 = vpop.f32.mrf.mxu1 }
 0x8fe   : > { %v32874_v12 = vadd.f32 %v32853_v18, %v14053_v16  ;;  %v16039_v11 = vsel %vm1759_vm2, %v32869_v36, -inf }
 0x8ff   : > { %v28040_v26 = vpop.f32.mrf.mxu1  ;;  %16040 = vmax.xlane.f32.xlu1 %v16039_v11  ;;  %v13977_v9 = vpop.f32.mrf.mxu0 }
 0x900   : > { %v32879_v23 = vadd.f32 %v32853_v18, %v13977_v9  ;;  %v16048_v2 = vsel %vm1759_vm2, %v32874_v12, -inf }
 0x901   : > { %16049 = vmax.xlane.f32.xlu0 %v16048_v2  ;;  %v28035_v45 = vpop.f32.mrf.mxu0  ;;  %v14205_v6 = vpop.f32.mrf.mxu1 }
 0x902   : > { %v32884_v52 = vadd.f32 %v32853_v18, %v14205_v6  ;;  %v16045_v16 = vsel %vm1759_vm2, %v32879_v23, -inf }
 0x903   : > { %v28050_v32 = vpop.f32.mrf.mxu1  ;;  %16046 = vmax.xlane.f32.xlu1 %v16045_v16  ;;  %v14129_v26 = vpop.f32.mrf.mxu0 }
 0x904   : > { %v32889_v11 = vadd.f32 %v32853_v18, %v14129_v26  ;;  %v16054_v9 = vsel %vm1759_vm2, %v32884_v52, -inf }
 0x905   : > { %16055 = vmax.xlane.f32.xlu0 %v16054_v9  ;;  %v28045_v47 = vpop.f32.mrf.mxu0  ;;  %v14357_v2 = vpop.f32.mrf.mxu1 }
 0x906   : > { %v32894_v45 = vadd.f32 %v32853_v18, %v14357_v2  ;;  %v16051_v6 = vsel %vm1759_vm2, %v32889_v11, -inf }
 0x907   : > { %v28060_v21 = vpop.f32.mrf.mxu1  ;;  %16052 = vmax.xlane.f32.xlu1 %v16051_v6  ;;  %v14281_v32 = vpop.f32.mrf.mxu0 }
 0x908   : > { %v32899_v16 = vadd.f32 %v32853_v18, %v14281_v32  ;;  %v16060_v26 = vsel %vm1759_vm2, %v32894_v45, -inf }
 0x909   : > { %16061 = vmax.xlane.f32.xlu0 %v16060_v26  ;;  %v28055_v1 = vpop.f32.mrf.mxu0  ;;  %v14509_v9 = vpop.f32.mrf.mxu1 }
 0x90a   : > { %v32904_v47 = vadd.f32 %v32853_v18, %v14509_v9  ;;  %v16057_v2 = vsel %vm1759_vm2, %v32899_v16, -inf }
 0x90b   : > { %v28070_v54 = vpop.f32.mrf.mxu1  ;;  %16058 = vmax.xlane.f32.xlu1 %v16057_v2  ;;  %v14433_v21 = vpop.f32.mrf.mxu0 }
 0x90c   : > { %v32909_v6 = vadd.f32 %v32853_v18, %v14433_v21  ;;  %v16066_v32 = vsel %vm1759_vm2, %v32904_v47, -inf }
 0x90d   : > { %16067 = vmax.xlane.f32.xlu0 %v16066_v32  ;;  %v28065_v0 = vpop.f32.mrf.mxu0  ;;  %v14661_v26 = vpop.f32.mrf.mxu1 }
 0x90e   : > { %v32914_v1 = vadd.f32 %v32853_v18, %v14661_v26  ;;  %v16063_v9 = vsel %vm1759_vm2, %v32909_v6, -inf }
 0x90f   : > { %v28080_v15 = vpop.f32.mrf.mxu1  ;;  %16064 = vmax.xlane.f32.xlu1 %v16063_v9  ;;  %v14585_v54 = vpop.f32.mrf.mxu0 }
 0x910   : > { %v32919_v2 = vadd.f32 %v32853_v18, %v14585_v54  ;;  %v16072_v21 = vsel %vm1759_vm2, %v32914_v1, -inf }
 0x911   : > { %16073 = vmax.xlane.f32.xlu0 %v16072_v21  ;;  %v28075_v40 = vpop.f32.mrf.mxu0  ;;  %v14813_v32 = vpop.f32.mrf.mxu1 }
 0x912   : > { %v32924_v0 = vadd.f32 %v32853_v18, %v14813_v32  ;;  %v16069_v26 = vsel %vm1759_vm2, %v32919_v2, -inf }
 0x913   : > { %v28090_v4 = vpop.f32.mrf.mxu1  ;;  %16070 = vmax.xlane.f32.xlu1 %v16069_v26  ;;  %v14737_v15 = vpop.f32.mrf.mxu0 }
 0x914   : > { %v32929_v9 = vadd.f32 %v32853_v18, %v14737_v15  ;;  %v16078_v54 = vsel %vm1759_vm2, %v32924_v0, -inf }
 0x915   : > { %16079 = vmax.xlane.f32.xlu0 %v16078_v54  ;;  %v28085_v7 = vpop.f32.mrf.mxu0  ;;  %v14965_v21 = vpop.f32.mrf.mxu1 }
 0x916   : > { %v32934_v40 = vadd.f32 %v32853_v18, %v14965_v21  ;;  %v16075_v32 = vsel %vm1759_vm2, %v32929_v9, -inf }
 0x917   : > { %v28100_v14 = vpop.f32.mrf.mxu1  ;;  %16076 = vmax.xlane.f32.xlu1 %v16075_v32  ;;  %v14889_v4 = vpop.f32.mrf.mxu0 }
 0x918   : > { %v32939_v26 = vadd.f32 %v32853_v18, %v14889_v4  ;;  %v16084_v15 = vsel %vm1759_vm2, %v32934_v40, -inf }
 0x919   : > { %16085 = vmax.xlane.f32.xlu0 %v16084_v15  ;;  %v28095_v22 = vpop.f32.mrf.mxu0  ;;  %v15117_v54 = vpop.f32.mrf.mxu1 }
 0x91a   : > { %v32944_v7 = vadd.f32 %v32853_v18, %v15117_v54  ;;  %v16081_v21 = vsel %vm1759_vm2, %v32939_v26, -inf }
 0x91b   : > { %v28110_v53 = vpop.f32.mrf.mxu1  ;;  %16082 = vmax.xlane.f32.xlu1 %v16081_v21  ;;  %v15041_v14 = vpop.f32.mrf.mxu0 }
 0x91c   : > { %v32949_v32 = vadd.f32 %v32853_v18, %v15041_v14  ;;  %v16090_v4 = vsel %vm1759_vm2, %v32944_v7, -inf }
 0x91d   : > { %16091 = vmax.xlane.f32.xlu0 %v16090_v4  ;;  %v28105_v49 = vpop.f32.mrf.mxu0  ;;  %v15269_v15 = vpop.f32.mrf.mxu1 }
 0x91e   : > { %v32954_v22 = vadd.f32 %v32853_v18, %v15269_v15  ;;  %v16087_v54 = vsel %vm1759_vm2, %v32949_v32, -inf }
 0x91f   : > { %v28120_v46 = vpop.f32.mrf.mxu1  ;;  %16088 = vmax.xlane.f32.xlu1 %v16087_v54  ;;  %v15193_v53 = vpop.f32.mrf.mxu0 }
 0x920   : > { %v32959_v21 = vadd.f32 %v32853_v18, %v15193_v53  ;;  %v16096_v14 = vsel %vm1759_vm2, %v32954_v22, -inf }
 0x921   : > { %16097 = vmax.xlane.f32.xlu0 %v16096_v14  ;;  %v28115_v39 = vpop.f32.mrf.mxu0  ;;  %v15421_v4 = vpop.f32.mrf.mxu1 }
 0x922   : > { %v32964_v49 = vadd.f32 %v32853_v18, %v15421_v4  ;;  %v16093_v15 = vsel %vm1759_vm2, %v32959_v21, -inf }
 0x923   : > { %v28130_v48 = vpop.f32.mrf.mxu1  ;;  %16094 = vmax.xlane.f32.xlu1 %v16093_v15  ;;  %v15345_v46 = vpop.f32.mrf.mxu0 }
 0x924   : > { %v32969_v54 = vadd.f32 %v32853_v18, %v15345_v46  ;;  %v16102_v53 = vsel %vm1759_vm2, %v32964_v49, -inf }
 0x925   : > { %16103 = vmax.xlane.f32.xlu0 %v16102_v53  ;;  %v28125_v20 = vpop.f32.mrf.mxu0  ;;  %v15573_v14 = vpop.f32.mrf.mxu1 }
 0x926   : > { %v32974_v39 = vadd.f32 %v32853_v18, %v15573_v14  ;;  %v16099_v4 = vsel %vm1759_vm2, %v32969_v54, -inf }
 0x927   : > { %v28140_v63 = vpop.f32.mrf.mxu1  ;;  %16100 = vmax.xlane.f32.xlu1 %v16099_v4  ;;  %v15497_v48 = vpop.f32.mrf.mxu0 }
 0x928   : > { %v32979_v15 = vadd.f32 %v32853_v18, %v15497_v48  ;;  %v16108_v46 = vsel %vm1759_vm2, %v32974_v39, -inf }
 0x929   : > { %16109 = vmax.xlane.f32.xlu0 %v16108_v46  ;;  %v28135_v50 = vpop.f32.mrf.mxu0  ;;  %v15725_v53 = vpop.f32.mrf.mxu1 }
 0x92a   : > { %v32984_v20 = vadd.f32 %v32853_v18, %v15725_v53  ;;  %v16105_v14 = vsel %vm1759_vm2, %v32979_v15, -inf }
 0x92b   : > { %v28150_v17 = vpop.f32.mrf.mxu1  ;;  %16106 = vmax.xlane.f32.xlu1 %v16105_v14  ;;  %v15649_v63 = vpop.f32.mrf.mxu0 }
 0x92c   : > { %v32989_v4 = vadd.f32 %v32853_v18, %v15649_v63  ;;  %v16114_v48 = vsel %vm1759_vm2, %v32984_v20, -inf }
 0x92d   : > { %16115 = vmax.xlane.f32.xlu0 %v16114_v48  ;;  %v28145_v42 = vpop.f32.mrf.mxu0  ;;  %v15877_v46 = vpop.f32.mrf.mxu1 }
 0x92e   : > { %v32994_v50 = vadd.f32 %v32853_v18, %v15877_v46  ;;  %v16111_v53 = vsel %vm1759_vm2, %v32989_v4, -inf }
 0x92f   : > { %v28160_v31 = vpop.f32.mrf.mxu1  ;;  %16112 = vmax.xlane.f32.xlu1 %v16111_v53  ;;  %v15801_v17 = vpop.f32.mrf.mxu0 }
 0x930   : > { %v32999_v14 = vadd.f32 %v32853_v18, %v15801_v17  ;;  %v16120_v63 = vsel %vm1759_vm2, %v32994_v50, -inf }
 0x931   : > { %16121 = vmax.xlane.f32.xlu0 %v16120_v63  ;;  %v28155_v44 = vpop.f32.mrf.mxu0  ;;  %v16029_v48 = vpop.f32.mrf.mxu1 }
 0x932   : > { %v33004_v42 = vadd.f32 %v32853_v18, %v16029_v48  ;;  %v16117_v46 = vsel %vm1759_vm2, %v32999_v14, -inf }
 0x933   : > { %v28170_v10 = vpop.f32.mrf.mxu1  ;;  %16118 = vmax.xlane.f32.xlu1 %v16117_v46  ;;  %v15953_v31 = vpop.f32.mrf.mxu0 }
 0x934   : > { %v33009_v53 = vadd.f32 %v32853_v18, %v15953_v31  ;;  %v16126_v17 = vsel %vm1759_vm2, %v33004_v42, -inf }
 0x935   : > { %16127 = vmax.xlane.f32.xlu0 %v16126_v17  ;;  %v28165_v51 = vpop.f32.mrf.mxu0 }
 0x936   : > { %v16123_v44 = vsel %vm1759_vm2, %v33009_v53, -inf }
 0x937   : > { %16124 = vmax.xlane.f32.xlu1 %v16123_v44 }
 0x982   : > { %v16038_v63 = vpop.xlane.xlu0 %16037 }
 0x983   : > { %v16130_v48 = vsub.f32 %v32856_v13, %v16038_v63 }
 0x984   : > { %v16035_v34 = vpop.xlane.xlu1 %16034 }
 0x985   : > { %v16163_v43 = vmul.f32 1.442695, %v16130_v48  ;;  %v16129_v10 = vsub.f32 %v32859_v30, %v16035_v34 }
 0x986   : > { %v16044_v46 = vpop.xlane.xlu0 %16043 }
 0x987   : > { %29153 = vpow2.f32 %v16163_v43  ;;  %v16161_v18 = vmul.f32 1.442695, %v16129_v10  ;;  %v16132_v31 = vsub.f32 %v32864_v35, %v16044_v46 }
 0x988   : > { %v16041_v29 = vpop.xlane.xlu1 %16040 }
 0x989   : > { %29155 = vpow2.f32 %v16161_v18  ;;  %v16167_v17 = vmul.f32 1.442695, %v16132_v31  ;;  %v16131_v51 = vsub.f32 %v32869_v36, %v16041_v29 }
 0x98a   : > { %v16050_v37 = vpop.xlane.xlu0 %16049 }
 0x98b   : > { %29157 = vpow2.f32 %v16167_v17  ;;  %v16165_v44 = vmul.f32 1.442695, %v16131_v51  ;;  %v16134_v5 = vsub.f32 %v32874_v12, %v16050_v37 }
 0x98c   : > { %v16047_v13 = vpop.xlane.xlu1 %16046 }
 0x98d   : > { %29159 = vpow2.f32 %v16165_v44  ;;  %v16171_v63 = vmul.f32 1.442695, %v16134_v5  ;;  %v16133_v34 = vsub.f32 %v32879_v23, %v16047_v13 }
 0x98e   : > { %v16056_v30 = vpop.xlane.xlu0 %16055 }
 0x98f   : > { %29161 = vpow2.f32 %v16171_v63  ;;  %v16169_v43 = vmul.f32 1.442695, %v16133_v34  ;;  %v16136_v35 = vsub.f32 %v32884_v52, %v16056_v30 }
 0x990   : > { %v16053_v48 = vpop.xlane.xlu1 %16052 }
 0x991   : > { %29163 = vpow2.f32 %v16169_v43  ;;  %v16175_v10 = vmul.f32 1.442695, %v16136_v35  ;;  %v16135_v29 = vsub.f32 %v32889_v11, %v16053_v48 }
 0x992   : > { %v16062_v36 = vpop.xlane.xlu0 %16061 }
 0x993   : > { %29165 = vpow2.f32 %v16175_v10  ;;  %v16173_v46 = vmul.f32 1.442695, %v16135_v29  ;;  %v16138_v37 = vsub.f32 %v32894_v45, %v16062_v36 }
 0x994   : > { %v33024_v12 = vpop.eup %29153  ;;  %v16059_v5 = vpop.xlane.xlu1 %16058 }
 0x995   : > { %29167 = vpow2.f32 %v16173_v46  ;;  %v16179_v23 = vmul.f32 1.442695, %v16138_v37  ;;  %v16137_v18 = vsub.f32 %v32899_v16, %v16059_v5  ;;  %v16228_v52 = vsel %vm1759_vm2, %v33024_v12, 0.0 }
 0x996   : > { %v33029_v31 = vpop.eup %29155  ;;  %v16068_v17 = vpop.xlane.xlu0 %16067  ;;  %16229 = vadd.xlane.f32.xlu0 %v16228_v52 }
 0x997   : > { %29169 = vpow2.f32 %v16179_v23  ;;  %v16177_v11 = vmul.f32 1.442695, %v16137_v18  ;;  %v16140_v51 = vsub.f32 %v32904_v47, %v16068_v17  ;;  %v16225_v45 = vsel %vm1759_vm2, %v33029_v31, 0.0 }
 0x998   : > { %v33034_v44 = vpop.eup %29157  ;;  %v16065_v13 = vpop.xlane.xlu1 %16064  ;;  %16226 = vadd.xlane.f32.xlu1 %v16225_v45 }
 0x999   : > { %29171 = vpow2.f32 %v16177_v11  ;;  %v16183_v16 = vmul.f32 1.442695, %v16140_v51  ;;  %v16139_v63 = vsub.f32 %v32909_v6, %v16065_v13  ;;  %v16234_v34 = vsel %vm1759_vm2, %v33034_v44, 0.0 }
 0x99a   : > { %v33039_v30 = vpop.eup %29159  ;;  %v16074_v43 = vpop.xlane.xlu0 %16073  ;;  %16235 = vadd.xlane.f32.xlu0 %v16234_v34 }
 0x99b   : > { %29173 = vpow2.f32 %v16183_v16  ;;  %v16181_v47 = vmul.f32 1.442695, %v16139_v63  ;;  %v16142_v35 = vsub.f32 %v32914_v1, %v16074_v43  ;;  %v16231_v48 = vsel %vm1759_vm2, %v33039_v30, 0.0 }
 0x99c   : > { %v33044_v10 = vpop.eup %29161  ;;  %v16071_v29 = vpop.xlane.xlu1 %16070  ;;  %16232 = vadd.xlane.f32.xlu1 %v16231_v48 }
 0x99d   : > { %29175 = vpow2.f32 %v16181_v47  ;;  %v16187_v6 = vmul.f32 1.442695, %v16142_v35  ;;  %v16141_v36 = vsub.f32 %v32919_v2, %v16071_v29  ;;  %v16240_v46 = vsel %vm1759_vm2, %v33044_v10, 0.0 }
 0x99e   : > { %v33049_v37 = vpop.eup %29163  ;;  %v16080_v5 = vpop.xlane.xlu0 %16079  ;;  %16241 = vadd.xlane.f32.xlu0 %v16240_v46 }
 0x99f   : > { %29177 = vpow2.f32 %v16187_v6  ;;  %v16185_v1 = vmul.f32 1.442695, %v16141_v36  ;;  %v16144_v23 = vsub.f32 %v32924_v0, %v16080_v5  ;;  %v16237_v18 = vsel %vm1759_vm2, %v33049_v37, 0.0 }
 0x9a0   : > { %v33054_v52 = vpop.eup %29165  ;;  %v16077_v17 = vpop.xlane.xlu1 %16076  ;;  %16238 = vadd.xlane.f32.xlu1 %v16237_v18 }
 0x9a1   : > { %29179 = vpow2.f32 %v16185_v1  ;;  %v16191_v2 = vmul.f32 1.442695, %v16144_v23  ;;  %v16143_v11 = vsub.f32 %v32929_v9, %v16077_v17  ;;  %v16246_v51 = vsel %vm1759_vm2, %v33054_v52, 0.0 }
 0x9a2   : > { %v33059_v45 = vpop.eup %29167  ;;  %v16086_v13 = vpop.xlane.xlu0 %16085  ;;  %16247 = vadd.xlane.f32.xlu0 %v16246_v51 }
 0x9a3   : > { %29181 = vpow2.f32 %v16191_v2  ;;  %v16189_v0 = vmul.f32 1.442695, %v16143_v11  ;;  %v16146_v16 = vsub.f32 %v32934_v40, %v16086_v13  ;;  %v16243_v63 = vsel %vm1759_vm2, %v33059_v45, 0.0 }
 0x9a4   : > { %v33064_v34 = vpop.eup %29169  ;;  %v16083_v43 = vpop.xlane.xlu1 %16082  ;;  %16244 = vadd.xlane.f32.xlu1 %v16243_v63 }
 0x9a5   : > { %29183 = vpow2.f32 %v16189_v0  ;;  %v16195_v9 = vmul.f32 1.442695, %v16146_v16  ;;  %v16145_v47 = vsub.f32 %v32939_v26, %v16083_v43  ;;  %v16252_v35 = vsel %vm1759_vm2, %v33064_v34, 0.0 }
 0x9a6   : > { %v33069_v48 = vpop.eup %29171  ;;  %v16092_v29 = vpop.xlane.xlu0 %16091  ;;  %16253 = vadd.xlane.f32.xlu0 %v16252_v35 }
 0x9a7   : > { %29185 = vpow2.f32 %v16195_v9  ;;  %v16193_v40 = vmul.f32 1.442695, %v16145_v47  ;;  %v16148_v6 = vsub.f32 %v32944_v7, %v16092_v29  ;;  %v16249_v36 = vsel %vm1759_vm2, %v33069_v48, 0.0 }
 0x9a8   : > { %v33074_v46 = vpop.eup %29173  ;;  %v16089_v5 = vpop.xlane.xlu1 %16088  ;;  %16250 = vadd.xlane.f32.xlu1 %v16249_v36 }
 0x9a9   : > { %29187 = vpow2.f32 %v16193_v40  ;;  %v16199_v26 = vmul.f32 1.442695, %v16148_v6  ;;  %v16147_v1 = vsub.f32 %v32949_v32, %v16089_v5  ;;  %v16258_v23 = vsel %vm1759_vm2, %v33074_v46, 0.0 }
 0x9aa   : > { %v33079_v18 = vpop.eup %29175  ;;  %v16098_v17 = vpop.xlane.xlu0 %16097  ;;  %16259 = vadd.xlane.f32.xlu0 %v16258_v23 }
 0x9ab   : > { %29189 = vpow2.f32 %v16199_v26  ;;  %v16197_v7 = vmul.f32 1.442695, %v16147_v1  ;;  %v16150_v2 = vsub.f32 %v32954_v22, %v16098_v17  ;;  %v16255_v11 = vsel %vm1759_vm2, %v33079_v18, 0.0 }
 0x9ac   : > { %v33084_v51 = vpop.eup %29177  ;;  %v16095_v13 = vpop.xlane.xlu1 %16094  ;;  %16256 = vadd.xlane.f32.xlu1 %v16255_v11 }
 0x9ad   : > { %29191 = vpow2.f32 %v16197_v7  ;;  %v16203_v32 = vmul.f32 1.442695, %v16150_v2  ;;  %v16149_v0 = vsub.f32 %v32959_v21, %v16095_v13  ;;  %v16264_v16 = vsel %vm1759_vm2, %v33084_v51, 0.0 }
 0x9ae   : > { %v33089_v63 = vpop.eup %29179  ;;  %v16104_v43 = vpop.xlane.xlu0 %16103  ;;  %16265 = vadd.xlane.f32.xlu0 %v16264_v16 }
 0x9af   : > { %29193 = vpow2.f32 %v16203_v32  ;;  %v16201_v22 = vmul.f32 1.442695, %v16149_v0  ;;  %v16152_v9 = vsub.f32 %v32964_v49, %v16104_v43  ;;  %v16261_v47 = vsel %vm1759_vm2, %v33089_v63, 0.0 }
 0x9b0   : > { %v33094_v35 = vpop.eup %29181  ;;  %v16101_v29 = vpop.xlane.xlu1 %16100  ;;  %16262 = vadd.xlane.f32.xlu1 %v16261_v47 }
 0x9b1   : > { %29195 = vpow2.f32 %v16201_v22  ;;  %v16207_v21 = vmul.f32 1.442695, %v16152_v9  ;;  %v16151_v40 = vsub.f32 %v32969_v54, %v16101_v29  ;;  %v16270_v6 = vsel %vm1759_vm2, %v33094_v35, 0.0 }
 0x9b2   : > { %v33099_v36 = vpop.eup %29183  ;;  %v16110_v5 = vpop.xlane.xlu0 %16109  ;;  %16271 = vadd.xlane.f32.xlu0 %v16270_v6 }
 0x9b3   : > { %29197 = vpow2.f32 %v16207_v21  ;;  %v16205_v49 = vmul.f32 1.442695, %v16151_v40  ;;  %v16154_v26 = vsub.f32 %v32974_v39, %v16110_v5  ;;  %v16267_v1 = vsel %vm1759_vm2, %v33099_v36, 0.0 }
 0x9b4   : > { %v33104_v23 = vpop.eup %29185  ;;  %v16107_v17 = vpop.xlane.xlu1 %16106  ;;  %16268 = vadd.xlane.f32.xlu1 %v16267_v1 }
 0x9b5   : > { %29199 = vpow2.f32 %v16205_v49  ;;  %v16211_v54 = vmul.f32 1.442695, %v16154_v26  ;;  %v16153_v7 = vsub.f32 %v32979_v15, %v16107_v17  ;;  %v16276_v2 = vsel %vm1759_vm2, %v33104_v23, 0.0 }
 0x9b6   : > { %v33109_v11 = vpop.eup %29187  ;;  %v16116_v13 = vpop.xlane.xlu0 %16115  ;;  %16277 = vadd.xlane.f32.xlu0 %v16276_v2 }
 0x9b7   : > { %29201 = vpow2.f32 %v16211_v54  ;;  %v16209_v39 = vmul.f32 1.442695, %v16153_v7  ;;  %v16156_v32 = vsub.f32 %v32984_v20, %v16116_v13  ;;  %v16273_v0 = vsel %vm1759_vm2, %v33109_v11, 0.0 }
 0x9b8   : > { %v33114_v16 = vpop.eup %29189  ;;  %v16113_v43 = vpop.xlane.xlu1 %16112  ;;  %16274 = vadd.xlane.f32.xlu1 %v16273_v0 }
 0x9b9   : > { %29203 = vpow2.f32 %v16209_v39  ;;  %v16215_v15 = vmul.f32 1.442695, %v16156_v32  ;;  %v16155_v22 = vsub.f32 %v32989_v4, %v16113_v43  ;;  %v16282_v9 = vsel %vm1759_vm2, %v33114_v16, 0.0 }
 0x9ba   : > { %v33119_v47 = vpop.eup %29191  ;;  %v16122_v29 = vpop.xlane.xlu0 %16121  ;;  %16283 = vadd.xlane.f32.xlu0 %v16282_v9 }
 0x9bb   : > { %29205 = vpow2.f32 %v16215_v15  ;;  %v16213_v20 = vmul.f32 1.442695, %v16155_v22  ;;  %v16158_v21 = vsub.f32 %v32994_v50, %v16122_v29  ;;  %v16279_v40 = vsel %vm1759_vm2, %v33119_v47, 0.0 }
 0x9bc   : > { %v33124_v6 = vpop.eup %29193  ;;  %v16119_v5 = vpop.xlane.xlu1 %16118  ;;  %16280 = vadd.xlane.f32.xlu1 %v16279_v40 }
 0x9bd   : > { %29207 = vpow2.f32 %v16213_v20  ;;  %v16219_v4 = vmul.f32 1.442695, %v16158_v21  ;;  %v16157_v49 = vsub.f32 %v32999_v14, %v16119_v5  ;;  %v16288_v26 = vsel %vm1759_vm2, %v33124_v6, 0.0 }
 0x9be   : > { %v33129_v1 = vpop.eup %29195  ;;  %16289 = vadd.xlane.f32.xlu0 %v16288_v26  ;;  %v16128_v17 = vpop.xlane.xlu0 %16127 }
 0x9bf   : > { %29209 = vpow2.f32 %v16219_v4  ;;  %v16217_v50 = vmul.f32 1.442695, %v16157_v49  ;;  %v16160_v54 = vsub.f32 %v33004_v42, %v16128_v17  ;;  %v16285_v7 = vsel %vm1759_vm2, %v33129_v1, 0.0 }
 0x9c0   : > { %v33134_v2 = vpop.eup %29197  ;;  %16286 = vadd.xlane.f32.xlu1 %v16285_v7  ;;  %v16125_v13 = vpop.xlane.xlu1 %16124 }
 0x9c1   : > { %29211 = vpow2.f32 %v16217_v50  ;;  %v16223_v14 = vmul.f32 1.442695, %v16160_v54  ;;  %v16159_v39 = vsub.f32 %v33009_v53, %v16125_v13  ;;  %v16294_v32 = vsel %vm1759_vm2, %v33134_v2, 0.0 }
 0x9c2   : > { %v33139_v0 = vpop.eup %29199  ;;  %16295 = vadd.xlane.f32.xlu0 %v16294_v32 }
 0x9c3   : > { %29213 = vpow2.f32 %v16223_v14  ;;  %v16221_v43 = vmul.f32 1.442695, %v16159_v39  ;;  %v16291_v42 = vsel %vm1759_vm2, %v33139_v0, 0.0 }
 0x9c4   : > { %v33143_v15 = vpop.eup %29201  ;;  %16292 = vadd.xlane.f32.xlu1 %v16291_v42 }
 0x9c5   : > { %29215 = vpow2.f32 %v16221_v43  ;;  %v16300_v22 = vsel %vm1759_vm2, %v33143_v15, 0.0 }
 0x9c6   : > { %v33147_v9 = vpop.eup %29203  ;;  %16301 = vadd.xlane.f32.xlu0 %v16300_v22 }
 0x9c7   : > { %v16297_v53 = vsel %vm1759_vm2, %v33147_v9, 0.0 }
 0x9c8   : > { %v33151_v29 = vpop.eup %29205  ;;  %16298 = vadd.xlane.f32.xlu1 %v16297_v53 }
 0x9c9   : > { %v16306_v20 = vsel %vm1759_vm2, %v33151_v29, 0.0 }
 0x9ca   : > { %v33155_v21 = vpop.eup %29207  ;;  %16307 = vadd.xlane.f32.xlu0 %v16306_v20 }
 0x9cb   : > { %v16303_v40 = vsel %vm1759_vm2, %v33155_v21, 0.0 }
 0x9cc   : > { %v33159_v5 = vpop.eup %29209  ;;  %16304 = vadd.xlane.f32.xlu1 %v16303_v40 }
 0x9cd   : > { %v16312_v4 = vsel %vm1759_vm2, %v33159_v5, 0.0 }
 0x9ce   : > { %v33163_v49 = vpop.eup %29211  ;;  %16313 = vadd.xlane.f32.xlu0 %v16312_v4 }
 0x9cf   : > { %v16309_v26 = vsel %vm1759_vm2, %v33163_v49, 0.0 }
 0x9d0   : > { %v33167_v17 = vpop.eup %29213  ;;  %16310 = vadd.xlane.f32.xlu1 %v16309_v26 }
 0x9d1   : > { %v16318_v50 = vsel %vm1759_vm2, %v33167_v17, 0.0 }
 0x9d2   : > { %v33171_v54 = vpop.eup %29215  ;;  %16319 = vadd.xlane.f32.xlu0 %v16318_v50 }
 0x9d3   : > { %v16315_v7 = vsel %vm1759_vm2, %v33171_v54, 0.0 }
 0x9d4   : > { %16316 = vadd.xlane.f32.xlu1 %v16315_v7 }
 0xa1f   : > { %v16230_v13 = vpop.xlane.xlu0 %16229 }
 0xa20   : > { %29217 = vrcp.f32 %v16230_v13  ;;  %v33181_v13 = vld [vmem:[%s34861_s5 + $0x2] ss:$0 sm:$0xff] }
 0xa21   : > { %v16227_v14 = vpop.xlane.xlu1 %16226 }
 0xa22   : > { %29219 = vrcp.f32 %v16227_v14  ;;  %v13451_v14 = vadd.f32 %v33181_v13, %v32579_v62 }
 0xa23   : > { %v16236_v39 = vpop.xlane.xlu0 %16235 }
 0xa24   : > { %29221 = vrcp.f32 %v16236_v39 }
 0xa25   : > { %v16233_v32 = vpop.xlane.xlu1 %16232 }
 0xa26   : > { %29223 = vrcp.f32 %v16233_v32 }
 0xa27   : > { %v16242_v43 = vpop.xlane.xlu0 %16241 }
 0xa28   : > { %29225 = vrcp.f32 %v16242_v43 }
 0xa29   : > { %v16239_v42 = vpop.xlane.xlu1 %16238 }
 0xa2a   : > { %29227 = vrcp.f32 %v16239_v42 }
 0xa2b   : > { %v16248_v22 = vpop.xlane.xlu0 %16247 }
 0xa2c   : > { %29229 = vrcp.f32 %v16248_v22 }
 0xa2d   : > { %v29218_v53 = vpop.eup %29217  ;;  %v16245_v20 = vpop.xlane.xlu1 %16244 }
 0xa2e   : > { %v16354_v40 = vmul.f32 %v29218_v53, %v33024_v12  ;;  %29231 = vrcp.f32 %v16245_v20 }
 0xa2f   : > { %v29220_v4 = vpop.eup %29219  ;;  %v16254_v26 = vpop.xlane.xlu0 %16253 }
 0xa30   : > { %v16353_v50 = vmul.f32 %v29220_v4, %v33029_v31  ;;  %29233 = vrcp.f32 %v16254_v26  ;;  %28179 = vmatmul.mubr.msk.f32.vlgmr.msra.gmra.mxu1 %vm1759_vm2, %v16354_v40 }
 0xa31   : > { %v29222_v7 = vpop.eup %29221  ;;  %28187 = vmatpush3.msra.mxu1 %v32572_v8  ;;  %v16251_v12 = vpop.xlane.xlu1 %16250  ;;  %28188 = vmatprep.mubr.msk.f32.mxu1 %vm29533_vm1, %v34881_v41 }
 0xa32   : > { %v16356_v31 = vmul.f32 %v29222_v7, %v33034_v44  ;;  %29235 = vrcp.f32 %v16251_v12  ;;  %28174 = vmatmul.mubr.msk.f32.vlgmr.msra.gmra.mxu0 %vm1759_vm2, %v16353_v50  ;;  %28196 = vmatprep.subr.mxu1 %v34881_v41  ;;  %v13461_v44 = vadd.f32 %v33181_v13, %v32598_v19 }
 0xa33   : > { %v29224_v39 = vpop.eup %29223  ;;  %28182 = vmatpush3.msra.mxu0 %v13451_v14  ;;  %v16260_v32 = vpop.xlane.xlu0 %16259  ;;  %28183 = vmatprep.mubr.msk.f32.mxu0 %vm29533_vm1, %v34881_v41 }
 0xa34   : > { %v16355_v62 = vmul.f32 %v29224_v39, %v33039_v30  ;;  %29237 = vrcp.f32 %v16260_v32  ;;  %28189 = vmatmul.mubr.msk.f32.vlgmr.msra.gmra.mxu1 %vm1759_vm2, %v16356_v31  ;;  %28191 = vmatprep.subr.mxu0 %v34881_v41 }
 0xa35   : > { %v29226_v8 = vpop.eup %29225  ;;  %28197 = vmatpush3.msra.mxu1 %v32591_v57  ;;  %v16257_v43 = vpop.xlane.xlu1 %16256  ;;  %28198 = vmatprep.mubr.msk.f32.mxu1 %vm29533_vm1, %v34881_v41 }
 0xa36   : > { %v16358_v42 = vmul.f32 %v29226_v8, %v33044_v10  ;;  %29239 = vrcp.f32 %v16257_v43  ;;  %28184 = vmatmul.mubr.msk.f32.vlgmr.msra.gmra.mxu0 %vm1759_vm2, %v16355_v62  ;;  %28206 = vmatprep.subr.mxu1 %v34881_v41  ;;  %v13471_v10 = vadd.f32 %v33181_v13, %v32617_v61 }
 0xa37   : > { %v29228_v30 = vpop.eup %29227  ;;  %28192 = vmatpush3.msra.mxu0 %v13461_v44  ;;  %v16266_v22 = vpop.xlane.xlu0 %16265  ;;  %28193 = vmatprep.mubr.msk.f32.mxu0 %vm29533_vm1, %v34881_v41 }
 0xa38   : > { %v16357_v19 = vmul.f32 %v29228_v30, %v33049_v37  ;;  %29241 = vrcp.f32 %v16266_v22  ;;  %28199 = vmatmul.mubr.msk.f32.vlgmr.msra.gmra.mxu1 %vm1759_vm2, %v16358_v42  ;;  %28201 = vmatprep.subr.mxu0 %v34881_v41  ;;  %v35062_v22 = vld [vmem:[#allocation67_spill] sm:$0xff] }
 0xa39   : > { %v29230_v57 = vpop.eup %29229  ;;  %28207 = vmatpush3.msra.mxu1 %v32610_v24  ;;  %v16263_v53 = vpop.xlane.xlu1 %16262  ;;  %28208 = vmatprep.mubr.msk.f32.mxu1 %vm29533_vm1, %v34881_v41 }
 0xa3a   : > { %v16360_v20 = vmul.f32 %v29230_v57, %v33054_v52  ;;  %29243 = vrcp.f32 %v16263_v53  ;;  %28194 = vmatmul.mubr.msk.f32.vlgmr.msra.gmra.mxu0 %vm1759_vm2, %v16357_v19  ;;  %28216 = vmatprep.subr.mxu1 %v34881_v41  ;;  %v13481_v52 = vadd.f32 %v33181_v13, %v32636_v59 }
 0xa3b   : > { %v29232_v37 = vpop.eup %29231  ;;  %28202 = vmatpush3.msra.mxu0 %v13471_v10  ;;  %v16272_v40 = vpop.xlane.xlu0 %16271  ;;  %28203 = vmatprep.mubr.msk.f32.mxu0 %vm29533_vm1, %v34881_v41 }
 0xa3c   : > { %v16359_v61 = vmul.f32 %v29232_v37, %v33059_v45  ;;  %29245 = vrcp.f32 %v16272_v40  ;;  %28209 = vmatmul.mubr.msk.f32.vlgmr.msra.gmra.mxu1 %vm1759_vm2, %v16360_v20  ;;  %28211 = vmatprep.subr.mxu0 %v34881_v41  ;;  %v35064_v37 = vld [vmem:[#allocation68_spill] sm:$0xff] }
 0xa3d   : > { %v29234_v24 = vpop.eup %29233  ;;  %28217 = vmatpush3.msra.mxu1 %v32629_v60  ;;  %v16269_v4 = vpop.xlane.xlu1 %16268  ;;  %28218 = vmatprep.mubr.msk.f32.mxu1 %vm29533_vm1, %v34881_v41 }
 0xa3e   : > { %v16362_v26 = vmul.f32 %v29234_v24, %v33064_v34  ;;  %29247 = vrcp.f32 %v16269_v4  ;;  %28204 = vmatmul.mubr.msk.f32.vlgmr.msra.gmra.mxu0 %vm1759_vm2, %v16359_v61  ;;  %28226 = vmatprep.subr.mxu1 %v34881_v41  ;;  %v13491_v34 = vadd.f32 %v33181_v13, %v32655_v55 }
 0xa3f   : > { %v29236_v45 = vpop.eup %29235  ;;  %28212 = vmatpush3.msra.mxu0 %v13481_v52  ;;  %v16278_v50 = vpop.xlane.xlu0 %16277  ;;  %28213 = vmatprep.mubr.msk.f32.mxu0 %vm29533_vm1, %v34881_v41 }
 0xa40   : > { %v16361_v59 = vmul.f32 %v29236_v45, %v33069_v48  ;;  %29249 = vrcp.f32 %v16278_v50  ;;  %28219 = vmatmul.mubr.msk.f32.vlgmr.msra.gmra.mxu1 %vm1759_vm2, %v16362_v26  ;;  %28221 = vmatprep.subr.mxu0 %v34881_v41  ;;  %v35066_v45 = vld [vmem:[#allocation70_spill] sm:$0xff] }
 0xa41   : > { %v29238_v60 = vpop.eup %29237  ;;  %28227 = vmatpush3.msra.mxu1 %v32648_v56  ;;  %v16275_v7 = vpop.xlane.xlu1 %16274  ;;  %28228 = vmatprep.mubr.msk.f32.mxu1 %vm29533_vm1, %v34881_v41 }
 0xa42   : > { %v16364_v14 = vmul.f32 %v29238_v60, %v33074_v46  ;;  %29251 = vrcp.f32 %v16275_v7  ;;  %28214 = vmatmul.mubr.msk.f32.vlgmr.msra.gmra.mxu0 %vm1759_vm2, %v16361_v59  ;;  %28236 = vmatprep.subr.mxu1 %v34881_v41  ;;  %v13501_v46 = vadd.f32 %v33181_v13, %v32674_v28 }
 0xa43   : > { %v29240_v48 = vpop.eup %29239  ;;  %28222 = vmatpush3.msra.mxu0 %v13491_v34  ;;  %v16284_v12 = vpop.xlane.xlu0 %16283  ;;  %28223 = vmatprep.mubr.msk.f32.mxu0 %vm29533_vm1, %v34881_v41 }
 0xa44   : > { %v16363_v55 = vmul.f32 %v29240_v48, %v33079_v18  ;;  %29253 = vrcp.f32 %v16284_v12  ;;  %28229 = vmatmul.mubr.msk.f32.vlgmr.msra.gmra.mxu1 %vm1759_vm2, %v16364_v14  ;;  %28231 = vmatprep.subr.mxu0 %v34881_v41  ;;  %v35068_v48 = vld [vmem:[#allocation72_spill] sm:$0xff] }
 0xa45   : > { %v29242_v56 = vpop.eup %29241  ;;  %28237 = vmatpush3.msra.mxu1 %v32667_v58  ;;  %v16281_v31 = vpop.xlane.xlu1 %16280  ;;  %28238 = vmatprep.mubr.msk.f32.mxu1 %vm29533_vm1, %v34881_v41 }
 0xa46   : > { %v16366_v39 = vmul.f32 %v29242_v56, %v33084_v51  ;;  %29255 = vrcp.f32 %v16281_v31  ;;  %28224 = vmatmul.mubr.msk.f32.vlgmr.msra.gmra.mxu0 %vm1759_vm2, %v16363_v55  ;;  %28246 = vmatprep.subr.mxu1 %v34881_v41  ;;  %v13511_v51 = vadd.f32 %v33181_v13, %v32693_v33  ;;  %v35069_v31 = vld [vmem:[#allocation75_spill] sm:$0xff] }
 0xa47   : > { %v29244_v18 = vpop.eup %29243  ;;  %28232 = vmatpush3.msra.mxu0 %v13501_v46  ;;  %v16290_v32 = vpop.xlane.xlu0 %16289  ;;  %28233 = vmatprep.mubr.msk.f32.mxu0 %vm29533_vm1, %v34881_v41 }
 0xa48   : > { %v16365_v28 = vmul.f32 %v29244_v18, %v33089_v63  ;;  %29257 = vrcp.f32 %v16290_v32  ;;  %28239 = vmatmul.mubr.msk.f32.vlgmr.msra.gmra.mxu1 %vm1759_vm2, %v16366_v39  ;;  %28241 = vmatprep.subr.mxu0 %v34881_v41  ;;  %v35070_v39 = vld [vmem:[#allocation74_spill] sm:$0xff] }
 0xa49   : > { %v29246_v58 = vpop.eup %29245  ;;  %28247 = vmatpush3.msra.mxu1 %v32686_v25  ;;  %v16287_v62 = vpop.xlane.xlu1 %16286  ;;  %28248 = vmatprep.mubr.msk.f32.mxu1 %vm29533_vm1, %v34881_v41 }
 0xa4a   : > { %v16368_v8 = vmul.f32 %v29246_v58, %v33094_v35  ;;  %29259 = vrcp.f32 %v16287_v62  ;;  %28234 = vmatmul.mubr.msk.f32.vlgmr.msra.gmra.mxu0 %vm1759_vm2, %v16365_v28  ;;  %28256 = vmatprep.subr.mxu1 %v34881_v41  ;;  %v13521_v35 = vadd.f32 %v33181_v13, %v32712_v38  ;;  %v35071_v58 = vld [vmem:[#allocation77_spill] sm:$0xff] }
 0xa4b   : > { %v29248_v63 = vpop.eup %29247  ;;  %28242 = vmatpush3.msra.mxu0 %v13511_v51  ;;  %v16296_v44 = vpop.xlane.xlu0 %16295  ;;  %28243 = vmatprep.mubr.msk.f32.mxu0 %vm29533_vm1, %v34881_v41  ;;  %v13581_v51 = vadd.f32 %v33181_v13, %v35071_v58 }
 0xa4c   : > { %v16367_v33 = vmul.f32 %v29248_v63, %v33099_v36  ;;  %29261 = vrcp.f32 %v16296_v44  ;;  %28249 = vmatmul.mubr.msk.f32.vlgmr.msra.gmra.mxu1 %vm1759_vm2, %v16368_v8  ;;  %28251 = vmatprep.subr.mxu0 %v34881_v41  ;;  %v25796_v8 = vld [vmem:[%s34858_s2 + $0x78] sm:$0xff]  ;;  %v35073_v44 = vld [vmem:[#allocation79_spill] sm:$0xff] }
 0xa4d   : > { %v29250_v25 = vpop.eup %29249  ;;  %28257 = vmatpush3.msra.mxu1 %v32705_v27  ;;  %v16293_v43 = vpop.xlane.xlu1 %16292  ;;  %28258 = vmatprep.mubr.msk.f32.mxu1 %vm29533_vm1, %v34881_v41 }
 0xa4e   : > { %v16370_v42 = vmul.f32 %v29250_v25, %v33104_v23  ;;  %29263 = vrcp.f32 %v16293_v43  ;;  %28244 = vmatmul.mubr.msk.f32.vlgmr.msra.gmra.mxu0 %vm1759_vm2, %v16367_v33  ;;  %28266 = vmatprep.subr.mxu1 %v34881_v41  ;;  %v13531_v23 = vadd.f32 %v33181_v13, %v32731_v3  ;;  %v13591_v33 = vadd.f32 %v33181_v13, %v35073_v44  ;;  %v35074_v25 = vld [vmem:[#allocation78_spill] sm:$0xff]  ;;  %v25795_v43 = vld [vmem:[%s34858_s2 + $0x70] sm:$0xff] }
 0xa4f   : > { %v29252_v36 = vpop.eup %29251  ;;  %28252 = vmatpush3.msra.mxu0 %v13521_v35  ;;  %v16302_v30 = vpop.xlane.xlu0 %16301  ;;  %28253 = vmatprep.mubr.msk.f32.mxu0 %vm29533_vm1, %v34881_v41 }
 0xa50   : > { %v16369_v38 = vmul.f32 %v29252_v36, %v33109_v11  ;;  %29265 = vrcp.f32 %v16302_v30  ;;  %28259 = vmatmul.mubr.msk.f32.vlgmr.msra.gmra.mxu1 %vm1759_vm2, %v16370_v42  ;;  %28261 = vmatprep.subr.mxu0 %v34881_v41  ;;  %v33386_v42 = vld [vmem:[%s29911_s25] sm:$0xff]  ;;  %v25760_v36 = vld [vmem:[%s34863_s7 + $0x10] sm:$0xff]  ;;  %v33398_v30 = vld [vmem:[%s29911_s25 + $0x8] sm:$0xff] }
 0xa51   : > { %v29254_v27 = vpop.eup %29253  ;;  %28267 = vmatpush3.msra.mxu1 %v35062_v22  ;;  %v16299_v19 = vpop.xlane.xlu1 %16298  ;;  %28268 = vmatprep.mubr.msk.f32.mxu1 %vm29533_vm1, %v34881_v41  ;;  %v33419_v22 = vld [vmem:[%s29911_s25 + $0x28] sm:$0xff] }
 0xa52   : > { %v16372_v57 = vmul.f32 %v29254_v27, %v33114_v16  ;;  %29267 = vrcp.f32 %v16299_v19  ;;  %28254 = vmatmul.mubr.msk.f32.vlgmr.msra.gmra.mxu0 %vm1759_vm2, %v16369_v38  ;;  %28276 = vmatprep.subr.mxu1 %v34881_v41  ;;  %v35063_v16 = vld [vmem:[#allocation69_spill] sm:$0xff]  ;;  %v33409_v27 = vld [vmem:[%s29911_s25 + $0x18] sm:$0xff] }
 0xa53   : > { %v29256_v11 = vpop.eup %29255  ;;  %28262 = vmatpush3.msra.mxu0 %v13531_v23  ;;  %v16308_v10 = vpop.xlane.xlu0 %16307  ;;  %28263 = vmatprep.mubr.msk.f32.mxu0 %vm29533_vm1, %v34881_v41  ;;  %v13541_v20 = vadd.f32 %v33181_v13, %v35063_v16  ;;  %v33403_v38 = vld [vmem:[%s29911_s25 + $0x10] sm:$0xff]  ;;  %v33414_v23 = vld [vmem:[%s29911_s25 + $0x20] sm:$0xff] }
 0xa54   : > { %v16371_v3 = vmul.f32 %v29256_v11, %v33119_v47  ;;  %29269 = vrcp.f32 %v16308_v10  ;;  %28269 = vmatmul.mubr.msk.f32.vlgmr.msra.gmra.mxu1 %vm1759_vm2, %v16372_v57  ;;  %28271 = vmatprep.subr.mxu0 %v34881_v41  ;;  %v33424_v19 = vld [vmem:[%s29911_s25 + $0x30] sm:$0xff]  ;;  %v33429_v57 = vld [vmem:[%s29911_s25 + $0x38] sm:$0xff]  ;;  %v33434_v11 = vld [vmem:[%s29911_s25 + $0x40] sm:$0xff] }
 0xa55   : > { %v29258_v53 = vpop.eup %29257  ;;  %28277 = vmatpush3.msra.mxu1 %v35064_v37  ;;  %v16305_v40 = vpop.xlane.xlu1 %16304  ;;  %28278 = vmatprep.mubr.msk.f32.mxu1 %vm29533_vm1, %v34881_v41  ;;  %v33439_v10 = vld [vmem:[%s29911_s25 + $0x48] sm:$0xff]  ;;  %v33454_v16 = vld [vmem:[%s29911_s25 + $0x60] sm:$0xff]  ;;  %v33464_v37 = vld [vmem:[%s29911_s25 + $0x70] sm:$0xff] }
 0xa56   : > { %v16374_v61 = vmul.f32 %v29258_v53, %v33124_v6  ;;  %29271 = vrcp.f32 %v16305_v40  ;;  %28264 = vmatmul.mubr.msk.f32.vlgmr.msra.gmra.mxu0 %vm1759_vm2, %v16371_v3  ;;  %28286 = vmatprep.subr.mxu1 %v34881_v41  ;;  %v35065_v6 = vld [vmem:[#allocation71_spill] sm:$0xff]  ;;  %v33444_v3 = vld [vmem:[%s29911_s25 + $0x50] sm:$0xff]  ;;  %v33449_v53 = vld [vmem:[%s29911_s25 + $0x58] sm:$0xff] }
 0xa57   : > { %v29260_v47 = vpop.eup %29259  ;;  %28272 = vmatpush3.msra.mxu0 %v13541_v20  ;;  %v16314_v24 = vpop.xlane.xlu0 %16313  ;;  %28273 = vmatprep.mubr.msk.f32.mxu0 %vm29533_vm1, %v34881_v41  ;;  %v13551_v26 = vadd.f32 %v33181_v13, %v35065_v6  ;;  %v33459_v20 = vld [vmem:[%s29911_s25 + $0x68] sm:$0xff]  ;;  %v33469_v40 = vld [vmem:[%s29911_s25 + $0x78] sm:$0xff] }
 0xa58   : > { %v16373_v52 = vmul.f32 %v29260_v47, %v33129_v1  ;;  %29273 = vrcp.f32 %v16314_v24  ;;  %28279 = vmatmul.mubr.msk.f32.vlgmr.msra.gmra.mxu1 %vm1759_vm2, %v16374_v61  ;;  %28281 = vmatprep.subr.mxu0 %v34881_v41  ;;  %v33474_v61 = vld [vmem:[%s29911_s25 + $0x80] sm:$0xff]  ;;  %v33479_v47 = vld [vmem:[%s29911_s25 + $0x88] sm:$0xff]  ;;  %v33484_v24 = vld [vmem:[%s29911_s25 + $0x90] sm:$0xff] }
 0xa59   : > { %v29262_v4 = vpop.eup %29261  ;;  %28287 = vmatpush3.msra.mxu1 %v35066_v45  ;;  %v16311_v50 = vpop.xlane.xlu1 %16310  ;;  %28288 = vmatprep.mubr.msk.f32.mxu1 %vm29533_vm1, %v34881_v41  ;;  %v33499_v6 = vld [vmem:[%s29911_s25 + $0xa8] sm:$0xff]  ;;  %v33509_v45 = vld [vmem:[%s29911_s25 + $0xb8] sm:$0xff] }
 0xa5a   : > { %v16376_v59 = vmul.f32 %v29262_v4, %v33134_v2  ;;  %29275 = vrcp.f32 %v16311_v50  ;;  %28274 = vmatmul.mubr.msk.f32.vlgmr.msra.gmra.mxu0 %vm1759_vm2, %v16373_v52  ;;  %28296 = vmatprep.subr.mxu1 %v34881_v41  ;;  %v35067_v2 = vld [vmem:[#allocation73_spill] sm:$0xff]  ;;  %v33489_v52 = vld [vmem:[%s29911_s25 + $0x98] sm:$0xff]  ;;  %v33494_v4 = vld [vmem:[%s29911_s25 + $0xa0] sm:$0xff] }
 0xa5b   : > { %v29264_v1 = vpop.eup %29263  ;;  %28282 = vmatpush3.msra.mxu0 %v13551_v26  ;;  %v16320_v60 = vpop.xlane.xlu0 %16319  ;;  %28283 = vmatprep.mubr.msk.f32.mxu0 %vm29533_vm1, %v34881_v41  ;;  %v13561_v14 = vadd.f32 %v33181_v13, %v35067_v2  ;;  %v33504_v26 = vld [vmem:[%s29911_s25 + $0xb0] sm:$0xff]  ;;  %v33514_v50 = vld [vmem:[%s29911_s25 + $0xc0] sm:$0xff]  ;;  %v25834_v2 = vld [vmem:[%s34859_s3 + $0x78] sm:$0xff] }
 0xa5c   : > { %v16375_v34 = vmul.f32 %v29264_v1, %v33139_v0  ;;  %29277 = vrcp.f32 %v16320_v60  ;;  %28289 = vmatmul.mubr.msk.f32.vlgmr.msra.gmra.mxu1 %vm1759_vm2, %v16376_v59  ;;  %28291 = vmatprep.subr.mxu0 %v34881_v41  ;;  %v33519_v59 = vld [vmem:[%s29911_s25 + $0xc8] sm:$0xff]  ;;  %v33524_v1 = vld [vmem:[%s29911_s25 + $0xd0] sm:$0xff]  ;;  %v33529_v60 = vld [vmem:[%s29911_s25 + $0xd8] sm:$0xff] }
 0xa5d   : > { %v29266_v7 = vpop.eup %29265  ;;  %28297 = vmatpush3.msra.mxu1 %v35068_v48  ;;  %v16317_v12 = vpop.xlane.xlu1 %16316  ;;  %28298 = vmatprep.mubr.msk.f32.mxu1 %vm29533_vm1, %v34881_v41  ;;  %v33552_v48 = vld [vmem:[%s29911_s25 + $0xf8] sm:$0xff] }
 0xa5e   : > { %v16378_v55 = vmul.f32 %v29266_v7, %v33143_v15  ;;  %29279 = vrcp.f32 %v16317_v12  ;;  %28284 = vmatmul.mubr.msk.f32.vlgmr.msra.gmra.mxu0 %vm1759_vm2, %v16375_v34  ;;  %28306 = vmatprep.subr.mxu1 %v34881_v41  ;;  %v13571_v15 = vadd.f32 %v33181_v13, %v35069_v31  ;;  %v33534_v34 = vld [vmem:[%s29911_s25 + $0xe0] sm:$0xff]  ;;  %v33539_v7 = vld [vmem:[%s29911_s25 + $0xe8] sm:$0xff] }
 0xa5f   : > { %v29268_v0 = vpop.eup %29267  ;;  %28292 = vmatpush3.msra.mxu0 %v13561_v14  ;;  %28293 = vmatprep.mubr.msk.f32.mxu0 %vm29533_vm1, %v34881_v41  ;;  %v33547_v14 = vld [vmem:[%s29911_s25 + $0xf0] sm:$0xff]  ;;  %s34688_s25 = scalar_lea.vmem %s34865_s9, %s25184_s22 }
 0xa60   : > { %v16377_v56 = vmul.f32 %v29268_v0, %v33147_v9  ;;  %28299 = vmatmul.mubr.msk.f32.vlgmr.msra.gmra.mxu1 %vm1759_vm2, %v16378_v55  ;;  %28301 = vmatprep.subr.mxu0 %v34881_v41 }
 0xa61   : > { %v29270_v46 = vpop.eup %29269  ;;  %28307 = vmatpush3.msra.mxu1 %v35070_v39  ;;  %28308 = vmatprep.mubr.msk.f32.mxu1 %vm29533_vm1, %v34881_v41 }
 0xa62   : > { %v16380_v18 = vmul.f32 %v29270_v46, %v33151_v29  ;;  %28294 = vmatmul.mubr.msk.f32.vlgmr.msra.gmra.mxu0 %vm1759_vm2, %v16377_v56  ;;  %28316 = vmatprep.subr.mxu1 %v34881_v41  ;;  %v35072_v29 = vld [vmem:[#allocation76_spill] sm:$0xff]  ;;  %v25833_v56 = vld [vmem:[%s34859_s3 + $0x70] sm:$0xff] }
 0xa63   : > { %v29272_v9 = vpop.eup %29271  ;;  %28302 = vmatpush3.msra.mxu0 %v13571_v15  ;;  %28303 = vmatprep.mubr.msk.f32.mxu0 %vm29533_vm1, %v34881_v41  ;;  %v25832_v15 = vld [vmem:[%s34859_s3 + $0x68] sm:$0xff] }
 0xa64   : > { %v16379_v32 = vmul.f32 %v29272_v9, %v33155_v21  ;;  %28309 = vmatmul.mubr.msk.f32.vlgmr.msra.gmra.mxu1 %vm1759_vm2, %v16380_v18  ;;  %28311 = vmatprep.subr.mxu0 %v34881_v41  ;;  %v25831_v9 = vld [vmem:[%s34859_s3 + $0x60] sm:$0xff] }
 0xa65   : > { %v29274_v28 = vpop.eup %29273  ;;  %28317 = vmatpush3.msra.mxu1 %v35072_v29  ;;  %28318 = vmatprep.mubr.msk.f32.mxu1 %vm29533_vm1, %v34881_v41 }
 0xa66   : > { %v16382_v62 = vmul.f32 %v29274_v28, %v33159_v5  ;;  %28304 = vmatmul.mubr.msk.f32.vlgmr.msra.gmra.mxu0 %vm1759_vm2, %v16379_v32  ;;  %28326 = vmatprep.subr.mxu1 %v34881_v41 }
 0xa67   : > { %v29276_v21 = vpop.eup %29275  ;;  %28312 = vmatpush3.msra.mxu0 %v13581_v51  ;;  %28313 = vmatprep.mubr.msk.f32.mxu0 %vm29533_vm1, %v34881_v41 }
 0xa68   : > { %v16381_v63 = vmul.f32 %v29276_v21, %v33163_v49  ;;  %28319 = vmatmul.mubr.msk.f32.vlgmr.msra.gmra.mxu1 %vm1759_vm2, %v16382_v62  ;;  %28321 = vmatprep.subr.mxu0 %v34881_v41 }
 0xa69   : > { %v29278_v5 = vpop.eup %29277  ;;  %28327 = vmatpush3.msra.mxu1 %v35074_v25  ;;  %28328 = vmatprep.mubr.msk.f32.mxu1 %vm29533_vm1, %v34881_v41 }
 0xa6a   : > { %v16384_v35 = vmul.f32 %v29278_v5, %v33167_v17  ;;  %28314 = vmatmul.mubr.msk.f32.vlgmr.msra.gmra.mxu0 %vm1759_vm2, %v16381_v63  ;;  %28381 = vmatprep.subr.mxu1 %v25796_v8  ;;  %v25794_v17 = vld [vmem:[%s34858_s2 + $0x68] sm:$0xff] }
 0xa6b   : > { %v29280_v49 = vpop.eup %29279  ;;  %28322 = vmatpush3.msra.mxu0 %v13591_v33  ;;  %28323 = vmatprep.mubr.msk.f32.mxu0 %vm29533_vm1, %v34881_v41 }
 0xa6c   : > { %v16383_v13 = vmul.f32 %v29280_v49, %v33171_v54  ;;  %28329 = vmatmul.mubr.msk.f32.vlgmr.msra.gmra.mxu1 %vm1759_vm2, %v16384_v35  ;;  %v25793_v54 = vld [vmem:[%s34858_s2 + $0x60] sm:$0xff]  ;;  %28331 = vmatprep.subr.mxu0 %v25760_v36 }
 0xa6d   : > { %28382 = vmatpush3.msra.mxu1 %v25796_v8  ;;  %28389 = vmatprep.mubr.msk.f32.mxu1 %vm1200_vm0, %v33386_v42 }
 0xa6e   : > { %28383 = vmatprep.subr.mxu1 %v25795_v43  ;;  %28324 = vmatmul.mubr.msk.f32.vlgmr.msra.gmra.mxu0 %vm1759_vm2, %v16383_v13 }
 0xa6f   : > { %28384 = vmatpush3.msra.mxu1 %v25795_v43  ;;  %28332 = vmatpush3.msra.mxu0 %v25760_v36 }
 0xa70   : > { %28385 = vmatprep.subr.mxu1 %v25794_v17  ;;  %28437 = vmatprep.subr.mxu0 %v25834_v2 }
 0xa71   : > { %28386 = vmatpush3.msra.mxu1 %v25794_v17 }
 0xa72   : > { %28387 = vmatprep.subr.mxu1 %v25793_v54 }
 0xa73   : > { %28388 = vmatpush3.msra.mxu1 %v25793_v54 }
 0xa74   : > { %28390 = vmatmul.mubr.msk.f32.vlgmr.msra.gmra.mxu1 %vm1200_vm0, %v33398_v30  ;;  %28493 = vmatprep.subr.mxu1 %v34881_v41 }
 0xa75   : > { %28392 = vmatprep.mubr.msk.f32.mxu1 %vm1200_vm0, %v33403_v38 }
 0xa78   : > { %28393 = vmatmul.mubr.msk.f32.gmra.mxu1 %vm1200_vm0, %v33409_v27 }
 0xa79   : > { %28395 = vmatprep.mubr.msk.f32.mxu1 %vm1200_vm0, %v33414_v23 }
 0xa7c   : > { %28396 = vmatmul.mubr.msk.f32.gmra.mxu1 %vm1200_vm0, %v33419_v22 }
 0xa7d   : > { %28398 = vmatprep.mubr.msk.f32.mxu1 %vm1200_vm0, %v33424_v19 }
 0xa80   : > { %28399 = vmatmul.mubr.msk.f32.gmra.mxu1 %vm1200_vm0, %v33429_v57 }
 0xa81   : > { %28401 = vmatprep.mubr.msk.f32.mxu1 %vm1200_vm0, %v33434_v11 }
 0xa84   : > { %28402 = vmatmul.mubr.msk.f32.gmra.mxu1 %vm1200_vm0, %v33439_v10 }
 0xa85   : > { %28404 = vmatprep.mubr.msk.f32.mxu1 %vm1200_vm0, %v33444_v3 }
 0xa88   : > { %28405 = vmatmul.mubr.msk.f32.gmra.mxu1 %vm1200_vm0, %v33449_v53 }
 0xa89   : > { %28407 = vmatprep.mubr.msk.f32.mxu1 %vm1200_vm0, %v33454_v16 }
 0xa8c   : > { %28408 = vmatmul.mubr.msk.f32.gmra.mxu1 %vm1200_vm0, %v33459_v20 }
 0xa8d   : > { %28410 = vmatprep.mubr.msk.f32.mxu1 %vm1200_vm0, %v33464_v37 }
 0xa90   : > { %28411 = vmatmul.mubr.msk.f32.gmra.mxu1 %vm1200_vm0, %v33469_v40 }
 0xa91   : > { %28413 = vmatprep.mubr.msk.f32.mxu1 %vm1200_vm0, %v33474_v61 }
 0xa94   : > { %28414 = vmatmul.mubr.msk.f32.gmra.mxu1 %vm1200_vm0, %v33479_v47 }
 0xa95   : > { %28416 = vmatprep.mubr.msk.f32.mxu1 %vm1200_vm0, %v33484_v24 }
 0xa98   : > { %28417 = vmatmul.mubr.msk.f32.gmra.mxu1 %vm1200_vm0, %v33489_v52 }
 0xa99   : > { %28419 = vmatprep.mubr.msk.f32.mxu1 %vm1200_vm0, %v33494_v4 }
 0xa9c   : > { %28420 = vmatmul.mubr.msk.f32.gmra.mxu1 %vm1200_vm0, %v33499_v6 }
 0xa9d   : > { %28422 = vmatprep.mubr.msk.f32.mxu1 %vm1200_vm0, %v33504_v26 }
 0xaa0   : > { %28423 = vmatmul.mubr.msk.f32.gmra.mxu1 %vm1200_vm0, %v33509_v45 }
 0xaa1   : > { %28425 = vmatprep.mubr.msk.f32.mxu1 %vm1200_vm0, %v33514_v50 }
 0xaa4   : > { %28426 = vmatmul.mubr.msk.f32.gmra.mxu1 %vm1200_vm0, %v33519_v59 }
 0xaa5   : > { %28428 = vmatprep.mubr.msk.f32.mxu1 %vm1200_vm0, %v33524_v1 }
 0xaa8   : > { %28429 = vmatmul.mubr.msk.f32.gmra.mxu1 %vm1200_vm0, %v33529_v60 }
 0xaa9   : > { %28431 = vmatprep.mubr.msk.f32.mxu1 %vm1200_vm0, %v33534_v34 }
 0xaac   : > { %28432 = vmatmul.mubr.msk.f32.gmra.mxu1 %vm1200_vm0, %v33539_v7 }
 0xaad   : > { %28434 = vmatprep.mubr.msk.f32.mxu1 %vm1200_vm0, %v33547_v14 }
 0xab0   : > { %28435 = vmatmul.mubr.msk.f32.gmra.mxu1 %vm1200_vm0, %v33552_v48 }
 0xab1   : > { %28495 = vmatprep.mubr.msk.f32.mxu1 %vm29533_vm1, %v34881_v41 }
 0xaf0   : > { %v16527_v12 = vpop.f32.mrf.mxu1 }
 0xaf2   : > { %v16454_v55 = vpop.f32.mrf.mxu0  ;;  %v28180_v0 = vpop.f32.mrf.mxu1 }
 0xaf3   : > { %28333 = vmatprep.mubr.msk.f32.mxu0 %vm1759_vm2, %v16454_v55 }
 0xaf4   : > { %v28175_v46 = vpop.f32.mrf.mxu0  ;;  %v16673_v31 = vpop.f32.mrf.mxu1  ;;  %28334 = vmatmul.mubr.msk.f32.vlgmr.msra.gmra.mxu0 %vm1759_vm2, %v16527_v12 }
 0xaf5   : > { %28438 = vmatpush3.msra.mxu0 %v25834_v2 }
 0xaf6   : > { %v16600_v39 = vpop.f32.mrf.mxu0  ;;  %v28190_v18 = vpop.f32.mrf.mxu1  ;;  %28439 = vmatprep.subr.mxu0 %v25833_v56 }
 0xaf7   : > { %28336 = vmatprep.mubr.msk.f32.mxu0 %vm1759_vm2, %v16600_v39  ;;  %28440 = vmatpush3.msra.mxu0 %v25833_v56 }
 0xaf8   : > { %v28185_v32 = vpop.f32.mrf.mxu0  ;;  %v16819_v28 = vpop.f32.mrf.mxu1  ;;  %28337 = vmatmul.mubr.msk.f32.gmra.mxu0 %vm1759_vm2, %v16673_v31  ;;  %28441 = vmatprep.subr.mxu0 %v25832_v15 }
 0xaf9   : > { %28442 = vmatpush3.msra.mxu0 %v25832_v15 }
 0xafa   : > { %v16746_v58 = vpop.f32.mrf.mxu0  ;;  %v28200_v51 = vpop.f32.mrf.mxu1  ;;  %28443 = vmatprep.subr.mxu0 %v25831_v9 }
 0xafb   : > { %28339 = vmatprep.mubr.msk.f32.mxu0 %vm1759_vm2, %v16746_v58  ;;  %28444 = vmatpush3.msra.mxu0 %v25831_v9 }
 0xafc   : > { %v28195_v29 = vpop.f32.mrf.mxu0  ;;  %v16965_v62 = vpop.f32.mrf.mxu1  ;;  %28340 = vmatmul.mubr.msk.f32.gmra.mxu0 %vm1759_vm2, %v16819_v28  ;;  %28568 = vmatprep.subr.mxu0 %v34881_v41 }
 0xafe   : > { %v16892_v21 = vpop.f32.mrf.mxu0  ;;  %v28210_v8 = vpop.f32.mrf.mxu1 }
 0xaff   : > { %28342 = vmatprep.mubr.msk.f32.mxu0 %vm1759_vm2, %v16892_v21 }
 0xb00   : > { %v28205_v63 = vpop.f32.mrf.mxu0  ;;  %v17111_v5 = vpop.f32.mrf.mxu1  ;;  %28343 = vmatmul.mubr.msk.f32.gmra.mxu0 %vm1759_vm2, %v16965_v62 }
 0xb02   : > { %v17038_v44 = vpop.f32.mrf.mxu0  ;;  %v28220_v33 = vpop.f32.mrf.mxu1 }
 0xb03   : > { %28345 = vmatprep.mubr.msk.f32.mxu0 %vm1759_vm2, %v17038_v44 }
 0xb04   : > { %v28215_v25 = vpop.f32.mrf.mxu0  ;;  %v17257_v35 = vpop.f32.mrf.mxu1  ;;  %28346 = vmatmul.mubr.msk.f32.gmra.mxu0 %vm1759_vm2, %v17111_v5 }
 0xb06   : > { %v17184_v49 = vpop.f32.mrf.mxu0  ;;  %v28230_v43 = vpop.f32.mrf.mxu1 }
 0xb07   : > { %28348 = vmatprep.mubr.msk.f32.mxu0 %vm1759_vm2, %v17184_v49 }
 0xb08   : > { %v28225_v13 = vpop.f32.mrf.mxu0  ;;  %v17403_v17 = vpop.f32.mrf.mxu1  ;;  %28349 = vmatmul.mubr.msk.f32.gmra.mxu0 %vm1759_vm2, %v17257_v35 }
 0xb0a   : > { %v17330_v54 = vpop.f32.mrf.mxu0  ;;  %v28240_v36 = vpop.f32.mrf.mxu1 }
 0xb0b   : > { %28351 = vmatprep.mubr.msk.f32.mxu0 %vm1759_vm2, %v17330_v54 }
 0xb0c   : > { %v28235_v2 = vpop.f32.mrf.mxu0  ;;  %v17549_v12 = vpop.f32.mrf.mxu1  ;;  %28352 = vmatmul.mubr.msk.f32.gmra.mxu0 %vm1759_vm2, %v17403_v17 }
 0xb0e   : > { %v17476_v55 = vpop.f32.mrf.mxu0  ;;  %v28250_v0 = vpop.f32.mrf.mxu1 }
 0xb0f   : > { %28354 = vmatprep.mubr.msk.f32.mxu0 %vm1759_vm2, %v17476_v55 }
 0xb10   : > { %v28245_v56 = vpop.f32.mrf.mxu0  ;;  %v17695_v46 = vpop.f32.mrf.mxu1  ;;  %28355 = vmatmul.mubr.msk.f32.gmra.mxu0 %vm1759_vm2, %v17549_v12 }
 0xb12   : > { %v17622_v31 = vpop.f32.mrf.mxu0  ;;  %v28260_v15 = vpop.f32.mrf.mxu1 }
 0xb13   : > { %28357 = vmatprep.mubr.msk.f32.mxu0 %vm1759_vm2, %v17622_v31  ;;  %v1029_v15 = vld [vmem:[%s30068_s18 + $0x300] sm:$0xff] }
 0xb14   : > { %v28255_v39 = vpop.f32.mrf.mxu0  ;;  %v17841_v18 = vpop.f32.mrf.mxu1  ;;  %28358 = vmatmul.mubr.msk.f32.gmra.mxu0 %vm1759_vm2, %v17695_v46 }
 0xb15   : > { %v33610_v39 = vld [vmem:[%s34860_s4 + $0x3] ss:$0 sm:$0xff] }
 0xb16   : > { %v17768_v9 = vpop.f32.mrf.mxu0  ;;  %v28270_v32 = vpop.f32.mrf.mxu1 }
 0xb17   : > { %28360 = vmatprep.mubr.msk.f32.mxu0 %vm1759_vm2, %v17768_v9  ;;  %v1157_v32 = vmul.f32 0.35355338, %v1029_v15 }
 0xb18   : > { %v28265_v28 = vpop.f32.mrf.mxu0  ;;  %v17987_v58 = vpop.f32.mrf.mxu1  ;;  %28361 = vmatmul.mubr.msk.f32.gmra.mxu0 %vm1759_vm2, %v17841_v18 }
 0xb1a   : > { %v17914_v51 = vpop.f32.mrf.mxu0  ;;  %v28280_v29 = vpop.f32.mrf.mxu1 }
 0xb1b   : > { %28363 = vmatprep.mubr.msk.f32.mxu0 %vm1759_vm2, %v17914_v51 }
 0xb1c   : > { %v28275_v62 = vpop.f32.mrf.mxu0  ;;  %v18133_v21 = vpop.f32.mrf.mxu1  ;;  %28364 = vmatmul.mubr.msk.f32.gmra.mxu0 %vm1759_vm2, %v17987_v58 }
 0xb1e   : > { %v18060_v8 = vpop.f32.mrf.mxu0  ;;  %v28290_v63 = vpop.f32.mrf.mxu1 }
 0xb1f   : > { %28366 = vmatprep.mubr.msk.f32.mxu0 %vm1759_vm2, %v18060_v8 }
 0xb20   : > { %v28285_v5 = vpop.f32.mrf.mxu0  ;;  %v18279_v44 = vpop.f32.mrf.mxu1  ;;  %28367 = vmatmul.mubr.msk.f32.gmra.mxu0 %vm1759_vm2, %v18133_v21  ;;  %v1032_v21 = vld [vmem:[%s30068_s18 + $0x318] sm:$0xff] }
 0xb22   : > { %v18206_v33 = vpop.f32.mrf.mxu0  ;;  %v28300_v25 = vpop.f32.mrf.mxu1 }
 0xb23   : > { %28369 = vmatprep.mubr.msk.f32.mxu0 %vm1759_vm2, %v18206_v33 }
 0xb24   : > { %v28295_v35 = vpop.f32.mrf.mxu0  ;;  %v18425_v49 = vpop.f32.mrf.mxu1  ;;  %28370 = vmatmul.mubr.msk.f32.gmra.mxu0 %vm1759_vm2, %v18279_v44 }
 0xb26   : > { %v18352_v43 = vpop.f32.mrf.mxu0  ;;  %v28310_v13 = vpop.f32.mrf.mxu1 }
 0xb27   : > { %28372 = vmatprep.mubr.msk.f32.mxu0 %vm1759_vm2, %v18352_v43 }
 0xb28   : > { %v28305_v17 = vpop.f32.mrf.mxu0  ;;  %v18571_v54 = vpop.f32.mrf.mxu1  ;;  %28373 = vmatmul.mubr.msk.f32.gmra.mxu0 %vm1759_vm2, %v18425_v49 }
 0xb2a   : > { %v18498_v36 = vpop.f32.mrf.mxu0  ;;  %v28320_v2 = vpop.f32.mrf.mxu1 }
 0xb2b   : > { %28375 = vmatprep.mubr.msk.f32.mxu0 %vm1759_vm2, %v18498_v36 }
 0xb2c   : > { %v28315_v12 = vpop.f32.mrf.mxu0  ;;  %v18717_v55 = vpop.f32.mrf.mxu1  ;;  %28376 = vmatmul.mubr.msk.f32.gmra.mxu0 %vm1759_vm2, %v18571_v54 }
 0xb2e   : > { %v18644_v0 = vpop.f32.mrf.mxu0  ;;  %v28330_v56 = vpop.f32.mrf.mxu1 }
 0xb2f   : > { %28378 = vmatprep.mubr.msk.f32.mxu0 %vm1759_vm2, %v18644_v0 }
 0xb30   : > { %v28325_v46 = vpop.f32.mrf.mxu0  ;;  %28379 = vmatmul.mubr.msk.f32.gmra.mxu0 %vm1759_vm2, %v18717_v55 }
 0xb31   : > { %28445 = vmatprep.mubr.msk.f32.mxu0 %vm1200_vm0, %v33386_v42 }
 0xb34   : > { %v28391_v31 = vpop.f32.mrf.mxu1  ;;  %28446 = vmatmul.mubr.msk.f32.vlgmr.msra.gmra.mxu0 %vm1200_vm0, %v33398_v30  ;;  %v1030_v30 = vld [vmem:[%s30068_s18 + $0x308] sm:$0xff] }
 0xb35   : > { %28448 = vmatprep.mubr.msk.f32.mxu0 %vm1200_vm0, %v33403_v38  ;;  %v19161_v28 = vadd.f32 %v28391_v31, %v33610_v39 }
 0xb36   : > { %v19155_v18 = vpop.f32.mrf.mxu1 }
 0xb37   : > { %v19156_v9 = vadd.f32 %v33610_v39, %v19155_v18 }
 0xb38   : > { %28449 = vmatmul.mubr.msk.f32.gmra.mxu0 %vm1200_vm0, %v33409_v27  ;;  %v28394_v42 = vpop.f32.mrf.mxu1  ;;  %v1158_v27 = vmul.f32 0.35355338, %v1030_v30 }
 0xb39   : > { %28494 = vmatpush3.xpose.msk.msra.mxu1 %vm1759_vm2, %v19156_v9  ;;  %28451 = vmatprep.mubr.msk.f32.mxu0 %vm1200_vm0, %v33414_v23  ;;  %v1031_v23 = vld [vmem:[%s30068_s18 + $0x310] sm:$0xff]  ;;  %v19171_v8 = vadd.f32 %v28394_v42, %v33610_v39  ;;  %v1040_v9 = vld [vmem:[%s30068_s18 + $0x358] sm:$0xff] }
 0xb3a   : > { %28498 = vmatprep.subr.mxu1 %v34881_v41  ;;  %v19165_v38 = vpop.f32.mrf.mxu1 }
 0xb3b   : > { %v19166_v29 = vadd.f32 %v33610_v39, %v19165_v38 }
 0xb3c   : > { %28496 = vmatmul.mubr.msk.f32.vlgmr.msra.gmra.mxu1 %vm1759_vm2, %v1157_v32  ;;  %28452 = vmatmul.mubr.msk.f32.gmra.mxu0 %vm1200_vm0, %v33419_v22  ;;  %v28397_v58 = vpop.f32.mrf.mxu1  ;;  %v1159_v22 = vmul.f32 0.35355338, %v1031_v23 }
 0xb3d   : > { %28499 = vmatpush3.xpose.msk.msra.mxu1 %vm1759_vm2, %v19161_v28  ;;  %28500 = vmatprep.mubr.msk.f32.mxu1 %vm29533_vm1, %v34881_v41  ;;  %v19181_v35 = vadd.f32 %v28397_v58, %v33610_v39 }
 0xb3e   : > { %28454 = vmatprep.mubr.msk.f32.mxu0 %vm1200_vm0, %v33424_v19  ;;  %28503 = vmatprep.subr.mxu1 %v34881_v41  ;;  %v19175_v51 = vpop.f32.mrf.mxu1 }
 0xb3f   : > { %v19176_v44 = vadd.f32 %v33610_v39, %v19175_v51 }
 0xb40   : > { %28501 = vmatmul.mubr.msk.f32.vlgmr.msra.gmra.mxu1 %vm1759_vm2, %v1158_v27  ;;  %28455 = vmatmul.mubr.msk.f32.gmra.mxu0 %vm1200_vm0, %v33429_v57  ;;  %v28400_v62 = vpop.f32.mrf.mxu1  ;;  %v1160_v57 = vmul.f32 0.35355338, %v1032_v21  ;;  %v1044_v27 = vld [vmem:[%s30068_s18 + $0x378] sm:$0xff] }
 0xb41   : > { %28504 = vmatpush3.xpose.msk.msra.mxu1 %vm1759_vm2, %v19166_v29  ;;  %28505 = vmatprep.mubr.msk.f32.mxu1 %vm29533_vm1, %v34881_v41  ;;  %v1172_v23 = vmul.f32 0.35355338, %v1044_v27  ;;  %v1046_v29 = vld [vmem:[%s30068_s18 + $0x388] sm:$0xff] }
 0xb42   : > { %28457 = vmatprep.mubr.msk.f32.mxu0 %vm1200_vm0, %v33434_v11  ;;  %28508 = vmatprep.subr.mxu1 %v34881_v41  ;;  %v19185_v19 = vpop.f32.mrf.mxu1  ;;  %v1033_v11 = vld [vmem:[%s30068_s18 + $0x320] sm:$0xff]  ;;  %v1174_v21 = vmul.f32 0.35355338, %v1046_v29 }
 0xb43   : > { %v19186_v13 = vadd.f32 %v33610_v39, %v19185_v19 }
 0xb44   : > { %28506 = vmatmul.mubr.msk.f32.vlgmr.msra.gmra.mxu1 %vm1759_vm2, %v1159_v22  ;;  %28458 = vmatmul.mubr.msk.f32.gmra.mxu0 %vm1200_vm0, %v33439_v10  ;;  %v33646_v63 = vpop.f32.mrf.mxu1  ;;  %v1161_v10 = vmul.f32 0.35355338, %v1033_v11 }
 0xb45   : > { %28509 = vmatpush3.xpose.msk.msra.mxu1 %vm1759_vm2, %v19171_v8  ;;  %28510 = vmatprep.mubr.msk.f32.mxu1 %vm29533_vm1, %v34881_v41  ;;  %v19201_v46 = vadd.f32 %v33646_v63, %v33610_v39  ;;  %v1047_v8 = vld [vmem:[%s30068_s18 + $0x390] sm:$0xff] }
 0xb46   : > { %28460 = vmatprep.mubr.msk.f32.mxu0 %vm1200_vm0, %v33444_v3  ;;  %28513 = vmatprep.subr.mxu1 %v34881_v41  ;;  %v19195_v5 = vpop.f32.mrf.mxu1  ;;  %v1034_v3 = vld [vmem:[%s30068_s18 + $0x328] sm:$0xff] }
 0xb47   : > { %v19196_v0 = vadd.f32 %v33610_v39, %v19195_v5  ;;  %v1175_v5 = vmul.f32 0.35355338, %v1047_v8 }
 0xb48   : > { %28511 = vmatmul.mubr.msk.f32.vlgmr.msra.gmra.mxu1 %vm1759_vm2, %v1160_v57  ;;  %28461 = vmatmul.mubr.msk.f32.gmra.mxu0 %vm1200_vm0, %v33449_v53  ;;  %v33659_v33 = vpop.f32.mrf.mxu1  ;;  %v1162_v53 = vmul.f32 0.35355338, %v1034_v3  ;;  %v1048_v57 = vld [vmem:[%s30068_s18 + $0x398] sm:$0xff]  ;;  %v1050_v3 = vld [vmem:[%s30068_s18 + $0x3a8] sm:$0xff] }
 0xb49   : > { %28514 = vmatpush3.xpose.msk.msra.mxu1 %vm1759_vm2, %v19176_v44  ;;  %28515 = vmatprep.mubr.msk.f32.mxu1 %vm29533_vm1, %v34881_v41  ;;  %v1176_v44 = vmul.f32 0.35355338, %v1048_v57 }
 0xb4a   : > { %28463 = vmatprep.mubr.msk.f32.mxu0 %vm1200_vm0, %v33454_v16  ;;  %28518 = vmatprep.subr.mxu1 %v34881_v41  ;;  %v19205_v25 = vpop.f32.mrf.mxu1  ;;  %v1035_v16 = vld [vmem:[%s30068_s18 + $0x330] sm:$0xff] }
 0xb4b   : > { %v19206_v15 = vadd.f32 %v33610_v39, %v19205_v25 }
 0xb4c   : > { %28516 = vmatmul.mubr.msk.f32.vlgmr.msra.gmra.mxu1 %vm1759_vm2, %v1161_v10  ;;  %28464 = vmatmul.mubr.msk.f32.gmra.mxu0 %vm1200_vm0, %v33459_v20  ;;  %v33672_v49 = vpop.f32.mrf.mxu1  ;;  %v1163_v20 = vmul.f32 0.35355338, %v1035_v16 }
 0xb4d   : > { %28519 = vmatpush3.xpose.msk.msra.mxu1 %vm1759_vm2, %v19181_v35  ;;  %28520 = vmatprep.mubr.msk.f32.mxu1 %vm29533_vm1, %v34881_v41  ;;  %v19221_v38 = vadd.f32 %v33672_v49, %v33610_v39  ;;  %v1178_v49 = vmul.f32 0.35355338, %v1050_v3 }
 0xb4e   : > { %28466 = vmatprep.mubr.msk.f32.mxu0 %vm1200_vm0, %v33464_v37  ;;  %28523 = vmatprep.subr.mxu1 %v34881_v41  ;;  %v33681_v43 = vpop.f32.mrf.mxu1  ;;  %v1036_v37 = vld [vmem:[%s30068_s18 + $0x338] sm:$0xff] }
 0xb4f   : > { %v1164_v2 = vmul.f32 0.35355338, %v1036_v37  ;;  %v19216_v32 = vadd.f32 %v33610_v39, %v33681_v43  ;;  %v1051_v43 = vld [vmem:[%s30068_s18 + $0x3b0] sm:$0xff] }
 0xb50   : > { %28521 = vmatmul.mubr.msk.f32.vlgmr.msra.gmra.mxu1 %vm1759_vm2, %v1162_v53  ;;  %28467 = vmatmul.mubr.msk.f32.gmra.mxu0 %vm1200_vm0, %v33469_v40  ;;  %v28412_v17 = vpop.f32.mrf.mxu1  ;;  %v19191_v40 = vadd.f32 %v28400_v62, %v33610_v39  ;;  %v1179_v37 = vmul.f32 0.35355338, %v1051_v43 }
 0xb51   : > { %28524 = vmatpush3.xpose.msk.msra.mxu1 %vm1759_vm2, %v19186_v13  ;;  %28525 = vmatprep.mubr.msk.f32.mxu1 %vm29533_vm1, %v34881_v41  ;;  %v19231_v54 = vadd.f32 %v28412_v17, %v33610_v39  ;;  %v1052_v13 = vld [vmem:[%s30068_s18 + $0x3b8] sm:$0xff] }
 0xb52   : > { %28469 = vmatprep.mubr.msk.f32.mxu0 %vm1200_vm0, %v33474_v61  ;;  %28528 = vmatprep.subr.mxu1 %v34881_v41  ;;  %v33695_v36 = vpop.f32.mrf.mxu1  ;;  %v1037_v61 = vld [vmem:[%s30068_s18 + $0x340] sm:$0xff] }
 0xb53   : > { %28569 = vmatpush3.xpose.msk.msra.mxu0 %vm1759_vm2, %v19231_v54  ;;  %v1180_v54 = vmul.f32 0.35355338, %v1052_v13  ;;  %v35095_v13 = vld [vmem:[#allocation27_spill] sm:$0xff] }
 0xb54   : > { %28526 = vmatmul.mubr.msk.f32.vlgmr.msra.gmra.mxu1 %vm1759_vm2, %v1163_v20  ;;  %28470 = vmatmul.mubr.msk.f32.gmra.mxu0 %vm1200_vm0, %v33479_v47  ;;  %v33702_v12 = vpop.f32.mrf.mxu1  ;;  %v1165_v47 = vmul.f32 0.35355338, %v1037_v61 }
 0xb55   : > { %28529 = vmatpush3.xpose.msk.msra.mxu1 %vm1759_vm2, %v19191_v40  ;;  %28530 = vmatprep.mubr.msk.f32.mxu1 %vm29533_vm1, %v34881_v41  ;;  %v1053_v40 = vld [vmem:[%s30068_s18 + $0x3c0] sm:$0xff] }
 0xb56   : > { %28472 = vmatprep.mubr.msk.f32.mxu0 %vm1200_vm0, %v33484_v24  ;;  %28533 = vmatprep.subr.mxu1 %v34881_v41  ;;  %v33711_v55 = vpop.f32.mrf.mxu1  ;;  %v1038_v24 = vld [vmem:[%s30068_s18 + $0x348] sm:$0xff] }
 0xb57   : > { %28578 = vmatprep.subr.mxu0 %v34881_v41  ;;  %v19236_v22 = vadd.f32 %v33610_v39, %v33711_v55  ;;  %v1181_v55 = vmul.f32 0.35355338, %v1053_v40  ;;  %v35099_v40 = vld [vmem:[#allocation8_spill] sm:$0xff] }
 0xb58   : > { %28531 = vmatmul.mubr.msk.f32.vlgmr.msra.gmra.mxu1 %vm1759_vm2, %v1164_v2  ;;  %28473 = vmatmul.mubr.msk.f32.gmra.mxu0 %vm1200_vm0, %v33489_v52  ;;  %v33718_v56 = vpop.f32.mrf.mxu1  ;;  %v1166_v52 = vmul.f32 0.35355338, %v1038_v24  ;;  %v1054_v2 = vld [vmem:[%s30068_s18 + $0x3c8] sm:$0xff]  ;;  %v1056_v24 = vld [vmem:[%s30068_s18 + $0x3d8] sm:$0xff] }
 0xb59   : > { %28534 = vmatpush3.xpose.msk.msra.mxu1 %vm1759_vm2, %v19196_v0  ;;  %28535 = vmatprep.mubr.msk.f32.mxu1 %vm29533_vm1, %v34881_v41  ;;  %v19251_v63 = vadd.f32 %v33718_v56, %v33610_v39  ;;  %v1182_v0 = vmul.f32 0.35355338, %v1054_v2  ;;  %v1055_v56 = vld [vmem:[%s30068_s18 + $0x3d0] sm:$0xff]  ;;  %v35100_v2 = vld [vmem:[#allocation47_spill] sm:$0xff] }
 0xb5a   : > { %28475 = vmatprep.mubr.msk.f32.mxu0 %vm1200_vm0, %v33494_v4  ;;  %28538 = vmatprep.subr.mxu1 %v34881_v41  ;;  %v33732_v31 = vpop.f32.mrf.mxu1  ;;  %v1039_v4 = vld [vmem:[%s30068_s18 + $0x350] sm:$0xff] }
 0xb5b   : > { %v19246_v11 = vadd.f32 %v33610_v39, %v33732_v31 }
 0xb5c   : > { %28536 = vmatmul.mubr.msk.f32.vlgmr.msra.gmra.mxu1 %vm1759_vm2, %v1165_v47  ;;  %28476 = vmatmul.mubr.msk.f32.gmra.mxu0 %vm1200_vm0, %v33499_v6  ;;  %v1167_v6 = vmul.f32 0.35355338, %v1039_v4  ;;  %v33745_v18 = vpop.f32.mrf.mxu1  ;;  %v1183_v4 = vmul.f32 0.35355338, %v1055_v56  ;;  %v35104_v56 = vld [vmem:[#allocation14_spill] sm:$0xff] }
 0xb5d   : > { %28539 = vmatpush3.xpose.msk.msra.mxu1 %vm1759_vm2, %v19201_v46  ;;  %28540 = vmatprep.mubr.msk.f32.mxu1 %vm29533_vm1, %v34881_v41  ;;  %v19261_v25 = vadd.f32 %v33745_v18, %v33610_v39  ;;  %v1058_v18 = vld [vmem:[%s30068_s18 + $0x3e8] sm:$0xff] }
 0xb5e   : > { %28478 = vmatprep.mubr.msk.f32.mxu0 %vm1200_vm0, %v33504_v26  ;;  %28543 = vmatprep.subr.mxu1 %v34881_v41  ;;  %v19211_v26 = vadd.f32 %v33659_v33, %v33610_v39  ;;  %v33759_v42 = vpop.f32.mrf.mxu1  ;;  %v1049_v33 = vld [vmem:[%s30068_s18 + $0x3a0] sm:$0xff] }
 0xb5f   : > { %v19256_v35 = vadd.f32 %v33610_v39, %v33759_v42  ;;  %v1177_v53 = vmul.f32 0.35355338, %v1049_v33 }
 0xb60   : > { %28541 = vmatmul.mubr.msk.f32.vlgmr.msra.gmra.mxu1 %vm1759_vm2, %v1166_v52  ;;  %28479 = vmatmul.mubr.msk.f32.gmra.mxu0 %vm1200_vm0, %v33509_v45  ;;  %v1168_v45 = vmul.f32 0.35355338, %v1040_v9  ;;  %v33773_v30 = vpop.f32.mrf.mxu1 }
 0xb61   : > { %28544 = vmatpush3.xpose.msk.msra.mxu1 %vm1759_vm2, %v19206_v15  ;;  %28545 = vmatprep.mubr.msk.f32.mxu1 %vm29533_vm1, %v34881_v41  ;;  %v19271_v20 = vadd.f32 %v33773_v30, %v33610_v39  ;;  %v1184_v15 = vmul.f32 0.35355338, %v1056_v24 }
 0xb62   : > { %28481 = vmatprep.mubr.msk.f32.mxu0 %vm1200_vm0, %v33514_v50  ;;  %28548 = vmatprep.subr.mxu1 %v34881_v41  ;;  %v1041_v50 = vld [vmem:[%s30068_s18 + $0x360] sm:$0xff]  ;;  %v33787_v28 = vpop.f32.mrf.mxu1 }
 0xb63   : > { %v19266_v17 = vadd.f32 %v33610_v39, %v33787_v28  ;;  %v35076_v28 = vld [vmem:[#allocation35_spill] sm:$0xff] }
 0xb64   : > { %28546 = vmatmul.mubr.msk.f32.vlgmr.msra.gmra.mxu1 %vm1759_vm2, %v1167_v6  ;;  %28482 = vmatmul.mubr.msk.f32.gmra.mxu0 %vm1200_vm0, %v33519_v59  ;;  %v1169_v59 = vmul.f32 0.35355338, %v1041_v50  ;;  %v33802_v51 = vpop.f32.mrf.mxu1  ;;  %v1057_v6 = vld [vmem:[%s30068_s18 + $0x3e0] sm:$0xff]  ;;  %v1186_v50 = vmul.f32 0.35355338, %v1058_v18 }
 0xb65   : > { %28549 = vmatpush3.xpose.msk.msra.mxu1 %vm1759_vm2, %v19211_v26  ;;  %28550 = vmatprep.mubr.msk.f32.mxu1 %vm29533_vm1, %v34881_v41  ;;  %v1185_v42 = vmul.f32 0.35355338, %v1057_v6 }
 0xb66   : > { %28484 = vmatprep.mubr.msk.f32.mxu0 %vm1200_vm0, %v33524_v1  ;;  %28553 = vmatprep.subr.mxu1 %v34881_v41  ;;  %v1042_v1 = vld [vmem:[%s30068_s18 + $0x368] sm:$0xff]  ;;  %v19275_v19 = vpop.f32.mrf.mxu1 }
 0xb67   : > { %v19276_v61 = vadd.f32 %v33610_v39, %v19275_v19 }
 0xb68   : > { %28551 = vmatmul.mubr.msk.f32.vlgmr.msra.gmra.mxu1 %vm1759_vm2, %v1168_v45  ;;  %28485 = vmatmul.mubr.msk.f32.gmra.mxu0 %vm1200_vm0, %v33529_v60  ;;  %v1170_v60 = vmul.f32 0.35355338, %v1042_v1  ;;  %v28430_v10 = vpop.f32.mrf.mxu1 }
 0xb69   : > { %28554 = vmatpush3.xpose.msk.msra.mxu1 %vm1759_vm2, %v19216_v32  ;;  %28555 = vmatprep.mubr.msk.f32.mxu1 %vm29533_vm1, %v34881_v41  ;;  %v19291_v46 = vadd.f32 %v28430_v10, %v33610_v39  ;;  %v1059_v32 = vld [vmem:[%s30068_s18 + $0x3f0] sm:$0xff] }
 0xb6a   : > { %28487 = vmatprep.mubr.msk.f32.mxu0 %vm1200_vm0, %v33534_v34  ;;  %28558 = vmatprep.subr.mxu1 %v34881_v41  ;;  %v1043_v34 = vld [vmem:[%s30068_s18 + $0x370] sm:$0xff]  ;;  %v19285_v16 = vpop.f32.mrf.mxu1 }
 0xb6b   : > { %v1171_v58 = vmul.f32 0.35355338, %v1043_v34  ;;  %v19286_v52 = vadd.f32 %v33610_v39, %v19285_v16 }
 0xb6c   : > { %28556 = vmatmul.mubr.msk.f32.vlgmr.msra.gmra.mxu1 %vm1759_vm2, %v1169_v59  ;;  %28488 = vmatmul.mubr.msk.f32.gmra.mxu0 %vm1200_vm0, %v33539_v7  ;;  %v19226_v7 = vadd.f32 %v33610_v39, %v33695_v36  ;;  %v28433_v36 = vpop.f32.mrf.mxu1  ;;  %v1060_v59 = vld [vmem:[%s30068_s18 + $0x3f8] sm:$0xff] }
 0xb6d   : > { %28559 = vmatpush3.xpose.msk.msra.mxu1 %vm1759_vm2, %v19221_v38  ;;  %28560 = vmatprep.mubr.msk.f32.mxu1 %vm29533_vm1, %v34881_v41  ;;  %v19301_v9 = vadd.f32 %v28433_v36, %v33610_v39  ;;  %v1187_v38 = vmul.f32 0.35355338, %v1059_v32 }
 0xb6e   : > { %28490 = vmatprep.mubr.msk.f32.mxu0 %vm1200_vm0, %v33547_v14  ;;  %28563 = vmatprep.subr.mxu1 %v34881_v41  ;;  %v1045_v14 = vld [vmem:[%s30068_s18 + $0x380] sm:$0xff]  ;;  %v19295_v47 = vpop.f32.mrf.mxu1 }
 0xb6f   : > { %v1173_v62 = vmul.f32 0.35355338, %v1045_v14  ;;  %v19296_v26 = vadd.f32 %v33610_v39, %v19295_v47  ;;  %v35103_v47 = vld [vmem:[#allocation30_spill] sm:$0xff] }
 0xb70   : > { %28561 = vmatmul.mubr.msk.f32.vlgmr.msra.gmra.mxu1 %vm1759_vm2, %v1170_v60  ;;  %28491 = vmatmul.mubr.msk.f32.gmra.mxu0 %vm1200_vm0, %v33552_v48  ;;  %v19241_v48 = vadd.f32 %v33702_v12, %v33610_v39  ;;  %v19281_v12 = vadd.f32 %v33802_v51, %v33610_v39  ;;  %v28436_v31 = vpop.f32.mrf.mxu1  ;;  %v1188_v60 = vmul.f32 0.35355338, %v1060_v59  ;;  %v35080_v51 = vld [vmem:[#allocation37_spill] sm:$0xff]  ;;  %v13040_v24 = vadd.f32 %v35104_v56, %v35103_v47 }
 0xb71   : > { %28564 = vmatpush3.xpose.msk.msra.mxu1 %vm1759_vm2, %v19226_v7  ;;  %28565 = vmatprep.mubr.msk.f32.mxu1 %vm29533_vm1, %v34881_v41  ;;  %v19311_v30 = vadd.f32 %v28436_v31, %v33610_v39  ;;  %v35136_v47 = vld [vmem:[#allocation65_spill] sm:$0xff] }
 0xb72   : > { %28570 = vmatprep.mubr.msk.f32.mxu0 %vm29533_vm1, %v34881_v41  ;;  %28573 = vmatprep.subr.mxu1 %v34881_v41  ;;  %v19305_v45 = vpop.f32.mrf.mxu1 }
 0xb73   : > { %v19306_v1 = vadd.f32 %v33610_v39, %v19305_v45  ;;  %v35075_v39 = vld [vmem:[#allocation17_spill] sm:$0xff] }
 0xb74   : > { %28566 = vmatmul.mubr.msk.f32.vlgmr.msra.gmra.mxu1 %vm1759_vm2, %v1171_v58  ;;  %28571 = vmatmul.mubr.msk.f32.vlgmr.msra.gmra.mxu0 %vm1759_vm2, %v1172_v23  ;;  %v12970_v34 = vadd.f32 %v35076_v28, %v35075_v39  ;;  %v35079_v23 = vld [vmem:[#allocation21_spill] sm:$0xff] }
 0xb75   : > { %28574 = vmatpush3.xpose.msk.msra.mxu1 %vm1759_vm2, %v19236_v22  ;;  %28579 = vmatpush3.xpose.msk.msra.mxu0 %vm1759_vm2, %v19241_v48  ;;  %v12980_v14 = vadd.f32 %v35080_v51, %v35079_v23  ;;  %v35111_v45 = vld [vmem:[#allocation33_spill] sm:$0xff]  ;;  %v35120_v23 = vld [vmem:[#allocation31_spill] sm:$0xff] }
 0xb76   : > { %28575 = vmatprep.mubr.msk.f32.mxu1 %vm29533_vm1, %v34881_v41  ;;  %28580 = vmatprep.mubr.msk.f32.mxu0 %vm29533_vm1, %v34881_v41 }
 0xb77   : > { %28583 = vmatprep.subr.mxu1 %v34881_v41  ;;  %28588 = vmatprep.subr.mxu0 %v34881_v41 }
 0xb78   : > { %28576 = vmatmul.mubr.msk.f32.vlgmr.msra.gmra.mxu1 %vm1759_vm2, %v1173_v62  ;;  %28581 = vmatmul.mubr.msk.f32.vlgmr.msra.gmra.mxu0 %vm1759_vm2, %v1174_v21  ;;  %v35083_v62 = vld [vmem:[#allocation3_spill] sm:$0xff] }
 0xb79   : > { %28584 = vmatpush3.xpose.msk.msra.mxu1 %vm1759_vm2, %v19246_v11  ;;  %28589 = vmatpush3.xpose.msk.msra.mxu0 %vm1759_vm2, %v19251_v63  ;;  %v35084_v21 = vld [vmem:[#allocation39_spill] sm:$0xff]  ;;  %v35087_v11 = vld [vmem:[#allocation24_spill] sm:$0xff] }
 0xb7a   : > { %28585 = vmatprep.mubr.msk.f32.mxu1 %vm29533_vm1, %v34881_v41  ;;  %28590 = vmatprep.mubr.msk.f32.mxu0 %vm29533_vm1, %v34881_v41  ;;  %v12990_v19 = vadd.f32 %v35084_v21, %v35083_v62  ;;  %v35123_v21 = vld [vmem:[#allocation54_spill] sm:$0xff] }
 0xb7b   : > { %28593 = vmatprep.subr.mxu1 %v34881_v41  ;;  %28598 = vmatprep.subr.mxu0 %v34881_v41 }
 0xb7c   : > { %28586 = vmatmul.mubr.msk.f32.vlgmr.msra.gmra.mxu1 %vm1759_vm2, %v1175_v5  ;;  %28591 = vmatmul.mubr.msk.f32.vlgmr.msra.gmra.mxu0 %vm1759_vm2, %v1176_v44  ;;  %v35088_v5 = vld [vmem:[#allocation41_spill] sm:$0xff] }
 0xb7d   : > { %28594 = vmatpush3.xpose.msk.msra.mxu1 %vm1759_vm2, %v19256_v35  ;;  %28599 = vmatpush3.xpose.msk.msra.mxu0 %vm1759_vm2, %v19261_v25  ;;  %v13000_v44 = vadd.f32 %v35088_v5, %v35087_v11  ;;  %v35091_v25 = vld [vmem:[#allocation20_spill] sm:$0xff]  ;;  %v35092_v35 = vld [vmem:[#allocation43_spill] sm:$0xff] }
 0xb7e   : > { %28595 = vmatprep.mubr.msk.f32.mxu1 %vm29533_vm1, %v34881_v41  ;;  %28600 = vmatprep.mubr.msk.f32.mxu0 %vm29533_vm1, %v34881_v41 }
 0xb7f   : > { %28603 = vmatprep.subr.mxu1 %v34881_v41  ;;  %28608 = vmatprep.subr.mxu0 %v34881_v41 }
 0xb80   : > { %28596 = vmatmul.mubr.msk.f32.vlgmr.msra.gmra.mxu1 %vm1759_vm2, %v1177_v53  ;;  %28601 = vmatmul.mubr.msk.f32.vlgmr.msra.gmra.mxu0 %vm1759_vm2, %v1178_v49  ;;  %v13010_v53 = vadd.f32 %v35092_v35, %v35091_v25  ;;  %v35128_v25 = vld [vmem:[#allocation53_spill] sm:$0xff] }
 0xb81   : > { %28604 = vmatpush3.xpose.msk.msra.mxu1 %vm1759_vm2, %v19266_v17  ;;  %28609 = vmatpush3.xpose.msk.msra.mxu0 %vm1759_vm2, %v19271_v20  ;;  %v35096_v20 = vld [vmem:[#allocation45_spill] sm:$0xff] }
 0xb82   : > { %28605 = vmatprep.mubr.msk.f32.mxu1 %vm29533_vm1, %v34881_v41  ;;  %28610 = vmatprep.mubr.msk.f32.mxu0 %vm29533_vm1, %v34881_v41  ;;  %v13020_v17 = vadd.f32 %v35096_v20, %v35095_v13  ;;  %v35131_v20 = vld [vmem:[#allocation60_spill] sm:$0xff] }
 0xb83   : > { %28613 = vmatprep.subr.mxu1 %v34881_v41  ;;  %28618 = vmatprep.subr.mxu0 %v34881_v41 }
 0xb84   : > { %28606 = vmatmul.mubr.msk.f32.vlgmr.msra.gmra.mxu1 %vm1759_vm2, %v1179_v37  ;;  %28611 = vmatmul.mubr.msk.f32.vlgmr.msra.gmra.mxu0 %vm1759_vm2, %v1180_v54 }
 0xb85   : > { %28614 = vmatpush3.xpose.msk.msra.mxu1 %vm1759_vm2, %v19276_v61  ;;  %28619 = vmatpush3.xpose.msk.msra.mxu0 %vm1759_vm2, %v19281_v12  ;;  %v13030_v12 = vadd.f32 %v35100_v2, %v35099_v40 }
 0xb86   : > { %28615 = vmatprep.mubr.msk.f32.mxu1 %vm29533_vm1, %v34881_v41  ;;  %28620 = vmatprep.mubr.msk.f32.mxu0 %vm29533_vm1, %v34881_v41 }
 0xb87   : > { %28623 = vmatprep.subr.mxu1 %v34881_v41  ;;  %28628 = vmatprep.subr.mxu0 %v34881_v41 }
 0xb88   : > { %28616 = vmatmul.mubr.msk.f32.vlgmr.msra.gmra.mxu1 %vm1759_vm2, %v1181_v55  ;;  %28621 = vmatmul.mubr.msk.f32.vlgmr.msra.gmra.mxu0 %vm1759_vm2, %v1182_v0 }
 0xb89   : > { %28624 = vmatpush3.xpose.msk.msra.mxu1 %vm1759_vm2, %v19286_v52  ;;  %28629 = vmatpush3.xpose.msk.msra.mxu0 %vm1759_vm2, %v19291_v46 }
 0xb8a   : > { %28625 = vmatprep.mubr.msk.f32.mxu1 %vm29533_vm1, %v34881_v41  ;;  %28630 = vmatprep.mubr.msk.f32.mxu0 %vm29533_vm1, %v34881_v41 }
 0xb8b   : > { %28633 = vmatprep.subr.mxu1 %v34881_v41  ;;  %28638 = vmatprep.subr.mxu0 %v34881_v41 }
 0xb8c   : > { %28626 = vmatmul.mubr.msk.f32.vlgmr.msra.gmra.mxu1 %vm1759_vm2, %v1183_v4  ;;  %28631 = vmatmul.mubr.msk.f32.vlgmr.msra.gmra.mxu0 %vm1759_vm2, %v1184_v15  ;;  %v35107_v4 = vld [vmem:[#allocation11_spill] sm:$0xff]  ;;  %v35108_v15 = vld [vmem:[#allocation22_spill] sm:$0xff] }
 0xb8d   : > { %28634 = vmatpush3.xpose.msk.msra.mxu1 %vm1759_vm2, %v19296_v26  ;;  %28639 = vmatpush3.xpose.msk.msra.mxu0 %vm1759_vm2, %v19301_v9  ;;  %v13050_v6 = vadd.f32 %v35108_v15, %v35107_v4  ;;  %v34036_v15 = vld [vmem:[%s34861_s5 + $0x3] ss:$0 sm:$0xff] }
 0xb8e   : > { %28635 = vmatprep.mubr.msk.f32.mxu1 %vm29533_vm1, %v34881_v41  ;;  %28640 = vmatprep.mubr.msk.f32.mxu0 %vm29533_vm1, %v34881_v41 }
 0xb8f   : > { %28643 = vmatprep.subr.mxu1 %v34881_v41  ;;  %28648 = vmatprep.subr.mxu0 %v34881_v41 }
 0xb90   : > { %28636 = vmatmul.mubr.msk.f32.vlgmr.msra.gmra.mxu1 %vm1759_vm2, %v1185_v42  ;;  %28641 = vmatmul.mubr.msk.f32.vlgmr.msra.gmra.mxu0 %vm1759_vm2, %v1186_v50  ;;  %v35112_v42 = vld [vmem:[#allocation25_spill] sm:$0xff] }
 0xb91   : > { %28644 = vmatpush3.xpose.msk.msra.mxu1 %vm1759_vm2, %v19306_v1  ;;  %28649 = vmatpush3.xpose.msk.msra.mxu0 %vm1759_vm2, %v19311_v30  ;;  %v13060_v50 = vadd.f32 %v35112_v42, %v35111_v45  ;;  %v35115_v1 = vld [vmem:[#allocation48_spill] sm:$0xff] }
 0xb92   : > { %28645 = vmatprep.mubr.msk.f32.mxu1 %vm29533_vm1, %v34881_v41  ;;  %28650 = vmatprep.mubr.msk.f32.mxu0 %vm29533_vm1, %v34881_v41 }
 0xb93   : > { %28653 = vmatprep.subr.mxu1 %v34881_v41  ;;  %28658 = vmatprep.subr.mxu0 %v34881_v41 }
 0xb94   : > { %28646 = vmatmul.mubr.msk.f32.vlgmr.msra.gmra.mxu1 %vm1759_vm2, %v1187_v38  ;;  %28651 = vmatmul.mubr.msk.f32.vlgmr.msra.gmra.mxu0 %vm1759_vm2, %v1188_v60  ;;  %v35116_v38 = vld [vmem:[#allocation28_spill] sm:$0xff] }
 0xb95   : > { %28655 = vmatprep.mubr.msk.f32.mxu1 %vm29533_vm1, %v34881_v41  ;;  %28660 = vmatprep.mubr.msk.f32.mxu0 %vm29533_vm1, %v34881_v41  ;;  %v13070_v60 = vadd.f32 %v35116_v38, %v35115_v1  ;;  %v34047_v38 = vld [vmem:[%s34862_s6 + $0x18] sm:$0xff] }
 0xbb4   : > { %v28335_v27 = vpop.f32.mrf.mxu0 }
 0xbb5   : > { %v33939_v7 = vadd.f32 %v28335_v27, %v12970_v34  ;;  %v35119_v27 = vld [vmem:[#allocation51_spill] sm:$0xff] }
 0xbb6   : > { %v33941_v58 = vpop.f32.mrf.mxu0  ;;  %v13080_v51 = vadd.f32 %v35120_v23, %v35119_v27 }
 0xbb7   : > { %35077 = vst [vmem:[#allocation67_spill] sm:$0xff] %v33939_v7  ;;  %35078 = vst [vmem:[#allocation69_spill] sm:$0xff] %v33941_v58 }
 0xbb8   : > { %v28338_v29 = vpop.f32.mrf.mxu0 }
 0xbb9   : > { %v33945_v48 = vadd.f32 %v28338_v29, %v12980_v14 }
 0xbba   : > { %v33947_v22 = vpop.f32.mrf.mxu0 }
 0xbbb   : > { %35081 = vst [vmem:[#allocation68_spill] sm:$0xff] %v33945_v48  ;;  %35082 = vst [vmem:[#allocation71_spill] sm:$0xff] %v33947_v22 }
 0xbbc   : > { %v28341_v8 = vpop.f32.mrf.mxu0 }
 0xbbd   : > { %v33951_v57 = vadd.f32 %v28341_v8, %v12990_v19  ;;  %v35124_v19 = vld [vmem:[#allocation34_spill] sm:$0xff] }
 0xbbe   : > { %v33953_v63 = vpop.f32.mrf.mxu0  ;;  %v13090_v8 = vadd.f32 %v35124_v19, %v35123_v21 }
 0xbbf   : > { %35085 = vst [vmem:[#allocation70_spill] sm:$0xff] %v33951_v57  ;;  %35086 = vst [vmem:[#allocation73_spill] sm:$0xff] %v33953_v63 }
 0xbc0   : > { %v28344_v10 = vpop.f32.mrf.mxu0 }
 0xbc1   : > { %v33957_v33 = vadd.f32 %v28344_v10, %v13000_v44  ;;  %v35127_v10 = vld [vmem:[#allocation57_spill] sm:$0xff] }
 0xbc2   : > { %v33959_v3 = vpop.f32.mrf.mxu0  ;;  %v13100_v35 = vadd.f32 %v35128_v25, %v35127_v10 }
 0xbc3   : > { %35089 = vst [vmem:[#allocation72_spill] sm:$0xff] %v33957_v33  ;;  %35090 = vst [vmem:[#allocation75_spill] sm:$0xff] %v33959_v3 }
 0xbc4   : > { %v28347_v49 = vpop.f32.mrf.mxu0 }
 0xbc5   : > { %v33963_v16 = vadd.f32 %v28347_v49, %v13010_v53 }
 0xbc6   : > { %v33965_v43 = vpop.f32.mrf.mxu0 }
 0xbc7   : > { %35093 = vst [vmem:[#allocation74_spill] sm:$0xff] %v33963_v16  ;;  %35094 = vst [vmem:[#allocation77_spill] sm:$0xff] %v33965_v43 }
 0xbc8   : > { %v28350_v37 = vpop.f32.mrf.mxu0 }
 0xbc9   : > { %v33969_v54 = vadd.f32 %v28350_v37, %v13020_v17  ;;  %v35132_v17 = vld [vmem:[#allocation59_spill] sm:$0xff] }
 0xbca   : > { %v33971_v36 = vpop.f32.mrf.mxu0  ;;  %v13110_v37 = vadd.f32 %v35132_v17, %v35131_v20 }
 0xbcb   : > { %35097 = vst [vmem:[#allocation76_spill] sm:$0xff] %v33969_v54  ;;  %35098 = vst [vmem:[#allocation79_spill] sm:$0xff] %v33971_v36 }
 0xbcc   : > { %v28353_v61 = vpop.f32.mrf.mxu0 }
 0xbcd   : > { %v33975_v55 = vadd.f32 %v28353_v61, %v13030_v12  ;;  %v35135_v61 = vld [vmem:[#allocation63_spill] sm:$0xff] }
 0xbce   : > { %v33977_v0 = vpop.f32.mrf.mxu0  ;;  %v13120_v56 = vadd.f32 %v35136_v47, %v35135_v61 }
 0xbcf   : > { %35101 = vst [vmem:[#allocation78_spill] sm:$0xff] %v33975_v55  ;;  %35102 = vst [vmem:[#allocation17_spill] sm:$0xff] %v33977_v0 }
 0xbd0   : > { %v28356_v46 = vpop.f32.mrf.mxu0 }
 0xbd1   : > { %v33981_v52 = vadd.f32 %v28356_v46, %v13040_v24 }
 0xbd2   : > { %v33983_v31 = vpop.f32.mrf.mxu0 }
 0xbd3   : > { %35105 = vst [vmem:[#allocation35_spill] sm:$0xff] %v33981_v52  ;;  %35106 = vst [vmem:[#allocation21_spill] sm:$0xff] %v33983_v31 }
 0xbd4   : > { %v28359_v18 = vpop.f32.mrf.mxu0 }
 0xbd5   : > { %v33987_v9 = vadd.f32 %v28359_v18, %v13050_v6 }
 0xbd6   : > { %v33989_v26 = vpop.f32.mrf.mxu0 }
 0xbd7   : > { %35109 = vst [vmem:[#allocation37_spill] sm:$0xff] %v33987_v9  ;;  %35110 = vst [vmem:[#allocation3_spill] sm:$0xff] %v33989_v26 }
 0xbd8   : > { %v28362_v32 = vpop.f32.mrf.mxu0 }
 0xbd9   : > { %v33993_v59 = vadd.f32 %v28362_v32, %v13060_v50 }
 0xbda   : > { %v33995_v30 = vpop.f32.mrf.mxu0 }
 0xbdb   : > { %35113 = vst [vmem:[#allocation39_spill] sm:$0xff] %v33993_v59  ;;  %35114 = vst [vmem:[#allocation24_spill] sm:$0xff] %v33995_v30 }
 0xbdc   : > { %v28365_v39 = vpop.f32.mrf.mxu0 }
 0xbdd   : > { %v33999_v28 = vadd.f32 %v28365_v39, %v13070_v60 }
 0xbde   : > { %v34001_v34 = vpop.f32.mrf.mxu0 }
 0xbdf   : > { %35117 = vst [vmem:[#allocation41_spill] sm:$0xff] %v33999_v28  ;;  %35118 = vst [vmem:[#allocation20_spill] sm:$0xff] %v34001_v34 }
 0xbe0   : > { %v28368_v14 = vpop.f32.mrf.mxu0 }
 0xbe1   : > { %v34005_v29 = vadd.f32 %v28368_v14, %v13080_v51 }
 0xbe2   : > { %v34007_v62 = vpop.f32.mrf.mxu0 }
 0xbe3   : > { %35121 = vst [vmem:[#allocation43_spill] sm:$0xff] %v34005_v29  ;;  %35122 = vst [vmem:[#allocation27_spill] sm:$0xff] %v34007_v62 }
 0xbe4   : > { %v28371_v11 = vpop.f32.mrf.mxu0 }
 0xbe5   : > { %v34011_v5 = vadd.f32 %v28371_v11, %v13090_v8 }
 0xbe6   : > { %v34013_v44 = vpop.f32.mrf.mxu0 }
 0xbe7   : > { %35125 = vst [vmem:[#allocation45_spill] sm:$0xff] %v34011_v5  ;;  %35126 = vst [vmem:[#allocation8_spill] sm:$0xff] %v34013_v44 }
 0xbe8   : > { %v28374_v53 = vpop.f32.mrf.mxu0 }
 0xbe9   : > { %v34017_v49 = vadd.f32 %v28374_v53, %v13100_v35 }
 0xbea   : > { %v34019_v13 = vpop.f32.mrf.mxu0 }
 0xbeb   : > { %35129 = vst [vmem:[#allocation47_spill] sm:$0xff] %v34017_v49  ;;  %35130 = vst [vmem:[#allocation30_spill] sm:$0xff] %v34019_v13 }
 0xbec   : > { %v28377_v40 = vpop.f32.mrf.mxu0 }
 0xbed   : > { %v34023_v2 = vadd.f32 %v28377_v40, %v13110_v37 }
 0xbee   : > { %v34025_v12 = vpop.f32.mrf.mxu0 }
 0xbef   : > { %35133 = vst [vmem:[#allocation14_spill] sm:$0xff] %v34023_v2  ;;  %35134 = vst [vmem:[#allocation11_spill] sm:$0xff] %v34025_v12 }
 0xbf0   : > { %v28380_v24 = vpop.f32.mrf.mxu0 }
 0xbf1   : > { %v34029_v46 = vadd.f32 %v28380_v24, %v13120_v56 }
 0xbf2   : > { %v34031_v4 = vpop.f32.mrf.mxu0 }
 0xbf3   : > { %35137 = vst [vmem:[#allocation22_spill] sm:$0xff] %v34029_v46  ;;  %35138 = vst [vmem:[#allocation33_spill] sm:$0xff] %v34031_v4 }
 0xbf4   : > { %v28447_v6 = vpop.f32.mrf.mxu0 }
 0xbf5   : > { %v19399_v18 = vadd.f32 %v28447_v6, %v34036_v15 }
 0xbf6   : > { %v19393_v45 = vpop.f32.mrf.mxu0 }
 0xbf7   : > { %v19394_v42 = vadd.f32 %v34036_v15, %v19393_v45  ;;  %28659 = vmatpush3.msra.mxu0 %v19399_v18 }
 0xbf8   : > { %v28450_v50 = vpop.f32.mrf.mxu0  ;;  %28668 = vmatprep.subr.mxu0 %v34881_v41 }
 0xbf9   : > { %v34042_v32 = vadd.f32 %v28450_v50, %v34036_v15  ;;  %28654 = vmatpush3.msra.mxu1 %v19394_v42 }
 0xbfa   : > { %v19403_v1 = vpop.f32.mrf.mxu0  ;;  %28663 = vmatprep.subr.mxu1 %v34881_v41 }
 0xbfb   : > { %v34051_v60 = vadd.f32 %v34036_v15, %v19403_v1 }
 0xbfc   : > { %v19626_v39 = vpop.f32.mrf.mxu1  ;;  %v28453_v27 = vpop.f32.mrf.mxu0 }
 0xbfd   : > { %v34054_v23 = vadd.f32 %v34047_v38, %v19626_v39  ;;  %v34057_v51 = vadd.f32 %v28453_v27, %v34036_v15 }
 0xbfe   : > { %v28497_v14 = vpop.f32.mrf.mxu1  ;;  %v19413_v21 = vpop.f32.mrf.mxu0 }
 0xbff   : > { %v34060_v19 = vadd.f32 %v34036_v15, %v19413_v21  ;;  %v21986_v8 = vsel %vm1759_vm2, %v34054_v23, -inf }
 0xc00   : > { %21987 = vmax.xlane.f32.xlu0 %v21986_v8  ;;  %v19702_v11 = vpop.f32.mrf.mxu1  ;;  %v28456_v10 = vpop.f32.mrf.mxu0 }
 0xc01   : > { %v34065_v25 = vadd.f32 %v34047_v38, %v19702_v11  ;;  %v34068_v35 = vadd.f32 %v28456_v10, %v34036_v15 }
 0xc02   : > { %v28502_v53 = vpop.f32.mrf.mxu1  ;;  %v19423_v20 = vpop.f32.mrf.mxu0 }
 0xc03   : > { %v34071_v17 = vadd.f32 %v34036_v15, %v19423_v20  ;;  %v21989_v37 = vsel %vm1759_vm2, %v34065_v25, -inf }
 0xc04   : > { %v19778_v40 = vpop.f32.mrf.mxu1  ;;  %21990 = vmax.xlane.f32.xlu1 %v21989_v37  ;;  %v28459_v61 = vpop.f32.mrf.mxu0 }
 0xc05   : > { %v34076_v47 = vadd.f32 %v34047_v38, %v19778_v40  ;;  %v34079_v56 = vadd.f32 %v28459_v61, %v34036_v15 }
 0xc06   : > { %v28507_v24 = vpop.f32.mrf.mxu1  ;;  %v19433_v6 = vpop.f32.mrf.mxu0 }
 0xc07   : > { %v34082_v18 = vadd.f32 %v34036_v15, %v19433_v6  ;;  %v21992_v45 = vsel %vm1759_vm2, %v34076_v47, -inf }
 0xc08   : > { %21993 = vmax.xlane.f32.xlu0 %v21992_v45  ;;  %v19854_v42 = vpop.f32.mrf.mxu1  ;;  %v28462_v50 = vpop.f32.mrf.mxu0 }
 0xc09   : > { %v34087_v1 = vadd.f32 %v34047_v38, %v19854_v42  ;;  %v34090_v39 = vadd.f32 %v28462_v50, %v34036_v15 }
 0xc0a   : > { %v28512_v27 = vpop.f32.mrf.mxu1  ;;  %v19443_v14 = vpop.f32.mrf.mxu0 }
 0xc0b   : > { %v34093_v21 = vadd.f32 %v34036_v15, %v19443_v14  ;;  %v21995_v8 = vsel %vm1759_vm2, %v34087_v1, -inf }
 0xc0c   : > { %v19930_v11 = vpop.f32.mrf.mxu1  ;;  %21996 = vmax.xlane.f32.xlu1 %v21995_v8  ;;  %v28465_v10 = vpop.f32.mrf.mxu0 }
 0xc0d   : > { %v34098_v53 = vadd.f32 %v34047_v38, %v19930_v11  ;;  %v34101_v20 = vadd.f32 %v28465_v10, %v34036_v15 }
 0xc0e   : > { %v28517_v37 = vpop.f32.mrf.mxu1  ;;  %v19453_v40 = vpop.f32.mrf.mxu0 }
 0xc0f   : > { %v34104_v61 = vadd.f32 %v34036_v15, %v19453_v40  ;;  %v21998_v24 = vsel %vm1759_vm2, %v34098_v53, -inf }
 0xc10   : > { %21999 = vmax.xlane.f32.xlu0 %v21998_v24  ;;  %v20006_v6 = vpop.f32.mrf.mxu1  ;;  %v28468_v45 = vpop.f32.mrf.mxu0 }
 0xc11   : > { %v34109_v42 = vadd.f32 %v34047_v38, %v20006_v6  ;;  %v34112_v50 = vadd.f32 %v28468_v45, %v34036_v15 }
 0xc12   : > { %v28522_v27 = vpop.f32.mrf.mxu1  ;;  %v19463_v14 = vpop.f32.mrf.mxu0 }
 0xc13   : > { %v34115_v8 = vadd.f32 %v34036_v15, %v19463_v14  ;;  %v22001_v11 = vsel %vm1759_vm2, %v34109_v42, -inf }
 0xc14   : > { %v20082_v10 = vpop.f32.mrf.mxu1  ;;  %22002 = vmax.xlane.f32.xlu1 %v22001_v11  ;;  %v28471_v37 = vpop.f32.mrf.mxu0 }
 0xc15   : > { %v34120_v40 = vadd.f32 %v34047_v38, %v20082_v10  ;;  %v34123_v24 = vadd.f32 %v28471_v37, %v34036_v15 }
 0xc16   : > { %v28527_v6 = vpop.f32.mrf.mxu1  ;;  %v19473_v45 = vpop.f32.mrf.mxu0 }
 0xc17   : > { %v34126_v27 = vadd.f32 %v34036_v15, %v19473_v45  ;;  %v22004_v14 = vsel %vm1759_vm2, %v34120_v40, -inf }
 0xc18   : > { %22005 = vmax.xlane.f32.xlu0 %v22004_v14  ;;  %v20158_v46 = vpop.f32.mrf.mxu1  ;;  %v28474_v4 = vpop.f32.mrf.mxu0 }
 0xc19   : > { %v34131_v11 = vadd.f32 %v34047_v38, %v20158_v46  ;;  %v34134_v10 = vadd.f32 %v28474_v4, %v34036_v15 }
 0xc1a   : > { %v28532_v2 = vpop.f32.mrf.mxu1  ;;  %v19483_v37 = vpop.f32.mrf.mxu0 }
 0xc1b   : > { %v34137_v6 = vadd.f32 %v34036_v15, %v19483_v37  ;;  %v22007_v45 = vsel %vm1759_vm2, %v34131_v11, -inf }
 0xc1c   : > { %v20234_v12 = vpop.f32.mrf.mxu1  ;;  %22008 = vmax.xlane.f32.xlu1 %v22007_v45  ;;  %v28477_v49 = vpop.f32.mrf.mxu0 }
 0xc1d   : > { %v34142_v14 = vadd.f32 %v34047_v38, %v20234_v12  ;;  %v34145_v46 = vadd.f32 %v28477_v49, %v34036_v15 }
 0xc1e   : > { %v28537_v13 = vpop.f32.mrf.mxu1  ;;  %v19493_v4 = vpop.f32.mrf.mxu0 }
 0xc1f   : > { %35139 = vst [vmem:[#allocation25_spill] sm:$0xff] %v34145_v46  ;;  %v34148_v2 = vadd.f32 %v34036_v15, %v19493_v4  ;;  %v22010_v37 = vsel %vm1759_vm2, %v34142_v14, -inf }
 0xc20   : > { %22011 = vmax.xlane.f32.xlu0 %v22010_v37  ;;  %v20310_v5 = vpop.f32.mrf.mxu1  ;;  %v28480_v44 = vpop.f32.mrf.mxu0 }
 0xc21   : > { %35140 = vst [vmem:[#allocation48_spill] sm:$0xff] %v34148_v2  ;;  %v34153_v45 = vadd.f32 %v34047_v38, %v20310_v5  ;;  %v34156_v12 = vadd.f32 %v28480_v44, %v34036_v15 }
 0xc22   : > { %v28542_v29 = vpop.f32.mrf.mxu1  ;;  %v19503_v49 = vpop.f32.mrf.mxu0 }
 0xc23   : > { %35141 = vst [vmem:[#allocation28_spill] sm:$0xff] %v34156_v12  ;;  %v34159_v13 = vadd.f32 %v34036_v15, %v19503_v49  ;;  %v22013_v4 = vsel %vm1759_vm2, %v34153_v45, -inf }
 0xc24   : > { %v20386_v62 = vpop.f32.mrf.mxu1  ;;  %22014 = vmax.xlane.f32.xlu1 %v22013_v4  ;;  %v28483_v28 = vpop.f32.mrf.mxu0 }
 0xc25   : > { %35142 = vst [vmem:[#allocation51_spill] sm:$0xff] %v34159_v13  ;;  %v34164_v37 = vadd.f32 %v34047_v38, %v20386_v62  ;;  %v34167_v5 = vadd.f32 %v28483_v28, %v34036_v15 }
 0xc26   : > { %v28547_v34 = vpop.f32.mrf.mxu1  ;;  %v19513_v44 = vpop.f32.mrf.mxu0 }
 0xc27   : > { %35143 = vst [vmem:[#allocation31_spill] sm:$0xff] %v34167_v5  ;;  %v34170_v29 = vadd.f32 %v34036_v15, %v19513_v44  ;;  %v22016_v49 = vsel %vm1759_vm2, %v34164_v37, -inf }
 0xc28   : > { %22017 = vmax.xlane.f32.xlu0 %v22016_v49  ;;  %v20462_v59 = vpop.f32.mrf.mxu1  ;;  %v28486_v30 = vpop.f32.mrf.mxu0 }
 0xc29   : > { %35144 = vst [vmem:[#allocation54_spill] sm:$0xff] %v34170_v29  ;;  %v34175_v4 = vadd.f32 %v34047_v38, %v20462_v59  ;;  %v34178_v62 = vadd.f32 %v28486_v30, %v34036_v15 }
 0xc2a   : > { %v28552_v9 = vpop.f32.mrf.mxu1  ;;  %v19523_v28 = vpop.f32.mrf.mxu0 }
 0xc2b   : > { %35145 = vst [vmem:[#allocation34_spill] sm:$0xff] %v34178_v62  ;;  %v34181_v34 = vadd.f32 %v34036_v15, %v19523_v28  ;;  %v22019_v44 = vsel %vm1759_vm2, %v34175_v4, -inf }
 0xc2c   : > { %v20538_v26 = vpop.f32.mrf.mxu1  ;;  %22020 = vmax.xlane.f32.xlu1 %v22019_v44  ;;  %v28489_v52 = vpop.f32.mrf.mxu0 }
 0xc2d   : > { %35146 = vst [vmem:[#allocation57_spill] sm:$0xff] %v34181_v34  ;;  %v34186_v49 = vadd.f32 %v34047_v38, %v20538_v26  ;;  %v34189_v59 = vadd.f32 %v28489_v52, %v34036_v15 }
 0xc2e   : > { %v28557_v31 = vpop.f32.mrf.mxu1  ;;  %v19533_v30 = vpop.f32.mrf.mxu0 }
 0xc2f   : > { %35147 = vst [vmem:[#allocation53_spill] sm:$0xff] %v34189_v59  ;;  %v34192_v9 = vadd.f32 %v34036_v15, %v19533_v30  ;;  %v22022_v28 = vsel %vm1759_vm2, %v34186_v49, -inf }
 0xc30   : > { %22023 = vmax.xlane.f32.xlu0 %v22022_v28  ;;  %v20614_v55 = vpop.f32.mrf.mxu1  ;;  %v28492_v0 = vpop.f32.mrf.mxu0 }
 0xc31   : > { %35148 = vst [vmem:[#allocation60_spill] sm:$0xff] %v34192_v9  ;;  %v34197_v44 = vadd.f32 %v34047_v38, %v20614_v55  ;;  %v34200_v26 = vadd.f32 %v28492_v0, %v34036_v15 }
 0xc32   : > { %v28562_v54 = vpop.f32.mrf.mxu1  ;;  %v19543_v52 = vpop.f32.mrf.mxu0 }
 0xc33   : > { %35149 = vst [vmem:[#allocation59_spill] sm:$0xff] %v34200_v26  ;;  %v34203_v31 = vadd.f32 %v34036_v15, %v19543_v52  ;;  %v22025_v30 = vsel %vm1759_vm2, %v34197_v44, -inf }
 0xc34   : > { %v20690_v36 = vpop.f32.mrf.mxu1  ;;  %22026 = vmax.xlane.f32.xlu1 %v22025_v30  ;;  %v20766_v16 = vpop.f32.mrf.mxu0 }
 0xc35   : > { %35150 = vst [vmem:[#allocation63_spill] sm:$0xff] %v34203_v31  ;;  %v34208_v28 = vadd.f32 %v34047_v38, %v20690_v36  ;;  %v34211_v55 = vadd.f32 %v34047_v38, %v20766_v16 }
 0xc36   : > { %v28567_v43 = vpop.f32.mrf.mxu1  ;;  %v28572_v0 = vpop.f32.mrf.mxu0 }
 0xc37   : > { %v22028_v54 = vsel %vm1759_vm2, %v34208_v28, -inf  ;;  %v22031_v15 = vsel %vm1759_vm2, %v34211_v55, -inf }
 0xc38   : > { %22029 = vmax.xlane.f32.xlu0 %v22028_v54  ;;  %v20842_v52 = vpop.f32.mrf.mxu1  ;;  %22032 = vmax.xlane.f32.xlu1 %v22031_v15  ;;  %v20918_v33 = vpop.f32.mrf.mxu0 }
 0xc39   : > { %v34218_v30 = vadd.f32 %v34047_v38, %v20842_v52  ;;  %v34221_v36 = vadd.f32 %v34047_v38, %v20918_v33 }
 0xc3a   : > { %v28577_v16 = vpop.f32.mrf.mxu1  ;;  %v28582_v3 = vpop.f32.mrf.mxu0 }
 0xc3b   : > { %v22034_v43 = vsel %vm1759_vm2, %v34218_v30, -inf  ;;  %v22037_v0 = vsel %vm1759_vm2, %v34221_v36, -inf }
 0xc3c   : > { %22035 = vmax.xlane.f32.xlu0 %v22034_v43  ;;  %v20994_v57 = vpop.f32.mrf.mxu1  ;;  %22038 = vmax.xlane.f32.xlu1 %v22037_v0  ;;  %v21070_v54 = vpop.f32.mrf.mxu0 }
 0xc3d   : > { %v34228_v15 = vadd.f32 %v34047_v38, %v20994_v57  ;;  %v34231_v52 = vadd.f32 %v34047_v38, %v21070_v54 }
 0xc3e   : > { %v28587_v33 = vpop.f32.mrf.mxu1  ;;  %v28592_v63 = vpop.f32.mrf.mxu0 }
 0xc3f   : > { %v22040_v3 = vsel %vm1759_vm2, %v34228_v15, -inf  ;;  %v22043_v16 = vsel %vm1759_vm2, %v34231_v52, -inf }
 0xc40   : > { %22041 = vmax.xlane.f32.xlu0 %v22040_v3  ;;  %v21146_v48 = vpop.f32.mrf.mxu1  ;;  %22044 = vmax.xlane.f32.xlu1 %v22043_v16  ;;  %v21222_v43 = vpop.f32.mrf.mxu0 }
 0xc41   : > { %v34238_v0 = vadd.f32 %v34047_v38, %v21146_v48  ;;  %v34241_v57 = vadd.f32 %v34047_v38, %v21222_v43 }
 0xc42   : > { %v28597_v54 = vpop.f32.mrf.mxu1  ;;  %v28602_v22 = vpop.f32.mrf.mxu0 }
 0xc43   : > { %v22046_v63 = vsel %vm1759_vm2, %v34238_v0, -inf  ;;  %v22049_v33 = vsel %vm1759_vm2, %v34241_v57, -inf }
 0xc44   : > { %22047 = vmax.xlane.f32.xlu0 %v22046_v63  ;;  %v21298_v7 = vpop.f32.mrf.mxu1  ;;  %22050 = vmax.xlane.f32.xlu1 %v22049_v33  ;;  %v21374_v3 = vpop.f32.mrf.mxu0 }
 0xc45   : > { %v34248_v16 = vadd.f32 %v34047_v38, %v21298_v7  ;;  %v34251_v48 = vadd.f32 %v34047_v38, %v21374_v3 }
 0xc46   : > { %v28607_v43 = vpop.f32.mrf.mxu1  ;;  %v28612_v58 = vpop.f32.mrf.mxu0 }
 0xc47   : > { %v22052_v22 = vsel %vm1759_vm2, %v34248_v16, -inf  ;;  %v22055_v54 = vsel %vm1759_vm2, %v34251_v48, -inf }
 0xc48   : > { %22053 = vmax.xlane.f32.xlu0 %v22052_v22  ;;  %v21450_v26 = vpop.f32.mrf.mxu1  ;;  %22056 = vmax.xlane.f32.xlu1 %v22055_v54  ;;  %v21526_v63 = vpop.f32.mrf.mxu0 }
 0xc49   : > { %v34258_v33 = vadd.f32 %v34047_v38, %v21450_v26  ;;  %v34261_v7 = vadd.f32 %v34047_v38, %v21526_v63 }
 0xc4a   : > { %v28617_v3 = vpop.f32.mrf.mxu1  ;;  %v28622_v31 = vpop.f32.mrf.mxu0 }
 0xc4b   : > { %v22058_v58 = vsel %vm1759_vm2, %v34258_v33, -inf  ;;  %v22061_v43 = vsel %vm1759_vm2, %v34261_v7, -inf }
 0xc4c   : > { %22059 = vmax.xlane.f32.xlu0 %v22058_v58  ;;  %v21602_v59 = vpop.f32.mrf.mxu1  ;;  %22062 = vmax.xlane.f32.xlu1 %v22061_v43  ;;  %v21678_v22 = vpop.f32.mrf.mxu0 }
 0xc4d   : > { %v34268_v54 = vadd.f32 %v34047_v38, %v21602_v59  ;;  %v34271_v26 = vadd.f32 %v34047_v38, %v21678_v22 }
 0xc4e   : > { %v28627_v63 = vpop.f32.mrf.mxu1  ;;  %v28632_v9 = vpop.f32.mrf.mxu0 }
 0xc4f   : > { %v22064_v31 = vsel %vm1759_vm2, %v34268_v54, -inf  ;;  %v22067_v3 = vsel %vm1759_vm2, %v34271_v26, -inf }
 0xc50   : > { %22065 = vmax.xlane.f32.xlu0 %v22064_v31  ;;  %v21754_v62 = vpop.f32.mrf.mxu1  ;;  %22068 = vmax.xlane.f32.xlu1 %v22067_v3  ;;  %v21830_v58 = vpop.f32.mrf.mxu0 }
 0xc51   : > { %v34278_v43 = vadd.f32 %v34047_v38, %v21754_v62  ;;  %v34281_v59 = vadd.f32 %v34047_v38, %v21830_v58 }
 0xc52   : > { %v28637_v22 = vpop.f32.mrf.mxu1  ;;  %v28642_v34 = vpop.f32.mrf.mxu0 }
 0xc53   : > { %v22070_v9 = vsel %vm1759_vm2, %v34278_v43, -inf  ;;  %v22073_v63 = vsel %vm1759_vm2, %v34281_v59, -inf }
 0xc54   : > { %22071 = vmax.xlane.f32.xlu0 %v22070_v9  ;;  %v21906_v5 = vpop.f32.mrf.mxu1  ;;  %22074 = vmax.xlane.f32.xlu1 %v22073_v63  ;;  %v21982_v31 = vpop.f32.mrf.mxu0 }
 0xc55   : > { %v34288_v3 = vadd.f32 %v34047_v38, %v21906_v5  ;;  %v34291_v62 = vadd.f32 %v34047_v38, %v21982_v31 }
 0xc56   : > { %v28647_v58 = vpop.f32.mrf.mxu1  ;;  %v28652_v29 = vpop.f32.mrf.mxu0 }
 0xc57   : > { %v22076_v34 = vsel %vm1759_vm2, %v34288_v3, -inf  ;;  %v22079_v22 = vsel %vm1759_vm2, %v34291_v62, -inf }
 0xc58   : > { %22077 = vmax.xlane.f32.xlu0 %v22076_v34  ;;  %22080 = vmax.xlane.f32.xlu1 %v22079_v22 }
 0xc89   : > { %v21988_v9 = vpop.xlane.xlu0 %21987 }
 0xc8a   : > { %v22082_v63 = vsub.f32 %v34054_v23, %v21988_v9 }
 0xc8c   : > { %v22114_v12 = vmul.f32 1.442695, %v22082_v63 }
 0xc8d   : > { %v21991_v13 = vpop.xlane.xlu1 %21990 }
 0xc8e   : > { %29281 = vpow2.f32 %v22114_v12  ;;  %v22083_v5 = vsub.f32 %v34065_v25, %v21991_v13 }
 0xc90   : > { %v22116_v38 = vmul.f32 1.442695, %v22083_v5 }
 0xc91   : > { %v21994_v31 = vpop.xlane.xlu0 %21993 }
 0xc92   : > { %29283 = vpow2.f32 %v22116_v38  ;;  %v22084_v29 = vsub.f32 %v34076_v47, %v21994_v31 }
 0xc94   : > { %v22118_v58 = vmul.f32 1.442695, %v22084_v29 }
 0xc95   : > { %v21997_v46 = vpop.xlane.xlu1 %21996 }
 0xc96   : > { %29285 = vpow2.f32 %v22118_v58  ;;  %v22085_v2 = vsub.f32 %v34087_v1, %v21997_v46 }
 0xc98   : > { %v22120_v34 = vmul.f32 1.442695, %v22085_v2 }
 0xc99   : > { %v22000_v22 = vpop.xlane.xlu0 %21999 }
 0xc9a   : > { %29287 = vpow2.f32 %v22120_v34  ;;  %v22086_v23 = vsub.f32 %v34098_v53, %v22000_v22 }
 0xc9b   : > { %v34302_v9 = vpop.eup %29281 }
 0xc9c   : > { %v22122_v12 = vmul.f32 1.442695, %v22086_v23  ;;  %v22178_v25 = vsel %vm1759_vm2, %v34302_v9, 0.0 }
 0xc9d   : > { %22179 = vadd.xlane.f32.xlu0 %v22178_v25  ;;  %v22003_v13 = vpop.xlane.xlu1 %22002 }
 0xc9e   : > { %29289 = vpow2.f32 %v22122_v12  ;;  %v22087_v47 = vsub.f32 %v34109_v42, %v22003_v13 }
 0xc9f   : > { %v34307_v63 = vpop.eup %29283 }
 0xca0   : > { %v22124_v5 = vmul.f32 1.442695, %v22087_v47  ;;  %v22181_v1 = vsel %vm1759_vm2, %v34307_v63, 0.0 }
 0xca1   : > { %v22006_v46 = vpop.xlane.xlu0 %22005  ;;  %22182 = vadd.xlane.f32.xlu1 %v22181_v1 }
 0xca2   : > { %29291 = vpow2.f32 %v22124_v5  ;;  %v22088_v53 = vsub.f32 %v34120_v40, %v22006_v46 }
 0xca3   : > { %v34312_v2 = vpop.eup %29285 }
 0xca4   : > { %v22126_v38 = vmul.f32 1.442695, %v22088_v53  ;;  %v22184_v31 = vsel %vm1759_vm2, %v34312_v2, 0.0 }
 0xca5   : > { %22185 = vadd.xlane.f32.xlu0 %v22184_v31  ;;  %v22009_v29 = vpop.xlane.xlu1 %22008 }
 0xca6   : > { %29293 = vpow2.f32 %v22126_v38  ;;  %v22089_v42 = vsub.f32 %v34131_v11, %v22009_v29 }
 0xca7   : > { %v34317_v58 = vpop.eup %29287 }
 0xca8   : > { %v22128_v34 = vmul.f32 1.442695, %v22089_v42  ;;  %v22187_v22 = vsel %vm1759_vm2, %v34317_v58, 0.0 }
 0xca9   : > { %v22012_v23 = vpop.xlane.xlu0 %22011  ;;  %22188 = vadd.xlane.f32.xlu1 %v22187_v22 }
 0xcaa   : > { %29295 = vpow2.f32 %v22128_v34  ;;  %v22090_v40 = vsub.f32 %v34142_v14, %v22012_v23 }
 0xcab   : > { %v34322_v12 = vpop.eup %29289 }
 0xcac   : > { %v22130_v25 = vmul.f32 1.442695, %v22090_v40  ;;  %v22190_v13 = vsel %vm1759_vm2, %v34322_v12, 0.0 }
 0xcad   : > { %22191 = vadd.xlane.f32.xlu0 %v22190_v13  ;;  %v22015_v47 = vpop.xlane.xlu1 %22014 }
 0xcae   : > { %29297 = vpow2.f32 %v22130_v25  ;;  %v22091_v11 = vsub.f32 %v34153_v45, %v22015_v47 }
 0xcaf   : > { %v34327_v5 = vpop.eup %29291 }
 0xcb0   : > { %v22132_v1 = vmul.f32 1.442695, %v22091_v11  ;;  %v22193_v46 = vsel %vm1759_vm2, %v34327_v5, 0.0 }
 0xcb1   : > { %v22018_v53 = vpop.xlane.xlu0 %22017  ;;  %22194 = vadd.xlane.f32.xlu1 %v22193_v46 }
 0xcb2   : > { %29299 = vpow2.f32 %v22132_v1  ;;  %v22092_v14 = vsub.f32 %v34164_v37, %v22018_v53 }
 0xcb3   : > { %v34332_v38 = vpop.eup %29293 }
 0xcb4   : > { %v22134_v31 = vmul.f32 1.442695, %v22092_v14  ;;  %v22196_v29 = vsel %vm1759_vm2, %v34332_v38, 0.0 }
 0xcb5   : > { %22197 = vadd.xlane.f32.xlu0 %v22196_v29  ;;  %v22021_v42 = vpop.xlane.xlu1 %22020 }
 0xcb6   : > { %29301 = vpow2.f32 %v22134_v31  ;;  %v22093_v45 = vsub.f32 %v34175_v4, %v22021_v42 }
 0xcb7   : > { %v34337_v34 = vpop.eup %29295 }
 0xcb8   : > { %v22136_v22 = vmul.f32 1.442695, %v22093_v45  ;;  %v22199_v23 = vsel %vm1759_vm2, %v34337_v34, 0.0 }
 0xcb9   : > { %v22024_v40 = vpop.xlane.xlu0 %22023  ;;  %22200 = vadd.xlane.f32.xlu1 %v22199_v23 }
 0xcba   : > { %29303 = vpow2.f32 %v22136_v22  ;;  %v22094_v37 = vsub.f32 %v34186_v49, %v22024_v40 }
 0xcbb   : > { %v34342_v25 = vpop.eup %29297 }
 0xcbc   : > { %v22138_v13 = vmul.f32 1.442695, %v22094_v37  ;;  %v22202_v47 = vsel %vm1759_vm2, %v34342_v25, 0.0 }
 0xcbd   : > { %22203 = vadd.xlane.f32.xlu0 %v22202_v47  ;;  %v22027_v11 = vpop.xlane.xlu1 %22026 }
 0xcbe   : > { %29305 = vpow2.f32 %v22138_v13  ;;  %v22095_v4 = vsub.f32 %v34197_v44, %v22027_v11 }
 0xcbf   : > { %v34347_v1 = vpop.eup %29299 }
 0xcc0   : > { %v22140_v46 = vmul.f32 1.442695, %v22095_v4  ;;  %v22205_v53 = vsel %vm1759_vm2, %v34347_v1, 0.0 }
 0xcc1   : > { %v22030_v14 = vpop.xlane.xlu0 %22029  ;;  %22206 = vadd.xlane.f32.xlu1 %v22205_v53  ;;  %v22033_v49 = vpop.xlane.xlu1 %22032 }
 0xcc2   : > { %29307 = vpow2.f32 %v22140_v46  ;;  %v22096_v31 = vsub.f32 %v34208_v28, %v22030_v14  ;;  %v22097_v29 = vsub.f32 %v34211_v55, %v22033_v49 }
 0xcc3   : > { %v34353_v42 = vpop.eup %29301 }
 0xcc4   : > { %v22142_v45 = vmul.f32 1.442695, %v22096_v31  ;;  %v22144_v22 = vmul.f32 1.442695, %v22097_v29  ;;  %v22208_v44 = vsel %vm1759_vm2, %v34353_v42, 0.0 }
 0xcc5   : > { %v22036_v23 = vpop.xlane.xlu0 %22035  ;;  %22209 = vadd.xlane.f32.xlu0 %v22208_v44  ;;  %v22039_v40 = vpop.xlane.xlu1 %22038 }
 0xcc6   : > { %29309 = vpow2.f32 %v22142_v45  ;;  %v22098_v37 = vsub.f32 %v34218_v30, %v22036_v23  ;;  %v22099_v13 = vsub.f32 %v34221_v36, %v22039_v40 }
 0xcc7   : > { %v34359_v47 = vpop.eup %29303  ;;  %29311 = vpow2.f32 %v22144_v22 }
 0xcc8   : > { %v22146_v28 = vmul.f32 1.442695, %v22098_v37  ;;  %v22148_v55 = vmul.f32 1.442695, %v22099_v13  ;;  %v22211_v11 = vsel %vm1759_vm2, %v34359_v47, 0.0 }
 0xcc9   : > { %v22042_v4 = vpop.xlane.xlu0 %22041  ;;  %22212 = vadd.xlane.f32.xlu1 %v22211_v11  ;;  %v22045_v46 = vpop.xlane.xlu1 %22044 }
 0xcca   : > { %29313 = vpow2.f32 %v22146_v28  ;;  %v22100_v53 = vsub.f32 %v34228_v15, %v22042_v4  ;;  %v22101_v14 = vsub.f32 %v34231_v52, %v22045_v46 }
 0xccb   : > { %v34365_v49 = vpop.eup %29305  ;;  %29315 = vpow2.f32 %v22148_v55 }
 0xccc   : > { %v22150_v30 = vmul.f32 1.442695, %v22100_v53  ;;  %v22152_v36 = vmul.f32 1.442695, %v22101_v14  ;;  %v22214_v31 = vsel %vm1759_vm2, %v34365_v49, 0.0 }
 0xccd   : > { %v22048_v29 = vpop.xlane.xlu0 %22047  ;;  %22215 = vadd.xlane.f32.xlu0 %v22214_v31  ;;  %v22051_v45 = vpop.xlane.xlu1 %22050 }
 0xcce   : > { %29317 = vpow2.f32 %v22150_v30  ;;  %v22102_v22 = vsub.f32 %v34238_v0, %v22048_v29  ;;  %v22103_v44 = vsub.f32 %v34241_v57, %v22051_v45 }
 0xccf   : > { %v34371_v23 = vpop.eup %29307  ;;  %29319 = vpow2.f32 %v22152_v36 }
 0xcd0   : > { %v22154_v15 = vmul.f32 1.442695, %v22102_v22  ;;  %v22156_v52 = vmul.f32 1.442695, %v22103_v44  ;;  %v22217_v40 = vsel %vm1759_vm2, %v34371_v23, 0.0 }
 0xcd1   : > { %v22054_v37 = vpop.xlane.xlu0 %22053  ;;  %22218 = vadd.xlane.f32.xlu1 %v22217_v40  ;;  %v22057_v13 = vpop.xlane.xlu1 %22056 }
 0xcd2   : > { %29321 = vpow2.f32 %v22154_v15  ;;  %v22104_v28 = vsub.f32 %v34248_v16, %v22054_v37  ;;  %v22105_v55 = vsub.f32 %v34251_v48, %v22057_v13 }
 0xcd3   : > { %v34377_v11 = vpop.eup %29309  ;;  %29323 = vpow2.f32 %v22156_v52 }
 0xcd4   : > { %v34379_v0 = vpop.eup %29311  ;;  %v22158_v57 = vmul.f32 1.442695, %v22104_v28  ;;  %v22160_v4 = vmul.f32 1.442695, %v22105_v55  ;;  %v22220_v46 = vsel %vm1759_vm2, %v34377_v11, 0.0 }
 0xcd5   : > { %v22060_v53 = vpop.xlane.xlu0 %22059  ;;  %22221 = vadd.xlane.f32.xlu0 %v22220_v46  ;;  %v22063_v14 = vpop.xlane.xlu1 %22062  ;;  %v22223_v30 = vsel %vm1759_vm2, %v34379_v0, 0.0 }
 0xcd6   : > { %29325 = vpow2.f32 %v22158_v57  ;;  %v22106_v16 = vsub.f32 %v34258_v33, %v22060_v53  ;;  %v22107_v48 = vsub.f32 %v34261_v7, %v22063_v14  ;;  %22224 = vadd.xlane.f32.xlu1 %v22223_v30 }
 0xcd7   : > { %v34387_v36 = vpop.eup %29313  ;;  %29327 = vpow2.f32 %v22160_v4 }
 0xcd8   : > { %v34389_v31 = vpop.eup %29315  ;;  %v22162_v29 = vmul.f32 1.442695, %v22106_v16  ;;  %v22164_v45 = vmul.f32 1.442695, %v22107_v48  ;;  %v22226_v22 = vsel %vm1759_vm2, %v34387_v36, 0.0 }
 0xcd9   : > { %v22066_v44 = vpop.xlane.xlu0 %22065  ;;  %22227 = vadd.xlane.f32.xlu0 %v22226_v22  ;;  %v22069_v15 = vpop.xlane.xlu1 %22068  ;;  %v22229_v52 = vsel %vm1759_vm2, %v34389_v31, 0.0 }
 0xcda   : > { %29329 = vpow2.f32 %v22162_v29  ;;  %v22108_v33 = vsub.f32 %v34268_v54, %v22066_v44  ;;  %v22109_v7 = vsub.f32 %v34271_v26, %v22069_v15  ;;  %22230 = vadd.xlane.f32.xlu1 %v22229_v52 }
 0xcdb   : > { %v34397_v40 = vpop.eup %29317  ;;  %29331 = vpow2.f32 %v22164_v45 }
 0xcdc   : > { %v34399_v37 = vpop.eup %29319  ;;  %v22166_v13 = vmul.f32 1.442695, %v22108_v33  ;;  %v22168_v28 = vmul.f32 1.442695, %v22109_v7  ;;  %v22232_v55 = vsel %vm1759_vm2, %v34397_v40, 0.0 }
 0xcdd   : > { %v22072_v57 = vpop.xlane.xlu0 %22071  ;;  %22233 = vadd.xlane.f32.xlu0 %v22232_v55  ;;  %v22075_v4 = vpop.xlane.xlu1 %22074  ;;  %v22235_v46 = vsel %vm1759_vm2, %v34399_v37, 0.0 }
 0xcde   : > { %29333 = vpow2.f32 %v22166_v13  ;;  %v22110_v54 = vsub.f32 %v34278_v43, %v22072_v57  ;;  %v22111_v26 = vsub.f32 %v34281_v59, %v22075_v4  ;;  %22236 = vadd.xlane.f32.xlu1 %v22235_v46 }
 0xcdf   : > { %v34407_v53 = vpop.eup %29321  ;;  %29335 = vpow2.f32 %v22168_v28 }
 0xce0   : > { %v34409_v14 = vpop.eup %29323  ;;  %v22170_v30 = vmul.f32 1.442695, %v22110_v54  ;;  %v22172_v16 = vmul.f32 1.442695, %v22111_v26  ;;  %v22238_v48 = vsel %vm1759_vm2, %v34407_v53, 0.0 }
 0xce1   : > { %22239 = vadd.xlane.f32.xlu0 %v22238_v48  ;;  %v22078_v29 = vpop.xlane.xlu0 %22077  ;;  %v22241_v45 = vsel %vm1759_vm2, %v34409_v14, 0.0  ;;  %v22081_v22 = vpop.xlane.xlu1 %22080 }
 0xce2   : > { %29337 = vpow2.f32 %v22170_v30  ;;  %v22112_v43 = vsub.f32 %v34288_v3, %v22078_v29  ;;  %22242 = vadd.xlane.f32.xlu1 %v22241_v45  ;;  %v22113_v59 = vsub.f32 %v34291_v62, %v22081_v22 }
 0xce3   : > { %v34417_v44 = vpop.eup %29325  ;;  %29339 = vpow2.f32 %v22172_v16 }
 0xce4   : > { %v34419_v15 = vpop.eup %29327  ;;  %v22174_v52 = vmul.f32 1.442695, %v22112_v43  ;;  %v22176_v33 = vmul.f32 1.442695, %v22113_v59  ;;  %v22244_v7 = vsel %vm1759_vm2, %v34417_v44, 0.0 }
 0xce5   : > { %22245 = vadd.xlane.f32.xlu0 %v22244_v7  ;;  %v22247_v13 = vsel %vm1759_vm2, %v34419_v15, 0.0 }
 0xce6   : > { %29341 = vpow2.f32 %v22174_v52  ;;  %22248 = vadd.xlane.f32.xlu1 %v22247_v13 }
 0xce7   : > { %v34425_v3 = vpop.eup %29329  ;;  %29343 = vpow2.f32 %v22176_v33 }
 0xce8   : > { %v34427_v62 = vpop.eup %29331  ;;  %v22250_v28 = vsel %vm1759_vm2, %v34425_v3, 0.0 }
 0xce9   : > { %22251 = vadd.xlane.f32.xlu0 %v22250_v28  ;;  %v22253_v55 = vsel %vm1759_vm2, %v34427_v62, 0.0 }
 0xcea   : > { %22254 = vadd.xlane.f32.xlu1 %v22253_v55 }
 0xceb   : > { %v34433_v57 = vpop.eup %29333 }
 0xcec   : > { %v34435_v4 = vpop.eup %29335  ;;  %v22256_v46 = vsel %vm1759_vm2, %v34433_v57, 0.0 }
 0xced   : > { %22257 = vadd.xlane.f32.xlu0 %v22256_v46  ;;  %v22259_v54 = vsel %vm1759_vm2, %v34435_v4, 0.0 }
 0xcee   : > { %22260 = vadd.xlane.f32.xlu1 %v22259_v54 }
 0xcef   : > { %v34441_v26 = vpop.eup %29337 }
 0xcf0   : > { %v34443_v30 = vpop.eup %29339  ;;  %v22262_v16 = vsel %vm1759_vm2, %v34441_v26, 0.0 }
 0xcf1   : > { %22263 = vadd.xlane.f32.xlu0 %v22262_v16  ;;  %v22265_v48 = vsel %vm1759_vm2, %v34443_v30, 0.0 }
 0xcf2   : > { %22266 = vadd.xlane.f32.xlu1 %v22265_v48 }
 0xcf3   : > { %v34449_v29 = vpop.eup %29341 }
 0xcf4   : > { %v34451_v45 = vpop.eup %29343  ;;  %v22268_v22 = vsel %vm1759_vm2, %v34449_v29, 0.0 }
 0xcf5   : > { %22269 = vadd.xlane.f32.xlu0 %v22268_v22  ;;  %v22271_v43 = vsel %vm1759_vm2, %v34451_v45, 0.0 }
 0xcf6   : > { %22272 = vadd.xlane.f32.xlu1 %v22271_v43 }
 0xd26   : > { %v22180_v59 = vpop.xlane.xlu0 %22179 }
 0xd27   : > { %29345 = vrcp.f32 %v22180_v59 }
 0xd2a   : > { %v22183_v52 = vpop.xlane.xlu1 %22182 }
 0xd2b   : > { %29347 = vrcp.f32 %v22183_v52 }
 0xd2e   : > { %v22186_v33 = vpop.xlane.xlu0 %22185 }
 0xd2f   : > { %29349 = vrcp.f32 %v22186_v33 }
 0xd32   : > { %v22189_v7 = vpop.xlane.xlu1 %22188 }
 0xd33   : > { %29351 = vrcp.f32 %v22189_v7 }
 0xd34   : > { %v29346_v13 = vpop.eup %29345 }
 0xd35   : > { %v22306_v28 = vmul.f32 %v29346_v13, %v34302_v9 }
 0xd36   : > { %v22192_v55 = vpop.xlane.xlu0 %22191 }
 0xd37   : > { %29353 = vrcp.f32 %v22192_v55  ;;  %28656 = vmatmul.mubr.msk.f32.vlgmr.msra.gmra.mxu1 %vm1759_vm2, %v22306_v28 }
 0xd38   : > { %v29348_v46 = vpop.eup %29347  ;;  %28664 = vmatpush3.msra.mxu1 %v34051_v60  ;;  %28665 = vmatprep.mubr.msk.f32.mxu1 %vm29533_vm1, %v34881_v41 }
 0xd39   : > { %v22307_v54 = vmul.f32 %v29348_v46, %v34307_v63  ;;  %28673 = vmatprep.subr.mxu1 %v34881_v41 }
 0xd3a   : > { %v22195_v16 = vpop.xlane.xlu1 %22194 }
 0xd3b   : > { %29355 = vrcp.f32 %v22195_v16  ;;  %28661 = vmatmul.mubr.msk.f32.vlgmr.msra.gmra.mxu0 %vm1759_vm2, %v22307_v54 }
 0xd3c   : > { %v29350_v48 = vpop.eup %29349  ;;  %28669 = vmatpush3.msra.mxu0 %v34042_v32  ;;  %28670 = vmatprep.mubr.msk.f32.mxu0 %vm29533_vm1, %v34881_v41 }
 0xd3d   : > { %v22308_v9 = vmul.f32 %v29350_v48, %v34312_v2  ;;  %28678 = vmatprep.subr.mxu0 %v34881_v41 }
 0xd3e   : > { %v22198_v60 = vpop.xlane.xlu0 %22197 }
 0xd3f   : > { %29357 = vrcp.f32 %v22198_v60  ;;  %28666 = vmatmul.mubr.msk.f32.vlgmr.msra.gmra.mxu1 %vm1759_vm2, %v22308_v9 }
 0xd40   : > { %v29352_v63 = vpop.eup %29351  ;;  %28674 = vmatpush3.msra.mxu1 %v34060_v19  ;;  %28675 = vmatprep.mubr.msk.f32.mxu1 %vm29533_vm1, %v34881_v41 }
 0xd41   : > { %v22309_v22 = vmul.f32 %v29352_v63, %v34317_v58  ;;  %28683 = vmatprep.subr.mxu1 %v34881_v41 }
 0xd42   : > { %v22201_v32 = vpop.xlane.xlu1 %22200 }
 0xd43   : > { %29359 = vrcp.f32 %v22201_v32  ;;  %28671 = vmatmul.mubr.msk.f32.vlgmr.msra.gmra.mxu0 %vm1759_vm2, %v22309_v22 }
 0xd44   : > { %v29354_v2 = vpop.eup %29353  ;;  %28679 = vmatpush3.msra.mxu0 %v34057_v51  ;;  %28680 = vmatprep.mubr.msk.f32.mxu0 %vm29533_vm1, %v34881_v41 }
 0xd45   : > { %v22310_v43 = vmul.f32 %v29354_v2, %v34322_v12  ;;  %28688 = vmatprep.subr.mxu0 %v34881_v41 }
 0xd46   : > { %v22204_v19 = vpop.xlane.xlu0 %22203 }
 0xd47   : > { %29361 = vrcp.f32 %v22204_v19  ;;  %28676 = vmatmul.mubr.msk.f32.vlgmr.msra.gmra.mxu1 %vm1759_vm2, %v22310_v43 }
 0xd48   : > { %v29356_v58 = vpop.eup %29355  ;;  %28684 = vmatpush3.msra.mxu1 %v34071_v17  ;;  %28685 = vmatprep.mubr.msk.f32.mxu1 %vm29533_vm1, %v34881_v41 }
 0xd49   : > { %v22311_v59 = vmul.f32 %v29356_v58, %v34327_v5  ;;  %28693 = vmatprep.subr.mxu1 %v34881_v41 }
 0xd4a   : > { %v22207_v51 = vpop.xlane.xlu1 %22206 }
 0xd4b   : > { %29363 = vrcp.f32 %v22207_v51  ;;  %28681 = vmatmul.mubr.msk.f32.vlgmr.msra.gmra.mxu0 %vm1759_vm2, %v22311_v59  ;;  %v35152_v51 = vld [vmem:[#allocation25_spill] sm:$0xff] }
 0xd4c   : > { %v29358_v12 = vpop.eup %29357  ;;  %28689 = vmatpush3.msra.mxu0 %v34068_v35  ;;  %28690 = vmatprep.mubr.msk.f32.mxu0 %vm29533_vm1, %v34881_v41 }
 0xd4d   : > { %v22312_v52 = vmul.f32 %v29358_v12, %v34332_v38  ;;  %28698 = vmatprep.subr.mxu0 %v34881_v41 }
 0xd4e   : > { %v22210_v17 = vpop.xlane.xlu0 %22209 }
 0xd4f   : > { %29365 = vrcp.f32 %v22210_v17  ;;  %28686 = vmatmul.mubr.msk.f32.vlgmr.msra.gmra.mxu1 %vm1759_vm2, %v22312_v52 }
 0xd50   : > { %v29360_v5 = vpop.eup %29359  ;;  %28694 = vmatpush3.msra.mxu1 %v34082_v18  ;;  %28695 = vmatprep.mubr.msk.f32.mxu1 %vm29533_vm1, %v34881_v41 }
 0xd51   : > { %v22313_v33 = vmul.f32 %v29360_v5, %v34337_v34  ;;  %28703 = vmatprep.subr.mxu1 %v34881_v41  ;;  %v35153_v5 = vld [vmem:[#allocation51_spill] sm:$0xff] }
 0xd52   : > { %v22213_v35 = vpop.xlane.xlu1 %22212 }
 0xd53   : > { %29367 = vrcp.f32 %v22213_v35  ;;  %28691 = vmatmul.mubr.msk.f32.vlgmr.msra.gmra.mxu0 %vm1759_vm2, %v22313_v33  ;;  %v35154_v35 = vld [vmem:[#allocation28_spill] sm:$0xff] }
 0xd54   : > { %v29362_v38 = vpop.eup %29361  ;;  %28699 = vmatpush3.msra.mxu0 %v34079_v56  ;;  %28700 = vmatprep.mubr.msk.f32.mxu0 %vm29533_vm1, %v34881_v41 }
 0xd55   : > { %v22314_v7 = vmul.f32 %v29362_v38, %v34342_v25  ;;  %28708 = vmatprep.subr.mxu0 %v34881_v41 }
 0xd56   : > { %v22216_v18 = vpop.xlane.xlu0 %22215 }
 0xd57   : > { %29369 = vrcp.f32 %v22216_v18  ;;  %28696 = vmatmul.mubr.msk.f32.vlgmr.msra.gmra.mxu1 %vm1759_vm2, %v22314_v7 }
 0xd58   : > { %v29364_v34 = vpop.eup %29363  ;;  %28704 = vmatpush3.msra.mxu1 %v34093_v21  ;;  %28705 = vmatprep.mubr.msk.f32.mxu1 %vm29533_vm1, %v34881_v41 }
 0xd59   : > { %v22315_v13 = vmul.f32 %v29364_v34, %v34347_v1  ;;  %28713 = vmatprep.subr.mxu1 %v34881_v41  ;;  %v35155_v34 = vld [vmem:[#allocation54_spill] sm:$0xff] }
 0xd5a   : > { %v22219_v56 = vpop.xlane.xlu1 %22218 }
 0xd5b   : > { %29371 = vrcp.f32 %v22219_v56  ;;  %28701 = vmatmul.mubr.msk.f32.vlgmr.msra.gmra.mxu0 %vm1759_vm2, %v22315_v13  ;;  %v35156_v56 = vld [vmem:[#allocation31_spill] sm:$0xff] }
 0xd5c   : > { %v29366_v25 = vpop.eup %29365  ;;  %28709 = vmatpush3.msra.mxu0 %v34090_v39  ;;  %28710 = vmatprep.mubr.msk.f32.mxu0 %vm29533_vm1, %v34881_v41 }
 0xd5d   : > { %v22316_v28 = vmul.f32 %v29366_v25, %v34353_v42  ;;  %28718 = vmatprep.subr.mxu0 %v34881_v41 }
 0xd5e   : > { %v22222_v21 = vpop.xlane.xlu0 %22221 }
 0xd5f   : > { %29373 = vrcp.f32 %v22222_v21  ;;  %v22225_v55 = vpop.xlane.xlu1 %22224  ;;  %28706 = vmatmul.mubr.msk.f32.vlgmr.msra.gmra.mxu1 %vm1759_vm2, %v22316_v28  ;;  %v35157_v21 = vld [vmem:[#allocation57_spill] sm:$0xff] }
 0xd60   : > { %v29368_v1 = vpop.eup %29367  ;;  %29375 = vrcp.f32 %v22225_v55  ;;  %28714 = vmatpush3.msra.mxu1 %v34104_v61  ;;  %28715 = vmatprep.mubr.msk.f32.mxu1 %vm29533_vm1, %v34881_v41 }
 0xd61   : > { %v22317_v39 = vmul.f32 %v29368_v1, %v34359_v47  ;;  %28723 = vmatprep.subr.mxu1 %v34881_v41  ;;  %v35158_v1 = vld [vmem:[#allocation34_spill] sm:$0xff] }
 0xd62   : > { %v22228_v46 = vpop.xlane.xlu0 %22227 }
 0xd63   : > { %29377 = vrcp.f32 %v22228_v46  ;;  %28711 = vmatmul.mubr.msk.f32.vlgmr.msra.gmra.mxu0 %vm1759_vm2, %v22317_v39  ;;  %v22231_v42 = vpop.xlane.xlu1 %22230  ;;  %v35159_v46 = vld [vmem:[#allocation60_spill] sm:$0xff] }
 0xd64   : > { %v29370_v54 = vpop.eup %29369  ;;  %28719 = vmatpush3.msra.mxu0 %v34101_v20  ;;  %29379 = vrcp.f32 %v22231_v42  ;;  %28720 = vmatprep.mubr.msk.f32.mxu0 %vm29533_vm1, %v34881_v41 }
 0xd65   : > { %v22318_v61 = vmul.f32 %v29370_v54, %v34365_v49  ;;  %28728 = vmatprep.subr.mxu0 %v34881_v41  ;;  %v35160_v54 = vld [vmem:[#allocation53_spill] sm:$0xff] }
 0xd66   : > { %v22234_v16 = vpop.xlane.xlu0 %22233 }
 0xd67   : > { %29381 = vrcp.f32 %v22234_v16  ;;  %v22237_v47 = vpop.xlane.xlu1 %22236  ;;  %28716 = vmatmul.mubr.msk.f32.vlgmr.msra.gmra.mxu1 %vm1759_vm2, %v22318_v61  ;;  %v35161_v16 = vld [vmem:[#allocation63_spill] sm:$0xff] }
 0xd68   : > { %v29372_v48 = vpop.eup %29371  ;;  %29383 = vrcp.f32 %v22237_v47  ;;  %28724 = vmatpush3.msra.mxu1 %v34115_v8  ;;  %28725 = vmatprep.mubr.msk.f32.mxu1 %vm29533_vm1, %v34881_v41 }
 0xd69   : > { %v22319_v20 = vmul.f32 %v29372_v48, %v34371_v23  ;;  %28733 = vmatprep.subr.mxu1 %v34881_v41  ;;  %v35162_v48 = vld [vmem:[#allocation59_spill] sm:$0xff] }
 0xd6a   : > { %v22240_v9 = vpop.xlane.xlu0 %22239 }
 0xd6b   : > { %29385 = vrcp.f32 %v22240_v9  ;;  %28721 = vmatmul.mubr.msk.f32.vlgmr.msra.gmra.mxu0 %vm1759_vm2, %v22319_v20  ;;  %v22243_v49 = vpop.xlane.xlu1 %22242 }
 0xd6c   : > { %v29374_v60 = vpop.eup %29373  ;;  %28729 = vmatpush3.msra.mxu0 %v34112_v50  ;;  %29387 = vrcp.f32 %v22243_v49  ;;  %28730 = vmatprep.mubr.msk.f32.mxu0 %vm29533_vm1, %v34881_v41 }
 0xd6d   : > { %v29376_v8 = vpop.eup %29375  ;;  %v22320_v63 = vmul.f32 %v29374_v60, %v34377_v11  ;;  %28738 = vmatprep.subr.mxu0 %v34881_v41 }
 0xd6e   : > { %v22321_v23 = vmul.f32 %v29376_v8, %v34379_v0  ;;  %v22246_v22 = vpop.xlane.xlu0 %22245 }
 0xd6f   : > { %29389 = vrcp.f32 %v22246_v22  ;;  %v22249_v32 = vpop.xlane.xlu1 %22248  ;;  %28726 = vmatmul.mubr.msk.f32.vlgmr.msra.gmra.mxu1 %vm1759_vm2, %v22320_v63 }
 0xd70   : > { %v29378_v2 = vpop.eup %29377  ;;  %29391 = vrcp.f32 %v22249_v32  ;;  %28734 = vmatpush3.msra.mxu1 %v34126_v27  ;;  %28731 = vmatmul.mubr.msk.f32.vlgmr.msra.gmra.mxu0 %vm1759_vm2, %v22321_v23 }
 0xd71   : > { %v29380_v50 = vpop.eup %29379  ;;  %v22322_v43 = vmul.f32 %v29378_v2, %v34387_v36  ;;  %28739 = vmatpush3.msra.mxu0 %v34123_v24  ;;  %28735 = vmatprep.mubr.msk.f32.mxu1 %vm29533_vm1, %v34881_v41 }
 0xd72   : > { %v22323_v11 = vmul.f32 %v29380_v50, %v34389_v31  ;;  %v22252_v0 = vpop.xlane.xlu0 %22251  ;;  %28743 = vmatprep.subr.mxu1 %v34881_v41  ;;  %28740 = vmatprep.mubr.msk.f32.mxu0 %vm29533_vm1, %v34881_v41 }
 0xd73   : > { %29393 = vrcp.f32 %v22252_v0  ;;  %28748 = vmatprep.subr.mxu0 %v34881_v41  ;;  %v22255_v27 = vpop.xlane.xlu1 %22254  ;;  %28736 = vmatmul.mubr.msk.f32.vlgmr.msra.gmra.mxu1 %vm1759_vm2, %v22322_v43 }
 0xd74   : > { %v29382_v36 = vpop.eup %29381  ;;  %29395 = vrcp.f32 %v22255_v27  ;;  %28744 = vmatpush3.msra.mxu1 %v34137_v6  ;;  %28741 = vmatmul.mubr.msk.f32.vlgmr.msra.gmra.mxu0 %vm1759_vm2, %v22323_v11 }
 0xd75   : > { %v29384_v24 = vpop.eup %29383  ;;  %v22324_v31 = vmul.f32 %v29382_v36, %v34397_v40  ;;  %28749 = vmatpush3.msra.mxu0 %v34134_v10  ;;  %28745 = vmatprep.mubr.msk.f32.mxu1 %vm29533_vm1, %v34881_v41  ;;  %v35151_v10 = vld [vmem:[#allocation48_spill] sm:$0xff] }
 0xd76   : > { %v22325_v19 = vmul.f32 %v29384_v24, %v34399_v37  ;;  %v22258_v58 = vpop.xlane.xlu0 %22257  ;;  %28753 = vmatprep.subr.mxu1 %v34881_v41  ;;  %28750 = vmatprep.mubr.msk.f32.mxu0 %vm29533_vm1, %v34881_v41 }
 0xd77   : > { %29397 = vrcp.f32 %v22258_v58  ;;  %28758 = vmatprep.subr.mxu0 %v34881_v41  ;;  %v22261_v6 = vpop.xlane.xlu1 %22260  ;;  %28746 = vmatmul.mubr.msk.f32.vlgmr.msra.gmra.mxu1 %vm1759_vm2, %v22324_v31 }
 0xd78   : > { %v29386_v40 = vpop.eup %29385  ;;  %29399 = vrcp.f32 %v22261_v6  ;;  %28754 = vmatpush3.msra.mxu1 %v35151_v10  ;;  %28751 = vmatmul.mubr.msk.f32.vlgmr.msra.gmra.mxu0 %vm1759_vm2, %v22325_v19 }
 0xd79   : > { %v29388_v59 = vpop.eup %29387  ;;  %v22326_v37 = vmul.f32 %v29386_v40, %v34407_v53  ;;  %28759 = vmatpush3.msra.mxu0 %v35152_v51  ;;  %28755 = vmatprep.mubr.msk.f32.mxu1 %vm29533_vm1, %v34881_v41 }
 0xd7a   : > { %v22327_v12 = vmul.f32 %v29388_v59, %v34409_v14  ;;  %v22264_v52 = vpop.xlane.xlu0 %22263  ;;  %28763 = vmatprep.subr.mxu1 %v34881_v41  ;;  %28760 = vmatprep.mubr.msk.f32.mxu0 %vm29533_vm1, %v34881_v41 }
 0xd7b   : > { %29401 = vrcp.f32 %v22264_v52  ;;  %28768 = vmatprep.subr.mxu0 %v34881_v41  ;;  %v22267_v17 = vpop.xlane.xlu1 %22266  ;;  %28756 = vmatmul.mubr.msk.f32.vlgmr.msra.gmra.mxu1 %vm1759_vm2, %v22326_v37 }
 0xd7c   : > { %v29390_v53 = vpop.eup %29389  ;;  %29403 = vrcp.f32 %v22267_v17  ;;  %28764 = vmatpush3.msra.mxu1 %v35153_v5  ;;  %28761 = vmatmul.mubr.msk.f32.vlgmr.msra.gmra.mxu0 %vm1759_vm2, %v22327_v12 }
 0xd7d   : > { %v29392_v33 = vpop.eup %29391  ;;  %v22328_v14 = vmul.f32 %v29390_v53, %v34417_v44  ;;  %28769 = vmatpush3.msra.mxu0 %v35154_v35  ;;  %28765 = vmatprep.mubr.msk.f32.mxu1 %vm29533_vm1, %v34881_v41 }
 0xd7e   : > { %v22329_v38 = vmul.f32 %v29392_v33, %v34419_v15  ;;  %v22270_v7 = vpop.xlane.xlu0 %22269  ;;  %28773 = vmatprep.subr.mxu1 %v34881_v41  ;;  %28770 = vmatprep.mubr.msk.f32.mxu0 %vm29533_vm1, %v34881_v41 }
 0xd7f   : > { %29405 = vrcp.f32 %v22270_v7  ;;  %28778 = vmatprep.subr.mxu0 %v34881_v41  ;;  %v22273_v18 = vpop.xlane.xlu1 %22272  ;;  %28766 = vmatmul.mubr.msk.f32.vlgmr.msra.gmra.mxu1 %vm1759_vm2, %v22328_v14 }
 0xd80   : > { %v29394_v44 = vpop.eup %29393  ;;  %29407 = vrcp.f32 %v22273_v18  ;;  %28774 = vmatpush3.msra.mxu1 %v35155_v34  ;;  %28771 = vmatmul.mubr.msk.f32.vlgmr.msra.gmra.mxu0 %vm1759_vm2, %v22329_v38 }
 0xd81   : > { %v29396_v13 = vpop.eup %29395  ;;  %v22330_v15 = vmul.f32 %v29394_v44, %v34425_v3  ;;  %28779 = vmatpush3.msra.mxu0 %v35156_v56  ;;  %28775 = vmatprep.mubr.msk.f32.mxu1 %vm29533_vm1, %v34881_v41 }
 0xd82   : > { %v22331_v25 = vmul.f32 %v29396_v13, %v34427_v62  ;;  %28783 = vmatprep.subr.mxu1 %v34881_v41  ;;  %28780 = vmatprep.mubr.msk.f32.mxu0 %vm29533_vm1, %v34881_v41 }
 0xd83   : > { %28776 = vmatmul.mubr.msk.f32.vlgmr.msra.gmra.mxu1 %vm1759_vm2, %v22330_v15  ;;  %28788 = vmatprep.subr.mxu0 %v34881_v41 }
 0xd84   : > { %v29398_v28 = vpop.eup %29397  ;;  %28784 = vmatpush3.msra.mxu1 %v35157_v21  ;;  %28781 = vmatmul.mubr.msk.f32.vlgmr.msra.gmra.mxu0 %vm1759_vm2, %v22331_v25 }
 0xd85   : > { %v29400_v3 = vpop.eup %29399  ;;  %v22332_v55 = vmul.f32 %v29398_v28, %v34433_v57  ;;  %28789 = vmatpush3.msra.mxu0 %v35158_v1  ;;  %28785 = vmatprep.mubr.msk.f32.mxu1 %vm29533_vm1, %v34881_v41 }
 0xd86   : > { %v22333_v62 = vmul.f32 %v29400_v3, %v34435_v4  ;;  %28793 = vmatprep.subr.mxu1 %v34881_v41  ;;  %28790 = vmatprep.mubr.msk.f32.mxu0 %vm29533_vm1, %v34881_v41 }
 0xd87   : > { %28786 = vmatmul.mubr.msk.f32.vlgmr.msra.gmra.mxu1 %vm1759_vm2, %v22332_v55  ;;  %28798 = vmatprep.subr.mxu0 %v34881_v41 }
 0xd88   : > { %v29402_v39 = vpop.eup %29401  ;;  %28794 = vmatpush3.msra.mxu1 %v35159_v46  ;;  %28791 = vmatmul.mubr.msk.f32.vlgmr.msra.gmra.mxu0 %vm1759_vm2, %v22333_v62 }
 0xd89   : > { %v29404_v57 = vpop.eup %29403  ;;  %v22334_v42 = vmul.f32 %v29402_v39, %v34441_v26  ;;  %28799 = vmatpush3.msra.mxu0 %v35160_v54  ;;  %28795 = vmatprep.mubr.msk.f32.mxu1 %vm29533_vm1, %v34881_v41  ;;  %v25966_v26 = vld [vmem:[%s34863_s7 + $0x18] sm:$0xff] }
 0xd8a   : > { %v22335_v4 = vmul.f32 %v29404_v57, %v34443_v30  ;;  %28803 = vmatprep.subr.mxu1 %v34881_v41  ;;  %28800 = vmatprep.mubr.msk.f32.mxu0 %vm29533_vm1, %v34881_v41 }
 0xd8b   : > { %28796 = vmatmul.mubr.msk.f32.vlgmr.msra.gmra.mxu1 %vm1759_vm2, %v22334_v42  ;;  %28808 = vmatprep.subr.mxu0 %v34881_v41 }
 0xd8c   : > { %v29406_v61 = vpop.eup %29405  ;;  %28804 = vmatpush3.msra.mxu1 %v35161_v16  ;;  %28801 = vmatmul.mubr.msk.f32.vlgmr.msra.gmra.mxu0 %vm1759_vm2, %v22335_v4 }
 0xd8d   : > { %v29408_v47 = vpop.eup %29407  ;;  %v22336_v30 = vmul.f32 %v29406_v61, %v34449_v29  ;;  %28809 = vmatpush3.msra.mxu0 %v35162_v48  ;;  %28805 = vmatprep.mubr.msk.f32.mxu1 %vm29533_vm1, %v34881_v41 }
 0xd8e   : > { %v22337_v20 = vmul.f32 %v29408_v47, %v34451_v45  ;;  %28810 = vmatprep.mubr.msk.f32.mxu0 %vm29533_vm1, %v34881_v41  ;;  %28813 = vmatprep.subr.mxu1 %v25966_v26 }
 0xd8f   : > { %28806 = vmatmul.mubr.msk.f32.vlgmr.msra.gmra.mxu1 %vm1759_vm2, %v22336_v30 }
 0xd90   : > { %28811 = vmatmul.mubr.msk.f32.vlgmr.msra.gmra.mxu0 %vm1759_vm2, %v22337_v20  ;;  %28814 = vmatpush3.msra.mxu1 %v25966_v26 }
 0xdf7   : > { %v22407_v9 = vpop.f32.mrf.mxu1 }
 0xdf8   : > { %28815 = vmatprep.mubr.msk.f32.mxu1 %vm1759_vm2, %v22407_v9  ;;  %v35163_v9 = vld [vmem:[#allocation15_spill] sm:$0xff] }
 0xdf9   : > { %v28657_v29 = vpop.f32.mrf.mxu1 }
 0xdfa   : > { %v35164_v29 = vld [vmem:[#allocation36_spill] sm:$0xff] }
 0xdfb   : > { %v22480_v49 = vpop.f32.mrf.mxu0 }
 0xdfc   : > { %28816 = vmatmul.mubr.msk.f32.vlgmr.msra.gmra.mxu1 %vm1759_vm2, %v22480_v49  ;;  %v12965_v49 = vadd.f32 %v35164_v29, %v35163_v9  ;;  %v35185_v29 = vld [vmem:[#allocation79_spill] sm:$0xff] }
 0xdfd   : > { %v28662_v60 = vpop.f32.mrf.mxu0 }
 0xdff   : > { %v22553_v8 = vpop.f32.mrf.mxu1 }
 0xe00   : > { %28818 = vmatprep.mubr.msk.f32.mxu1 %vm1759_vm2, %v22553_v8  ;;  %v34679_v8 = vld [vmem:[%s34864_s8] ss:$0 sm:$0xff] }
 0xe01   : > { %v28667_v45 = vpop.f32.mrf.mxu1 }
 0xe02   : > { %v35165_v45 = vld [vmem:[#allocation69_spill] sm:$0xff] }
 0xe03   : > { %v22626_v63 = vpop.f32.mrf.mxu0 }
 0xe04   : > { %28819 = vmatmul.mubr.msk.f32.gmra.mxu1 %vm1759_vm2, %v22626_v63  ;;  %v19044_v63 = vadd.f32 %v35165_v45, %v12965_v49 }
 0xe05   : > { %v28672_v41 = vpop.f32.mrf.mxu0 }
 0xe06   : > { %v35166_v41 = vld [vmem:[#allocation67_spill] sm:$0xff] }
 0xe07   : > { %v22699_v23 = vpop.f32.mrf.mxu1 }
 0xe08   : > { %28821 = vmatprep.mubr.msk.f32.mxu1 %vm1759_vm2, %v22699_v23 }
 0xe09   : > { %v28677_v22 = vpop.f32.mrf.mxu1 }
 0xe0b   : > { %v22772_v32 = vpop.f32.mrf.mxu0 }
 0xe0c   : > { %28822 = vmatmul.mubr.msk.f32.gmra.mxu1 %vm1759_vm2, %v22772_v32 }
 0xe0d   : > { %v28682_v2 = vpop.f32.mrf.mxu0 }
 0xe0f   : > { %v22845_v50 = vpop.f32.mrf.mxu1 }
 0xe10   : > { %28824 = vmatprep.mubr.msk.f32.mxu1 %vm1759_vm2, %v22845_v50 }
 0xe11   : > { %v28687_v43 = vpop.f32.mrf.mxu1 }
 0xe12   : > { %v35167_v43 = vld [vmem:[#allocation19_spill] sm:$0xff] }
 0xe13   : > { %v22918_v11 = vpop.f32.mrf.mxu0 }
 0xe14   : > { %28825 = vmatmul.mubr.msk.f32.gmra.mxu1 %vm1759_vm2, %v22918_v11  ;;  %v35168_v11 = vld [vmem:[#allocation38_spill] sm:$0xff] }
 0xe15   : > { %v28692_v0 = vpop.f32.mrf.mxu0 }
 0xe16   : > { %v12975_v0 = vadd.f32 %v35168_v11, %v35167_v43  ;;  %v35189_v11 = vld [vmem:[#allocation17_spill] sm:$0xff] }
 0xe17   : > { %v22991_v27 = vpop.f32.mrf.mxu1 }
 0xe18   : > { %28827 = vmatprep.mubr.msk.f32.mxu1 %vm1759_vm2, %v22991_v27 }
 0xe19   : > { %v28697_v36 = vpop.f32.mrf.mxu1 }
 0xe1a   : > { %v35169_v36 = vld [vmem:[#allocation71_spill] sm:$0xff] }
 0xe1b   : > { %v23064_v24 = vpop.f32.mrf.mxu0 }
 0xe1c   : > { %28828 = vmatmul.mubr.msk.f32.gmra.mxu1 %vm1759_vm2, %v23064_v24  ;;  %v19046_v24 = vadd.f32 %v35169_v36, %v12975_v0 }
 0xe1d   : > { %v28702_v31 = vpop.f32.mrf.mxu0 }
 0xe1e   : > { %v35170_v31 = vld [vmem:[#allocation68_spill] sm:$0xff] }
 0xe1f   : > { %v23137_v19 = vpop.f32.mrf.mxu1 }
 0xe20   : > { %28830 = vmatprep.mubr.msk.f32.mxu1 %vm1759_vm2, %v23137_v19 }
 0xe21   : > { %v28707_v58 = vpop.f32.mrf.mxu1 }
 0xe23   : > { %v23210_v6 = vpop.f32.mrf.mxu0 }
 0xe24   : > { %28831 = vmatmul.mubr.msk.f32.gmra.mxu1 %vm1759_vm2, %v23210_v6 }
 0xe25   : > { %v28712_v40 = vpop.f32.mrf.mxu0 }
 0xe27   : > { %v23283_v10 = vpop.f32.mrf.mxu1 }
 0xe28   : > { %28833 = vmatprep.mubr.msk.f32.mxu1 %vm1759_vm2, %v23283_v10 }
 0xe29   : > { %v28717_v59 = vpop.f32.mrf.mxu1 }
 0xe2a   : > { %v35171_v59 = vld [vmem:[#allocation23_spill] sm:$0xff] }
 0xe2b   : > { %v23356_v37 = vpop.f32.mrf.mxu0 }
 0xe2c   : > { %28834 = vmatmul.mubr.msk.f32.gmra.mxu1 %vm1759_vm2, %v23356_v37  ;;  %v35172_v37 = vld [vmem:[#allocation40_spill] sm:$0xff] }
 0xe2d   : > { %v28722_v51 = vpop.f32.mrf.mxu0 }
 0xe2e   : > { %v12985_v51 = vadd.f32 %v35172_v37, %v35171_v59  ;;  %v35193_v37 = vld [vmem:[#allocation21_spill] sm:$0xff] }
 0xe2f   : > { %v23429_v12 = vpop.f32.mrf.mxu1 }
 0xe30   : > { %v23502_v52 = vpop.f32.mrf.mxu0  ;;  %28836 = vmatprep.mubr.msk.f32.mxu1 %vm1759_vm2, %v23429_v12 }
 0xe31   : > { %v28727_v17 = vpop.f32.mrf.mxu1  ;;  %28837 = vmatmul.mubr.msk.f32.gmra.mxu1 %vm1759_vm2, %v23502_v52  ;;  %v35173_v52 = vld [vmem:[#allocation73_spill] sm:$0xff] }
 0xe32   : > { %v28732_v53 = vpop.f32.mrf.mxu0  ;;  %v19048_v17 = vadd.f32 %v35173_v52, %v12985_v51 }
 0xe33   : > { %v23575_v5 = vpop.f32.mrf.mxu1  ;;  %v35174_v53 = vld [vmem:[#allocation70_spill] sm:$0xff] }
 0xe34   : > { %v23648_v33 = vpop.f32.mrf.mxu0  ;;  %28839 = vmatprep.mubr.msk.f32.mxu1 %vm1759_vm2, %v23575_v5 }
 0xe35   : > { %v28737_v14 = vpop.f32.mrf.mxu1  ;;  %28840 = vmatmul.mubr.msk.f32.gmra.mxu1 %vm1759_vm2, %v23648_v33 }
 0xe36   : > { %v28742_v35 = vpop.f32.mrf.mxu0 }
 0xe37   : > { %v23721_v38 = vpop.f32.mrf.mxu1 }
 0xe38   : > { %v23794_v7 = vpop.f32.mrf.mxu0  ;;  %28842 = vmatprep.mubr.msk.f32.mxu1 %vm1759_vm2, %v23721_v38 }
 0xe39   : > { %v28747_v18 = vpop.f32.mrf.mxu1  ;;  %28843 = vmatmul.mubr.msk.f32.gmra.mxu1 %vm1759_vm2, %v23794_v7  ;;  %v35175_v7 = vld [vmem:[#allocation5_spill] sm:$0xff] }
 0xe3a   : > { %v28752_v44 = vpop.f32.mrf.mxu0  ;;  %v35176_v18 = vld [vmem:[#allocation42_spill] sm:$0xff] }
 0xe3b   : > { %v23867_v34 = vpop.f32.mrf.mxu1  ;;  %v12995_v44 = vadd.f32 %v35176_v18, %v35175_v7  ;;  %v35197_v7 = vld [vmem:[#allocation3_spill] sm:$0xff] }
 0xe3c   : > { %v23940_v13 = vpop.f32.mrf.mxu0  ;;  %28845 = vmatprep.mubr.msk.f32.mxu1 %vm1759_vm2, %v23867_v34 }
 0xe3d   : > { %v28757_v15 = vpop.f32.mrf.mxu1  ;;  %28846 = vmatmul.mubr.msk.f32.gmra.mxu1 %vm1759_vm2, %v23940_v13  ;;  %v35177_v13 = vld [vmem:[#allocation75_spill] sm:$0xff] }
 0xe3e   : > { %v28762_v56 = vpop.f32.mrf.mxu0  ;;  %v19050_v15 = vadd.f32 %v35177_v13, %v12995_v44 }
 0xe3f   : > { %v24013_v25 = vpop.f32.mrf.mxu1  ;;  %v35178_v56 = vld [vmem:[#allocation72_spill] sm:$0xff] }
 0xe40   : > { %v24086_v28 = vpop.f32.mrf.mxu0  ;;  %28848 = vmatprep.mubr.msk.f32.mxu1 %vm1759_vm2, %v24013_v25 }
 0xe41   : > { %v28767_v21 = vpop.f32.mrf.mxu1  ;;  %28849 = vmatmul.mubr.msk.f32.gmra.mxu1 %vm1759_vm2, %v24086_v28 }
 0xe42   : > { %v28772_v3 = vpop.f32.mrf.mxu0 }
 0xe43   : > { %v24159_v55 = vpop.f32.mrf.mxu1 }
 0xe44   : > { %v24232_v1 = vpop.f32.mrf.mxu0  ;;  %28851 = vmatprep.mubr.msk.f32.mxu1 %vm1759_vm2, %v24159_v55 }
 0xe45   : > { %v28777_v62 = vpop.f32.mrf.mxu1  ;;  %28852 = vmatmul.mubr.msk.f32.gmra.mxu1 %vm1759_vm2, %v24232_v1  ;;  %v35179_v1 = vld [vmem:[#allocation26_spill] sm:$0xff] }
 0xe46   : > { %v28782_v39 = vpop.f32.mrf.mxu0  ;;  %v35180_v62 = vld [vmem:[#allocation44_spill] sm:$0xff] }
 0xe47   : > { %v24305_v46 = vpop.f32.mrf.mxu1  ;;  %v13005_v39 = vadd.f32 %v35180_v62, %v35179_v1  ;;  %v35201_v1 = vld [vmem:[#allocation24_spill] sm:$0xff] }
 0xe48   : > { %v24378_v57 = vpop.f32.mrf.mxu0  ;;  %28854 = vmatprep.mubr.msk.f32.mxu1 %vm1759_vm2, %v24305_v46 }
 0xe49   : > { %v28787_v42 = vpop.f32.mrf.mxu1  ;;  %28855 = vmatmul.mubr.msk.f32.gmra.mxu1 %vm1759_vm2, %v24378_v57  ;;  %v35181_v57 = vld [vmem:[#allocation77_spill] sm:$0xff] }
 0xe4a   : > { %v28792_v54 = vpop.f32.mrf.mxu0  ;;  %v19052_v42 = vadd.f32 %v35181_v57, %v13005_v39 }
 0xe4b   : > { %v24451_v4 = vpop.f32.mrf.mxu1  ;;  %v35182_v54 = vld [vmem:[#allocation74_spill] sm:$0xff] }
 0xe4c   : > { %v24524_v26 = vpop.f32.mrf.mxu0  ;;  %28857 = vmatprep.mubr.msk.f32.mxu1 %vm1759_vm2, %v24451_v4 }
 0xe4d   : > { %v28797_v61 = vpop.f32.mrf.mxu1  ;;  %28858 = vmatmul.mubr.msk.f32.gmra.mxu1 %vm1759_vm2, %v24524_v26 }
 0xe4e   : > { %v28802_v16 = vpop.f32.mrf.mxu0 }
 0xe4f   : > { %v24597_v47 = vpop.f32.mrf.mxu1 }
 0xe50   : > { %v24670_v30 = vpop.f32.mrf.mxu0  ;;  %28860 = vmatprep.mubr.msk.f32.mxu1 %vm1759_vm2, %v24597_v47 }
 0xe51   : > { %v28807_v48 = vpop.f32.mrf.mxu1  ;;  %28861 = vmatmul.mubr.msk.f32.gmra.mxu1 %vm1759_vm2, %v24670_v30  ;;  %v35183_v30 = vld [vmem:[#allocation7_spill] sm:$0xff] }
 0xe52   : > { %v28812_v20 = vpop.f32.mrf.mxu0  ;;  %v35184_v48 = vld [vmem:[#allocation46_spill] sm:$0xff] }
 0xe53   : > { %v13015_v20 = vadd.f32 %v35184_v48, %v35183_v30  ;;  %v35205_v30 = vld [vmem:[#allocation20_spill] sm:$0xff] }
 0xe55   : > { %v19054_v49 = vadd.f32 %v35185_v29, %v13015_v20 }
 0xebc   : > { %v28817_v60 = vpop.f32.mrf.mxu1 }
 0xebd   : > { %v24998_v23 = vadd.f32 %v28817_v60, %v35166_v41  ;;  %v35186_v60 = vld [vmem:[#allocation76_spill] sm:$0xff] }
 0xebe   : > { %v24838_v22 = vpop.f32.mrf.mxu1 }
 0xebf   : > { %v25037_v32 = vadd.f32 %v34679_v8, %v24998_v23  ;;  %v24997_v2 = vadd.f32 %v24838_v22, %v19044_v63 }
 0xec1   : > { %25069 = vst.msk [vmem:[%s34688_s25 + $0x8] sm:$0xff] %vm1200_vm0, %v25037_v32  ;;  %v25036_v50 = vadd.f32 %v34679_v8, %v24997_v2  ;;  %v35187_v32 = vld [vmem:[#allocation29_spill] sm:$0xff]  ;;  %v35188_v2 = vld [vmem:[#allocation16_spill] sm:$0xff] }
 0xec3   : > { %25068 = vst.msk [vmem:[%s34688_s25] sm:$0xff] %vm1200_vm0, %v25036_v50  ;;  %v13025_v50 = vadd.f32 %v35188_v2, %v35187_v32  ;;  %v35209_v32 = vld [vmem:[#allocation27_spill] sm:$0xff] }
 0xec4   : > { %v28820_v27 = vpop.f32.mrf.mxu1 }
 0xec5   : > { %v25000_v19 = vadd.f32 %v28820_v27, %v35170_v31  ;;  %v19056_v0 = vadd.f32 %v35189_v11, %v13025_v50  ;;  %v35190_v27 = vld [vmem:[#allocation78_spill] sm:$0xff] }
 0xec6   : > { %v24848_v58 = vpop.f32.mrf.mxu1 }
 0xec7   : > { %v25039_v6 = vadd.f32 %v34679_v8, %v25000_v19  ;;  %v24999_v40 = vadd.f32 %v24848_v58, %v19046_v24  ;;  %v35191_v58 = vld [vmem:[#allocation10_spill] sm:$0xff] }
 0xec9   : > { %25071 = vst.msk [vmem:[%s34688_s25 + $0x18] sm:$0xff] %vm1200_vm0, %v25039_v6  ;;  %v25038_v10 = vadd.f32 %v34679_v8, %v24999_v40  ;;  %v35192_v6 = vld [vmem:[#allocation18_spill] sm:$0xff] }
 0xeca   : > { %v13035_v40 = vadd.f32 %v35192_v6, %v35191_v58  ;;  %v35213_v6 = vld [vmem:[#allocation8_spill] sm:$0xff] }
 0xecb   : > { %25070 = vst.msk [vmem:[%s34688_s25 + $0x10] sm:$0xff] %vm1200_vm0, %v25038_v10 }
 0xecc   : > { %v28823_v12 = vpop.f32.mrf.mxu1  ;;  %v19058_v51 = vadd.f32 %v35193_v37, %v13035_v40 }
 0xecd   : > { %v25002_v5 = vadd.f32 %v28823_v12, %v35174_v53  ;;  %v35194_v12 = vld [vmem:[#allocation35_spill] sm:$0xff]  ;;  %v35195_v53 = vld [vmem:[#allocation32_spill] sm:$0xff] }
 0xece   : > { %v24858_v33 = vpop.f32.mrf.mxu1 }
 0xecf   : > { %v25041_v14 = vadd.f32 %v34679_v8, %v25002_v5  ;;  %v25001_v35 = vadd.f32 %v24858_v33, %v19048_v17  ;;  %v35196_v5 = vld [vmem:[#allocation4_spill] sm:$0xff] }
 0xed0   : > { %v13045_v33 = vadd.f32 %v35196_v5, %v35195_v53 }
 0xed1   : > { %25073 = vst.msk [vmem:[%s34688_s25 + $0x28] sm:$0xff] %vm1200_vm0, %v25041_v14  ;;  %v25040_v38 = vadd.f32 %v34679_v8, %v25001_v35 }
 0xed2   : > { %v19060_v18 = vadd.f32 %v35197_v7, %v13045_v33  ;;  %v35218_v7 = vld [vmem:[#allocation47_spill] sm:$0xff] }
 0xed3   : > { %25072 = vst.msk [vmem:[%s34688_s25 + $0x20] sm:$0xff] %vm1200_vm0, %v25040_v38 }
 0xed4   : > { %v28826_v34 = vpop.f32.mrf.mxu1 }
 0xed5   : > { %v25004_v25 = vadd.f32 %v28826_v34, %v35178_v56  ;;  %v35198_v34 = vld [vmem:[#allocation37_spill] sm:$0xff] }
 0xed6   : > { %v24868_v28 = vpop.f32.mrf.mxu1  ;;  %v35199_v56 = vld [vmem:[#allocation13_spill] sm:$0xff] }
 0xed7   : > { %v25043_v21 = vadd.f32 %v34679_v8, %v25004_v25  ;;  %v25003_v3 = vadd.f32 %v24868_v28, %v19050_v15  ;;  %v35200_v25 = vld [vmem:[#allocation6_spill] sm:$0xff] }
 0xed8   : > { %v13055_v28 = vadd.f32 %v35200_v25, %v35199_v56 }
 0xed9   : > { %25075 = vst.msk [vmem:[%s34688_s25 + $0x38] sm:$0xff] %vm1200_vm0, %v25043_v21  ;;  %v25042_v55 = vadd.f32 %v34679_v8, %v25003_v3 }
 0xeda   : > { %v19062_v62 = vadd.f32 %v35201_v1, %v13055_v28  ;;  %v35222_v1 = vld [vmem:[#allocation14_spill] sm:$0xff] }
 0xedb   : > { %25074 = vst.msk [vmem:[%s34688_s25 + $0x30] sm:$0xff] %vm1200_vm0, %v25042_v55 }
 0xedc   : > { %v28829_v46 = vpop.f32.mrf.mxu1 }
 0xedd   : > { %v25006_v4 = vadd.f32 %v28829_v46, %v35182_v54  ;;  %v35202_v46 = vld [vmem:[#allocation39_spill] sm:$0xff]  ;;  %v35203_v54 = vld [vmem:[#allocation49_spill] sm:$0xff] }
 0xede   : > { %v24878_v26 = vpop.f32.mrf.mxu1 }
 0xedf   : > { %v25045_v61 = vadd.f32 %v34679_v8, %v25006_v4  ;;  %v25005_v16 = vadd.f32 %v24878_v26, %v19052_v42  ;;  %v35204_v4 = vld [vmem:[#allocation9_spill] sm:$0xff] }
 0xee0   : > { %v13065_v26 = vadd.f32 %v35204_v4, %v35203_v54 }
 0xee1   : > { %25077 = vst.msk [vmem:[%s34688_s25 + $0x48] sm:$0xff] %vm1200_vm0, %v25045_v61  ;;  %v25044_v47 = vadd.f32 %v34679_v8, %v25005_v16 }
 0xee2   : > { %v19064_v48 = vadd.f32 %v35205_v30, %v13065_v26  ;;  %v35226_v30 = vld [vmem:[#allocation22_spill] sm:$0xff] }
 0xee3   : > { %25076 = vst.msk [vmem:[%s34688_s25 + $0x40] sm:$0xff] %vm1200_vm0, %v25044_v47 }
 0xee4   : > { %v28832_v9 = vpop.f32.mrf.mxu1 }
 0xee5   : > { %v25008_v45 = vadd.f32 %v28832_v9, %v35186_v60  ;;  %v35206_v9 = vld [vmem:[#allocation41_spill] sm:$0xff]  ;;  %v35207_v60 = vld [vmem:[#allocation52_spill] sm:$0xff] }
 0xee6   : > { %v24888_v63 = vpop.f32.mrf.mxu1 }
 0xee7   : > { %v25047_v41 = vadd.f32 %v34679_v8, %v25008_v45  ;;  %v25007_v23 = vadd.f32 %v24888_v63, %v19054_v49  ;;  %v35208_v45 = vld [vmem:[#allocation12_spill] sm:$0xff] }
 0xee8   : > { %v13075_v63 = vadd.f32 %v35208_v45, %v35207_v60 }
 0xee9   : > { %25079 = vst.msk [vmem:[%s34688_s25 + $0x58] sm:$0xff] %vm1200_vm0, %v25047_v41  ;;  %v25046_v22 = vadd.f32 %v34679_v8, %v25007_v23 }
 0xeea   : > { %v19066_v2 = vadd.f32 %v35209_v32, %v13075_v63 }
 0xeeb   : > { %25078 = vst.msk [vmem:[%s34688_s25 + $0x50] sm:$0xff] %vm1200_vm0, %v25046_v22 }
 0xeec   : > { %v28835_v43 = vpop.f32.mrf.mxu1 }
 0xeed   : > { %v25010_v36 = vadd.f32 %v28835_v43, %v35190_v27  ;;  %v35210_v43 = vld [vmem:[#allocation43_spill] sm:$0xff] }
 0xeee   : > { %v24898_v24 = vpop.f32.mrf.mxu1  ;;  %v35211_v27 = vld [vmem:[#allocation55_spill] sm:$0xff] }
 0xeef   : > { %v25049_v31 = vadd.f32 %v34679_v8, %v25010_v36  ;;  %v25009_v19 = vadd.f32 %v24898_v24, %v19056_v0  ;;  %v35212_v36 = vld [vmem:[#allocation50_spill] sm:$0xff] }
 0xef0   : > { %v13085_v24 = vadd.f32 %v35212_v36, %v35211_v27 }
 0xef1   : > { %25081 = vst.msk [vmem:[%s34688_s25 + $0x68] sm:$0xff] %vm1200_vm0, %v25049_v31  ;;  %v25048_v10 = vadd.f32 %v34679_v8, %v25009_v19  ;;  %v28838_v59 = vpop.f32.mrf.mxu1 }
 0xef2   : > { %v25012_v52 = vadd.f32 %v28838_v59, %v35194_v12  ;;  %v19068_v40 = vadd.f32 %v35213_v6, %v13085_v24  ;;  %v35214_v59 = vld [vmem:[#allocation45_spill] sm:$0xff]  ;;  %v35215_v12 = vld [vmem:[#allocation58_spill] sm:$0xff] }
 0xef3   : > { %25080 = vst.msk [vmem:[%s34688_s25 + $0x60] sm:$0xff] %vm1200_vm0, %v25048_v10  ;;  %v24908_v17 = vpop.f32.mrf.mxu1 }
 0xef4   : > { %v25051_v14 = vadd.f32 %v34679_v8, %v25012_v52  ;;  %v25011_v35 = vadd.f32 %v24908_v17, %v19058_v51  ;;  %v35216_v52 = vld [vmem:[#allocation56_spill] sm:$0xff] }
 0xef5   : > { %v28841_v38 = vpop.f32.mrf.mxu1  ;;  %v13095_v17 = vadd.f32 %v35216_v52, %v35215_v12 }
 0xef6   : > { %25083 = vst.msk [vmem:[%s34688_s25 + $0x78] sm:$0xff] %vm1200_vm0, %v25051_v14  ;;  %v25050_v44 = vadd.f32 %v34679_v8, %v25011_v35  ;;  %v25014_v13 = vadd.f32 %v28841_v38, %v35198_v34  ;;  %v35217_v14 = vld [vmem:[#allocation30_spill] sm:$0xff]  ;;  %v35219_v34 = vld [vmem:[#allocation61_spill] sm:$0xff] }
 0xef7   : > { %v24918_v15 = vpop.f32.mrf.mxu1  ;;  %v19070_v35 = vadd.f32 %v35217_v14, %v13095_v17 }
 0xef8   : > { %25082 = vst.msk [vmem:[%s34688_s25 + $0x70] sm:$0xff] %vm1200_vm0, %v25050_v44  ;;  %v25053_v21 = vadd.f32 %v34679_v8, %v25014_v13  ;;  %v25013_v3 = vadd.f32 %v24918_v15, %v19060_v18  ;;  %v35220_v13 = vld [vmem:[#allocation62_spill] sm:$0xff] }
 0xef9   : > { %v28844_v55 = vpop.f32.mrf.mxu1  ;;  %v13105_v15 = vadd.f32 %v35220_v13, %v35219_v34 }
 0xefa   : > { %25085 = vst.msk [vmem:[%s34688_s25 + $0x88] sm:$0xff] %vm1200_vm0, %v25053_v21  ;;  %v25052_v39 = vadd.f32 %v34679_v8, %v25013_v3  ;;  %v25016_v57 = vadd.f32 %v28844_v55, %v35202_v46  ;;  %v35221_v21 = vld [vmem:[#allocation11_spill] sm:$0xff]  ;;  %v35223_v46 = vld [vmem:[#allocation64_spill] sm:$0xff] }
 0xefb   : > { %v24928_v42 = vpop.f32.mrf.mxu1  ;;  %v19072_v3 = vadd.f32 %v35221_v21, %v13105_v15 }
 0xefc   : > { %25084 = vst.msk [vmem:[%s34688_s25 + $0x80] sm:$0xff] %vm1200_vm0, %v25052_v39  ;;  %v25055_v61 = vadd.f32 %v34679_v8, %v25016_v57  ;;  %v25015_v16 = vadd.f32 %v24928_v42, %v19062_v62  ;;  %v35224_v57 = vld [vmem:[#allocation66_spill] sm:$0xff] }
 0xefd   : > { %v28847_v47 = vpop.f32.mrf.mxu1  ;;  %v13115_v42 = vadd.f32 %v35224_v57, %v35223_v46 }
 0xefe   : > { %25087 = vst.msk [vmem:[%s34688_s25 + $0x98] sm:$0xff] %vm1200_vm0, %v25055_v61  ;;  %v25054_v20 = vadd.f32 %v34679_v8, %v25015_v16  ;;  %v25018_v29 = vadd.f32 %v28847_v47, %v35206_v9  ;;  %v35225_v61 = vld [vmem:[#allocation33_spill] sm:$0xff] }
 0xeff   : > { %v24938_v49 = vpop.f32.mrf.mxu1  ;;  %v19074_v16 = vadd.f32 %v35225_v61, %v13115_v42 }
 0xf00   : > { %25086 = vst.msk [vmem:[%s34688_s25 + $0x90] sm:$0xff] %vm1200_vm0, %v25054_v20  ;;  %v25057_v41 = vadd.f32 %v34679_v8, %v25018_v29  ;;  %v25017_v23 = vadd.f32 %v24938_v49, %v19064_v48 }
 0xf01   : > { %v28850_v22 = vpop.f32.mrf.mxu1 }
 0xf02   : > { %25089 = vst.msk [vmem:[%s34688_s25 + $0xa8] sm:$0xff] %vm1200_vm0, %v25057_v41  ;;  %v25056_v50 = vadd.f32 %v34679_v8, %v25017_v23  ;;  %v25020_v11 = vadd.f32 %v28850_v22, %v35210_v43 }
 0xf03   : > { %v24948_v0 = vpop.f32.mrf.mxu1 }
 0xf04   : > { %25088 = vst.msk [vmem:[%s34688_s25 + $0xa0] sm:$0xff] %vm1200_vm0, %v25056_v50  ;;  %v25059_v31 = vadd.f32 %v34679_v8, %v25020_v11  ;;  %v25019_v19 = vadd.f32 %v24948_v0, %v19066_v2 }
 0xf05   : > { %v28853_v58 = vpop.f32.mrf.mxu1 }
 0xf06   : > { %25091 = vst.msk [vmem:[%s34688_s25 + $0xb8] sm:$0xff] %vm1200_vm0, %v25059_v31  ;;  %v25058_v10 = vadd.f32 %v34679_v8, %v25019_v19  ;;  %v25022_v37 = vadd.f32 %v28853_v58, %v35214_v59 }
 0xf07   : > { %v24958_v51 = vpop.f32.mrf.mxu1 }
 0xf08   : > { %25090 = vst.msk [vmem:[%s34688_s25 + $0xb0] sm:$0xff] %vm1200_vm0, %v25058_v10  ;;  %v25061_v53 = vadd.f32 %v34679_v8, %v25022_v37  ;;  %v25021_v5 = vadd.f32 %v24958_v51, %v19068_v40 }
 0xf09   : > { %v28856_v33 = vpop.f32.mrf.mxu1 }
 0xf0a   : > { %25093 = vst.msk [vmem:[%s34688_s25 + $0xc8] sm:$0xff] %vm1200_vm0, %v25061_v53  ;;  %v25060_v38 = vadd.f32 %v34679_v8, %v25021_v5  ;;  %v25024_v18 = vadd.f32 %v28856_v33, %v35218_v7 }
 0xf0b   : > { %v24968_v44 = vpop.f32.mrf.mxu1 }
 0xf0c   : > { %25092 = vst.msk [vmem:[%s34688_s25 + $0xc0] sm:$0xff] %vm1200_vm0, %v25060_v38  ;;  %v25063_v56 = vadd.f32 %v34679_v8, %v25024_v18  ;;  %v25023_v25 = vadd.f32 %v24968_v44, %v19070_v35 }
 0xf0d   : > { %v28859_v28 = vpop.f32.mrf.mxu1 }
 0xf0e   : > { %25095 = vst.msk [vmem:[%s34688_s25 + $0xd8] sm:$0xff] %vm1200_vm0, %v25063_v56  ;;  %v25062_v55 = vadd.f32 %v34679_v8, %v25023_v25  ;;  %v25026_v62 = vadd.f32 %v28859_v28, %v35222_v1 }
 0xf0f   : > { %v24978_v39 = vpop.f32.mrf.mxu1 }
 0xf10   : > { %25094 = vst.msk [vmem:[%s34688_s25 + $0xd0] sm:$0xff] %vm1200_vm0, %v25062_v55  ;;  %v25065_v54 = vadd.f32 %v34679_v8, %v25026_v62  ;;  %v25025_v4 = vadd.f32 %v24978_v39, %v19072_v3 }
 0xf11   : > { %v28862_v26 = vpop.f32.mrf.mxu1 }
 0xf12   : > { %25097 = vst.msk [vmem:[%s34688_s25 + $0xe8] sm:$0xff] %vm1200_vm0, %v25065_v54  ;;  %v25064_v47 = vadd.f32 %v34679_v8, %v25025_v4  ;;  %v25028_v48 = vadd.f32 %v28862_v26, %v35226_v30 }
 0xf13   : > { %v24988_v20 = vpop.f32.mrf.mxu1 }
 0xf14   : > { %25096 = vst.msk [vmem:[%s34688_s25 + $0xe0] sm:$0xff] %vm1200_vm0, %v25064_v47  ;;  %v25067_v9 = vadd.f32 %v34679_v8, %v25028_v48  ;;  %v25027_v29 = vadd.f32 %v24988_v20, %v19074_v16 }
 0xf16   : > { %25099 = vst.msk [vmem:[%s34688_s25 + $0xf8] sm:$0xff] %vm1200_vm0, %v25067_v9  ;;  %v25066_v49 = vadd.f32 %v34679_v8, %v25027_v29 }
 0xf18   : > { %25098 = vst.msk [vmem:[%s34688_s25 + $0xf0] sm:$0xff] %vm1200_vm0, %v25066_v49 }
 0xf19 PF: > { %p16_p9 = scmp.ge.s32.totalorder %s29601_s13, 4   ;;  %s35227_s30 = smov %s29526_s10 }
 0xf1a   : > { %s35228_s10 = smov %s29610_s16  ;;  %s35229_s11 = smov %s29601_s13 }
 0xf1b   :  { %18 = sbr.rel (!%p16_p9) target bundleno = 2 (0x2), region = 150 }

</bundles_post_ra>
